<compile_context>
chip_gen: v7x
topology: tpu7x:2x2x1
jax: 0.10.0
libtpu: 0.0.40
codegen_flags: <defaults>
</compile_context>

<pallas_src>
import jax
import jax.numpy as jnp
from jax import lax
from jax.experimental import pallas as pl
from jax.experimental.pallas import tpu as pltpu


def _conv_upsample_kernel(x_ref, w_ref, b_ref, out_ref):
    """One batch element per grid step.

    x_ref:   (1, C, H, W)   original-resolution input (VMEM)
    w_ref:   (C*C*9,)       conv weights, flat OIHW order (SMEM scalars)
    b_ref:   (C,)           bias (SMEM scalars)
    out_ref: (1, C, Ho, Wo) upsampled + convolved output (VMEM)
    """
    _, C, H, W = x_ref.shape
    _, _, Ho, Wo = out_ref.shape
    u = Ho // H                      # integer nearest-upsample factor
    Hp, Wp = Ho + 2, Wo + 2          # padded extents for the 3x3 "same" conv

    f32 = jnp.float32

    # Constant 0/1 expansion matrices: rowE @ plane @ colE == zero-padded nearest
    # upsample of plane. rowE[i, k] = 1 iff padded row i is a copy of original row k,
    # i.e. i in [u*k+1, u*k+u]; rows/cols 0 and Ho+1 / Wo+1 stay zero (conv padding).
    ri = lax.broadcasted_iota(jnp.int32, (Hp, H), 0)
    rk = lax.broadcasted_iota(jnp.int32, (Hp, H), 1)
    rowE = ((ri >= u * rk + 1) & (ri <= u * rk + u)).astype(f32)      # (Hp, H)

    ck = lax.broadcasted_iota(jnp.int32, (W, Wp), 0)
    cj = lax.broadcasted_iota(jnp.int32, (W, Wp), 1)
    colE = ((cj >= u * ck + 1) & (cj <= u * ck + u)).astype(f32)      # (W, Wp)

    # Per-output-channel accumulators (f32, vreg-resident at these block sizes).
    accs = [jnp.zeros((Ho, Wo), f32) for _ in range(C)]

    for ci in range(C):
        plane = x_ref[0, ci].astype(f32)                              # (H, W)
        # Fused upsample + pad, entirely in VMEM (uses the otherwise idle MXU).
        up = jnp.dot(rowE,
                     jnp.dot(plane, colE, preferred_element_type=f32),
                     preferred_element_type=f32)                      # (Hp, Wp)
        for di in range(3):
            for dj in range(3):
                patch = up[di:di + Ho, dj:dj + Wo]    # static slice, no reshape
                for co in range(C):
                    w_s = w_ref[(co * C + ci) * 9 + di * 3 + dj]      # SMEM scalar
                    accs[co] = accs[co] + w_s * patch                 # VPU FMA

    for co in range(C):
        out_ref[0, co] = (accs[co] + b_ref[co]).astype(out_ref.dtype)


def conv_upsample(x, weight, bias, *, up_factor=2, use_conv=True,
                  interpolate_mode="nearest"):
    """x: (N, C, H, W).  weight: (C, C, 3, 3) (PyTorch OIHW).  bias: (C,)."""
    # TODO(synk): only 'nearest' interpolation with an integer up_factor (the module
    # default) is implemented; other F.interpolate modes are not translated.
    assert interpolate_mode == "nearest"
    up_factor = int(up_factor)
    N, C, H, W = x.shape
    Ho, Wo = H * up_factor, W * up_factor

    if not use_conv:
        # No conv: plain nearest upsample, pure data movement -> leave to XLA.
        return jnp.repeat(jnp.repeat(x, up_factor, axis=2), up_factor, axis=3)

    w_flat = weight.astype(jnp.float32).reshape(-1)   # (C*C*9,), OIHW order
    b_flat = bias.astype(jnp.float32)                 # (C,)

    out = pl.pallas_call(
        _conv_upsample_kernel,
        out_shape=jax.ShapeDtypeStruct((N, C, Ho, Wo), x.dtype),
        grid_spec=pltpu.PrefetchScalarGridSpec(
            num_scalar_prefetch=0,
            grid=(N,),
            in_specs=[
                pl.BlockSpec((1, C, H, W), lambda n: (n, 0, 0, 0)),
                pl.BlockSpec(memory_space=pltpu.MemorySpace.SMEM),
                pl.BlockSpec(memory_space=pltpu.MemorySpace.SMEM),
            ],
            out_specs=pl.BlockSpec((1, C, Ho, Wo), lambda n: (n, 0, 0, 0)),
        ),
        compiler_params=pltpu.CompilerParams(
            dimension_semantics=("parallel",)),
    )(x, w_flat, b_flat)
    return out


def _reference(x, weight, bias, up_factor):
    x_up = jnp.repeat(jnp.repeat(x, up_factor, axis=2), up_factor, axis=3)
    out = lax.conv_general_dilated(
        x_up, weight, window_strides=(1, 1), padding="SAME",
        dimension_numbers=("NCHW", "OIHW", "NCHW"))
    return out + bias[None, :, None, None]


if __name__ == "__main__":
    # Module config: channels=4, up_factor=2, use_conv=True, mode='nearest'
    N, C, H, W = 2, 4, 16, 16
    up_factor = 2

    key = jax.random.PRNGKey(0)
    kx, kw, kb = jax.random.split(key, 3)

    x = jax.random.normal(kx, (N, C, H, W), dtype=jnp.float32)

    # Deterministic Conv2d(C, C, 3, padding=1) params (PyTorch-style kaiming bound).
    fan_in = C * 3 * 3
    bound = 1.0 / float(fan_in) ** 0.5
    weight = jax.random.uniform(kw, (C, C, 3, 3), jnp.float32, -bound, bound)
    bias = jax.random.uniform(kb, (C,), jnp.float32, -bound, bound)

    out = conv_upsample(x, weight, bias, up_factor=up_factor, use_conv=True)
    out = jax.block_until_ready(out)

    ref = _reference(x, weight, bias, up_factor)
    assert out.shape == (N, C, H * up_factor, W * up_factor)
    assert jnp.allclose(out, ref, atol=1e-4, rtol=1e-4), "mismatch vs reference"

    print("KERNEL_OK")
</pallas_src>

<mosaic_0001>
module attributes {stable_mosaic.version = 11 : i64} {
  func.func @_conv_upsample_kernel(%arg0: i32, %arg1: memref<1x4x16x16xf32, #tpu.memory_space<vmem>>, %arg2: memref<144xf32, #tpu.memory_space<smem>>, %arg3: memref<4xf32, #tpu.memory_space<smem>>, %arg4: memref<1x4x32x32xf32, #tpu.memory_space<vmem>>) attributes {dimension_semantics = [#tpu.dimension_semantics<parallel>], iteration_bounds = array<i64: 2>, scalar_prefetch = 0 : i64, scratch_operands = 0 : i64, tpu.core_type = #tpu.core_type<tc>, window_params = [{transform_indices = @transform_0, window_bounds = array<i64: 1, 4, 16, 16>}, {transform_indices = @transform_1, window_bounds = array<i64: 144>}, {transform_indices = @transform_2, window_bounds = array<i64: 4>}, {transform_indices = @transform_3, window_bounds = array<i64: 1, 4, 32, 32>}]} {
    %0 = tpu.iota {dimensions = array<i32: 0>} : vector<34x16xi32>
    %1 = tpu.iota {dimensions = array<i32: 1>} : vector<34x16xi32>
    %c2_i32 = arith.constant 2 : i32
    %2 = vector.broadcast %c2_i32 : i32 to vector<34x16xi32>
    %3 = arith.muli %2, %1 : vector<34x16xi32>
    %c1_i32 = arith.constant 1 : i32
    %4 = vector.broadcast %c1_i32 : i32 to vector<34x16xi32>
    %5 = arith.addi %3, %4 : vector<34x16xi32>
    %6 = arith.cmpi sge, %0, %5 : vector<34x16xi32>
    %c2_i32_0 = arith.constant 2 : i32
    %7 = vector.broadcast %c2_i32_0 : i32 to vector<34x16xi32>
    %8 = arith.muli %7, %1 : vector<34x16xi32>
    %c2_i32_1 = arith.constant 2 : i32
    %9 = vector.broadcast %c2_i32_1 : i32 to vector<34x16xi32>
    %10 = arith.addi %8, %9 : vector<34x16xi32>
    %11 = arith.cmpi sle, %0, %10 : vector<34x16xi32>
    %12 = arith.andi %6, %11 : vector<34x16xi1>
    %13 = arith.extui %12 : vector<34x16xi1> to vector<34x16xi32>
    %14 = arith.sitofp %13 : vector<34x16xi32> to vector<34x16xf32>
    %15 = tpu.iota {dimensions = array<i32: 0>} : vector<16x34xi32>
    %16 = tpu.iota {dimensions = array<i32: 1>} : vector<16x34xi32>
    %c2_i32_2 = arith.constant 2 : i32
    %17 = vector.broadcast %c2_i32_2 : i32 to vector<16x34xi32>
    %18 = arith.muli %17, %15 : vector<16x34xi32>
    %c1_i32_3 = arith.constant 1 : i32
    %19 = vector.broadcast %c1_i32_3 : i32 to vector<16x34xi32>
    %20 = arith.addi %18, %19 : vector<16x34xi32>
    %21 = arith.cmpi sge, %16, %20 : vector<16x34xi32>
    %c2_i32_4 = arith.constant 2 : i32
    %22 = vector.broadcast %c2_i32_4 : i32 to vector<16x34xi32>
    %23 = arith.muli %22, %15 : vector<16x34xi32>
    %c2_i32_5 = arith.constant 2 : i32
    %24 = vector.broadcast %c2_i32_5 : i32 to vector<16x34xi32>
    %25 = arith.addi %23, %24 : vector<16x34xi32>
    %26 = arith.cmpi sle, %16, %25 : vector<16x34xi32>
    %27 = arith.andi %21, %26 : vector<16x34xi1>
    %28 = arith.extui %27 : vector<16x34xi1> to vector<16x34xi32>
    %29 = arith.sitofp %28 : vector<16x34xi32> to vector<16x34xf32>
    %cst = arith.constant 0.000000e+00 : f32
    %30 = vector.broadcast %cst : f32 to vector<32x32xf32>
    %cst_6 = arith.constant 0.000000e+00 : f32
    %31 = vector.broadcast %cst_6 : f32 to vector<32x32xf32>
    %cst_7 = arith.constant 0.000000e+00 : f32
    %32 = vector.broadcast %cst_7 : f32 to vector<32x32xf32>
    %cst_8 = arith.constant 0.000000e+00 : f32
    %33 = vector.broadcast %cst_8 : f32 to vector<32x32xf32>
    %c0 = arith.constant 0 : index
    %c0_9 = arith.constant 0 : index
    %c0_10 = arith.constant 0 : index
    %c0_11 = arith.constant 0 : index
    %34 = vector.load %arg1[%c0, %c0_9, %c0_10, %c0_11] : memref<1x4x16x16xf32, #tpu.memory_space<vmem>>, vector<1x1x16x16xf32>
    %35 = vector.shape_cast %34 : vector<1x1x16x16xf32> to vector<16x16xf32>
    %cst_12 = arith.constant dense<0.000000e+00> : vector<16x34xf32>
    %36 = tpu.matmul %35, %29, %cst_12 {dimension_numbers = #tpu.dot_dimension_numbers<[1], [0], [0], [1], [0, 0, 1, 1], [], []>} : vector<16x16xf32>, vector<16x34xf32>, vector<16x34xf32> -> vector<16x34xf32>
    %cst_13 = arith.constant dense<0.000000e+00> : vector<34x34xf32>
    %37 = tpu.matmul %14, %36, %cst_13 {dimension_numbers = #tpu.dot_dimension_numbers<[1], [0], [0], [1], [0, 0, 1, 1], [], []>} : vector<34x16xf32>, vector<16x34xf32>, vector<34x34xf32> -> vector<34x34xf32>
    %38 = vector.extract_strided_slice %37 {offsets = [0, 0], sizes = [32, 32], strides = [1, 1]} : vector<34x34xf32> to vector<32x32xf32>
    %c0_14 = arith.constant 0 : index
    %39 = memref.load %arg2[%c0_14] : memref<144xf32, #tpu.memory_space<smem>>
    %40 = vector.broadcast %39 : f32 to vector<32x32xf32>
    %41 = arith.mulf %40, %38 : vector<32x32xf32>
    %42 = arith.addf %30, %41 : vector<32x32xf32>
    %c36 = arith.constant 36 : index
    %43 = memref.load %arg2[%c36] : memref<144xf32, #tpu.memory_space<smem>>
    %44 = vector.broadcast %43 : f32 to vector<32x32xf32>
    %45 = arith.mulf %44, %38 : vector<32x32xf32>
    %46 = arith.addf %31, %45 : vector<32x32xf32>
    %c72 = arith.constant 72 : index
    %47 = memref.load %arg2[%c72] : memref<144xf32, #tpu.memory_space<smem>>
    %48 = vector.broadcast %47 : f32 to vector<32x32xf32>
    %49 = arith.mulf %48, %38 : vector<32x32xf32>
    %50 = arith.addf %32, %49 : vector<32x32xf32>
    %c108 = arith.constant 108 : index
    %51 = memref.load %arg2[%c108] : memref<144xf32, #tpu.memory_space<smem>>
    %52 = vector.broadcast %51 : f32 to vector<32x32xf32>
    %53 = arith.mulf %52, %38 : vector<32x32xf32>
    %54 = arith.addf %33, %53 : vector<32x32xf32>
    %55 = vector.extract_strided_slice %37 {offsets = [0, 1], sizes = [32, 32], strides = [1, 1]} : vector<34x34xf32> to vector<32x32xf32>
    %c1 = arith.constant 1 : index
    %56 = memref.load %arg2[%c1] : memref<144xf32, #tpu.memory_space<smem>>
    %57 = vector.broadcast %56 : f32 to vector<32x32xf32>
    %58 = arith.mulf %57, %55 : vector<32x32xf32>
    %59 = arith.addf %42, %58 : vector<32x32xf32>
    %c37 = arith.constant 37 : index
    %60 = memref.load %arg2[%c37] : memref<144xf32, #tpu.memory_space<smem>>
    %61 = vector.broadcast %60 : f32 to vector<32x32xf32>
    %62 = arith.mulf %61, %55 : vector<32x32xf32>
    %63 = arith.addf %46, %62 : vector<32x32xf32>
    %c73 = arith.constant 73 : index
    %64 = memref.load %arg2[%c73] : memref<144xf32, #tpu.memory_space<smem>>
    %65 = vector.broadcast %64 : f32 to vector<32x32xf32>
    %66 = arith.mulf %65, %55 : vector<32x32xf32>
    %67 = arith.addf %50, %66 : vector<32x32xf32>
    %c109 = arith.constant 109 : index
    %68 = memref.load %arg2[%c109] : memref<144xf32, #tpu.memory_space<smem>>
    %69 = vector.broadcast %68 : f32 to vector<32x32xf32>
    %70 = arith.mulf %69, %55 : vector<32x32xf32>
    %71 = arith.addf %54, %70 : vector<32x32xf32>
    %72 = vector.extract_strided_slice %37 {offsets = [0, 2], sizes = [32, 32], strides = [1, 1]} : vector<34x34xf32> to vector<32x32xf32>
    %c2 = arith.constant 2 : index
    %73 = memref.load %arg2[%c2] : memref<144xf32, #tpu.memory_space<smem>>
    %74 = vector.broadcast %73 : f32 to vector<32x32xf32>
    %75 = arith.mulf %74, %72 : vector<32x32xf32>
    %76 = arith.addf %59, %75 : vector<32x32xf32>
    %c38 = arith.constant 38 : index
    %77 = memref.load %arg2[%c38] : memref<144xf32, #tpu.memory_space<smem>>
    %78 = vector.broadcast %77 : f32 to vector<32x32xf32>
    %79 = arith.mulf %78, %72 : vector<32x32xf32>
    %80 = arith.addf %63, %79 : vector<32x32xf32>
    %c74 = arith.constant 74 : index
    %81 = memref.load %arg2[%c74] : memref<144xf32, #tpu.memory_space<smem>>
    %82 = vector.broadcast %81 : f32 to vector<32x32xf32>
    %83 = arith.mulf %82, %72 : vector<32x32xf32>
    %84 = arith.addf %67, %83 : vector<32x32xf32>
    %c110 = arith.constant 110 : index
    %85 = memref.load %arg2[%c110] : memref<144xf32, #tpu.memory_space<smem>>
    %86 = vector.broadcast %85 : f32 to vector<32x32xf32>
    %87 = arith.mulf %86, %72 : vector<32x32xf32>
    %88 = arith.addf %71, %87 : vector<32x32xf32>
    %89 = vector.extract_strided_slice %37 {offsets = [1, 0], sizes = [32, 32], strides = [1, 1]} : vector<34x34xf32> to vector<32x32xf32>
    %c3 = arith.constant 3 : index
    %90 = memref.load %arg2[%c3] : memref<144xf32, #tpu.memory_space<smem>>
    %91 = vector.broadcast %90 : f32 to vector<32x32xf32>
    %92 = arith.mulf %91, %89 : vector<32x32xf32>
    %93 = arith.addf %76, %92 : vector<32x32xf32>
    %c39 = arith.constant 39 : index
    %94 = memref.load %arg2[%c39] : memref<144xf32, #tpu.memory_space<smem>>
    %95 = vector.broadcast %94 : f32 to vector<32x32xf32>
    %96 = arith.mulf %95, %89 : vector<32x32xf32>
    %97 = arith.addf %80, %96 : vector<32x32xf32>
    %c75 = arith.constant 75 : index
    %98 = memref.load %arg2[%c75] : memref<144xf32, #tpu.memory_space<smem>>
    %99 = vector.broadcast %98 : f32 to vector<32x32xf32>
    %100 = arith.mulf %99, %89 : vector<32x32xf32>
    %101 = arith.addf %84, %100 : vector<32x32xf32>
    %c111 = arith.constant 111 : index
    %102 = memref.load %arg2[%c111] : memref<144xf32, #tpu.memory_space<smem>>
    %103 = vector.broadcast %102 : f32 to vector<32x32xf32>
    %104 = arith.mulf %103, %89 : vector<32x32xf32>
    %105 = arith.addf %88, %104 : vector<32x32xf32>
    %106 = vector.extract_strided_slice %37 {offsets = [1, 1], sizes = [32, 32], strides = [1, 1]} : vector<34x34xf32> to vector<32x32xf32>
    %c4 = arith.constant 4 : index
    %107 = memref.load %arg2[%c4] : memref<144xf32, #tpu.memory_space<smem>>
    %108 = vector.broadcast %107 : f32 to vector<32x32xf32>
    %109 = arith.mulf %108, %106 : vector<32x32xf32>
    %110 = arith.addf %93, %109 : vector<32x32xf32>
    %c40 = arith.constant 40 : index
    %111 = memref.load %arg2[%c40] : memref<144xf32, #tpu.memory_space<smem>>
    %112 = vector.broadcast %111 : f32 to vector<32x32xf32>
    %113 = arith.mulf %112, %106 : vector<32x32xf32>
    %114 = arith.addf %97, %113 : vector<32x32xf32>
    %c76 = arith.constant 76 : index
    %115 = memref.load %arg2[%c76] : memref<144xf32, #tpu.memory_space<smem>>
    %116 = vector.broadcast %115 : f32 to vector<32x32xf32>
    %117 = arith.mulf %116, %106 : vector<32x32xf32>
    %118 = arith.addf %101, %117 : vector<32x32xf32>
    %c112 = arith.constant 112 : index
    %119 = memref.load %arg2[%c112] : memref<144xf32, #tpu.memory_space<smem>>
    %120 = vector.broadcast %119 : f32 to vector<32x32xf32>
    %121 = arith.mulf %120, %106 : vector<32x32xf32>
    %122 = arith.addf %105, %121 : vector<32x32xf32>
    %123 = vector.extract_strided_slice %37 {offsets = [1, 2], sizes = [32, 32], strides = [1, 1]} : vector<34x34xf32> to vector<32x32xf32>
    %c5 = arith.constant 5 : index
    %124 = memref.load %arg2[%c5] : memref<144xf32, #tpu.memory_space<smem>>
    %125 = vector.broadcast %124 : f32 to vector<32x32xf32>
    %126 = arith.mulf %125, %123 : vector<32x32xf32>
    %127 = arith.addf %110, %126 : vector<32x32xf32>
    %c41 = arith.constant 41 : index
    %128 = memref.load %arg2[%c41] : memref<144xf32, #tpu.memory_space<smem>>
    %129 = vector.broadcast %128 : f32 to vector<32x32xf32>
    %130 = arith.mulf %129, %123 : vector<32x32xf32>
    %131 = arith.addf %114, %130 : vector<32x32xf32>
    %c77 = arith.constant 77 : index
    %132 = memref.load %arg2[%c77] : memref<144xf32, #tpu.memory_space<smem>>
    %133 = vector.broadcast %132 : f32 to vector<32x32xf32>
    %134 = arith.mulf %133, %123 : vector<32x32xf32>
    %135 = arith.addf %118, %134 : vector<32x32xf32>
    %c113 = arith.constant 113 : index
    %136 = memref.load %arg2[%c113] : memref<144xf32, #tpu.memory_space<smem>>
    %137 = vector.broadcast %136 : f32 to vector<32x32xf32>
    %138 = arith.mulf %137, %123 : vector<32x32xf32>
    %139 = arith.addf %122, %138 : vector<32x32xf32>
    %140 = vector.extract_strided_slice %37 {offsets = [2, 0], sizes = [32, 32], strides = [1, 1]} : vector<34x34xf32> to vector<32x32xf32>
    %c6 = arith.constant 6 : index
    %141 = memref.load %arg2[%c6] : memref<144xf32, #tpu.memory_space<smem>>
    %142 = vector.broadcast %141 : f32 to vector<32x32xf32>
    %143 = arith.mulf %142, %140 : vector<32x32xf32>
    %144 = arith.addf %127, %143 : vector<32x32xf32>
    %c42 = arith.constant 42 : index
    %145 = memref.load %arg2[%c42] : memref<144xf32, #tpu.memory_space<smem>>
    %146 = vector.broadcast %145 : f32 to vector<32x32xf32>
    %147 = arith.mulf %146, %140 : vector<32x32xf32>
    %148 = arith.addf %131, %147 : vector<32x32xf32>
    %c78 = arith.constant 78 : index
    %149 = memref.load %arg2[%c78] : memref<144xf32, #tpu.memory_space<smem>>
    %150 = vector.broadcast %149 : f32 to vector<32x32xf32>
    %151 = arith.mulf %150, %140 : vector<32x32xf32>
    %152 = arith.addf %135, %151 : vector<32x32xf32>
    %c114 = arith.constant 114 : index
    %153 = memref.load %arg2[%c114] : memref<144xf32, #tpu.memory_space<smem>>
    %154 = vector.broadcast %153 : f32 to vector<32x32xf32>
    %155 = arith.mulf %154, %140 : vector<32x32xf32>
    %156 = arith.addf %139, %155 : vector<32x32xf32>
    %157 = vector.extract_strided_slice %37 {offsets = [2, 1], sizes = [32, 32], strides = [1, 1]} : vector<34x34xf32> to vector<32x32xf32>
    %c7 = arith.constant 7 : index
    %158 = memref.load %arg2[%c7] : memref<144xf32, #tpu.memory_space<smem>>
    %159 = vector.broadcast %158 : f32 to vector<32x32xf32>
    %160 = arith.mulf %159, %157 : vector<32x32xf32>
    %161 = arith.addf %144, %160 : vector<32x32xf32>
    %c43 = arith.constant 43 : index
    %162 = memref.load %arg2[%c43] : memref<144xf32, #tpu.memory_space<smem>>
    %163 = vector.broadcast %162 : f32 to vector<32x32xf32>
    %164 = arith.mulf %163, %157 : vector<32x32xf32>
    %165 = arith.addf %148, %164 : vector<32x32xf32>
    %c79 = arith.constant 79 : index
    %166 = memref.load %arg2[%c79] : memref<144xf32, #tpu.memory_space<smem>>
    %167 = vector.broadcast %166 : f32 to vector<32x32xf32>
    %168 = arith.mulf %167, %157 : vector<32x32xf32>
    %169 = arith.addf %152, %168 : vector<32x32xf32>
    %c115 = arith.constant 115 : index
    %170 = memref.load %arg2[%c115] : memref<144xf32, #tpu.memory_space<smem>>
    %171 = vector.broadcast %170 : f32 to vector<32x32xf32>
    %172 = arith.mulf %171, %157 : vector<32x32xf32>
    %173 = arith.addf %156, %172 : vector<32x32xf32>
    %174 = vector.extract_strided_slice %37 {offsets = [2, 2], sizes = [32, 32], strides = [1, 1]} : vector<34x34xf32> to vector<32x32xf32>
    %c8 = arith.constant 8 : index
    %175 = memref.load %arg2[%c8] : memref<144xf32, #tpu.memory_space<smem>>
    %176 = vector.broadcast %175 : f32 to vector<32x32xf32>
    %177 = arith.mulf %176, %174 : vector<32x32xf32>
    %178 = arith.addf %161, %177 : vector<32x32xf32>
    %c44 = arith.constant 44 : index
    %179 = memref.load %arg2[%c44] : memref<144xf32, #tpu.memory_space<smem>>
    %180 = vector.broadcast %179 : f32 to vector<32x32xf32>
    %181 = arith.mulf %180, %174 : vector<32x32xf32>
    %182 = arith.addf %165, %181 : vector<32x32xf32>
    %c80 = arith.constant 80 : index
    %183 = memref.load %arg2[%c80] : memref<144xf32, #tpu.memory_space<smem>>
    %184 = vector.broadcast %183 : f32 to vector<32x32xf32>
    %185 = arith.mulf %184, %174 : vector<32x32xf32>
    %186 = arith.addf %169, %185 : vector<32x32xf32>
    %c116 = arith.constant 116 : index
    %187 = memref.load %arg2[%c116] : memref<144xf32, #tpu.memory_space<smem>>
    %188 = vector.broadcast %187 : f32 to vector<32x32xf32>
    %189 = arith.mulf %188, %174 : vector<32x32xf32>
    %190 = arith.addf %173, %189 : vector<32x32xf32>
    %c0_15 = arith.constant 0 : index
    %c1_16 = arith.constant 1 : index
    %c0_17 = arith.constant 0 : index
    %c0_18 = arith.constant 0 : index
    %191 = vector.load %arg1[%c0_15, %c1_16, %c0_17, %c0_18] : memref<1x4x16x16xf32, #tpu.memory_space<vmem>>, vector<1x1x16x16xf32>
    %192 = vector.shape_cast %191 : vector<1x1x16x16xf32> to vector<16x16xf32>
    %cst_19 = arith.constant dense<0.000000e+00> : vector<16x34xf32>
    %193 = tpu.matmul %192, %29, %cst_19 {dimension_numbers = #tpu.dot_dimension_numbers<[1], [0], [0], [1], [0, 0, 1, 1], [], []>} : vector<16x16xf32>, vector<16x34xf32>, vector<16x34xf32> -> vector<16x34xf32>
    %cst_20 = arith.constant dense<0.000000e+00> : vector<34x34xf32>
    %194 = tpu.matmul %14, %193, %cst_20 {dimension_numbers = #tpu.dot_dimension_numbers<[1], [0], [0], [1], [0, 0, 1, 1], [], []>} : vector<34x16xf32>, vector<16x34xf32>, vector<34x34xf32> -> vector<34x34xf32>
    %195 = vector.extract_strided_slice %194 {offsets = [0, 0], sizes = [32, 32], strides = [1, 1]} : vector<34x34xf32> to vector<32x32xf32>
    %c9 = arith.constant 9 : index
    %196 = memref.load %arg2[%c9] : memref<144xf32, #tpu.memory_space<smem>>
    %197 = vector.broadcast %196 : f32 to vector<32x32xf32>
    %198 = arith.mulf %197, %195 : vector<32x32xf32>
    %199 = arith.addf %178, %198 : vector<32x32xf32>
    %c45 = arith.constant 45 : index
    %200 = memref.load %arg2[%c45] : memref<144xf32, #tpu.memory_space<smem>>
    %201 = vector.broadcast %200 : f32 to vector<32x32xf32>
    %202 = arith.mulf %201, %195 : vector<32x32xf32>
    %203 = arith.addf %182, %202 : vector<32x32xf32>
    %c81 = arith.constant 81 : index
    %204 = memref.load %arg2[%c81] : memref<144xf32, #tpu.memory_space<smem>>
    %205 = vector.broadcast %204 : f32 to vector<32x32xf32>
    %206 = arith.mulf %205, %195 : vector<32x32xf32>
    %207 = arith.addf %186, %206 : vector<32x32xf32>
    %c117 = arith.constant 117 : index
    %208 = memref.load %arg2[%c117] : memref<144xf32, #tpu.memory_space<smem>>
    %209 = vector.broadcast %208 : f32 to vector<32x32xf32>
    %210 = arith.mulf %209, %195 : vector<32x32xf32>
    %211 = arith.addf %190, %210 : vector<32x32xf32>
    %212 = vector.extract_strided_slice %194 {offsets = [0, 1], sizes = [32, 32], strides = [1, 1]} : vector<34x34xf32> to vector<32x32xf32>
    %c10 = arith.constant 10 : index
    %213 = memref.load %arg2[%c10] : memref<144xf32, #tpu.memory_space<smem>>
    %214 = vector.broadcast %213 : f32 to vector<32x32xf32>
    %215 = arith.mulf %214, %212 : vector<32x32xf32>
    %216 = arith.addf %199, %215 : vector<32x32xf32>
    %c46 = arith.constant 46 : index
    %217 = memref.load %arg2[%c46] : memref<144xf32, #tpu.memory_space<smem>>
    %218 = vector.broadcast %217 : f32 to vector<32x32xf32>
    %219 = arith.mulf %218, %212 : vector<32x32xf32>
    %220 = arith.addf %203, %219 : vector<32x32xf32>
    %c82 = arith.constant 82 : index
    %221 = memref.load %arg2[%c82] : memref<144xf32, #tpu.memory_space<smem>>
    %222 = vector.broadcast %221 : f32 to vector<32x32xf32>
    %223 = arith.mulf %222, %212 : vector<32x32xf32>
    %224 = arith.addf %207, %223 : vector<32x32xf32>
    %c118 = arith.constant 118 : index
    %225 = memref.load %arg2[%c118] : memref<144xf32, #tpu.memory_space<smem>>
    %226 = vector.broadcast %225 : f32 to vector<32x32xf32>
    %227 = arith.mulf %226, %212 : vector<32x32xf32>
    %228 = arith.addf %211, %227 : vector<32x32xf32>
    %229 = vector.extract_strided_slice %194 {offsets = [0, 2], sizes = [32, 32], strides = [1, 1]} : vector<34x34xf32> to vector<32x32xf32>
    %c11 = arith.constant 11 : index
    %230 = memref.load %arg2[%c11] : memref<144xf32, #tpu.memory_space<smem>>
    %231 = vector.broadcast %230 : f32 to vector<32x32xf32>
    %232 = arith.mulf %231, %229 : vector<32x32xf32>
    %233 = arith.addf %216, %232 : vector<32x32xf32>
    %c47 = arith.constant 47 : index
    %234 = memref.load %arg2[%c47] : memref<144xf32, #tpu.memory_space<smem>>
    %235 = vector.broadcast %234 : f32 to vector<32x32xf32>
    %236 = arith.mulf %235, %229 : vector<32x32xf32>
    %237 = arith.addf %220, %236 : vector<32x32xf32>
    %c83 = arith.constant 83 : index
    %238 = memref.load %arg2[%c83] : memref<144xf32, #tpu.memory_space<smem>>
    %239 = vector.broadcast %238 : f32 to vector<32x32xf32>
    %240 = arith.mulf %239, %229 : vector<32x32xf32>
    %241 = arith.addf %224, %240 : vector<32x32xf32>
    %c119 = arith.constant 119 : index
    %242 = memref.load %arg2[%c119] : memref<144xf32, #tpu.memory_space<smem>>
    %243 = vector.broadcast %242 : f32 to vector<32x32xf32>
    %244 = arith.mulf %243, %229 : vector<32x32xf32>
    %245 = arith.addf %228, %244 : vector<32x32xf32>
    %246 = vector.extract_strided_slice %194 {offsets = [1, 0], sizes = [32, 32], strides = [1, 1]} : vector<34x34xf32> to vector<32x32xf32>
    %c12 = arith.constant 12 : index
    %247 = memref.load %arg2[%c12] : memref<144xf32, #tpu.memory_space<smem>>
    %248 = vector.broadcast %247 : f32 to vector<32x32xf32>
    %249 = arith.mulf %248, %246 : vector<32x32xf32>
    %250 = arith.addf %233, %249 : vector<32x32xf32>
    %c48 = arith.constant 48 : index
    %251 = memref.load %arg2[%c48] : memref<144xf32, #tpu.memory_space<smem>>
    %252 = vector.broadcast %251 : f32 to vector<32x32xf32>
    %253 = arith.mulf %252, %246 : vector<32x32xf32>
    %254 = arith.addf %237, %253 : vector<32x32xf32>
    %c84 = arith.constant 84 : index
    %255 = memref.load %arg2[%c84] : memref<144xf32, #tpu.memory_space<smem>>
    %256 = vector.broadcast %255 : f32 to vector<32x32xf32>
    %257 = arith.mulf %256, %246 : vector<32x32xf32>
    %258 = arith.addf %241, %257 : vector<32x32xf32>
    %c120 = arith.constant 120 : index
    %259 = memref.load %arg2[%c120] : memref<144xf32, #tpu.memory_space<smem>>
    %260 = vector.broadcast %259 : f32 to vector<32x32xf32>
    %261 = arith.mulf %260, %246 : vector<32x32xf32>
    %262 = arith.addf %245, %261 : vector<32x32xf32>
    %263 = vector.extract_strided_slice %194 {offsets = [1, 1], sizes = [32, 32], strides = [1, 1]} : vector<34x34xf32> to vector<32x32xf32>
    %c13 = arith.constant 13 : index
    %264 = memref.load %arg2[%c13] : memref<144xf32, #tpu.memory_space<smem>>
    %265 = vector.broadcast %264 : f32 to vector<32x32xf32>
    %266 = arith.mulf %265, %263 : vector<32x32xf32>
    %267 = arith.addf %250, %266 : vector<32x32xf32>
    %c49 = arith.constant 49 : index
    %268 = memref.load %arg2[%c49] : memref<144xf32, #tpu.memory_space<smem>>
    %269 = vector.broadcast %268 : f32 to vector<32x32xf32>
    %270 = arith.mulf %269, %263 : vector<32x32xf32>
    %271 = arith.addf %254, %270 : vector<32x32xf32>
    %c85 = arith.constant 85 : index
    %272 = memref.load %arg2[%c85] : memref<144xf32, #tpu.memory_space<smem>>
    %273 = vector.broadcast %272 : f32 to vector<32x32xf32>
    %274 = arith.mulf %273, %263 : vector<32x32xf32>
    %275 = arith.addf %258, %274 : vector<32x32xf32>
    %c121 = arith.constant 121 : index
    %276 = memref.load %arg2[%c121] : memref<144xf32, #tpu.memory_space<smem>>
    %277 = vector.broadcast %276 : f32 to vector<32x32xf32>
    %278 = arith.mulf %277, %263 : vector<32x32xf32>
    %279 = arith.addf %262, %278 : vector<32x32xf32>
    %280 = vector.extract_strided_slice %194 {offsets = [1, 2], sizes = [32, 32], strides = [1, 1]} : vector<34x34xf32> to vector<32x32xf32>
    %c14 = arith.constant 14 : index
    %281 = memref.load %arg2[%c14] : memref<144xf32, #tpu.memory_space<smem>>
    %282 = vector.broadcast %281 : f32 to vector<32x32xf32>
    %283 = arith.mulf %282, %280 : vector<32x32xf32>
    %284 = arith.addf %267, %283 : vector<32x32xf32>
    %c50 = arith.constant 50 : index
    %285 = memref.load %arg2[%c50] : memref<144xf32, #tpu.memory_space<smem>>
    %286 = vector.broadcast %285 : f32 to vector<32x32xf32>
    %287 = arith.mulf %286, %280 : vector<32x32xf32>
    %288 = arith.addf %271, %287 : vector<32x32xf32>
    %c86 = arith.constant 86 : index
    %289 = memref.load %arg2[%c86] : memref<144xf32, #tpu.memory_space<smem>>
    %290 = vector.broadcast %289 : f32 to vector<32x32xf32>
    %291 = arith.mulf %290, %280 : vector<32x32xf32>
    %292 = arith.addf %275, %291 : vector<32x32xf32>
    %c122 = arith.constant 122 : index
    %293 = memref.load %arg2[%c122] : memref<144xf32, #tpu.memory_space<smem>>
    %294 = vector.broadcast %293 : f32 to vector<32x32xf32>
    %295 = arith.mulf %294, %280 : vector<32x32xf32>
    %296 = arith.addf %279, %295 : vector<32x32xf32>
    %297 = vector.extract_strided_slice %194 {offsets = [2, 0], sizes = [32, 32], strides = [1, 1]} : vector<34x34xf32> to vector<32x32xf32>
    %c15 = arith.constant 15 : index
    %298 = memref.load %arg2[%c15] : memref<144xf32, #tpu.memory_space<smem>>
    %299 = vector.broadcast %298 : f32 to vector<32x32xf32>
    %300 = arith.mulf %299, %297 : vector<32x32xf32>
    %301 = arith.addf %284, %300 : vector<32x32xf32>
    %c51 = arith.constant 51 : index
    %302 = memref.load %arg2[%c51] : memref<144xf32, #tpu.memory_space<smem>>
    %303 = vector.broadcast %302 : f32 to vector<32x32xf32>
    %304 = arith.mulf %303, %297 : vector<32x32xf32>
    %305 = arith.addf %288, %304 : vector<32x32xf32>
    %c87 = arith.constant 87 : index
    %306 = memref.load %arg2[%c87] : memref<144xf32, #tpu.memory_space<smem>>
    %307 = vector.broadcast %306 : f32 to vector<32x32xf32>
    %308 = arith.mulf %307, %297 : vector<32x32xf32>
    %309 = arith.addf %292, %308 : vector<32x32xf32>
    %c123 = arith.constant 123 : index
    %310 = memref.load %arg2[%c123] : memref<144xf32, #tpu.memory_space<smem>>
    %311 = vector.broadcast %310 : f32 to vector<32x32xf32>
    %312 = arith.mulf %311, %297 : vector<32x32xf32>
    %313 = arith.addf %296, %312 : vector<32x32xf32>
    %314 = vector.extract_strided_slice %194 {offsets = [2, 1], sizes = [32, 32], strides = [1, 1]} : vector<34x34xf32> to vector<32x32xf32>
    %c16 = arith.constant 16 : index
    %315 = memref.load %arg2[%c16] : memref<144xf32, #tpu.memory_space<smem>>
    %316 = vector.broadcast %315 : f32 to vector<32x32xf32>
    %317 = arith.mulf %316, %314 : vector<32x32xf32>
    %318 = arith.addf %301, %317 : vector<32x32xf32>
    %c52 = arith.constant 52 : index
    %319 = memref.load %arg2[%c52] : memref<144xf32, #tpu.memory_space<smem>>
    %320 = vector.broadcast %319 : f32 to vector<32x32xf32>
    %321 = arith.mulf %320, %314 : vector<32x32xf32>
    %322 = arith.addf %305, %321 : vector<32x32xf32>
    %c88 = arith.constant 88 : index
    %323 = memref.load %arg2[%c88] : memref<144xf32, #tpu.memory_space<smem>>
    %324 = vector.broadcast %323 : f32 to vector<32x32xf32>
    %325 = arith.mulf %324, %314 : vector<32x32xf32>
    %326 = arith.addf %309, %325 : vector<32x32xf32>
    %c124 = arith.constant 124 : index
    %327 = memref.load %arg2[%c124] : memref<144xf32, #tpu.memory_space<smem>>
    %328 = vector.broadcast %327 : f32 to vector<32x32xf32>
    %329 = arith.mulf %328, %314 : vector<32x32xf32>
    %330 = arith.addf %313, %329 : vector<32x32xf32>
    %331 = vector.extract_strided_slice %194 {offsets = [2, 2], sizes = [32, 32], strides = [1, 1]} : vector<34x34xf32> to vector<32x32xf32>
    %c17 = arith.constant 17 : index
    %332 = memref.load %arg2[%c17] : memref<144xf32, #tpu.memory_space<smem>>
    %333 = vector.broadcast %332 : f32 to vector<32x32xf32>
    %334 = arith.mulf %333, %331 : vector<32x32xf32>
    %335 = arith.addf %318, %334 : vector<32x32xf32>
    %c53 = arith.constant 53 : index
    %336 = memref.load %arg2[%c53] : memref<144xf32, #tpu.memory_space<smem>>
    %337 = vector.broadcast %336 : f32 to vector<32x32xf32>
    %338 = arith.mulf %337, %331 : vector<32x32xf32>
    %339 = arith.addf %322, %338 : vector<32x32xf32>
    %c89 = arith.constant 89 : index
    %340 = memref.load %arg2[%c89] : memref<144xf32, #tpu.memory_space<smem>>
    %341 = vector.broadcast %340 : f32 to vector<32x32xf32>
    %342 = arith.mulf %341, %331 : vector<32x32xf32>
    %343 = arith.addf %326, %342 : vector<32x32xf32>
    %c125 = arith.constant 125 : index
    %344 = memref.load %arg2[%c125] : memref<144xf32, #tpu.memory_space<smem>>
    %345 = vector.broadcast %344 : f32 to vector<32x32xf32>
    %346 = arith.mulf %345, %331 : vector<32x32xf32>
    %347 = arith.addf %330, %346 : vector<32x32xf32>
    %c0_21 = arith.constant 0 : index
    %c2_22 = arith.constant 2 : index
    %c0_23 = arith.constant 0 : index
    %c0_24 = arith.constant 0 : index
    %348 = vector.load %arg1[%c0_21, %c2_22, %c0_23, %c0_24] : memref<1x4x16x16xf32, #tpu.memory_space<vmem>>, vector<1x1x16x16xf32>
    %349 = vector.shape_cast %348 : vector<1x1x16x16xf32> to vector<16x16xf32>
    %cst_25 = arith.constant dense<0.000000e+00> : vector<16x34xf32>
    %350 = tpu.matmul %349, %29, %cst_25 {dimension_numbers = #tpu.dot_dimension_numbers<[1], [0], [0], [1], [0, 0, 1, 1], [], []>} : vector<16x16xf32>, vector<16x34xf32>, vector<16x34xf32> -> vector<16x34xf32>
    %cst_26 = arith.constant dense<0.000000e+00> : vector<34x34xf32>
    %351 = tpu.matmul %14, %350, %cst_26 {dimension_numbers = #tpu.dot_dimension_numbers<[1], [0], [0], [1], [0, 0, 1, 1], [], []>} : vector<34x16xf32>, vector<16x34xf32>, vector<34x34xf32> -> vector<34x34xf32>
    %352 = vector.extract_strided_slice %351 {offsets = [0, 0], sizes = [32, 32], strides = [1, 1]} : vector<34x34xf32> to vector<32x32xf32>
    %c18 = arith.constant 18 : index
    %353 = memref.load %arg2[%c18] : memref<144xf32, #tpu.memory_space<smem>>
    %354 = vector.broadcast %353 : f32 to vector<32x32xf32>
    %355 = arith.mulf %354, %352 : vector<32x32xf32>
    %356 = arith.addf %335, %355 : vector<32x32xf32>
    %c54 = arith.constant 54 : index
    %357 = memref.load %arg2[%c54] : memref<144xf32, #tpu.memory_space<smem>>
    %358 = vector.broadcast %357 : f32 to vector<32x32xf32>
    %359 = arith.mulf %358, %352 : vector<32x32xf32>
    %360 = arith.addf %339, %359 : vector<32x32xf32>
    %c90 = arith.constant 90 : index
    %361 = memref.load %arg2[%c90] : memref<144xf32, #tpu.memory_space<smem>>
    %362 = vector.broadcast %361 : f32 to vector<32x32xf32>
    %363 = arith.mulf %362, %352 : vector<32x32xf32>
    %364 = arith.addf %343, %363 : vector<32x32xf32>
    %c126 = arith.constant 126 : index
    %365 = memref.load %arg2[%c126] : memref<144xf32, #tpu.memory_space<smem>>
    %366 = vector.broadcast %365 : f32 to vector<32x32xf32>
    %367 = arith.mulf %366, %352 : vector<32x32xf32>
    %368 = arith.addf %347, %367 : vector<32x32xf32>
    %369 = vector.extract_strided_slice %351 {offsets = [0, 1], sizes = [32, 32], strides = [1, 1]} : vector<34x34xf32> to vector<32x32xf32>
    %c19 = arith.constant 19 : index
    %370 = memref.load %arg2[%c19] : memref<144xf32, #tpu.memory_space<smem>>
    %371 = vector.broadcast %370 : f32 to vector<32x32xf32>
    %372 = arith.mulf %371, %369 : vector<32x32xf32>
    %373 = arith.addf %356, %372 : vector<32x32xf32>
    %c55 = arith.constant 55 : index
    %374 = memref.load %arg2[%c55] : memref<144xf32, #tpu.memory_space<smem>>
    %375 = vector.broadcast %374 : f32 to vector<32x32xf32>
    %376 = arith.mulf %375, %369 : vector<32x32xf32>
    %377 = arith.addf %360, %376 : vector<32x32xf32>
    %c91 = arith.constant 91 : index
    %378 = memref.load %arg2[%c91] : memref<144xf32, #tpu.memory_space<smem>>
    %379 = vector.broadcast %378 : f32 to vector<32x32xf32>
    %380 = arith.mulf %379, %369 : vector<32x32xf32>
    %381 = arith.addf %364, %380 : vector<32x32xf32>
    %c127 = arith.constant 127 : index
    %382 = memref.load %arg2[%c127] : memref<144xf32, #tpu.memory_space<smem>>
    %383 = vector.broadcast %382 : f32 to vector<32x32xf32>
    %384 = arith.mulf %383, %369 : vector<32x32xf32>
    %385 = arith.addf %368, %384 : vector<32x32xf32>
    %386 = vector.extract_strided_slice %351 {offsets = [0, 2], sizes = [32, 32], strides = [1, 1]} : vector<34x34xf32> to vector<32x32xf32>
    %c20 = arith.constant 20 : index
    %387 = memref.load %arg2[%c20] : memref<144xf32, #tpu.memory_space<smem>>
    %388 = vector.broadcast %387 : f32 to vector<32x32xf32>
    %389 = arith.mulf %388, %386 : vector<32x32xf32>
    %390 = arith.addf %373, %389 : vector<32x32xf32>
    %c56 = arith.constant 56 : index
    %391 = memref.load %arg2[%c56] : memref<144xf32, #tpu.memory_space<smem>>
    %392 = vector.broadcast %391 : f32 to vector<32x32xf32>
    %393 = arith.mulf %392, %386 : vector<32x32xf32>
    %394 = arith.addf %377, %393 : vector<32x32xf32>
    %c92 = arith.constant 92 : index
    %395 = memref.load %arg2[%c92] : memref<144xf32, #tpu.memory_space<smem>>
    %396 = vector.broadcast %395 : f32 to vector<32x32xf32>
    %397 = arith.mulf %396, %386 : vector<32x32xf32>
    %398 = arith.addf %381, %397 : vector<32x32xf32>
    %c128 = arith.constant 128 : index
    %399 = memref.load %arg2[%c128] : memref<144xf32, #tpu.memory_space<smem>>
    %400 = vector.broadcast %399 : f32 to vector<32x32xf32>
    %401 = arith.mulf %400, %386 : vector<32x32xf32>
    %402 = arith.addf %385, %401 : vector<32x32xf32>
    %403 = vector.extract_strided_slice %351 {offsets = [1, 0], sizes = [32, 32], strides = [1, 1]} : vector<34x34xf32> to vector<32x32xf32>
    %c21 = arith.constant 21 : index
    %404 = memref.load %arg2[%c21] : memref<144xf32, #tpu.memory_space<smem>>
    %405 = vector.broadcast %404 : f32 to vector<32x32xf32>
    %406 = arith.mulf %405, %403 : vector<32x32xf32>
    %407 = arith.addf %390, %406 : vector<32x32xf32>
    %c57 = arith.constant 57 : index
    %408 = memref.load %arg2[%c57] : memref<144xf32, #tpu.memory_space<smem>>
    %409 = vector.broadcast %408 : f32 to vector<32x32xf32>
    %410 = arith.mulf %409, %403 : vector<32x32xf32>
    %411 = arith.addf %394, %410 : vector<32x32xf32>
    %c93 = arith.constant 93 : index
    %412 = memref.load %arg2[%c93] : memref<144xf32, #tpu.memory_space<smem>>
    %413 = vector.broadcast %412 : f32 to vector<32x32xf32>
    %414 = arith.mulf %413, %403 : vector<32x32xf32>
    %415 = arith.addf %398, %414 : vector<32x32xf32>
    %c129 = arith.constant 129 : index
    %416 = memref.load %arg2[%c129] : memref<144xf32, #tpu.memory_space<smem>>
    %417 = vector.broadcast %416 : f32 to vector<32x32xf32>
    %418 = arith.mulf %417, %403 : vector<32x32xf32>
    %419 = arith.addf %402, %418 : vector<32x32xf32>
    %420 = vector.extract_strided_slice %351 {offsets = [1, 1], sizes = [32, 32], strides = [1, 1]} : vector<34x34xf32> to vector<32x32xf32>
    %c22 = arith.constant 22 : index
    %421 = memref.load %arg2[%c22] : memref<144xf32, #tpu.memory_space<smem>>
    %422 = vector.broadcast %421 : f32 to vector<32x32xf32>
    %423 = arith.mulf %422, %420 : vector<32x32xf32>
    %424 = arith.addf %407, %423 : vector<32x32xf32>
    %c58 = arith.constant 58 : index
    %425 = memref.load %arg2[%c58] : memref<144xf32, #tpu.memory_space<smem>>
    %426 = vector.broadcast %425 : f32 to vector<32x32xf32>
    %427 = arith.mulf %426, %420 : vector<32x32xf32>
    %428 = arith.addf %411, %427 : vector<32x32xf32>
    %c94 = arith.constant 94 : index
    %429 = memref.load %arg2[%c94] : memref<144xf32, #tpu.memory_space<smem>>
    %430 = vector.broadcast %429 : f32 to vector<32x32xf32>
    %431 = arith.mulf %430, %420 : vector<32x32xf32>
    %432 = arith.addf %415, %431 : vector<32x32xf32>
    %c130 = arith.constant 130 : index
    %433 = memref.load %arg2[%c130] : memref<144xf32, #tpu.memory_space<smem>>
    %434 = vector.broadcast %433 : f32 to vector<32x32xf32>
    %435 = arith.mulf %434, %420 : vector<32x32xf32>
    %436 = arith.addf %419, %435 : vector<32x32xf32>
    %437 = vector.extract_strided_slice %351 {offsets = [1, 2], sizes = [32, 32], strides = [1, 1]} : vector<34x34xf32> to vector<32x32xf32>
    %c23 = arith.constant 23 : index
    %438 = memref.load %arg2[%c23] : memref<144xf32, #tpu.memory_space<smem>>
    %439 = vector.broadcast %438 : f32 to vector<32x32xf32>
    %440 = arith.mulf %439, %437 : vector<32x32xf32>
    %441 = arith.addf %424, %440 : vector<32x32xf32>
    %c59 = arith.constant 59 : index
    %442 = memref.load %arg2[%c59] : memref<144xf32, #tpu.memory_space<smem>>
    %443 = vector.broadcast %442 : f32 to vector<32x32xf32>
    %444 = arith.mulf %443, %437 : vector<32x32xf32>
    %445 = arith.addf %428, %444 : vector<32x32xf32>
    %c95 = arith.constant 95 : index
    %446 = memref.load %arg2[%c95] : memref<144xf32, #tpu.memory_space<smem>>
    %447 = vector.broadcast %446 : f32 to vector<32x32xf32>
    %448 = arith.mulf %447, %437 : vector<32x32xf32>
    %449 = arith.addf %432, %448 : vector<32x32xf32>
    %c131 = arith.constant 131 : index
    %450 = memref.load %arg2[%c131] : memref<144xf32, #tpu.memory_space<smem>>
    %451 = vector.broadcast %450 : f32 to vector<32x32xf32>
    %452 = arith.mulf %451, %437 : vector<32x32xf32>
    %453 = arith.addf %436, %452 : vector<32x32xf32>
    %454 = vector.extract_strided_slice %351 {offsets = [2, 0], sizes = [32, 32], strides = [1, 1]} : vector<34x34xf32> to vector<32x32xf32>
    %c24 = arith.constant 24 : index
    %455 = memref.load %arg2[%c24] : memref<144xf32, #tpu.memory_space<smem>>
    %456 = vector.broadcast %455 : f32 to vector<32x32xf32>
    %457 = arith.mulf %456, %454 : vector<32x32xf32>
    %458 = arith.addf %441, %457 : vector<32x32xf32>
    %c60 = arith.constant 60 : index
    %459 = memref.load %arg2[%c60] : memref<144xf32, #tpu.memory_space<smem>>
    %460 = vector.broadcast %459 : f32 to vector<32x32xf32>
    %461 = arith.mulf %460, %454 : vector<32x32xf32>
    %462 = arith.addf %445, %461 : vector<32x32xf32>
    %c96 = arith.constant 96 : index
    %463 = memref.load %arg2[%c96] : memref<144xf32, #tpu.memory_space<smem>>
    %464 = vector.broadcast %463 : f32 to vector<32x32xf32>
    %465 = arith.mulf %464, %454 : vector<32x32xf32>
    %466 = arith.addf %449, %465 : vector<32x32xf32>
    %c132 = arith.constant 132 : index
    %467 = memref.load %arg2[%c132] : memref<144xf32, #tpu.memory_space<smem>>
    %468 = vector.broadcast %467 : f32 to vector<32x32xf32>
    %469 = arith.mulf %468, %454 : vector<32x32xf32>
    %470 = arith.addf %453, %469 : vector<32x32xf32>
    %471 = vector.extract_strided_slice %351 {offsets = [2, 1], sizes = [32, 32], strides = [1, 1]} : vector<34x34xf32> to vector<32x32xf32>
    %c25 = arith.constant 25 : index
    %472 = memref.load %arg2[%c25] : memref<144xf32, #tpu.memory_space<smem>>
    %473 = vector.broadcast %472 : f32 to vector<32x32xf32>
    %474 = arith.mulf %473, %471 : vector<32x32xf32>
    %475 = arith.addf %458, %474 : vector<32x32xf32>
    %c61 = arith.constant 61 : index
    %476 = memref.load %arg2[%c61] : memref<144xf32, #tpu.memory_space<smem>>
    %477 = vector.broadcast %476 : f32 to vector<32x32xf32>
    %478 = arith.mulf %477, %471 : vector<32x32xf32>
    %479 = arith.addf %462, %478 : vector<32x32xf32>
    %c97 = arith.constant 97 : index
    %480 = memref.load %arg2[%c97] : memref<144xf32, #tpu.memory_space<smem>>
    %481 = vector.broadcast %480 : f32 to vector<32x32xf32>
    %482 = arith.mulf %481, %471 : vector<32x32xf32>
    %483 = arith.addf %466, %482 : vector<32x32xf32>
    %c133 = arith.constant 133 : index
    %484 = memref.load %arg2[%c133] : memref<144xf32, #tpu.memory_space<smem>>
    %485 = vector.broadcast %484 : f32 to vector<32x32xf32>
    %486 = arith.mulf %485, %471 : vector<32x32xf32>
    %487 = arith.addf %470, %486 : vector<32x32xf32>
    %488 = vector.extract_strided_slice %351 {offsets = [2, 2], sizes = [32, 32], strides = [1, 1]} : vector<34x34xf32> to vector<32x32xf32>
    %c26 = arith.constant 26 : index
    %489 = memref.load %arg2[%c26] : memref<144xf32, #tpu.memory_space<smem>>
    %490 = vector.broadcast %489 : f32 to vector<32x32xf32>
    %491 = arith.mulf %490, %488 : vector<32x32xf32>
    %492 = arith.addf %475, %491 : vector<32x32xf32>
    %c62 = arith.constant 62 : index
    %493 = memref.load %arg2[%c62] : memref<144xf32, #tpu.memory_space<smem>>
    %494 = vector.broadcast %493 : f32 to vector<32x32xf32>
    %495 = arith.mulf %494, %488 : vector<32x32xf32>
    %496 = arith.addf %479, %495 : vector<32x32xf32>
    %c98 = arith.constant 98 : index
    %497 = memref.load %arg2[%c98] : memref<144xf32, #tpu.memory_space<smem>>
    %498 = vector.broadcast %497 : f32 to vector<32x32xf32>
    %499 = arith.mulf %498, %488 : vector<32x32xf32>
    %500 = arith.addf %483, %499 : vector<32x32xf32>
    %c134 = arith.constant 134 : index
    %501 = memref.load %arg2[%c134] : memref<144xf32, #tpu.memory_space<smem>>
    %502 = vector.broadcast %501 : f32 to vector<32x32xf32>
    %503 = arith.mulf %502, %488 : vector<32x32xf32>
    %504 = arith.addf %487, %503 : vector<32x32xf32>
    %c0_27 = arith.constant 0 : index
    %c3_28 = arith.constant 3 : index
    %c0_29 = arith.constant 0 : index
    %c0_30 = arith.constant 0 : index
    %505 = vector.load %arg1[%c0_27, %c3_28, %c0_29, %c0_30] : memref<1x4x16x16xf32, #tpu.memory_space<vmem>>, vector<1x1x16x16xf32>
    %506 = vector.shape_cast %505 : vector<1x1x16x16xf32> to vector<16x16xf32>
    %cst_31 = arith.constant dense<0.000000e+00> : vector<16x34xf32>
    %507 = tpu.matmul %506, %29, %cst_31 {dimension_numbers = #tpu.dot_dimension_numbers<[1], [0], [0], [1], [0, 0, 1, 1], [], []>} : vector<16x16xf32>, vector<16x34xf32>, vector<16x34xf32> -> vector<16x34xf32>
    %cst_32 = arith.constant dense<0.000000e+00> : vector<34x34xf32>
    %508 = tpu.matmul %14, %507, %cst_32 {dimension_numbers = #tpu.dot_dimension_numbers<[1], [0], [0], [1], [0, 0, 1, 1], [], []>} : vector<34x16xf32>, vector<16x34xf32>, vector<34x34xf32> -> vector<34x34xf32>
    %509 = vector.extract_strided_slice %508 {offsets = [0, 0], sizes = [32, 32], strides = [1, 1]} : vector<34x34xf32> to vector<32x32xf32>
    %c27 = arith.constant 27 : index
    %510 = memref.load %arg2[%c27] : memref<144xf32, #tpu.memory_space<smem>>
    %511 = vector.broadcast %510 : f32 to vector<32x32xf32>
    %512 = arith.mulf %511, %509 : vector<32x32xf32>
    %513 = arith.addf %492, %512 : vector<32x32xf32>
    %c63 = arith.constant 63 : index
    %514 = memref.load %arg2[%c63] : memref<144xf32, #tpu.memory_space<smem>>
    %515 = vector.broadcast %514 : f32 to vector<32x32xf32>
    %516 = arith.mulf %515, %509 : vector<32x32xf32>
    %517 = arith.addf %496, %516 : vector<32x32xf32>
    %c99 = arith.constant 99 : index
    %518 = memref.load %arg2[%c99] : memref<144xf32, #tpu.memory_space<smem>>
    %519 = vector.broadcast %518 : f32 to vector<32x32xf32>
    %520 = arith.mulf %519, %509 : vector<32x32xf32>
    %521 = arith.addf %500, %520 : vector<32x32xf32>
    %c135 = arith.constant 135 : index
    %522 = memref.load %arg2[%c135] : memref<144xf32, #tpu.memory_space<smem>>
    %523 = vector.broadcast %522 : f32 to vector<32x32xf32>
    %524 = arith.mulf %523, %509 : vector<32x32xf32>
    %525 = arith.addf %504, %524 : vector<32x32xf32>
    %526 = vector.extract_strided_slice %508 {offsets = [0, 1], sizes = [32, 32], strides = [1, 1]} : vector<34x34xf32> to vector<32x32xf32>
    %c28 = arith.constant 28 : index
    %527 = memref.load %arg2[%c28] : memref<144xf32, #tpu.memory_space<smem>>
    %528 = vector.broadcast %527 : f32 to vector<32x32xf32>
    %529 = arith.mulf %528, %526 : vector<32x32xf32>
    %530 = arith.addf %513, %529 : vector<32x32xf32>
    %c64 = arith.constant 64 : index
    %531 = memref.load %arg2[%c64] : memref<144xf32, #tpu.memory_space<smem>>
    %532 = vector.broadcast %531 : f32 to vector<32x32xf32>
    %533 = arith.mulf %532, %526 : vector<32x32xf32>
    %534 = arith.addf %517, %533 : vector<32x32xf32>
    %c100 = arith.constant 100 : index
    %535 = memref.load %arg2[%c100] : memref<144xf32, #tpu.memory_space<smem>>
    %536 = vector.broadcast %535 : f32 to vector<32x32xf32>
    %537 = arith.mulf %536, %526 : vector<32x32xf32>
    %538 = arith.addf %521, %537 : vector<32x32xf32>
    %c136 = arith.constant 136 : index
    %539 = memref.load %arg2[%c136] : memref<144xf32, #tpu.memory_space<smem>>
    %540 = vector.broadcast %539 : f32 to vector<32x32xf32>
    %541 = arith.mulf %540, %526 : vector<32x32xf32>
    %542 = arith.addf %525, %541 : vector<32x32xf32>
    %543 = vector.extract_strided_slice %508 {offsets = [0, 2], sizes = [32, 32], strides = [1, 1]} : vector<34x34xf32> to vector<32x32xf32>
    %c29 = arith.constant 29 : index
    %544 = memref.load %arg2[%c29] : memref<144xf32, #tpu.memory_space<smem>>
    %545 = vector.broadcast %544 : f32 to vector<32x32xf32>
    %546 = arith.mulf %545, %543 : vector<32x32xf32>
    %547 = arith.addf %530, %546 : vector<32x32xf32>
    %c65 = arith.constant 65 : index
    %548 = memref.load %arg2[%c65] : memref<144xf32, #tpu.memory_space<smem>>
    %549 = vector.broadcast %548 : f32 to vector<32x32xf32>
    %550 = arith.mulf %549, %543 : vector<32x32xf32>
    %551 = arith.addf %534, %550 : vector<32x32xf32>
    %c101 = arith.constant 101 : index
    %552 = memref.load %arg2[%c101] : memref<144xf32, #tpu.memory_space<smem>>
    %553 = vector.broadcast %552 : f32 to vector<32x32xf32>
    %554 = arith.mulf %553, %543 : vector<32x32xf32>
    %555 = arith.addf %538, %554 : vector<32x32xf32>
    %c137 = arith.constant 137 : index
    %556 = memref.load %arg2[%c137] : memref<144xf32, #tpu.memory_space<smem>>
    %557 = vector.broadcast %556 : f32 to vector<32x32xf32>
    %558 = arith.mulf %557, %543 : vector<32x32xf32>
    %559 = arith.addf %542, %558 : vector<32x32xf32>
    %560 = vector.extract_strided_slice %508 {offsets = [1, 0], sizes = [32, 32], strides = [1, 1]} : vector<34x34xf32> to vector<32x32xf32>
    %c30 = arith.constant 30 : index
    %561 = memref.load %arg2[%c30] : memref<144xf32, #tpu.memory_space<smem>>
    %562 = vector.broadcast %561 : f32 to vector<32x32xf32>
    %563 = arith.mulf %562, %560 : vector<32x32xf32>
    %564 = arith.addf %547, %563 : vector<32x32xf32>
    %c66 = arith.constant 66 : index
    %565 = memref.load %arg2[%c66] : memref<144xf32, #tpu.memory_space<smem>>
    %566 = vector.broadcast %565 : f32 to vector<32x32xf32>
    %567 = arith.mulf %566, %560 : vector<32x32xf32>
    %568 = arith.addf %551, %567 : vector<32x32xf32>
    %c102 = arith.constant 102 : index
    %569 = memref.load %arg2[%c102] : memref<144xf32, #tpu.memory_space<smem>>
    %570 = vector.broadcast %569 : f32 to vector<32x32xf32>
    %571 = arith.mulf %570, %560 : vector<32x32xf32>
    %572 = arith.addf %555, %571 : vector<32x32xf32>
    %c138 = arith.constant 138 : index
    %573 = memref.load %arg2[%c138] : memref<144xf32, #tpu.memory_space<smem>>
    %574 = vector.broadcast %573 : f32 to vector<32x32xf32>
    %575 = arith.mulf %574, %560 : vector<32x32xf32>
    %576 = arith.addf %559, %575 : vector<32x32xf32>
    %577 = vector.extract_strided_slice %508 {offsets = [1, 1], sizes = [32, 32], strides = [1, 1]} : vector<34x34xf32> to vector<32x32xf32>
    %c31 = arith.constant 31 : index
    %578 = memref.load %arg2[%c31] : memref<144xf32, #tpu.memory_space<smem>>
    %579 = vector.broadcast %578 : f32 to vector<32x32xf32>
    %580 = arith.mulf %579, %577 : vector<32x32xf32>
    %581 = arith.addf %564, %580 : vector<32x32xf32>
    %c67 = arith.constant 67 : index
    %582 = memref.load %arg2[%c67] : memref<144xf32, #tpu.memory_space<smem>>
    %583 = vector.broadcast %582 : f32 to vector<32x32xf32>
    %584 = arith.mulf %583, %577 : vector<32x32xf32>
    %585 = arith.addf %568, %584 : vector<32x32xf32>
    %c103 = arith.constant 103 : index
    %586 = memref.load %arg2[%c103] : memref<144xf32, #tpu.memory_space<smem>>
    %587 = vector.broadcast %586 : f32 to vector<32x32xf32>
    %588 = arith.mulf %587, %577 : vector<32x32xf32>
    %589 = arith.addf %572, %588 : vector<32x32xf32>
    %c139 = arith.constant 139 : index
    %590 = memref.load %arg2[%c139] : memref<144xf32, #tpu.memory_space<smem>>
    %591 = vector.broadcast %590 : f32 to vector<32x32xf32>
    %592 = arith.mulf %591, %577 : vector<32x32xf32>
    %593 = arith.addf %576, %592 : vector<32x32xf32>
    %594 = vector.extract_strided_slice %508 {offsets = [1, 2], sizes = [32, 32], strides = [1, 1]} : vector<34x34xf32> to vector<32x32xf32>
    %c32 = arith.constant 32 : index
    %595 = memref.load %arg2[%c32] : memref<144xf32, #tpu.memory_space<smem>>
    %596 = vector.broadcast %595 : f32 to vector<32x32xf32>
    %597 = arith.mulf %596, %594 : vector<32x32xf32>
    %598 = arith.addf %581, %597 : vector<32x32xf32>
    %c68 = arith.constant 68 : index
    %599 = memref.load %arg2[%c68] : memref<144xf32, #tpu.memory_space<smem>>
    %600 = vector.broadcast %599 : f32 to vector<32x32xf32>
    %601 = arith.mulf %600, %594 : vector<32x32xf32>
    %602 = arith.addf %585, %601 : vector<32x32xf32>
    %c104 = arith.constant 104 : index
    %603 = memref.load %arg2[%c104] : memref<144xf32, #tpu.memory_space<smem>>
    %604 = vector.broadcast %603 : f32 to vector<32x32xf32>
    %605 = arith.mulf %604, %594 : vector<32x32xf32>
    %606 = arith.addf %589, %605 : vector<32x32xf32>
    %c140 = arith.constant 140 : index
    %607 = memref.load %arg2[%c140] : memref<144xf32, #tpu.memory_space<smem>>
    %608 = vector.broadcast %607 : f32 to vector<32x32xf32>
    %609 = arith.mulf %608, %594 : vector<32x32xf32>
    %610 = arith.addf %593, %609 : vector<32x32xf32>
    %611 = vector.extract_strided_slice %508 {offsets = [2, 0], sizes = [32, 32], strides = [1, 1]} : vector<34x34xf32> to vector<32x32xf32>
    %c33 = arith.constant 33 : index
    %612 = memref.load %arg2[%c33] : memref<144xf32, #tpu.memory_space<smem>>
    %613 = vector.broadcast %612 : f32 to vector<32x32xf32>
    %614 = arith.mulf %613, %611 : vector<32x32xf32>
    %615 = arith.addf %598, %614 : vector<32x32xf32>
    %c69 = arith.constant 69 : index
    %616 = memref.load %arg2[%c69] : memref<144xf32, #tpu.memory_space<smem>>
    %617 = vector.broadcast %616 : f32 to vector<32x32xf32>
    %618 = arith.mulf %617, %611 : vector<32x32xf32>
    %619 = arith.addf %602, %618 : vector<32x32xf32>
    %c105 = arith.constant 105 : index
    %620 = memref.load %arg2[%c105] : memref<144xf32, #tpu.memory_space<smem>>
    %621 = vector.broadcast %620 : f32 to vector<32x32xf32>
    %622 = arith.mulf %621, %611 : vector<32x32xf32>
    %623 = arith.addf %606, %622 : vector<32x32xf32>
    %c141 = arith.constant 141 : index
    %624 = memref.load %arg2[%c141] : memref<144xf32, #tpu.memory_space<smem>>
    %625 = vector.broadcast %624 : f32 to vector<32x32xf32>
    %626 = arith.mulf %625, %611 : vector<32x32xf32>
    %627 = arith.addf %610, %626 : vector<32x32xf32>
    %628 = vector.extract_strided_slice %508 {offsets = [2, 1], sizes = [32, 32], strides = [1, 1]} : vector<34x34xf32> to vector<32x32xf32>
    %c34 = arith.constant 34 : index
    %629 = memref.load %arg2[%c34] : memref<144xf32, #tpu.memory_space<smem>>
    %630 = vector.broadcast %629 : f32 to vector<32x32xf32>
    %631 = arith.mulf %630, %628 : vector<32x32xf32>
    %632 = arith.addf %615, %631 : vector<32x32xf32>
    %c70 = arith.constant 70 : index
    %633 = memref.load %arg2[%c70] : memref<144xf32, #tpu.memory_space<smem>>
    %634 = vector.broadcast %633 : f32 to vector<32x32xf32>
    %635 = arith.mulf %634, %628 : vector<32x32xf32>
    %636 = arith.addf %619, %635 : vector<32x32xf32>
    %c106 = arith.constant 106 : index
    %637 = memref.load %arg2[%c106] : memref<144xf32, #tpu.memory_space<smem>>
    %638 = vector.broadcast %637 : f32 to vector<32x32xf32>
    %639 = arith.mulf %638, %628 : vector<32x32xf32>
    %640 = arith.addf %623, %639 : vector<32x32xf32>
    %c142 = arith.constant 142 : index
    %641 = memref.load %arg2[%c142] : memref<144xf32, #tpu.memory_space<smem>>
    %642 = vector.broadcast %641 : f32 to vector<32x32xf32>
    %643 = arith.mulf %642, %628 : vector<32x32xf32>
    %644 = arith.addf %627, %643 : vector<32x32xf32>
    %645 = vector.extract_strided_slice %508 {offsets = [2, 2], sizes = [32, 32], strides = [1, 1]} : vector<34x34xf32> to vector<32x32xf32>
    %c35 = arith.constant 35 : index
    %646 = memref.load %arg2[%c35] : memref<144xf32, #tpu.memory_space<smem>>
    %647 = vector.broadcast %646 : f32 to vector<32x32xf32>
    %648 = arith.mulf %647, %645 : vector<32x32xf32>
    %649 = arith.addf %632, %648 : vector<32x32xf32>
    %c71 = arith.constant 71 : index
    %650 = memref.load %arg2[%c71] : memref<144xf32, #tpu.memory_space<smem>>
    %651 = vector.broadcast %650 : f32 to vector<32x32xf32>
    %652 = arith.mulf %651, %645 : vector<32x32xf32>
    %653 = arith.addf %636, %652 : vector<32x32xf32>
    %c107 = arith.constant 107 : index
    %654 = memref.load %arg2[%c107] : memref<144xf32, #tpu.memory_space<smem>>
    %655 = vector.broadcast %654 : f32 to vector<32x32xf32>
    %656 = arith.mulf %655, %645 : vector<32x32xf32>
    %657 = arith.addf %640, %656 : vector<32x32xf32>
    %c143 = arith.constant 143 : index
    %658 = memref.load %arg2[%c143] : memref<144xf32, #tpu.memory_space<smem>>
    %659 = vector.broadcast %658 : f32 to vector<32x32xf32>
    %660 = arith.mulf %659, %645 : vector<32x32xf32>
    %661 = arith.addf %644, %660 : vector<32x32xf32>
    %c0_33 = arith.constant 0 : index
    %662 = memref.load %arg3[%c0_33] : memref<4xf32, #tpu.memory_space<smem>>
    %663 = vector.broadcast %662 : f32 to vector<32x32xf32>
    %664 = arith.addf %649, %663 : vector<32x32xf32>
    %c0_34 = arith.constant 0 : index
    %c0_35 = arith.constant 0 : index
    %c0_36 = arith.constant 0 : index
    %c0_37 = arith.constant 0 : index
    %665 = vector.load %arg4[%c0_34, %c0_35, %c0_36, %c0_37] : memref<1x4x32x32xf32, #tpu.memory_space<vmem>>, vector<1x1x32x32xf32>
    %666 = vector.shape_cast %665 : vector<1x1x32x32xf32> to vector<32x32xf32>
    %667 = vector.shape_cast %664 : vector<32x32xf32> to vector<1x1x32x32xf32>
    tpu.vector_store %arg4[%c0_34, %c0_35, %c0_36, %c0_37], %667 {strides = array<i32>} : memref<1x4x32x32xf32, #tpu.memory_space<vmem>>, vector<1x1x32x32xf32>,
    %c1_38 = arith.constant 1 : index
    %668 = memref.load %arg3[%c1_38] : memref<4xf32, #tpu.memory_space<smem>>
    %669 = vector.broadcast %668 : f32 to vector<32x32xf32>
    %670 = arith.addf %653, %669 : vector<32x32xf32>
    %c0_39 = arith.constant 0 : index
    %c1_40 = arith.constant 1 : index
    %c0_41 = arith.constant 0 : index
    %c0_42 = arith.constant 0 : index
    %671 = vector.load %arg4[%c0_39, %c1_40, %c0_41, %c0_42] : memref<1x4x32x32xf32, #tpu.memory_space<vmem>>, vector<1x1x32x32xf32>
    %672 = vector.shape_cast %671 : vector<1x1x32x32xf32> to vector<32x32xf32>
    %673 = vector.shape_cast %670 : vector<32x32xf32> to vector<1x1x32x32xf32>
    tpu.vector_store %arg4[%c0_39, %c1_40, %c0_41, %c0_42], %673 {strides = array<i32>} : memref<1x4x32x32xf32, #tpu.memory_space<vmem>>, vector<1x1x32x32xf32>,
    %c2_43 = arith.constant 2 : index
    %674 = memref.load %arg3[%c2_43] : memref<4xf32, #tpu.memory_space<smem>>
    %675 = vector.broadcast %674 : f32 to vector<32x32xf32>
    %676 = arith.addf %657, %675 : vector<32x32xf32>
    %c0_44 = arith.constant 0 : index
    %c2_45 = arith.constant 2 : index
    %c0_46 = arith.constant 0 : index
    %c0_47 = arith.constant 0 : index
    %677 = vector.load %arg4[%c0_44, %c2_45, %c0_46, %c0_47] : memref<1x4x32x32xf32, #tpu.memory_space<vmem>>, vector<1x1x32x32xf32>
    %678 = vector.shape_cast %677 : vector<1x1x32x32xf32> to vector<32x32xf32>
    %679 = vector.shape_cast %676 : vector<32x32xf32> to vector<1x1x32x32xf32>
    tpu.vector_store %arg4[%c0_44, %c2_45, %c0_46, %c0_47], %679 {strides = array<i32>} : memref<1x4x32x32xf32, #tpu.memory_space<vmem>>, vector<1x1x32x32xf32>,
    %c3_48 = arith.constant 3 : index
    %680 = memref.load %arg3[%c3_48] : memref<4xf32, #tpu.memory_space<smem>>
    %681 = vector.broadcast %680 : f32 to vector<32x32xf32>
    %682 = arith.addf %661, %681 : vector<32x32xf32>
    %c0_49 = arith.constant 0 : index
    %c3_50 = arith.constant 3 : index
    %c0_51 = arith.constant 0 : index
    %c0_52 = arith.constant 0 : index
    %683 = vector.load %arg4[%c0_49, %c3_50, %c0_51, %c0_52] : memref<1x4x32x32xf32, #tpu.memory_space<vmem>>, vector<1x1x32x32xf32>
    %684 = vector.shape_cast %683 : vector<1x1x32x32xf32> to vector<32x32xf32>
    %685 = vector.shape_cast %682 : vector<32x32xf32> to vector<1x1x32x32xf32>
    tpu.vector_store %arg4[%c0_49, %c3_50, %c0_51, %c0_52], %685 {strides = array<i32>} : memref<1x4x32x32xf32, #tpu.memory_space<vmem>>, vector<1x1x32x32xf32>,
    return
  }
  func.func @transform_0(%arg0: i32) -> (i32, i32, i32, i32) {
    %c0_i32 = arith.constant 0 : i32
    %c0_i32_0 = arith.constant 0 : i32
    %c0_i32_1 = arith.constant 0 : i32
    %c0_i32_2 = arith.constant 0 : i32
    return %arg0, %c0_i32, %c0_i32_0, %c0_i32_1 : i32, i32, i32, i32
  }
  func.func @transform_1(%arg0: i32) -> i32 {
    %c0_i32 = arith.constant 0 : i32
    %c0_i32_0 = arith.constant 0 : i32
    return %c0_i32 : i32
  }
  func.func @transform_2(%arg0: i32) -> i32 {
    %c0_i32 = arith.constant 0 : i32
    %c0_i32_0 = arith.constant 0 : i32
    return %c0_i32 : i32
  }
  func.func @transform_3(%arg0: i32) -> (i32, i32, i32, i32) {
    %c0_i32 = arith.constant 0 : i32
    %c0_i32_0 = arith.constant 0 : i32
    %c0_i32_1 = arith.constant 0 : i32
    %c0_i32_2 = arith.constant 0 : i32
    return %arg0, %c0_i32, %c0_i32_0, %c0_i32_1 : i32, i32, i32, i32
  }
}

</mosaic_0001>

<bundles_post_ra>
// kernel: tpu_custom_call.1
= control target key start
LH: loop header
LB: loop body
LE: loop exit
PB: predicated region body
PF: predicated region fallthrough
CT: control target
= control target key end

     0   :  { %8 = vsyncpa [#allocation3], 0  ;;  %s12651_s0 = inlined_call_operand.hbm [shape: f32[2,4,16,16], index: 0, kind: input, shape index: {}]   ;;  %s12652_s1 = inlined_call_operand.vmem [shape: f32[144], index: 1, kind: input, shape index: {}]   ;;  %s12653_s2 = inlined_call_operand.vmem [shape: f32[4], index: 2, kind: input, shape index: {}]   ;;  %s12654_s3 = inlined_call_operand.hbm [shape: f32[2,4,32,32], index: 3, kind: output, shape index: {}]  }
   0x1   :  { %10 = vsyncpa [#allocation3 + $0x1], 0 }
   0x2   :  { %11 = vsyncpa [#allocation5], 0 }
   0x3   :  { %12 = vsyncpa [#allocation8], 0 }
   0x4   :  { %13 = vsyncpa [#allocation4], 0 }
   0x5   :  { %15 = vsyncpa [#allocation4 + $0x1], 0  ;;  %s6072_s12 = smov 0   ;;  %s6074_s13 = smov 0  }
   0x6   :  { %s6076_s14 = smov 0   ;;  %s6078_s15 = smov 0  }
   0x7 LB: > { %s6093_s16 = sadd.s32 4294967295, %s6036_s15   ;;  %s5422_s17 = sadd.s32 4294967294, %s6036_s15   ;;  %s6036_s15 = sphi %s6078_s15, %s14905_s15   ;;  %s6032_s14 = sphi %s6076_s14, %s14904_s14   ;;  %s6028_s13 = sphi %s6074_s13, %s14903_s13   ;;  %s6024_s12 = sphi %s6072_s12, %s14902_s12  }
   0x8   : > { %s6097_s18 = sadd.s32 1, %s6036_s15   ;;  %s28_s19 = sadd.s32 1, %s6032_s14 }
   0x9   : > { %s25_s20 = ssub.s32 %s6036_s15, %s6097_s18  ;;  %p35_p0 = scmp.ne.s32.totalorder %s6032_s14, %s6028_s13 }
   0xa   : > { %p26_p1 = scmp.eq.s32.totalorder %s25_s20, 0  ;;  %p36_p2 = scmp.eq.s32.totalorder %s6036_s15, 0 }
   0xb   : > { %p41_p3 = scmp.ne.s32.totalorder %s6028_s13, %s6024_s12  ;;  %p12655_p4 = scmp.eq.s32.totalorder %s6093_s16, 0 }
   0xc   : > { %s6109_s21 = scalar_select %p26_p1, %s6032_s14, %s28_s19  }
   0xd   : > { %p6111_p5 = por %p36_p2, %p35_p0  ;;  %p6117_p6 = por %p12655_p4, %p41_p3 }
   0xe   : > { %p107_p7 = scmp.eq.s32.totalorder %s6093_s16, 1  ;;  %p113_p8 = scmp.eq.s32.totalorder %s5422_s17, 1 }
   0xf   : > { %s13194_s23 = scalar_select %p6117_p6, 1, 0 }
  0x10   : > { %p5423_p9 = scmp.ge.s32.totalorder %s6036_s15, 1  ;;  %p120_p10 = scmp.lt.s32.totalorder %s6036_s15, 3 }
  0x11   : > { %p6124_p11 = por %p107_p7, %p35_p0  ;;  %p6128_p12 = por %p113_p8, %p41_p3 }
  0x12   : > { %p6132_p13 = pnand %p5423_p9, %p120_p10  ;;  %s133_s29 = sshll.u32 %s12652_s1, 4  ;;  %s134_s29 = int_to_ptr.vmem [resolvable:$true] %s133_s29 }
  0x13   : > { %s13195_s24 = scalar_select %p6124_p11, 1, 0 }
  0x14   : > { %s13196_s25 = scalar_select %p6128_p12, 1, 0 }
  0x15   : > { %s13197_s26 = scalar_select %p6132_p13, 1, 0 }
  0x16   : > { %p5837_p1 = pneg %p6132_p13  ;;  %p5854_p2 = scmp.lt.s32.totalorder %s6036_s15, 2 }
  0x17   : > { %s144_s6 = sshll.u32 %s12653_s2, 4  ;;  %s5902_s8 = scalar_lea.vmem %s134_s29, 32  ;;  %s145_s6 = int_to_ptr.vmem [resolvable:$true] %s144_s6 }
  0x18   : > { %p6145_p7 = pnand %p5837_p1, %p12655_p4  ;;  %p6154_p3 = pnand %p5854_p2, %p6111_p5 }
  0x19   : > { %p5903_p8 = scmp.ne.s32.totalorder %s134_s29, %s5902_s8  ;;  %p5910_p0 = scmp.lt.s32.totalorder %s134_s29, %s134_s29 }
  0x1a   : > { %s13199_s7 = scalar_select %p6154_p3, 1, 0 }
  0x1b   : > { %p5904_p9 = pneg %p6145_p7  ;;  %p5911_p4 = scmp.lt.s32.totalorder %s5902_s8, %s5902_s8 }
  0x1d   : > { %p5905_p10 = pnand %p5904_p9, %p5903_p8  ;;  %p5912_p12 = por %p5911_p4, %p5910_p0 }
  0x1f   : > { %p5906_p1 = pneg %p5905_p10 }
  0x21   : > { %p5913_p11 = pnand %p5912_p12, %p5906_p1 }
  0x23   : > { %5916 = shalt.err (!%p5913_p11)
}
  0x24   : > { %s6038_s9 = smov [#allocation6]   ;;  %s155_s10 = sand.u32 1, %s6032_s14  }
  0x25   : > { %5840 = dma.vmem_to_smem (!%p6145_p7), %s134_s29, 32, %s6038_s9, [#allocation5]  }
  0x26   : > { %s5917_s11 = scalar_lea.vmem %s145_s6, 16  ;;  %p5925_p8 = scmp.lt.s32.totalorder %s145_s6, %s145_s6 }
  0x27   : > { %p5918_p5 = scmp.ne.s32.totalorder %s145_s6, %s5917_s11  ;;  %p5926_p10 = scmp.lt.s32.totalorder %s5917_s11, %s5917_s11 }
  0x29   : > { %p5920_p2 = pnand %p5918_p5, %p5904_p9  ;;  %p5927_p13 = por %p5926_p10, %p5925_p8 }
  0x2b   : > { %p5921_p6 = pneg %p5920_p2 }
  0x2d   : > { %p5928_p3 = pnand %p5927_p13, %p5921_p6 }
  0x2f   : > { %5931 = shalt.err (!%p5928_p3)
}
  0x30   : > { %s6039_s17 = smov [#allocation7]   ;;  %s5427_s19 = sshll.u32 %s155_s10, 6 }
  0x31   : > { %5843 = dma.vmem_to_smem (!%p6145_p7), %s145_s6, 16, %s6039_s17, [#allocation8]  }
  0x32   : > { %s5647_s20 = sshll.u32 %s6036_s15, 10  ;;  %s159_s29 = scalar_lea.vmem [#allocation2], %s5427_s19 }
  0x33   : > { %s6175_s28 = scalar_lea.hbm %s12651_s0, %s5647_s20  ;;  %s166_s4 = sshll.u32 %s159_s29, 4  ;;  %s6177_s4 = int_to_ptr.vmem [resolvable:$true] %s166_s4 }
  0x34   : > { %s6179_s30 = scalar_lea.sflag [#allocation3], %s155_s10  ;;  %s5932_s5 = scalar_lea.hbm %s6175_s28, 1024 }
  0x35   : > { %p5933_p4 = scmp.ne.s32.totalorder %s6175_s28, %s5932_s5  ;;  %p13200_p6 = scmp.ne.s32.totalorder %s13199_s7, 0 }
  0x36   : > { %s5937_s9 = scalar_lea.hbm %s12651_s0, 2048  ;;  %p5938_p0 = scmp.lt.u32.totalorder %s6175_s28, %s12651_s0 }
  0x37   : > { %p5934_p11 = pneg %p13200_p6  ;;  %p5939_p7 = scmp.lt.u32.totalorder %s5937_s9, %s5932_s5 }
  0x38   : > { %p5941_p9 = scmp.lt.u32.totalorder %s5932_s5, %s6175_s28 }
  0x39   : > { %p5935_p12 = pnand %p5934_p11, %p5933_p4  ;;  %p5940_p3 = por %p5939_p7, %p5938_p0 }
  0x3b   : > { %p5936_p13 = pneg %p5935_p12  ;;  %p5942_p1 = por %p5941_p9, %p5940_p3 }
  0x3d   : > { %p5943_p5 = pnand %p5942_p1, %p5936_p13 }
  0x3f   : > { %5946 = shalt.err (!%p5943_p5)
}
  0x40   : > { %s5947_s10 = scalar_lea.vmem %s6177_s4, 1024  ;;  %s6040_s19 = smov [#allocation2]  }
  0x41   : > { %p5948_p2 = scmp.ne.s32.totalorder %s6177_s4, %s5947_s10  ;;  %s5952_s20 = sshll.u32 %s6040_s19, 4  ;;  %s5953_s20 = int_to_ptr.vmem [resolvable:$false] %s5952_s20 }
  0x42   : > { %s5954_s22 = scalar_lea.vmem %s5953_s20, 2048  ;;  %p5955_p4 = scmp.lt.s32.totalorder %s6177_s4, %s5953_s20 }
  0x43   : > { %p5950_p8 = pnand %p5948_p2, %p5934_p11  ;;  %p5956_p12 = scmp.lt.s32.totalorder %s5954_s22, %s5947_s10 }
  0x45   : > { %p5951_p10 = pneg %p5950_p8  ;;  %p5957_p0 = por %p5956_p12, %p5955_p4 }
  0x47   : > { %p5958_p7 = pnand %p5957_p0, %p5951_p10 }
  0x49   : > { %5961 = shalt.err (!%p5958_p7)
}
  0x4a   : > { %s6041_s27 = smov 128   ;;  %s6042_s29 = smov 8  }
  0x4b   : > { %5847 = dma.hbm_to_vmem [thread:$0]  (!%p13200_p6), %s6175_s28, 1024, %s6177_s4, %s6179_s30, %s6041_s27, %s6041_s27, %s6042_s29  }
  0x4c   : > { %p13201_p11 = scmp.ne.s32.totalorder %s13197_s26, 0 }
  0x4e   : > { %178 = sbr.rel (%p13201_p11) target bundleno = 1490 (0x5d2), region = 32 }
  0x55   : > { %s6210_s5 = sand.u32 1, %s6028_s13   ;;  %p13202_p13 = scmp.ne.s32.totalorder %s13194_s23, 0 }
  0x56   : > { %s5431_s6 = sshll.u32 %s6210_s5, 6  ;;  %s181_s8 = scalar_lea.sflag [#allocation3], %s6210_s5 }
  0x57   : > { %s6214_s9 = scalar_lea.vmem [#allocation2], %s5431_s6 }
  0x58   : > { %6007 = dma.done.wait (%p13202_p13), %s181_s8, 1024  }
  0x59   : > { %6009 = vsyncadd (%p13202_p13), %s181_s8, 4294966272  ;;  %p13203_p6 = scmp.eq.s32.totalorder %s6093_s16, 0 }
  0x5b   : > { %6011 = dma.done.wait (%p13203_p6), [#allocation5], 32   ;;  %p13204_p3 = pmov %p13203_p6 }
  0x5d   : > { %6013 = vsyncadd (%p13204_p3), [#allocation5], 4294967264  ;;  %p13205_p9 = pmov %p13204_p3 }
  0x5e   : > { %p13206_p1 = pmov %p13204_p3 }
  0x5f   : > { %6015 = dma.done.wait (%p13205_p9), [#allocation8], 16  }
  0x60   : > { %6017 = vsyncadd (%p13206_p1), [#allocation8], 4294967280 }
  0x61   : > { %197 = sfence }
  0x62   : > { %v216_v0 = vlaneseq  ;;  %v268_v1 = vld [vmem:[%s6214_s9] sm:$0xff]  ;;  %vm270_vm0 = vcmask 130048   ;;  %v5486_v2 = vld [vmem:[%s6214_s9 + $0x10] sm:$0xff]  ;;  %v6043_v13 = vmov 1.0|1.0   ;;  %v269_v14 = vld [vmem:[%s6214_s9 + $0x8] sm:$0xff] }
  0x63   : > { %5697 = vmatprep.mubr.msk.f32.mxu1 %vm270_vm0, %v268_v1  ;;  %5723 = vmatprep.mubr.msk.f32.mxu0 %vm270_vm0, %v5486_v2  ;;  %v5487_v15 = vld [vmem:[%s6214_s9 + $0x18] sm:$0xff]  ;;  %v6044_v16 = vmov 0.0|0.0   ;;  %vm6045_vm8 = vmmov 0   ;;  %v12666_v17 = vmov 0.0   ;;  %v5533_v35 = vld [vmem:[%s6214_s9 + $0x20] sm:$0xff]  ;;  %v5580_v36 = vld [vmem:[%s6214_s9 + $0x30] sm:$0xff] }
  0x64   : > { %v6232_v3 = vshrl.u32 %v216_v0, 7  ;;  %v223_v5 = vand.u32 127, %v216_v0  ;;  %v5534_v37 = vld [vmem:[%s6214_s9 + $0x28] sm:$0xff]  ;;  %v5581_v38 = vld [vmem:[%s6214_s9 + $0x38] sm:$0xff]  ;;  %s5454_s23 = sld [smem:[#allocation6 + $0x1]]  ;;  %s5455_s26 = sld [smem:[#allocation6 + $0x25]] }
  0x65   : > { %s5456_s7 = sld [smem:[#allocation6 + $0x49]]  ;;  %s5457_s28 = sld [smem:[#allocation6 + $0x6d]] }
  0x66   : > { %v218_v4 = vadd.s32 8, %v6232_v3  ;;  %v252_v6 = vmul.u32 2, %v6232_v3  ;;  %v224_v18 = vmul.u32 2, %v223_v5  ;;  %v219_v26 = vadd.s32 16, %v6232_v3  ;;  %s6332_s4 = sld [smem:[#allocation6 + $0x2]]  ;;  %s6334_s30 = sld [smem:[#allocation6 + $0x26]] }
  0x67   : > { %v220_v29 = vadd.s32 24, %v6232_v3  ;;  %v221_v31 = vadd.s32 32, %v6232_v3  ;;  %s6338_s11 = sld [smem:[#allocation6 + $0x4a]]  ;;  %s5466_s17 = sld [smem:[#allocation6 + $0x4]] }
  0x68   : > { %v253_v7 = vmul.u32 2, %v218_v4  ;;  %v254_v8 = vadd.s32 1, %v252_v6  ;;  %v258_v9 = vadd.s32 2, %v252_v6  ;;  %v225_v19 = vadd.s32 1, %v224_v18  ;;  %s6340_s10 = sld [smem:[#allocation6 + $0x6e]]  ;;  %s5467_s19 = sld [smem:[#allocation6 + $0x28]] }
  0x69   : > { %v231_v20 = vadd.s32 2, %v224_v18  ;;  %s6346_s20 = sld [smem:[#allocation6 + $0x4c]]  ;;  %s6352_s22 = sld [smem:[#allocation6 + $0x70]] }
  0x6a   : > { %v255_v10 = vadd.s32 1, %v253_v7  ;;  %vm256_vm1 = vcmp.ge.s32.totalorder %v223_v5, %v254_v8  ;;  %v259_v11 = vadd.s32 2, %v253_v7  ;;  %vm260_vm2 = vcmp.le.s32.totalorder %v223_v5, %v258_v9  ;;  %s6047_s27 = smov 127   ;;  %s6359_s29 = sld [smem:[#allocation6 + $0x5]] }
  0x6b   : > { %vm262_vm3 = vmand %vm256_vm1, %vm260_vm2  ;;  %vm226_vm9 = vcmp.ge.s32.totalorder %v6232_v3, %v225_v19  ;;  %vm232_vm10 = vcmp.le.s32.totalorder %v6232_v3, %v231_v20  ;;  %vm227_vm12 = vcmp.ge.s32.totalorder %v218_v4, %v225_v19  ;;  %vm233_vm13 = vcmp.le.s32.totalorder %v218_v4, %v231_v20  ;;  %s6371_s6 = sld [smem:[#allocation6 + $0x29]]  ;;  %s6373_s8 = sld [smem:[#allocation6 + $0x4d]] }
  0x6c   : > { %vm257_vm4 = vcmp.ge.s32.totalorder %v223_v5, %v255_v10  ;;  %vm261_vm5 = vcmp.le.s32.totalorder %v223_v5, %v259_v11  ;;  %vm237_vm11 = vmand %vm226_vm9, %vm232_vm10  ;;  %vm228_vm15 = vcmp.ge.s32.totalorder %v219_v26, %v225_v19  ;;  %vm234_vm1 = vcmp.le.s32.totalorder %v219_v26, %v231_v20  ;;  %s6382_s9 = sld [smem:[#allocation6 + $0x71]]  ;;  %p14899_p2 = scmp.ne.s32.totalorder %s13195_s24, 0 }
  0x6d   : > { %vm263_vm6 = vmand %vm257_vm4, %vm261_vm5  ;;  %v6260_v28 = vsel %vm237_vm11, 1.0, %v12666_v17  ;;  %vm235_vm4 = vcmp.le.s32.totalorder %v220_v29, %v231_v20  ;;  %v6336_v39 = vstv %s5454_s23  ;;  %v6350_v45 = vstv %s5455_s26  ;;  %s6384_s23 = sld [smem:[#allocation6 + $0x7]]  ;;  %s6402_s26 = sld [smem:[#allocation6 + $0x2b]] }
  0x6e   : > { %vm6236_vm7 = vmpackc.low %vm263_vm6, %vm262_vm3  ;;  %vm229_vm3 = vcmp.ge.s32.totalorder %v220_v29, %v225_v19  ;;  %vm230_vm6 = vcmp.ge.s32.totalorder %v221_v31, %v225_v19  ;;  %13212 = vst [vmem:[#allocation17_spill] sm:$0xff] %v6336_v39  ;;  %v6365_v52 = vstv %s5456_s7  ;;  %v6367_v53 = vstv %s5457_s28  ;;  %s6423_s7 = sld [smem:[#allocation6 + $0x4f]]  ;;  %s6427_s28 = sld [smem:[#allocation6 + $0xa]] }
  0x6f   : > { %5798 = vmatprep.subr.msk.bf16.mxu1 %vm6236_vm7, %v6043_v13  ;;  %5805 = vmatprep.subr.msk.bf16.mxu0 %vm6236_vm7, %v6043_v13  ;;  %vm238_vm14 = vmand %vm227_vm12, %vm233_vm13  ;;  %13214 = vst [vmem:[#allocation19_spill] sm:$0xff] %v6350_v45  ;;  %v6369_v54 = vstv %s5466_s17  ;;  %v6378_v55 = vstv %s6332_s4  ;;  %v6380_v56 = vstv %s5467_s19  ;;  %v6389_v58 = vstv %s6334_s30  ;;  %s6436_s4 = sld [smem:[#allocation6 + $0x73]]  ;;  %s6456_s30 = sld [smem:[#allocation6 + $0x2e]] }
  0x70   : > { %5800 = vmatpush3.bf16.msk.msra.mxu1 %vm6236_vm7, %v6043_v13  ;;  %5807 = vmatpush3.bf16.msk.msra.mxu0 %vm6236_vm7, %v6043_v13  ;;  %v6274_v30 = vsel %vm238_vm14, 1.0, %v12666_v17  ;;  %vm239_vm2 = vmand %vm228_vm15, %vm234_vm1  ;;  %13217 = vst [vmem:[#allocation22_spill] sm:$0xff] %v6365_v52  ;;  %v6392_v59 = vstv %s6338_s11  ;;  %v6395_v60 = vstv %s6340_s10  ;;  %v6400_v62 = vstv %s6346_s20  ;;  %s6473_s11 = sld [smem:[#allocation6 + $0x52]]  ;;  %s6475_s17 = sld [smem:[#allocation6 + $0x76]] }
  0x71   : > { %5801 = vmatprep.subr.bf16.mxu1 %v6044_v16  ;;  %5808 = vmatprep.subr.bf16.mxu0 %v6044_v16  ;;  %v6290_v32 = vsel %vm239_vm2, 1.0, %v12666_v17  ;;  %vm240_vm5 = vmand %vm229_vm3, %vm235_vm4  ;;  %13218 = vst [vmem:[#allocation23_spill] sm:$0xff] %v6367_v53  ;;  %vm717_vm10 = vcmask 1046528   ;;  %v6421_v7 = vstv %s6352_s22  ;;  %v6469_v29 = vstv %s6373_s8  ;;  %s6510_s10 = sld [smem:[#allocation6 + $0xb]]  ;;  %s6048_s19 = smov 126  }
  0x72   : > { %13209 = vst [vmem:[#allocation14_spill] sm:$0xff] %v6290_v32  ;;  %v6301_v33 = vsel %vm240_vm5, 1.0, %v12666_v17  ;;  %13219 = vst [vmem:[#allocation24_spill] sm:$0xff] %v6378_v55  ;;  %s6525_s20 = sld [smem:[#allocation6 + $0x2f]]  ;;  %s6527_s22 = sld [smem:[#allocation6 + $0x53]]  ;;  %vm1130_vm11 = vcmask 1045504  }
  0x73   : > { %5698 = vmatmul.mubr.msk.f32.vlgmr.msra.gmra.mrb[0].mxu1 %vm270_vm0, %v269_v14  ;;  %5724 = vmatmul.mubr.msk.f32.vlgmr.msra.gmra.mrb[0].mxu0 %vm270_vm0, %v5487_v15  ;;  %13210 = vst [vmem:[#allocation15_spill] sm:$0xff] %v6301_v33  ;;  %13221 = vst [vmem:[#allocation26_spill] sm:$0xff] %v6389_v58  ;;  %s6580_s8 = sld [smem:[#allocation6]] }
  0x74   : > { %5704 = vmatprep.mubr.msk.f32.mxu1 %vm6045_vm8, %v12666_v17  ;;  %5730 = vmatprep.mubr.msk.f32.mxu0 %vm6045_vm8, %v12666_v17  ;;  %13222 = vst [vmem:[#allocation27_spill] sm:$0xff] %v6392_v59  ;;  %13223 = vst [vmem:[#allocation28_spill] sm:$0xff] %v6395_v60 }
  0x75   : > { %13225 = vst [vmem:[#allocation30_spill] sm:$0xff] %v6421_v7 }
 0x146   : > { %v5699_v21 = vpop.f32.mrb[0].mxu1  ;;  %v5725_v22 = vpop.f32.mrb[0].mxu0 }
 0x147   : > { %v343_v23 = vpop.f32.mrb[1].mxu1  ;;  %v1606_v24 = vpop.f32.mrb[1].mxu0 }
 0x148   : > { %v5802_v25 = vpack.c.bf16 %v5699_v21, %v343_v23  ;;  %v5809_v27 = vpack.c.bf16 %v5725_v22, %v1606_v24 }
 0x14a   : > { %5803 = vmatpush3.bf16.msra.mxu1 %v5802_v25  ;;  %5810 = vmatpush3.bf16.msra.mxu0 %v5809_v27  ;;  %v6466_v27 = vstv %s6371_s6  ;;  %s6577_s6 = sld [smem:[#allocation6 + $0x77]] }
 0x14b   : > { %5812 = vmatprep.subr.msk.bf16.mxu1 %vm6236_vm7, %v6043_v13  ;;  %5819 = vmatprep.subr.msk.bf16.mxu0 %vm6236_vm7, %v6043_v13 }
 0x14d   : > { %5705 = vmatmul.mubr.msk.f32.vlgmr.msra.gmra.mrb[2].mxu1 %vm270_vm0, %v6260_v28  ;;  %5731 = vmatmul.mubr.msk.f32.vlgmr.msra.gmra.mrb[2].mxu0 %vm270_vm0, %v6260_v28 }
 0x14e   : > { %5707 = vmatprep.mubr.msk.f32.mxu1 %vm6045_vm8, %v12666_v17  ;;  %5733 = vmatprep.mubr.msk.f32.mxu0 %vm6045_vm8, %v12666_v17 }
 0x14f   : > { %5814 = vmatpush3.bf16.msk.msra.mxu1 %vm6236_vm7, %v6043_v13  ;;  %5821 = vmatpush3.bf16.msk.msra.mxu0 %vm6236_vm7, %v6043_v13  ;;  %vm236_vm7 = vcmp.le.s32.totalorder %v221_v31, %v231_v20 }
 0x150   : > { %5815 = vmatprep.subr.bf16.mxu1 %v6044_v16  ;;  %5822 = vmatprep.subr.bf16.mxu0 %v6044_v16  ;;  %vm241_vm9 = vmand %vm230_vm6, %vm236_vm7  ;;  %v6444_v16 = vstv %s6359_s29  ;;  %s6545_s29 = sld [smem:[#allocation6 + $0x8]] }
 0x151   : > { %5708 = vmatmul.mubr.msk.f32.gmra.mrb[4].mxu1 %vm270_vm0, %v6274_v30  ;;  %5734 = vmatmul.mubr.msk.f32.gmra.mrb[4].mxu0 %vm270_vm0, %v6274_v30  ;;  %v6312_v34 = vsel %vm241_vm9, 1.0, %v12666_v17 }
 0x152   : > { %5710 = vmatprep.mubr.msk.f32.mxu1 %vm6045_vm8, %v12666_v17  ;;  %5736 = vmatprep.mubr.msk.f32.mxu0 %vm6045_vm8, %v12666_v17  ;;  %13211 = vst [vmem:[#allocation16_spill] sm:$0xff] %v6312_v34 }
 0x155   : > { %5711 = vmatmul.mubr.msk.f32.gmra.mrb[6].mxu1 %vm270_vm0, %v6290_v32  ;;  %5737 = vmatmul.mubr.msk.f32.gmra.mrb[6].mxu0 %vm270_vm0, %v6290_v32 }
 0x156   : > { %5713 = vmatprep.mubr.msk.f32.mxu1 %vm6045_vm8, %v12666_v17  ;;  %5739 = vmatprep.mubr.msk.f32.mxu0 %vm6045_vm8, %v12666_v17 }
 0x159   : > { %5714 = vmatmul.mubr.msk.f32.gmra.mrb[8].mxu1 %vm270_vm0, %v6301_v33  ;;  %5740 = vmatmul.mubr.msk.f32.gmra.mrb[8].mxu0 %vm270_vm0, %v6301_v33 }
 0x15a   : > { %5716 = vmatprep.mubr.msk.f32.mxu1 %vm6045_vm8, %v12666_v17  ;;  %5742 = vmatprep.mubr.msk.f32.mxu0 %vm6045_vm8, %v12666_v17 }
 0x15d   : > { %5717 = vmatmul.mubr.msk.f32.gmra.mrb[10].mxu1 %vm270_vm0, %v6312_v34  ;;  %5743 = vmatmul.mubr.msk.f32.gmra.mrb[10].mxu0 %vm270_vm0, %v6312_v34 }
 0x15e   : > { %5749 = vmatprep.mubr.msk.f32.mxu1 %vm270_vm0, %v5533_v35  ;;  %5775 = vmatprep.mubr.msk.f32.mxu0 %vm270_vm0, %v5580_v36  ;;  %v6487_v36 = vstv %s6382_s9  ;;  %s6589_s9 = sld [smem:[#allocation6 + $0x2c]] }
 0x161   : > { %5750 = vmatmul.mubr.msk.f32.vlgmr.msra.gmra.mrb[12].mxu1 %vm270_vm0, %v5534_v37  ;;  %5776 = vmatmul.mubr.msk.f32.vlgmr.msra.gmra.mrb[12].mxu0 %vm270_vm0, %v5581_v38  ;;  %v6490_v37 = vstv %s6384_s23  ;;  %s6602_s23 = sld [smem:[#allocation6 + $0x24]] }
 0x162   : > { %5756 = vmatprep.mubr.msk.f32.mxu1 %vm6045_vm8, %v12666_v17  ;;  %5782 = vmatprep.mubr.msk.f32.mxu0 %vm6045_vm8, %v12666_v17 }
 0x220   : > { %v6342_v40 = vpop.f32.mrb[2].mxu1  ;;  %v6344_v41 = vpop.f32.mrb[2].mxu0 }
 0x221   : > { %13213 = vst [vmem:[#allocation18_spill] sm:$0xff] %v6344_v41  ;;  %v5706_v42 = vpop.f32.mrb[3].mxu1  ;;  %v499_v43 = vmul.f32 %v6336_v39, %v6342_v40  ;;  %v5732_v44 = vpop.f32.mrb[3].mxu0  ;;  %v525_v49 = vmul.f32 %v6350_v45, %v6342_v40  ;;  %v551_v63 = vmul.f32 %v6365_v52, %v6342_v40  ;;  %v824_v2 = vmul.f32 %v6369_v54, %v6342_v40 }
 0x222   : > { %v861_v5 = vmul.f32 %v6380_v56, %v6342_v40  ;;  %v898_v10 = vmul.f32 %v6400_v62, %v6342_v40  ;;  %v577_v12 = vmul.f32 %v6367_v53, %v6342_v40  ;;  %v935_v26 = vmul.f32 %v6421_v7, %v6342_v40 }
 0x223   : > { %507 = vrot.lane.b32.xlu0 %v499_v43, %s6047_s27  ;;  %v834_v8 = vrot.slane %v824_v2, 1  ;;  %v603_v38 = vmul.f32 %v6378_v55, %v6342_v40  ;;  %v972_v43 = vmul.f32 %v6444_v16, %v6342_v40 }
 0x224   : > { %v6355_v46 = vpop.f32.mrb[4].mxu1  ;;  %v6357_v47 = vpop.f32.mrb[4].mxu0  ;;  %v871_v14 = vrot.slane %v861_v5, 1  ;;  %v908_v22 = vrot.slane %v898_v10, 1  ;;  %v6518_v5 = vstv %s6423_s7  ;;  %s6615_s7 = sld [smem:[#allocation6 + $0x50]] }
 0x225   : > { %13215 = vst [vmem:[#allocation20_spill] sm:$0xff] %v6355_v46  ;;  %13216 = vst [vmem:[#allocation21_spill] sm:$0xff] %v6357_v47  ;;  %v5709_v48 = vpop.f32.mrb[5].mxu1  ;;  %v526_v50 = vmul.f32 %v6350_v45, %v6355_v46  ;;  %v5735_v51 = vpop.f32.mrb[5].mxu0  ;;  %v552_v0 = vmul.f32 %v6365_v52, %v6355_v46  ;;  %v6412_v3 = vmul.f32 %v6369_v54, %v6355_v46 }
 0x226   : > { %v6418_v6 = vmul.f32 %v6380_v56, %v6355_v46  ;;  %v6434_v11 = vmul.f32 %v6400_v62, %v6355_v46  ;;  %v578_v19 = vmul.f32 %v6367_v53, %v6355_v46  ;;  %v6484_v35 = vmul.f32 %v6421_v7, %v6355_v46 }
 0x227   : > { %533 = vrot.lane.b32.xlu0 %v525_v49, %s6047_s27  ;;  %535 = vrot.lane.b32.xlu1 %v526_v50, %s6047_s27  ;;  %v12665_v9 = vrot.slane %v6412_v3, 1  ;;  %v6500_v44 = vmul.f32 %v6444_v16, %v6355_v46  ;;  %v6503_v48 = vstv %s6402_s26  ;;  %v604_v49 = vmul.f32 %v6378_v55, %v6355_v46  ;;  %s6604_s26 = sld [smem:[#allocation6 + $0x48]] }
 0x228   : > { %v6386_v57 = vpop.f32.mrb[6].mxu1  ;;  %v6397_v61 = vpop.f32.mrb[6].mxu0  ;;  %v12664_v15 = vrot.slane %v6418_v6, 1  ;;  %v12662_v23 = vrot.slane %v6434_v11, 1  ;;  %v945_v51 = vrot.slane %v935_v26, 1  ;;  %v629_v26 = vmul.f32 %v6389_v58, %v6342_v40 }
 0x229   : > { %13220 = vst [vmem:[#allocation25_spill] sm:$0xff] %v6386_v57  ;;  %13224 = vst [vmem:[#allocation29_spill] sm:$0xff] %v6397_v61  ;;  %v5712_v1 = vpop.f32.mrb[7].mxu1  ;;  %v5738_v4 = vpop.f32.mrb[7].mxu0  ;;  %v6453_v20 = vsel %vm717_vm10, %v834_v8, %v12665_v9  ;;  %v12660_v2 = vrot.slane %v6500_v44, 1  ;;  %v6523_v8 = vstv %s6427_s28  ;;  %v6607_v9 = vstv %s6510_s10  ;;  %s6617_s28 = sld [smem:[#allocation6 + $0x6c]] }
 0x22a   : > { %v6461_v25 = vsel %vm717_vm10, %v871_v14, %v12664_v15  ;;  %v6480_v31 = vsel %vm717_vm10, %v908_v22, %v12662_v23  ;;  %v982_v1 = vrot.slane %v972_v43, 1  ;;  %v6515_v4 = vmul.f32 %v6466_v27, %v6355_v46  ;;  %13229 = vst [vmem:[#allocation34_spill] sm:$0xff] %v6523_v8  ;;  %13236 = vst [vmem:[#allocation41_spill] sm:$0xff] %v6607_v9  ;;  %s6669_s10 = sld [smem:[#allocation6 + $0x55]] }
 0x22b   : > { %559 = vrot.lane.b32.xlu0 %v551_v63, %s6047_s27  ;;  %561 = vrot.lane.b32.xlu1 %v552_v0, %s6047_s27  ;;  %v12661_v63 = vrot.slane %v6484_v35, 1  ;;  %v1009_v0 = vmul.f32 %v6466_v27, %v6342_v40  ;;  %v6575_v23 = vstv %s6475_s17  ;;  %v1274_v15 = vmul.f32 %v6503_v48, %v6342_v40  ;;  %s6653_s17 = sld [smem:[#allocation6 + $0x31]] }
 0x22c   : > { %v6440_v13 = vpop.f32.mrb[8].mxu1  ;;  %v6446_v18 = vpop.f32.mrb[8].mxu0  ;;  %v12663_v22 = vrot.slane %v6515_v4, 1  ;;  %13233 = vst [vmem:[#allocation38_spill] sm:$0xff] %v6575_v23  ;;  %v681_v55 = vmul.f32 %v6395_v60, %v6342_v40 }
 0x22d   : > { %13226 = vst [vmem:[#allocation31_spill] sm:$0xff] %v6440_v13  ;;  %13227 = vst [vmem:[#allocation32_spill] sm:$0xff] %v6446_v18  ;;  %v5715_v21 = vpop.f32.mrb[9].mxu1  ;;  %v5741_v24 = vpop.f32.mrb[9].mxu0  ;;  %v6532_v10 = vsel %vm717_vm10, %v945_v51, %v12661_v63  ;;  %v6558_v51 = vstv %s6456_s30  ;;  %v6572_v63 = vstv %s6473_s11  ;;  %s6633_s30 = sld [smem:[#allocation6 + $0x3]]  ;;  %s6651_s11 = sld [smem:[#allocation6 + $0xd]] }
 0x22e   : > { %v1019_v21 = vrot.slane %v1009_v0, 1  ;;  %v1046_v24 = vmul.f32 %v6469_v29, %v6342_v40  ;;  %13230 = vst [vmem:[#allocation35_spill] sm:$0xff] %v6558_v51  ;;  %13232 = vst [vmem:[#allocation37_spill] sm:$0xff] %v6572_v63  ;;  %v1284_v53 = vrot.slane %v1274_v15, 2  ;;  %v1748_v15 = vmul.f32 %v6523_v8, %v6357_v47 }
 0x22f   : > { %585 = vrot.lane.b32.xlu0 %v577_v12, %s6047_s27  ;;  %587 = vrot.lane.b32.xlu1 %v578_v19, %s6047_s27  ;;  %v6535_v12 = vstv %s6436_s4  ;;  %v6540_v19 = vsel %vm717_vm10, %v982_v1, %v12660_v2  ;;  %v6567_v2 = vmul.f32 %v6487_v36, %v6355_v46  ;;  %s6631_s4 = sld [smem:[#allocation6 + $0x74]] }
 0x230   : > { %v6494_v42 = vpop.f32.mrb[10].mxu1  ;;  %v6563_v1 = vsel %vm717_vm10, %v1019_v21, %v12663_v22  ;;  %v6667_v13 = vmul.f32 %v6535_v12, %v6355_v46 }
 0x231   : > { %13228 = vst [vmem:[#allocation33_spill] sm:$0xff] %v6494_v42  ;;  %v5718_v50 = vpop.f32.mrb[11].mxu1  ;;  %13231 = vst [vmem:[#allocation36_spill] sm:$0xff] %v6563_v1  ;;  %v12673_v22 = vrot.slane %v6567_v2, 1  ;;  %v1348_v42 = vmul.f32 %v6535_v12, %v6342_v40 }
 0x232   : > { %v1083_v50 = vmul.f32 %v6487_v36, %v6342_v40  ;;  %13245 = vst [vmem:[#allocation49_spill] sm:$0xff] %v6667_v13 }
 0x233   : > { %611 = vrot.lane.b32.xlu0 %v603_v38, %s6048_s19  ;;  %613 = vrot.lane.b32.xlu1 %v604_v49, %s6048_s19  ;;  %v630_v38 = vmul.f32 %v6389_v58, %v6355_v46  ;;  %v6553_v49 = vmul.f32 %v6469_v29, %v6355_v46 }
 0x234   : > { %v5751_v14 = vpop.f32.mrb[12].mxu1  ;;  %v1093_v21 = vrot.slane %v1083_v50, 1 }
 0x235   : > { %v2852_v43 = vpop.f32.mrb[13].mxu1 }
 0x236   : > { %v5816_v0 = vpack.c.bf16 %v5751_v14, %v2852_v43  ;;  %v1056_v14 = vrot.slane %v1046_v24, 1  ;;  %v12672_v43 = vrot.slane %v6553_v49, 1  ;;  %v655_v24 = vmul.f32 %v6392_v59, %v6342_v40 }
 0x237   : > { %637 = vrot.lane.b32.xlu0 %v629_v26, %s6048_s19  ;;  %639 = vrot.lane.b32.xlu1 %v630_v38, %s6048_s19  ;;  %v1237_v26 = vmul.f32 %v6490_v37, %v6342_v40  ;;  %v6587_v38 = vmul.f32 %v6490_v37, %v6355_v46  ;;  %v6612_v17 = vsel %vm717_vm10, %v1093_v21, %v12673_v22  ;;  %v6649_v22 = vstv %s6545_s29  ;;  %s6728_s29 = sld [smem:[#allocation6 + $0x32]] }
 0x238   : > { %5817 = vmatpush3.bf16.msra.mxu1 %v5816_v0  ;;  %v656_v0 = vmul.f32 %v6392_v59, %v6355_v46  ;;  %v6598_v50 = vsel %vm717_vm10, %v1056_v14, %v12672_v43  ;;  %13237 = vst [vmem:[#allocation42_spill] sm:$0xff] %v6612_v17  ;;  %v6622_v14 = vstv %s6525_s20  ;;  %v6625_v43 = vstv %s6527_s22  ;;  %13243 = vst [vmem:[#allocation48_spill] sm:$0xff] %v6649_v22  ;;  %s6686_s20 = sld [smem:[#allocation6 + $0x79]]  ;;  %s6688_s22 = sld [smem:[#allocation6 + $0xe]] }
 0x239   : > { %13234 = vst [vmem:[#allocation39_spill] sm:$0xff] %v6587_v38  ;;  %13235 = vst [vmem:[#allocation40_spill] sm:$0xff] %v6598_v50  ;;  %v1247_v59 = vrot.slane %v1237_v26, 2  ;;  %v12676_v58 = vrot.slane %v6587_v38, 2  ;;  %v6629_v21 = vmul.f32 %v6503_v48, %v6355_v46  ;;  %v1385_v61 = vmul.f32 %v6649_v22, %v6342_v40 }
 0x23a   : > { %13238 = vst [vmem:[#allocation43_spill] sm:$0xff] %v6622_v14  ;;  %13239 = vst [vmem:[#allocation44_spill] sm:$0xff] %v6625_v43  ;;  %v6707_v17 = vmul.f32 %v6649_v22, %v6355_v46  ;;  %v6778_v50 = vstv %s6669_s10  ;;  %s6879_s10 = sld [smem:[#allocation6 + $0x4e]] }
 0x23b   : > { %663 = vrot.lane.b32.xlu0 %v655_v24, %s6048_s19  ;;  %665 = vrot.lane.b32.xlu1 %v656_v0, %s6048_s19  ;;  %13240 = vst [vmem:[#allocation45_spill] sm:$0xff] %v6629_v21  ;;  %v6640_v26 = vsel %vm1130_vm11, %v1247_v59, %v12676_v58  ;;  %v1311_v24 = vmul.f32 %v6518_v5, %v6342_v40  ;;  %v13244_v58 = vmov 0.0   ;;  %v12688_v52 = vrot.slane %v6629_v21, 2  ;;  %13266 = vst [vmem:[#allocation68_spill] sm:$0xff] %v6778_v50 }
 0x23c   : > { %5757 = vmatmul.mubr.msk.f32.vlgmr.msra.gmra.mrb[14].mxu1 %vm270_vm0, %v6260_v28  ;;  %13241 = vst [vmem:[#allocation46_spill] sm:$0xff] %v6640_v26  ;;  %v6646_v0 = vmul.f32 %v6518_v5, %v6355_v46  ;;  %v682_v59 = vmul.f32 %v6395_v60, %v6355_v46  ;;  %v6684_v60 = vstv %s6580_s8  ;;  %v1358_v26 = vrot.slane %v1348_v42, 2  ;;  %13252 = vst [vmem:[#allocation55_spill] sm:$0xff] %v6707_v17  ;;  %s6740_s8 = sld [smem:[#allocation6 + $0x7a]] }
 0x23d   : > { %5759 = vmatprep.mubr.msk.f32.mxu1 %vm6045_vm8, %v13244_v58  ;;  %v1321_v45 = vrot.slane %v1311_v24, 2  ;;  %v6676_v24 = vstv %s6577_s6  ;;  %v6681_v18 = vsel %vm1130_vm11, %v1284_v53, %v12688_v52  ;;  %13248 = vst [vmem:[#allocation52_spill] sm:$0xff] %v6684_v60  ;;  %v12694_v53 = vrot.slane %v6667_v13, 2  ;;  %s6730_s6 = sld [smem:[#allocation6 + $0x56]] }
 0x23e   : > { %13242 = vst [vmem:[#allocation47_spill] sm:$0xff] %v6646_v0  ;;  %13246 = vst [vmem:[#allocation50_spill] sm:$0xff] %v6676_v24  ;;  %v6699_v52 = vstv %s6589_s9  ;;  %v6720_v42 = vstv %s6604_s26  ;;  %s6752_s9 = sld [smem:[#allocation6 + $0x10]]  ;;  %v1774_v13 = vmul.f32 %v6558_v51, %v6357_v47 }
 0x23f   : > { %689 = vrot.lane.b32.xlu0 %v681_v55, %s6048_s19  ;;  %691 = vrot.lane.b32.xlu1 %v682_v59, %s6048_s19  ;;  %13247 = vst [vmem:[#allocation51_spill] sm:$0xff] %v6681_v18  ;;  %v13249_v55 = vrot.slane %v6646_v0, 2  ;;  %13251 = vst [vmem:[#allocation54_spill] sm:$0xff] %v6699_v52  ;;  %v1747_v18 = vmul.f32 %v6523_v8, %v6344_v41  ;;  %v6710_v0 = vstv %s6602_s23  ;;  %v6726_v8 = vstv %s6617_s28  ;;  %s6780_s23 = sld [smem:[#allocation6 + $0x34]]  ;;  %s6790_s26 = sld [smem:[#allocation6 + $0x58]] }
 0x240   : > { %5760 = vmatmul.mubr.msk.f32.gmra.mrb[16].mxu1 %vm270_vm0, %v6274_v30  ;;  %13253 = vst [vmem:[#allocation56_spill] sm:$0xff] %v6710_v0  ;;  %13255 = vst [vmem:[#allocation58_spill] sm:$0xff] %v6720_v42  ;;  %v13263_v42 = vrot.slane %v6707_v17, 2  ;;  %s6802_s28 = sld [smem:[#allocation6 + $0x27]] }
 0x241   : > { %v6695_v59 = vsel %vm1130_vm11, %v1321_v45, %v13249_v55  ;;  %5762 = vmatprep.mubr.msk.f32.mxu1 %vm6045_vm8, %v13244_v58  ;;  %v6717_v45 = vsel %vm1130_vm11, %v1358_v26, %v12694_v53  ;;  %v6723_v55 = vstv %s6615_s7  ;;  %13257 = vst [vmem:[#allocation60_spill] sm:$0xff] %v6726_v8  ;;  %v1422_v26 = vmul.f32 %v6699_v52, %v6342_v40  ;;  %s6792_s7 = sld [smem:[#allocation6 + $0x7c]] }
 0x242   : > { %13250 = vst [vmem:[#allocation53_spill] sm:$0xff] %v6695_v59  ;;  %13254 = vst [vmem:[#allocation57_spill] sm:$0xff] %v6717_v45  ;;  %v1395_v59 = vrot.slane %v1385_v61, 2  ;;  %v6738_v53 = vstv %s6631_s4  ;;  %v6744_v45 = vmul.f32 %v6699_v52, %v6355_v46  ;;  %v6747_v8 = vstv %s6651_s11  ;;  %s6833_s4 = sld [smem:[#allocation6 + $0x4b]]  ;;  %s6843_s11 = sld [smem:[#allocation6 + $0x6]] }
 0x243   : > { %13256 = vst [vmem:[#allocation59_spill] sm:$0xff] %v6723_v55  ;;  %1755 = vrot.lane.b32.xlu0 %v1747_v18, %s6047_s27  ;;  %1757 = vrot.lane.b32.xlu1 %v1748_v15, %s6047_s27  ;;  %13258 = vst [vmem:[#allocation61_spill] sm:$0xff] %v6738_v53  ;;  %v6750_v18 = vstv %s6653_s17  ;;  %v6757_v61 = vstv %s6633_s30  ;;  %v1773_v15 = vmul.f32 %v6558_v51, %v6344_v41  ;;  %v1432_v21 = vrot.slane %v1422_v26, 2  ;;  %s6835_s30 = sld [smem:[#allocation6 + $0x6f]]  ;;  %s6855_s17 = sld [smem:[#allocation6 + $0x2a]] }
 0x244   : > { %13259 = vst [vmem:[#allocation62_spill] sm:$0xff] %v6744_v45  ;;  %13260 = vst [vmem:[#allocation63_spill] sm:$0xff] %v6747_v8  ;;  %5763 = vmatmul.mubr.msk.f32.gmra.mrb[18].mxu1 %vm270_vm0, %v6290_v32  ;;  %v6766_v0 = vsel %vm1130_vm11, %v1395_v59, %v13263_v42  ;;  %v1459_v60 = vmul.f32 %v6723_v55, %v6342_v40  ;;  %v12706_v38 = vrot.slane %v6744_v45, 2  ;;  %v6785_v59 = vstv %s6686_s20  ;;  %s6893_s20 = sld [smem:[#allocation6 + $0x11]] }
 0x245   : > { %13261 = vst [vmem:[#allocation64_spill] sm:$0xff] %v6750_v18  ;;  %13262 = vst [vmem:[#allocation65_spill] sm:$0xff] %v6757_v61  ;;  %5765 = vmatprep.mubr.msk.f32.mxu1 %vm6045_vm8, %v13244_v58  ;;  %v6775_v52 = vmul.f32 %v6723_v55, %v6355_v46  ;;  %v6788_v42 = vstv %s6688_s22  ;;  %v1800_v45 = vmul.f32 %v6572_v63, %v6357_v47  ;;  %v6831_v17 = vstv %s6730_s6  ;;  %s6895_s22 = sld [smem:[#allocation6 + $0x72]]  ;;  %s6925_s6 = sld [smem:[#allocation6 + $0x59]] }
 0x246   : > { %13264 = vst [vmem:[#allocation66_spill] sm:$0xff] %v6766_v0  ;;  %13267 = vst [vmem:[#allocation69_spill] sm:$0xff] %v6785_v59  ;;  %v6797_v26 = vsel %vm1130_vm11, %v1432_v21, %v12706_v38  ;;  %v1469_v51 = vrot.slane %v1459_v60, 2  ;;  %v1799_v0 = vmul.f32 %v6572_v63, %v6344_v41  ;;  %v6812_v60 = vmul.f32 %v6738_v53, %v6355_v46 }
 0x247   : > { %13265 = vst [vmem:[#allocation67_spill] sm:$0xff] %v6775_v52  ;;  %1781 = vrot.lane.b32.xlu0 %v1773_v15, %s6047_s27  ;;  %1783 = vrot.lane.b32.xlu1 %v1774_v13, %s6047_s27  ;;  %13268 = vst [vmem:[#allocation70_spill] sm:$0xff] %v6788_v42  ;;  %v12711_v15 = vrot.slane %v6775_v52, 2  ;;  %v1496_v13 = vmul.f32 %v6738_v53, %v6342_v40  ;;  %v2071_v21 = vmul.f32 %v6747_v8, %v6344_v41 }
 0x248   : > { %13269 = vst [vmem:[#allocation71_spill] sm:$0xff] %v6797_v26  ;;  %5766 = vmatmul.mubr.msk.f32.gmra.mrb[20].mxu1 %vm270_vm0, %v6301_v33  ;;  %13270 = vst [vmem:[#allocation72_spill] sm:$0xff] %v6812_v60  ;;  %v6825_v26 = vmul.f32 %v6747_v8, %v6357_v47  ;;  %v6828_v63 = vstv %s6728_s29  ;;  %v2108_v53 = vmul.f32 %v6750_v18, %v6344_v41  ;;  %v6877_v32 = vstv %s6780_s23  ;;  %s6908_s29 = sld [smem:[#allocation6 + $0x35]]  ;;  %s7010_s23 = sld [smem:[#allocation6 + $0x30]] }
 0x249   : > { %5768 = vmatprep.mubr.msk.f32.mxu1 %vm6045_vm8, %v13244_v58  ;;  %v6821_v38 = vsel %vm1130_vm11, %v1469_v51, %v12711_v15  ;;  %13273 = vst [vmem:[#allocation75_spill] sm:$0xff] %v6828_v63  ;;  %13274 = vst [vmem:[#allocation76_spill] sm:$0xff] %v6831_v17  ;;  %v1506_v52 = vrot.slane %v1496_v13, 2  ;;  %v12725_v51 = vrot.slane %v6812_v60, 2  ;;  %v2081_v15 = vrot.slane %v2071_v21, 1 }
 0x24a   : > { %13271 = vst [vmem:[#allocation73_spill] sm:$0xff] %v6821_v38  ;;  %13272 = vst [vmem:[#allocation74_spill] sm:$0xff] %v6825_v26  ;;  %v6841_v38 = vstv %s6740_s8  ;;  %v6850_v55 = vmul.f32 %v6750_v18, %v6357_v47  ;;  %v1826_v13 = vmul.f32 %v6575_v23, %v6357_v47  ;;  %v2145_v8 = vmul.f32 %v6778_v50, %v6344_v41  ;;  %s6937_s8 = sld [smem:[#allocation6 + $0x7d]] }
 0x24b   : > { %1807 = vrot.lane.b32.xlu0 %v1799_v0, %s6047_s27  ;;  %1809 = vrot.lane.b32.xlu1 %v1800_v45, %s6047_s27  ;;  %13275 = vst [vmem:[#allocation77_spill] sm:$0xff] %v6841_v38  ;;  %v6853_v0 = vstv %s6752_s9  ;;  %v1825_v45 = vmul.f32 %v6575_v23, %v6344_v41  ;;  %v6866_v21 = vsel %vm1130_vm11, %v1506_v52, %v12725_v51  ;;  %v13279_v18 = vrot.slane %v6825_v26, 1  ;;  %s6997_s9 = sld [smem:[#allocation6 + $0xc]] }
 0x24c   : > { %13276 = vst [vmem:[#allocation78_spill] sm:$0xff] %v6850_v55  ;;  %13277 = vst [vmem:[#allocation79_spill] sm:$0xff] %v6853_v0  ;;  %5769 = vmatmul.mubr.msk.f32.gmra.mrb[22].mxu1 %vm270_vm0, %v6312_v34  ;;  %v2118_v34 = vrot.slane %v2108_v53, 1  ;;  %v12728_v22 = vrot.slane %v6850_v55, 1  ;;  %v6885_v52 = vmul.f32 %v6778_v50, %v6357_v47  ;;  %v2155_v51 = vrot.slane %v2145_v8, 1 }
 0x24d   : > { %13278 = vst [vmem:[#allocation80_spill] sm:$0xff] %v6866_v21  ;;  %v6873_v33 = vsel %vm717_vm10, %v2081_v15, %v13279_v18  ;;  %13281 = vst [vmem:[#allocation82_spill] sm:$0xff] %v6877_v32  ;;  %v6888_v23 = vstv %s6790_s26  ;;  %v6891_v18 = vstv %s6792_s7  ;;  %v2182_v15 = vmul.f32 %v6785_v59, %v6344_v41  ;;  %s7021_s26 = sld [smem:[#allocation6 + $0x54]]  ;;  %s7203_s7 = sld [smem:[#allocation6 + $0x78]] }
 0x24e   : > { %13280 = vst [vmem:[#allocation81_spill] sm:$0xff] %v6873_v33  ;;  %13282 = vst [vmem:[#allocation83_spill] sm:$0xff] %v6885_v52  ;;  %v6900_v53 = vsel %vm717_vm10, %v2118_v34, %v12728_v22  ;;  %v6906_v8 = vmul.f32 %v6785_v59, %v6357_v47  ;;  %v1852_v34 = vmul.f32 %v6607_v9, %v6357_v47  ;;  %v12738_v22 = vrot.slane %v6885_v52, 1 }
 0x24f   : > { %1833 = vrot.lane.b32.xlu0 %v1825_v45, %s6047_s27  ;;  %1835 = vrot.lane.b32.xlu1 %v1826_v13, %s6047_s27  ;;  %13283 = vst [vmem:[#allocation84_spill] sm:$0xff] %v6888_v23  ;;  %13284 = vst [vmem:[#allocation85_spill] sm:$0xff] %v6891_v18  ;;  %v6911_v45 = vstv %s6802_s28  ;;  %v1851_v13 = vmul.f32 %v6607_v9, %v6344_v41  ;;  %v2192_v33 = vrot.slane %v2182_v15, 1  ;;  %v6928_v26 = vstv %s6833_s4  ;;  %s7217_s28 = sld [smem:[#allocation6 + $0xf]]  ;;  %s7219_s4 = sld [smem:[#allocation6 + $0x33]] }
 0x250   : > { %13285 = vst [vmem:[#allocation86_spill] sm:$0xff] %v6900_v53  ;;  %13286 = vst [vmem:[#allocation87_spill] sm:$0xff] %v6906_v8  ;;  %v2219_v53 = vmul.f32 %v6788_v42, %v6344_v41  ;;  %v6923_v55 = vmul.f32 %v6788_v42, %v6357_v47  ;;  %v6935_v9 = vsel %vm717_vm10, %v2155_v51, %v12738_v22  ;;  %v6940_v21 = vstv %s6835_s30  ;;  %s7225_s30 = sld [smem:[#allocation6 + $0x57]] }
 0x251   : > { %13287 = vst [vmem:[#allocation88_spill] sm:$0xff] %v6911_v45  ;;  %13289 = vst [vmem:[#allocation90_spill] sm:$0xff] %v6928_v26  ;;  %v6943_v42 = vstv %s6843_s11  ;;  %v13293_v60 = vrot.slane %v6906_v8, 1  ;;  %v2256_v51 = vmul.f32 %v6828_v63, %v6344_v41  ;;  %v1878_v22 = vmul.f32 %v6622_v14, %v6357_v47  ;;  %s7551_s11 = sld [smem:[#allocation6 + $0x7b]] }
 0x252   : > { %13288 = vst [vmem:[#allocation89_spill] sm:$0xff] %v6923_v55  ;;  %13290 = vst [vmem:[#allocation91_spill] sm:$0xff] %v6935_v9  ;;  %v2229_v15 = vrot.slane %v2219_v53, 1  ;;  %v1877_v53 = vmul.f32 %v6622_v14, %v6344_v41  ;;  %v6973_v8 = vmul.f32 %v6831_v17, %v6357_v47  ;;  %v6976_v52 = vstv %s6879_s10  ;;  %s5498_s10 = sld [smem:[#allocation6 + $0x2d]] }
 0x253   : > { %1859 = vrot.lane.b32.xlu0 %v1851_v13, %s6048_s19  ;;  %1861 = vrot.lane.b32.xlu1 %v1852_v34, %s6048_s19  ;;  %13291 = vst [vmem:[#allocation92_spill] sm:$0xff] %v6940_v21  ;;  %13292 = vst [vmem:[#allocation93_spill] sm:$0xff] %v6943_v42  ;;  %v6948_v59 = vsel %vm717_vm10, %v2192_v33, %v13293_v60  ;;  %v12748_v13 = vrot.slane %v6923_v55, 1  ;;  %v6954_v34 = vstv %s6855_s17  ;;  %v2266_v9 = vrot.slane %v2256_v51, 1  ;;  %s5497_s17 = sld [smem:[#allocation6 + $0x9]] }
 0x254   : > { %13294 = vst [vmem:[#allocation94_spill] sm:$0xff] %v6948_v59  ;;  %13295 = vst [vmem:[#allocation95_spill] sm:$0xff] %v6954_v34  ;;  %v6962_v33 = vmul.f32 %v6828_v63, %v6357_v47  ;;  %v2293_v60 = vmul.f32 %v6831_v17, %v6344_v41  ;;  %v6982_v50 = vstv %s6893_s20  ;;  %v6985_v55 = vstv %s6895_s22  ;;  %s5499_s20 = sld [smem:[#allocation6 + $0x51]]  ;;  %s8732_s22 = sld [smem:[#allocation6 + $0x75]] }
 0x255   : > { %v6969_v59 = vsel %vm717_vm10, %v2229_v15, %v12748_v13  ;;  %13298 = vst [vmem:[#allocation98_spill] sm:$0xff] %v6973_v8  ;;  %13299 = vst [vmem:[#allocation99_spill] sm:$0xff] %v6976_v52  ;;  %v2330_v51 = vmul.f32 %v6841_v38, %v6344_v41  ;;  %v6992_v13 = vmul.f32 %v6841_v38, %v6357_v47  ;;  %v13305_v38 = vrot.slane %v6973_v8, 1 }
 0x256   : > { %13296 = vst [vmem:[#allocation96_spill] sm:$0xff] %v6962_v33  ;;  %13297 = vst [vmem:[#allocation97_spill] sm:$0xff] %v6969_v59  ;;  %v12755_v14 = vrot.slane %v6962_v33, 1  ;;  %v2303_v63 = vrot.slane %v2293_v60, 1  ;;  %v1904_v60 = vmul.f32 %v6625_v43, %v6357_v47  ;;  %v2483_v59 = vmul.f32 %v6853_v0, %v6344_v41 }
 0x257   : > { %1885 = vrot.lane.b32.xlu0 %v1877_v53, %s6048_s19  ;;  %1887 = vrot.lane.b32.xlu1 %v1878_v22, %s6048_s19  ;;  %13300 = vst [vmem:[#allocation100_spill] sm:$0xff] %v6982_v50  ;;  %13301 = vst [vmem:[#allocation101_spill] sm:$0xff] %v6985_v55  ;;  %v6995_v53 = vstv %s6908_s29  ;;  %v1903_v22 = vmul.f32 %v6625_v43, %v6344_v41  ;;  %v2340_v55 = vrot.slane %v2330_v51, 1  ;;  %v12758_v1 = vrot.slane %v6992_v13, 1  ;;  %s5544_s29 = sld [smem:[#allocation6 + $0x12]] }
 0x258   : > { %13302 = vst [vmem:[#allocation102_spill] sm:$0xff] %v6992_v13  ;;  %13303 = vst [vmem:[#allocation103_spill] sm:$0xff] %v6995_v53  ;;  %v7006_v15 = vsel %vm717_vm10, %v2266_v9, %v12755_v14  ;;  %v7015_v17 = vsel %vm717_vm10, %v2303_v63, %v13305_v38  ;;  %v7019_v52 = vstv %s6925_s6  ;;  %v7027_v9 = vmul.f32 %v6369_v54, %v6386_v57  ;;  %s5545_s6 = sld [smem:[#allocation6 + $0x36]] }
 0x259   : > { %13304 = vst [vmem:[#allocation104_spill] sm:$0xff] %v7006_v15  ;;  %13306 = vst [vmem:[#allocation105_spill] sm:$0xff] %v7015_v17  ;;  %v7031_v14 = vmul.f32 %v6853_v0, %v6357_v47  ;;  %v2493_v63 = vrot.slane %v2483_v59, 2  ;;  %v7034_v38 = vstv %s6937_s8  ;;  %v1929_v51 = vmul.f32 %v6676_v24, %v6344_v41  ;;  %s5546_s8 = sld [smem:[#allocation6 + $0x5a]] }
 0x25a   : > { %13307 = vst [vmem:[#allocation106_spill] sm:$0xff] %v7019_v52  ;;  %13308 = vst [vmem:[#allocation107_spill] sm:$0xff] %v7027_v9  ;;  %v7047_v43 = vmul.f32 %v6877_v32, %v6357_v47  ;;  %v1930_v59 = vmul.f32 %v6676_v24, %v6357_v47  ;;  %v7053_v17 = vmul.f32 %v6380_v56, %v6386_v57  ;;  %v7065_v24 = vpop.f32.mrb[10].mxu0  ;;  %v7088_v0 = vstv %s6997_s9  ;;  %s8938_s9 = sld [smem:[#allocation6 + $0x7e]] }
 0x25b   : > { %1911 = vrot.lane.b32.xlu0 %v1903_v22, %s6048_s19  ;;  %1913 = vrot.lane.b32.xlu1 %v1904_v60, %s6048_s19  ;;  %13309 = vst [vmem:[#allocation108_spill] sm:$0xff] %v7031_v14  ;;  %13310 = vst [vmem:[#allocation109_spill] sm:$0xff] %v7034_v38  ;;  %v7041_v22 = vsel %vm717_vm10, %v2340_v55, %v12758_v1  ;;  %v2520_v60 = vmul.f32 %v6877_v32, %v6344_v41  ;;  %v5744_v32 = vpop.f32.mrb[11].mxu0 }
 0x25c   : > { %13311 = vst [vmem:[#allocation110_spill] sm:$0xff] %v7041_v22  ;;  %13312 = vst [vmem:[#allocation111_spill] sm:$0xff] %v7047_v43  ;;  %v2557_v55 = vmul.f32 %v6888_v23, %v6344_v41  ;;  %v501_v1 = vmul.f32 %v6336_v39, %v6386_v57  ;;  %v7063_v8 = vmul.f32 %v6888_v23, %v6357_v47 }
 0x25d   : > { %13313 = vst [vmem:[#allocation112_spill] sm:$0xff] %v7053_v17  ;;  %v2530_v22 = vrot.slane %v2520_v60, 2  ;;  %13315 = vst [vmem:[#allocation114_spill] sm:$0xff] %v7065_v24  ;;  %v7072_v33 = vmul.f32 %v6400_v62, %v6386_v57  ;;  %v13317_v60 = vrot.slane %v7031_v14, 2  ;;  %v13319_v24 = vrot.slane %v7047_v43, 2 }
 0x25e   : > { %13314 = vst [vmem:[#allocation113_spill] sm:$0xff] %v7063_v8  ;;  %v2567_v23 = vrot.slane %v2557_v55, 2  ;;  %v2594_v15 = vmul.f32 %v6891_v18, %v6344_v41  ;;  %13321 = vst [vmem:[#allocation118_spill] sm:$0xff] %v7088_v0  ;;  %v500_v14 = vmul.f32 %v6336_v39, %v6355_v46  ;;  %v7095_v32 = vmul.f32 %v6891_v18, %v6357_v47 }
 0x25f   : > { %1937 = vrot.lane.b32.xlu0 %v1929_v51, %s6048_s19  ;;  %1939 = vrot.lane.b32.xlu1 %v1930_v59, %s6048_s19  ;;  %13316 = vst [vmem:[#allocation115_spill] sm:$0xff] %v7072_v33  ;;  %v7077_v13 = vsel %vm1130_vm11, %v2493_v63, %v13317_v60  ;;  %v7082_v51 = vsel %vm1130_vm11, %v2530_v22, %v13319_v24  ;;  %v12774_v59 = vrot.slane %v7063_v8, 2  ;;  %v7098_v55 = vstv %s7010_s23  ;;  %s5560_s23 = sld [smem:[#allocation6 + $0x16]] }
 0x260   : > { %13318 = vst [vmem:[#allocation116_spill] sm:$0xff] %v7077_v13  ;;  %13320 = vst [vmem:[#allocation117_spill] sm:$0xff] %v7082_v51  ;;  %v2604_v22 = vrot.slane %v2594_v15, 2  ;;  %v2631_v60 = vmul.f32 %v6982_v50, %v6344_v41  ;;  %v7107_v51 = vpop.f32.mrb[12].mxu0  ;;  %v7110_v39 = vstv %s7021_s26  ;;  %v13326_v63 = vrot.slane %v7027_v9, 1  ;;  %s5561_s26 = sld [smem:[#allocation6 + $0x3a]] }
 0x261   : > { %13322 = vst [vmem:[#allocation119_spill] sm:$0xff] %v7095_v32  ;;  %13323 = vst [vmem:[#allocation120_spill] sm:$0xff] %v7098_v55  ;;  %v7103_v24 = vsel %vm1130_vm11, %v2567_v23, %v12774_v59  ;;  %v13327_v13 = vrot.slane %v6412_v3, 1  ;;  %v7123_v59 = vmul.f32 %v6982_v50, %v6357_v47  ;;  %v707_v3 = vmul.f32 %v6757_v61, %v6342_v40 }
 0x262   : > { %13324 = vst [vmem:[#allocation121_spill] sm:$0xff] %v7103_v24  ;;  %13325 = vst [vmem:[#allocation122_spill] sm:$0xff] %v7110_v39  ;;  %v7125_v24 = vpop.f32.mrb[13].mxu0  ;;  %v13331_v23 = vrot.slane %v6418_v6, 1  ;;  %v13332_v9 = vrot.slane %v7095_v32, 2  ;;  %v7152_v18 = vmul.f32 %v6444_v16, %v6386_v57  ;;  %v2668_v6 = vmul.f32 %v6995_v53, %v6344_v41 }
 0x263   : > { %509 = vrot.lane.b32.xlu0 %v500_v14, %s6047_s27  ;;  %511 = vrot.lane.b32.xlu1 %v501_v1, %s6047_s27  ;;  %v838_v8 = vsel %vm717_vm10, %v13327_v13, %v13326_v63  ;;  %13328 = vst [vmem:[#allocation123_spill] sm:$0xff] %v7123_v59  ;;  %v7129_v14 = vmul.f32 %v6421_v7, %v6386_v57  ;;  %v2641_v1 = vrot.slane %v2631_v60, 2  ;;  %v13330_v63 = vrot.slane %v7053_v17, 1 }
 0x264   : > { %v708_v13 = vmul.f32 %v6757_v61, %v6355_v46  ;;  %v7143_v43 = vsel %vm1130_vm11, %v2604_v22, %v13332_v9  ;;  %v12785_v50 = vrot.slane %v7123_v59, 2  ;;  %v7148_v60 = vmul.f32 %v6757_v61, %v6386_v57  ;;  %13335 = vst [vmem:[#allocation127_spill] sm:$0xff] %v7152_v18 }
 0x265   : > { %13329 = vst [vmem:[#allocation124_spill] sm:$0xff] %v7129_v14  ;;  %v875_v15 = vsel %vm717_vm10, %v13331_v23, %v13330_v63  ;;  %13333 = vst [vmem:[#allocation125_spill] sm:$0xff] %v7143_v43  ;;  %v718_v17 = vrot.slane %v707_v3, 1  ;;  %v13336_v9 = vrot.slane %v7072_v33, 1  ;;  %v13337_v22 = vrot.slane %v6434_v11, 1 }
 0x266   : > { %13334 = vst [vmem:[#allocation126_spill] sm:$0xff] %v7148_v60  ;;  %v719_v7 = vrot.slane %v708_v13, 1  ;;  %v7167_v63 = vsel %vm1130_vm11, %v2641_v1, %v12785_v50  ;;  %v12786_v3 = vrot.slane %v7148_v60, 1  ;;  %v7172_v13 = vmul.f32 %v6995_v53, %v6357_v47  ;;  %v13426_v53 = vld [vmem:[#allocation46_spill] sm:$0xff] }
 0x267   : > { %843 = vrot.lane.b32.xlu0 %v6453_v20, %s6047_s27  ;;  %845 = vrot.lane.b32.xlu1 %v838_v8, %s6047_s27  ;;  %v912_v23 = vsel %vm717_vm10, %v13337_v22, %v13336_v9  ;;  %13338 = vst [vmem:[#allocation128_spill] sm:$0xff] %v7167_v63  ;;  %v2678_v33 = vrot.slane %v2668_v6, 2  ;;  %v737_v11 = vmul.f32 %v6911_v45, %v6342_v40 }
 0x268   : > { %13339 = vst [vmem:[#allocation129_spill] sm:$0xff] %v7172_v13  ;;  %v7176_v8 = vsel %vm717_vm10, %v718_v17, %v719_v7  ;;  %v7182_v9 = vmul.f32 %v6466_v27, %v6386_v57  ;;  %v7187_v1 = vsel %vm717_vm10, %v719_v7, %v12786_v3  ;;  %v12789_v22 = vrot.slane %v7172_v13, 2 }
 0x269   : > { %13341 = vst [vmem:[#allocation131_spill] sm:$0xff] %v7187_v1  ;;  %v738_v50 = vmul.f32 %v6911_v45, %v6355_v46  ;;  %v7195_v6 = vmul.f32 %v6911_v45, %v6386_v57  ;;  %v2705_v20 = vmul.f32 %v7019_v52, %v6344_v41  ;;  %v7201_v63 = vmul.f32 %v7019_v52, %v6357_v47  ;;  %v13425_v45 = vld [vmem:[#allocation16_spill] sm:$0xff] }
 0x26a   : > { %13340 = vst [vmem:[#allocation130_spill] sm:$0xff] %v7182_v9  ;;  %v7210_v7 = vmul.f32 %v6469_v29, %v6386_v57  ;;  %v7215_v3 = vsel %vm1130_vm11, %v2678_v33, %v12789_v22  ;;  %v747_v17 = vrot.slane %v737_v11, 1  ;;  %v766_v60 = vmul.f32 %v6928_v26, %v6342_v40 }
 0x26b   : > { %13342 = vst [vmem:[#allocation132_spill] sm:$0xff] %v7195_v6  ;;  %13343 = vst [vmem:[#allocation133_spill] sm:$0xff] %v7201_v63  ;;  %880 = vrot.lane.b32.xlu0 %v6461_v25, %s6047_s27  ;;  %882 = vrot.lane.b32.xlu1 %v875_v15, %s6047_s27  ;;  %v748_v1 = vrot.slane %v738_v50, 1  ;;  %v12794_v43 = vrot.slane %v7195_v6, 1  ;;  %v2715_v25 = vrot.slane %v2705_v20, 2  ;;  %v12793_v15 = vrot.slane %v7201_v63, 2 }
 0x26c   : > { %13344 = vst [vmem:[#allocation134_spill] sm:$0xff] %v7210_v7  ;;  %13345 = vst [vmem:[#allocation135_spill] sm:$0xff] %v7215_v3  ;;  %v767_v50 = vmul.f32 %v6928_v26, %v6355_v46  ;;  %v7235_v11 = vmul.f32 %v6928_v26, %v6386_v57  ;;  %v7239_v20 = vmul.f32 %v6487_v36, %v6386_v57  ;;  %v776_v3 = vrot.slane %v766_v60, 1 }
 0x26d   : > { %v7229_v33 = vsel %vm717_vm10, %v747_v17, %v748_v1  ;;  %v7244_v22 = vsel %vm717_vm10, %v748_v1, %v12794_v43  ;;  %v7249_v17 = vsel %vm1130_vm11, %v2715_v25, %v12793_v15  ;;  %v2742_v13 = vmul.f32 %v7034_v38, %v6344_v41 }
 0x26e   : > { %13346 = vst [vmem:[#allocation136_spill] sm:$0xff] %v7235_v11  ;;  %13347 = vst [vmem:[#allocation137_spill] sm:$0xff] %v7239_v20  ;;  %v777_v26 = vrot.slane %v767_v50, 1  ;;  %v12795_v6 = vrot.slane %v7235_v11, 1  ;;  %v7259_v1 = vmul.f32 %v7034_v38, %v6357_v47  ;;  %v5823_v43 = vpack.c.bf16 %v7107_v51, %v7125_v24 }
 0x26f   : > { %13348 = vst [vmem:[#allocation138_spill] sm:$0xff] %v7249_v17  ;;  %917 = vrot.lane.b32.xlu0 %v6480_v31, %s6047_s27  ;;  %919 = vrot.lane.b32.xlu1 %v912_v23, %s6047_s27  ;;  %v2752_v15 = vrot.slane %v2742_v13, 2  ;;  %v795_v31 = vmul.f32 %v6940_v21, %v6342_v40  ;;  %v796_v13 = vmul.f32 %v6940_v21, %v6355_v46  ;;  %v13350_v51 = vrot.slane %v7129_v14, 1 }
 0x270   : > { %13349 = vst [vmem:[#allocation139_spill] sm:$0xff] %v7259_v1  ;;  %v7267_v23 = vsel %vm717_vm10, %v776_v3, %v777_v26  ;;  %v7272_v60 = vsel %vm717_vm10, %v777_v26, %v12795_v6  ;;  %v12800_v50 = vrot.slane %v7259_v1, 2  ;;  %v13351_v24 = vrot.slane %v6484_v35, 1  ;;  %5824 = vmatpush3.bf16.msra.mxu0 %v5823_v43 }
 0x271   : > { %v7284_v25 = vmul.f32 %v6490_v37, %v6386_v57  ;;  %v7288_v26 = vmul.f32 %v6940_v21, %v6386_v57  ;;  %v7291_v6 = vstv %s7203_s7  ;;  %v806_v14 = vrot.slane %v796_v13, 1  ;;  %v13398_v21 = vld [vmem:[#allocation52_spill] sm:$0xff]  ;;  %s5562_s7 = sld [smem:[#allocation6 + $0x5e]] }
 0x272   : > { %v949_v3 = vsel %vm717_vm10, %v13351_v24, %v13350_v51  ;;  %13354 = vst [vmem:[#allocation142_spill] sm:$0xff] %v7291_v6  ;;  %v7300_v51 = vsel %vm1130_vm11, %v2752_v15, %v12800_v50  ;;  %v805_v24 = vrot.slane %v795_v31, 1  ;;  %v7304_v63 = vstv %s7217_s28  ;;  %s5563_s28 = sld [smem:[#allocation6 + $0x82]] }
 0x273   : > { %13352 = vst [vmem:[#allocation140_spill] sm:$0xff] %v7284_v25  ;;  %13353 = vst [vmem:[#allocation141_spill] sm:$0xff] %v7288_v26  ;;  %954 = vrot.lane.b32.xlu0 %v6532_v10, %s6047_s27  ;;  %956 = vrot.lane.b32.xlu1 %v949_v3, %s6047_s27  ;;  %v7307_v43 = vstv %s7219_s4  ;;  %v7310_v11 = vstv %s7225_s30  ;;  %v13359_v10 = vrot.slane %v7152_v18, 1  ;;  %v13360_v3 = vrot.slane %v6500_v44, 1  ;;  %s5564_s4 = sld [smem:[#allocation6 + $0x17]]  ;;  %s5565_s30 = sld [smem:[#allocation6 + $0x3b]] }
 0x274   : > { %13355 = vst [vmem:[#allocation143_spill] sm:$0xff] %v7300_v51  ;;  %13356 = vst [vmem:[#allocation144_spill] sm:$0xff] %v7304_v63  ;;  %v13361_v1 = vrot.slane %v7182_v9, 1  ;;  %v13362_v15 = vrot.slane %v6515_v4, 1  ;;  %v13363_v13 = vrot.slane %v7210_v7, 1  ;;  %v13364_v50 = vrot.slane %v6553_v49, 1  ;;  %5783 = vmatmul.mubr.msk.f32.vlgmr.msra.gmra.mrb[14].mxu0 %vm270_vm0, %v6260_v28 }
 0x275   : > { %13357 = vst [vmem:[#allocation145_spill] sm:$0xff] %v7307_v43  ;;  %13358 = vst [vmem:[#allocation146_spill] sm:$0xff] %v7310_v11  ;;  %v986_v35 = vsel %vm717_vm10, %v13360_v3, %v13359_v10  ;;  %v7328_v51 = vsel %vm717_vm10, %v805_v24, %v806_v14  ;;  %v7334_v44 = vmul.f32 %v6503_v48, %v6386_v57  ;;  %v13367_v4 = vrot.slane %v7288_v26, 1  ;;  %v13386_v9 = vld [vmem:[#allocation48_spill] sm:$0xff] }
 0x276   : > { %v1023_v31 = vsel %vm717_vm10, %v13362_v15, %v13361_v1  ;;  %v1060_v17 = vsel %vm717_vm10, %v13364_v50, %v13363_v13  ;;  %13365 = vst [vmem:[#allocation147_spill] sm:$0xff] %v7328_v51  ;;  %5785 = vmatprep.mubr.msk.f32.mxu0 %vm6045_vm8, %v13244_v58  ;;  %v1120_v49 = vmul.f32 %v6943_v42, %v6342_v40  ;;  %v13369_v28 = vrot.slane %v7239_v20, 1  ;;  %v13491_v51 = vld [vmem:[#allocation66_spill] sm:$0xff] }
 0x277   : > { %13366 = vst [vmem:[#allocation148_spill] sm:$0xff] %v7334_v44  ;;  %v7339_v1 = vsel %vm717_vm10, %v806_v14, %v13367_v4  ;;  %v1121_v50 = vmul.f32 %v6943_v42, %v6355_v46  ;;  %991 = vrot.lane.b32.xlu0 %v6540_v19, %s6048_s19  ;;  %993 = vrot.lane.b32.xlu1 %v986_v35, %s6048_s19  ;;  %v13370_v24 = vrot.slane %v6567_v2, 1 }
 0x278   : > { %13368 = vst [vmem:[#allocation149_spill] sm:$0xff] %v7339_v1  ;;  %v7358_v3 = vmul.f32 %v6518_v5, %v6386_v57  ;;  %v7362_v15 = vmul.f32 %v6943_v42, %v6386_v57  ;;  %v1131_v13 = vrot.slane %v1120_v49, 2  ;;  %v1150_v35 = vmul.f32 %v6954_v34, %v6342_v40  ;;  %5786 = vmatmul.mubr.msk.f32.gmra.mrb[16].mxu0 %vm270_vm0, %v6274_v30  ;;  %v13375_v49 = vld [vmem:[#allocation99_spill] sm:$0xff]  ;;  %v13396_v42 = vld [vmem:[#allocation45_spill] sm:$0xff] }
 0x279   : > { %v1097_v14 = vsel %vm717_vm10, %v13370_v24, %v13369_v28  ;;  %v1132_v19 = vrot.slane %v1121_v50, 2  ;;  %v1151_v2 = vmul.f32 %v6954_v34, %v6355_v46  ;;  %v7370_v4 = vmul.f32 %v6535_v12, %v6386_v57  ;;  %5788 = vmatprep.mubr.msk.f32.mxu0 %vm6045_vm8, %v13244_v58  ;;  %v13377_v28 = vld [vmem:[#allocation36_spill] sm:$0xff]  ;;  %v13493_v1 = vld [vmem:[#allocation77_spill] sm:$0xff] }
 0x27a   : > { %13371 = vst [vmem:[#allocation150_spill] sm:$0xff] %v7358_v3  ;;  %13372 = vst [vmem:[#allocation151_spill] sm:$0xff] %v7362_v15  ;;  %v7377_v24 = vmul.f32 %v6954_v34, %v6386_v57  ;;  %v1179_v50 = vmul.f32 %v13375_v49, %v6342_v40  ;;  %v1160_v20 = vrot.slane %v1150_v35, 2  ;;  %v1180_v30 = vmul.f32 %v13375_v49, %v6355_v46 }
 0x27b   : > { %13373 = vst [vmem:[#allocation152_spill] sm:$0xff] %v7370_v4  ;;  %v7384_v10 = vsel %vm1130_vm11, %v1131_v13, %v1132_v19  ;;  %v1161_v7 = vrot.slane %v1151_v2, 2  ;;  %1028 = vrot.lane.b32.xlu0 %v13377_v28, %s6048_s19  ;;  %1030 = vrot.lane.b32.xlu1 %v1023_v31, %s6048_s19  ;;  %v13378_v26 = vrot.slane %v7362_v15, 2  ;;  %v7404_v28 = vmul.f32 %v13375_v49, %v6386_v57  ;;  %v13382_v31 = vld [vmem:[#allocation14_spill] sm:$0xff] }
 0x27c   : > { %13374 = vst [vmem:[#allocation153_spill] sm:$0xff] %v7377_v24  ;;  %13376 = vst [vmem:[#allocation154_spill] sm:$0xff] %v7384_v10  ;;  %v12808_v13 = vrot.slane %v7377_v24, 2  ;;  %v1189_v2 = vrot.slane %v1179_v50, 2  ;;  %v1190_v10 = vrot.slane %v1180_v30, 2  ;;  %5789 = vmatmul.mubr.msk.f32.gmra.mrb[18].mxu0 %vm270_vm0, %v13382_v31  ;;  %v7424_v31 = vmul.f32 %v13386_v9, %v6386_v57 }
 0x27d   : > { %v7396_v34 = vsel %vm1130_vm11, %v1132_v19, %v13378_v26  ;;  %v7400_v35 = vsel %vm1130_vm11, %v1160_v20, %v1161_v7  ;;  %13381 = vst [vmem:[#allocation156_spill] sm:$0xff] %v7404_v28  ;;  %v13384_v26 = vld [vmem:[#allocation101_spill] sm:$0xff]  ;;  %5791 = vmatprep.mubr.msk.f32.mxu0 %vm6045_vm8, %v13244_v58  ;;  %v13395_v49 = vrot.slane %v7334_v44, 2  ;;  %v7452_v38 = vmul.f32 %v13398_v21, %v6342_v40  ;;  %v13427_v21 = vld [vmem:[#allocation68_spill] sm:$0xff] }
 0x27e   : > { %13379 = vst [vmem:[#allocation36_spill] sm:$0xff] %v7396_v34  ;;  %13380 = vst [vmem:[#allocation155_spill] sm:$0xff] %v7400_v35  ;;  %v7411_v18 = vsel %vm1130_vm11, %v1161_v7, %v12808_v13  ;;  %v1208_v19 = vmul.f32 %v13384_v26, %v6342_v40  ;;  %v1209_v20 = vmul.f32 %v13384_v26, %v6355_v46  ;;  %v13389_v13 = vld [vmem:[#allocation40_spill] sm:$0xff]  ;;  %v13401_v24 = vrot.slane %v7358_v3, 2  ;;  %v13416_v3 = vld [vmem:[#allocation61_spill] sm:$0xff] }
 0x27f   : > { %13383 = vst [vmem:[#allocation14_spill] sm:$0xff] %v7411_v18  ;;  %v7419_v50 = vmul.f32 %v13384_v26, %v6386_v57  ;;  %13387 = vst [vmem:[#allocation48_spill] sm:$0xff] %v7424_v31  ;;  %v7427_v35 = vsel %vm1130_vm11, %v1189_v2, %v1190_v10  ;;  %1065 = vrot.lane.b32.xlu0 %v13389_v13, %s6048_s19  ;;  %1067 = vrot.lane.b32.xlu1 %v1060_v17, %s6048_s19  ;;  %v13390_v18 = vld [vmem:[#allocation54_spill] sm:$0xff]  ;;  %v13392_v2 = vrot.slane %v7284_v25, 2 }
 0x280   : > { %13388 = vst [vmem:[#allocation158_spill] sm:$0xff] %v7427_v35  ;;  %v7437_v30 = vmul.f32 %v13390_v18, %v6386_v57  ;;  %v1218_v34 = vrot.slane %v1208_v19, 2  ;;  %v1219_v26 = vrot.slane %v1209_v20, 2  ;;  %v13393_v35 = vld [vmem:[#allocation39_spill] sm:$0xff]  ;;  %v13397_v13 = vrot.slane %v13396_v42, 2  ;;  %v13404_v42 = vld [vmem:[#allocation56_spill] sm:$0xff] }
 0x281   : > { %13385 = vst [vmem:[#allocation157_spill] sm:$0xff] %v7419_v50  ;;  %v13394_v7 = vrot.slane %v13393_v35, 2  ;;  %v13399_v19 = vrot.slane %v7404_v28, 2  ;;  %v13402_v35 = vld [vmem:[#allocation47_spill] sm:$0xff]  ;;  %v2013_v59 = vmul.f32 %v7110_v39, %v6344_v41 }
 0x282   : > { %13391 = vst [vmem:[#allocation40_spill] sm:$0xff] %v7437_v30  ;;  %v1288_v17 = vsel %vm1130_vm11, %v13397_v13, %v13395_v49  ;;  %v13403_v25 = vrot.slane %v13402_v35, 2  ;;  %v7471_v49 = vsel %vm1130_vm11, %v1218_v34, %v1219_v26  ;;  %v13406_v13 = vrot.slane %v7419_v50, 2  ;;  %v13410_v35 = vld [vmem:[#allocation49_spill] sm:$0xff] }
 0x283   : > { %v1251_v15 = vsel %vm1130_vm11, %v13394_v7, %v13392_v2  ;;  %v7457_v20 = vsel %vm1130_vm11, %v1190_v10, %v13399_v19  ;;  %v7468_v2 = vmul.f32 %v13404_v42, %v6342_v40  ;;  %13405 = vst [vmem:[#allocation39_spill] sm:$0xff] %v7471_v49  ;;  %v13408_v10 = vld [vmem:[#allocation15_spill] sm:$0xff]  ;;  %v13409_v19 = vrot.slane %v7370_v4, 2  ;;  %v13412_v49 = vld [vmem:[#allocation58_spill] sm:$0xff]  ;;  %1104 = vrot.lane.b32.xlu1 %v1097_v14, %s6048_s19 }
 0x284   : > { %13400 = vst [vmem:[#allocation54_spill] sm:$0xff] %v7457_v20  ;;  %v7464_v7 = vsel %vm1130_vm11, %v13403_v25, %v13401_v24  ;;  %v7476_v44 = vsel %vm1130_vm11, %v1219_v26, %v13406_v13  ;;  %5792 = vmatmul.mubr.msk.f32.gmra.mrb[20].mxu0 %vm270_vm0, %v13408_v10  ;;  %v13411_v25 = vrot.slane %v13410_v35, 2  ;;  %v7490_v34 = vmul.f32 %v13404_v42, %v6355_v46  ;;  %v13413_v13 = vld [vmem:[#allocation42_spill] sm:$0xff]  ;;  %v13414_v35 = vld [vmem:[#allocation59_spill] sm:$0xff] }
 0x285   : > { %13407 = vst [vmem:[#allocation45_spill] sm:$0xff] %v7476_v44  ;;  %v7494_v26 = vmul.f32 %v13412_v49, %v6342_v40  ;;  %5794 = vmatprep.mubr.msk.f32.mxu0 %vm6045_vm8, %v13244_v58  ;;  %1102 = vrot.lane.b32.xlu0 %v13413_v13, %s6048_s19  ;;  %v7512_v42 = vmul.f32 %v13416_v3, %v6386_v57  ;;  %v13418_v58 = vld [vmem:[#allocation29_spill] sm:$0xff]  ;;  %v13419_v4 = vld [vmem:[#allocation63_spill] sm:$0xff] }
 0x286   : > { %v7485_v24 = vsel %vm1130_vm11, %v13411_v25, %v13409_v19  ;;  %v7504_v19 = vmul.f32 %v13412_v49, %v6355_v46  ;;  %v7508_v25 = vmul.f32 %v13414_v35, %v6386_v57  ;;  %v7516_v44 = vmul.f32 %v13419_v4, %v13418_v58  ;;  %v13422_v49 = vld [vmem:[#allocation64_spill] sm:$0xff] }
 0x287   : > { %13417 = vst [vmem:[#allocation15_spill] sm:$0xff] %v7512_v42  ;;  %v1955_v14 = vmul.f32 %v7088_v0, %v6344_v41  ;;  %v1956_v13 = vmul.f32 %v7088_v0, %v6357_v47  ;;  %v7524_v10 = vmul.f32 %v7088_v0, %v13418_v58  ;;  %v7528_v20 = vmul.f32 %v13422_v49, %v13418_v58 }
 0x288   : > { %13415 = vst [vmem:[#allocation47_spill] sm:$0xff] %v7508_v25  ;;  %13420 = vst [vmem:[#allocation49_spill] sm:$0xff] %v7516_v44  ;;  %v1984_v57 = vmul.f32 %v7098_v55, %v6344_v41  ;;  %v1985_v50 = vmul.f32 %v7098_v55, %v6357_v47  ;;  %v7536_v28 = vmul.f32 %v7098_v55, %v13418_v58  ;;  %5795 = vmatmul.mubr.msk.f32.gmra.mrb[22].mxu0 %vm270_vm0, %v13425_v45  ;;  %vm5275_vm0 = vcmask 261120  }
 0x289   : > { %13421 = vst [vmem:[#allocation42_spill] sm:$0xff] %v7524_v10  ;;  %13423 = vst [vmem:[#allocation59_spill] sm:$0xff] %v7528_v20  ;;  %v1965_v61 = vrot.slane %v1955_v14, 1  ;;  %v1966_v0 = vrot.slane %v1956_v13, 1  ;;  %v12843_v52 = vrot.slane %v7524_v10, 1  ;;  %1256 = vrot.lane.b32.xlu0 %v13426_v53, %s6047_s27  ;;  %1258 = vrot.lane.b32.xlu1 %v1251_v15, %s6047_s27  ;;  %v7548_v32 = vmul.f32 %v13427_v21, %v13418_v58  ;;  %v13431_v21 = vld [vmem:[#allocation69_spill] sm:$0xff] }
 0x28a   : > { %13424 = vst [vmem:[#allocation29_spill] sm:$0xff] %v7536_v28  ;;  %v1994_v55 = vrot.slane %v1984_v57, 1  ;;  %v1995_v49 = vrot.slane %v1985_v50, 1  ;;  %v12844_v45 = vrot.slane %v7536_v28, 1  ;;  %v2014_v53 = vmul.f32 %v7110_v39, %v6357_v47 }
 0x28b   : > { %13428 = vst [vmem:[#allocation16_spill] sm:$0xff] %v7548_v32  ;;  %v7554_v14 = vsel %vm717_vm10, %v1965_v61, %v1966_v0  ;;  %v7559_v13 = vsel %vm717_vm10, %v1966_v0, %v12843_v52  ;;  %v2023_v15 = vrot.slane %v2013_v59, 1  ;;  %v7565_v57 = vmul.f32 %v13431_v21, %v13418_v58 }
 0x28c   : > { %13429 = vst [vmem:[#allocation46_spill] sm:$0xff] %v7554_v14  ;;  %13430 = vst [vmem:[#allocation159_spill] sm:$0xff] %v7559_v13  ;;  %v7568_v50 = vsel %vm717_vm10, %v1994_v55, %v1995_v49  ;;  %v7573_v61 = vsel %vm717_vm10, %v1995_v49, %v12844_v45  ;;  %v7577_v0 = vmul.f32 %v7110_v39, %v13418_v58  ;;  %v2024_v52 = vrot.slane %v2014_v53, 1  ;;  %v13440_v39 = vld [vmem:[#allocation55_spill] sm:$0xff] }
 0x28d   : > { %13432 = vst [vmem:[#allocation160_spill] sm:$0xff] %v7565_v57  ;;  %13433 = vst [vmem:[#allocation161_spill] sm:$0xff] %v7568_v50  ;;  %v2042_v59 = vmul.f32 %v7291_v6, %v6344_v41  ;;  %v2043_v13 = vmul.f32 %v7291_v6, %v6357_v47  ;;  %v7585_v55 = vmul.f32 %v7291_v6, %v13418_v58  ;;  %v13437_v50 = vld [vmem:[#allocation51_spill] sm:$0xff]  ;;  %1295 = vrot.lane.b32.xlu1 %v1288_v17, %s6047_s27 }
 0x28e   : > { %13434 = vst [vmem:[#allocation162_spill] sm:$0xff] %v7573_v61  ;;  %13435 = vst [vmem:[#allocation163_spill] sm:$0xff] %v7577_v0  ;;  %1293 = vrot.lane.b32.xlu0 %v13437_v50, %s6047_s27  ;;  %v12852_v61 = vrot.slane %v7577_v0, 1  ;;  %v7595_v14 = vsel %vm717_vm10, %v2023_v15, %v2024_v52  ;;  %v13439_v50 = vrot.slane %v7424_v31, 2  ;;  %v13441_v17 = vrot.slane %v13440_v39, 2  ;;  %v13452_v53 = vld [vmem:[#allocation67_spill] sm:$0xff] }
 0x28f   : > { %13436 = vst [vmem:[#allocation164_spill] sm:$0xff] %v7585_v55  ;;  %13438 = vst [vmem:[#allocation51_spill] sm:$0xff] %v7595_v14  ;;  %v2052_v28 = vrot.slane %v2042_v59, 1  ;;  %v2053_v10 = vrot.slane %v2043_v13, 1  ;;  %v13443_v59 = vld [vmem:[#allocation60_spill] sm:$0xff]  ;;  %v13445_v39 = vrot.slane %v7585_v55, 1 }
 0x290   : > { %v1399_v49 = vsel %vm1130_vm11, %v13441_v17, %v13439_v50  ;;  %v7608_v15 = vsel %vm717_vm10, %v2024_v52, %v12852_v61  ;;  %v7612_v13 = vmul.f32 %v13443_v59, %v6342_v40  ;;  %v13447_v17 = vld [vmem:[#allocation53_spill] sm:$0xff]  ;;  %v13448_v52 = vrot.slane %v7437_v30, 2  ;;  %v13449_v40 = vld [vmem:[#allocation62_spill] sm:$0xff] }
 0x291   : > { %13442 = vst [vmem:[#allocation55_spill] sm:$0xff] %v7608_v15  ;;  %v7616_v31 = vsel %vm717_vm10, %v2052_v28, %v2053_v10  ;;  %v7621_v50 = vsel %vm717_vm10, %v2053_v10, %v13445_v39  ;;  %1332 = vrot.lane.b32.xlu1 %v7464_v7, %s6047_s27  ;;  %v13450_v61 = vrot.slane %v13449_v40, 2  ;;  %v13451_v28 = vrot.slane %v7508_v25, 2  ;;  %v13462_v25 = vld [vmem:[#allocation78_spill] sm:$0xff]  ;;  %v13476_v14 = vld [vmem:[#allocation57_spill] sm:$0xff] }
 0x292   : > { %13444 = vst [vmem:[#allocation165_spill] sm:$0xff] %v7616_v31  ;;  %13446 = vst [vmem:[#allocation166_spill] sm:$0xff] %v7621_v50  ;;  %1330 = vrot.lane.b32.xlu0 %v13447_v17, %s6047_s27  ;;  %v13453_v45 = vrot.slane %v13452_v53, 2  ;;  %v7641_v10 = vmul.f32 %v13443_v59, %v6355_v46  ;;  %v7644_v39 = vstv %s7551_s11  ;;  %v13455_v7 = vrot.slane %v7512_v42, 2  ;;  %v13456_v17 = vld [vmem:[#allocation72_spill] sm:$0xff]  ;;  %s5566_s11 = sld [smem:[#allocation6 + $0x5f]] }
 0x293   : > { %v1436_v6 = vsel %vm1130_vm11, %v13450_v61, %v13448_v52  ;;  %13454 = vst [vmem:[#allocation53_spill] sm:$0xff] %v7644_v39  ;;  %v13457_v30 = vrot.slane %v13456_v17, 2  ;;  %v13458_v61 = vrot.slane %v7516_v44, 1  ;;  %v13459_v52 = vld [vmem:[#allocation74_spill] sm:$0xff]  ;;  %v2368_v59 = vmul.f32 %v7304_v63, %v6357_v47  ;;  %v13465_v44 = vld [vmem:[#allocation83_spill] sm:$0xff] }
 0x294   : > { %v7637_v31 = vsel %vm1130_vm11, %v13453_v45, %v13451_v28  ;;  %v13460_v53 = vrot.slane %v13459_v52, 1  ;;  %v2367_v28 = vmul.f32 %v7304_v63, %v6344_v41  ;;  %v13461_v42 = vrot.slane %v7528_v20, 1 }
 0x295   : > { %v7651_v40 = vsel %vm1130_vm11, %v13457_v30, %v13455_v7  ;;  %v13463_v17 = vrot.slane %v13462_v25, 1  ;;  %v13464_v7 = vrot.slane %v7548_v32, 1  ;;  %v13466_v52 = vrot.slane %v13465_v44, 1  ;;  %v13469_v25 = vld [vmem:[#allocation87_spill] sm:$0xff]  ;;  %1369 = vrot.lane.b32.xlu1 %v7485_v24, %s6047_s27 }
 0x296   : > { %v7658_v45 = vsel %vm717_vm10, %v13460_v53, %v13458_v61  ;;  %v7680_v53 = vmul.f32 %v7304_v63, %v13418_v58  ;;  %v2396_v50 = vmul.f32 %v7307_v43, %v6344_v41  ;;  %v13468_v20 = vrot.slane %v7565_v57, 1  ;;  %1367 = vrot.lane.b32.xlu0 %v13476_v14, %s6047_s27 }
 0x297   : > { %v7669_v30 = vsel %vm717_vm10, %v13463_v17, %v13461_v42  ;;  %v7676_v61 = vsel %vm717_vm10, %v13466_v52, %v13464_v7  ;;  %v13470_v15 = vrot.slane %v13469_v25, 1  ;;  %v13472_v17 = vld [vmem:[#allocation70_spill] sm:$0xff]  ;;  %v13474_v7 = vld [vmem:[#allocation75_spill] sm:$0xff]  ;;  %v2377_v32 = vrot.slane %v2367_v28, 2  ;;  %v13477_v25 = vld [vmem:[#allocation76_spill] sm:$0xff] }
 0x298   : > { %13467 = vst [vmem:[#allocation62_spill] sm:$0xff] %v7680_v53  ;;  %v7693_v44 = vmul.f32 %v13472_v17, %v13418_v58  ;;  %v7697_v52 = vmul.f32 %v13474_v7, %v13418_v58  ;;  %v7705_v57 = vmul.f32 %v13477_v25, %v13418_v58  ;;  %v2378_v63 = vrot.slane %v2368_v59, 2  ;;  %v7722_v25 = vpop.permute.xlu0 %507  ;;  %v13484_v59 = vld [vmem:[#allocation30_spill] sm:$0xff] }
 0x299   : > { %v7689_v42 = vsel %vm717_vm10, %v13470_v15, %v13468_v20  ;;  %v13479_v20 = vld [vmem:[#allocation31_spill] sm:$0xff]  ;;  %v2397_v14 = vmul.f32 %v7307_v43, %v6357_v47  ;;  %v2406_v0 = vrot.slane %v2396_v50, 2  ;;  %v7720_v24 = vmul.f32 %v7307_v43, %v13418_v58  ;;  %1406 = vrot.lane.b32.xlu1 %v1399_v49, %s6048_s19 }
 0x29a   : > { %13471 = vst [vmem:[#allocation67_spill] sm:$0xff] %v7689_v42  ;;  %13473 = vst [vmem:[#allocation72_spill] sm:$0xff] %v7693_v44  ;;  %v7709_v15 = vmul.f32 %v6369_v54, %v13479_v20  ;;  %v7714_v28 = vmul.f32 %v6380_v56, %v13479_v20  ;;  %v7726_v7 = vmul.f32 %v6400_v62, %v13479_v20  ;;  %v13487_v21 = vrot.slane %v7680_v53, 2  ;;  %v7774_v44 = vpop.permute.xlu1 %535 }
 0x29b   : > { %13475 = vst [vmem:[#allocation74_spill] sm:$0xff] %v7697_v52  ;;  %13478 = vst [vmem:[#allocation78_spill] sm:$0xff] %v7705_v57  ;;  %v7730_v55 = vmul.f32 %v13484_v59, %v13479_v20  ;;  %v7733_v17 = vsel %vm1130_vm11, %v2377_v32, %v2378_v63  ;;  %v7742_v43 = vmul.f32 %v6444_v16, %v13479_v20  ;;  %v2407_v4 = vrot.slane %v2397_v14, 2 }
 0x29c   : > { %13480 = vst [vmem:[#allocation83_spill] sm:$0xff] %v7709_v15  ;;  %13481 = vst [vmem:[#allocation87_spill] sm:$0xff] %v7714_v28  ;;  %v7738_v50 = vsel %vm1130_vm11, %v2378_v63, %v13487_v21  ;;  %v7746_v46 = vmul.f32 %v6466_v27, %v13479_v20  ;;  %1404 = vrot.lane.b32.xlu0 %v13491_v51, %s6048_s19  ;;  %v2425_v21 = vmul.f32 %v7310_v11, %v6344_v41  ;;  %v534_v53 = vpop.permute.xlu0 %533 }
 0x29d   : > { %13482 = vst [vmem:[#allocation57_spill] sm:$0xff] %v7720_v24  ;;  %13483 = vst [vmem:[#allocation31_spill] sm:$0xff] %v7726_v7  ;;  %v2426_v63 = vmul.f32 %v7310_v11, %v6357_v47  ;;  %v7767_v51 = vsel %vm1130_vm11, %v2406_v0, %v2407_v4  ;;  %v13496_v49 = vrot.slane %v7720_v24, 2  ;;  %1443 = vrot.lane.b32.xlu1 %v1436_v6, %s6048_s19 }
 0x29e   : > { %13485 = vst [vmem:[#allocation30_spill] sm:$0xff] %v7730_v55  ;;  %13486 = vst [vmem:[#allocation167_spill] sm:$0xff] %v7733_v17  ;;  %v7764_v17 = vmul.f32 %v13493_v1, %v13418_v58  ;;  %v2435_v14 = vrot.slane %v2425_v21, 2 }
 0x29f   : > { %13488 = vst [vmem:[#allocation168_spill] sm:$0xff] %v7738_v50  ;;  %13489 = vst [vmem:[#allocation169_spill] sm:$0xff] %v7742_v43  ;;  %v7759_v50 = vmul.f32 %v7310_v11, %v13418_v58  ;;  %v7772_v32 = vsel %vm1130_vm11, %v2407_v4, %v13496_v49  ;;  %v2436_v52 = vrot.slane %v2426_v63, 2  ;;  %v13499_v4 = vld [vmem:[#allocation71_spill] sm:$0xff]  ;;  %v13500_v49 = vld [vmem:[#allocation33_spill] sm:$0xff]  ;;  %v7802_v11 = vpop.permute.xlu1 %561 }
 0x2a0   : > { %13490 = vst [vmem:[#allocation170_spill] sm:$0xff] %v7746_v46  ;;  %13494 = vst [vmem:[#allocation171_spill] sm:$0xff] %v7764_v17  ;;  %1441 = vrot.lane.b32.xlu0 %v13499_v4, %s6048_s19  ;;  %v828_v42 = vmul.f32 %v6369_v54, %v13500_v49  ;;  %v865_v21 = vmul.f32 %v6380_v56, %v13500_v49  ;;  %v902_v0 = vmul.f32 %v6400_v62, %v13500_v49  ;;  %v560_v54 = vpop.permute.xlu0 %559 }
 0x2a1   : > { %13492 = vst [vmem:[#allocation66_spill] sm:$0xff] %v7759_v50  ;;  %13495 = vst [vmem:[#allocation172_spill] sm:$0xff] %v7767_v51  ;;  %v7783_v51 = vmul.f32 %v6469_v29, %v13479_v20  ;;  %v939_v1 = vmul.f32 %v13484_v59, %v13500_v49  ;;  %v976_v4 = vmul.f32 %v6444_v16, %v13500_v49  ;;  %1480 = vrot.lane.b32.xlu1 %v7637_v31, %s6048_s19 }
 0x2a2   : > { %13497 = vst [vmem:[#allocation173_spill] sm:$0xff] %v7772_v32  ;;  %v1013_v6 = vmul.f32 %v6466_v27, %v13500_v49  ;;  %v841_v56 = vrot.slane %v828_v42, 1  ;;  %v878_v32 = vrot.slane %v865_v21, 1  ;;  %v1050_v63 = vmul.f32 %v6469_v29, %v13500_v49  ;;  %v13503_v27 = vld [vmem:[#allocation73_spill] sm:$0xff] }
 0x2a3   : > { %13498 = vst [vmem:[#allocation174_spill] sm:$0xff] %v7783_v51  ;;  %v7807_v3 = vsel %vm1130_vm11, %v2435_v14, %v2436_v52  ;;  %v915_v62 = vrot.slane %v902_v0, 1  ;;  %v952_v24 = vrot.slane %v939_v1, 1  ;;  %v7812_v16 = vmul.f32 %v6487_v36, %v13479_v20 }
 0x2a4   : > { %13501 = vst [vmem:[#allocation71_spill] sm:$0xff] %v7807_v3  ;;  %1478 = vrot.lane.b32.xlu0 %v13503_v27, %s6048_s19  ;;  %v13504_v42 = vrot.slane %v7709_v15, 1  ;;  %v13506_v14 = vrot.slane %v7714_v28, 1  ;;  %v989_v0 = vrot.slane %v976_v4, 1  ;;  %v2454_v21 = vmul.f32 %v7644_v39, %v6344_v41  ;;  %v13512_v4 = vld [vmem:[#allocation79_spill] sm:$0xff]  ;;  %v13633_v15 = vld [vmem:[#allocation126_spill] sm:$0xff] }
 0x2a5   : > { %13502 = vst [vmem:[#allocation33_spill] sm:$0xff] %v7812_v16  ;;  %v13508_v59 = vrot.slane %v7726_v7, 1  ;;  %v13510_v31 = vrot.slane %v7730_v55, 1  ;;  %1517 = vrot.lane.b32.xlu1 %v7651_v40, %s6048_s19  ;;  %v7894_v40 = vmul.f32 %v6503_v48, %v13479_v20 }
 0x2a6   : > { %v7821_v29 = vsel %vm717_vm10, %v13504_v42, %v841_v56  ;;  %v7826_v1 = vsel %vm717_vm10, %v13506_v14, %v878_v32  ;;  %v1026_v56 = vrot.slane %v1013_v6, 1  ;;  %v1063_v42 = vrot.slane %v1050_v63, 1  ;;  %v7842_v32 = vpop.permute.xlu1 %587 }
 0x2a7   : > { %13505 = vst [vmem:[#allocation73_spill] sm:$0xff] %v7821_v29  ;;  %13507 = vst [vmem:[#allocation175_spill] sm:$0xff] %v7826_v1  ;;  %v7833_v27 = vsel %vm717_vm10, %v13508_v59, %v915_v62  ;;  %v7838_v3 = vsel %vm717_vm10, %v13510_v31, %v952_v24  ;;  %v7840_v29 = vpop.permute.xlu0 %585  ;;  %v7846_v14 = vmul.f32 %v13512_v4, %v13418_v58  ;;  %v13514_v1 = vrot.slane %v7742_v43, 1 }
 0x2a8   : > { %13509 = vst [vmem:[#allocation176_spill] sm:$0xff] %v7833_v27  ;;  %13511 = vst [vmem:[#allocation177_spill] sm:$0xff] %v7838_v3  ;;  %v13516_v59 = vrot.slane %v7759_v50, 2  ;;  %v1087_v63 = vmul.f32 %v6487_v36, %v13500_v49  ;;  %v13518_v6 = vrot.slane %v7746_v46, 1  ;;  %v13520_v43 = vrot.slane %v7783_v51, 1  ;;  %v13525_v3 = vld [vmem:[#allocation82_spill] sm:$0xff] }
 0x2a9   : > { %13513 = vst [vmem:[#allocation79_spill] sm:$0xff] %v7846_v14  ;;  %v7851_v62 = vsel %vm717_vm10, %v13514_v1, %v989_v0  ;;  %v7873_v0 = vmul.f32 %v6490_v37, %v13479_v20  ;;  %13527 = vst [vmem:[#allocation183_spill] sm:$0xff] %v7894_v40  ;;  %v1278_v46 = vmul.f32 %v6503_v48, %v13500_v49  ;;  %2092 = vrot.lane.b32.xlu1 %v7658_v45, %s6047_s27  ;;  %v13625_v27 = vld [vmem:[#allocation65_spill] sm:$0xff] }
 0x2aa   : > { %13515 = vst [vmem:[#allocation178_spill] sm:$0xff] %v7851_v62  ;;  %v7856_v24 = vsel %vm1130_vm11, %v2436_v52, %v13516_v59  ;;  %v7863_v31 = vsel %vm717_vm10, %v13518_v6, %v1026_v56  ;;  %v7869_v1 = vsel %vm717_vm10, %v13520_v43, %v1063_v42  ;;  %v13523_v52 = vld [vmem:[#allocation80_spill] sm:$0xff]  ;;  %v1100_v36 = vrot.slane %v1087_v63, 1 }
 0x2ab   : > { %13517 = vst [vmem:[#allocation179_spill] sm:$0xff] %v7856_v24  ;;  %13519 = vst [vmem:[#allocation180_spill] sm:$0xff] %v7863_v31  ;;  %1515 = vrot.lane.b32.xlu0 %v13523_v52, %s6048_s19  ;;  %v2455_v56 = vmul.f32 %v7644_v39, %v6357_v47  ;;  %v2464_v59 = vrot.slane %v2454_v21, 2  ;;  %v7883_v6 = vmul.f32 %v7644_v39, %v13418_v58  ;;  %v612_v63 = vpop.permute.xlu0 %611  ;;  %v13528_v21 = vrot.slane %v7812_v16, 1  ;;  %v13530_v16 = vld [vmem:[#allocation81_spill] sm:$0xff] }
 0x2ac   : > { %13521 = vst [vmem:[#allocation181_spill] sm:$0xff] %v7869_v1  ;;  %13522 = vst [vmem:[#allocation182_spill] sm:$0xff] %v7873_v0  ;;  %v519_v43 = vadd.f32 %v7722_v25, %v7452_v38  ;;  %v545_v42 = vadd.f32 %v534_v53, %v7468_v2  ;;  %v7890_v52 = vmul.f32 %v13525_v3, %v13418_v58  ;;  %v7896_v1 = vpop.permute.xlu1 %613  ;;  %v12884_v62 = vrot.slane %v7873_v0, 2 }
 0x2ad   : > { %13524 = vst [vmem:[#allocation80_spill] sm:$0xff] %v7883_v6  ;;  %v7901_v31 = vsel %vm717_vm10, %v13528_v21, %v1100_v36  ;;  %v2465_v51 = vrot.slane %v2455_v56, 2  ;;  %v12885_v38 = vrot.slane %v7883_v6, 2  ;;  %v1241_v2 = vmul.f32 %v6490_v37, %v13500_v49  ;;  %2129 = vrot.lane.b32.xlu1 %v7669_v30, %s6047_s27 }
 0x2ae   : > { %13526 = vst [vmem:[#allocation82_spill] sm:$0xff] %v7890_v52  ;;  %13529 = vst [vmem:[#allocation184_spill] sm:$0xff] %v7901_v31  ;;  %v546_v53 = vadd.f32 %v7774_v44, %v7490_v34  ;;  %v623_v25 = vadd.f32 %v612_v63, %v519_v43  ;;  %v7925_v44 = vmul.f32 %v6518_v5, %v13479_v20  ;;  %v1291_v56 = vrot.slane %v1278_v46, 2  ;;  %v13615_v31 = vld [vmem:[#allocation75_spill] sm:$0xff] }
 0x2af   : > { %2090 = vrot.lane.b32.xlu0 %v13530_v16, %s6047_s27  ;;  %v7916_v36 = vsel %vm1130_vm11, %v2464_v59, %v2465_v51  ;;  %v7921_v37 = vsel %vm1130_vm11, %v2465_v51, %v12885_v38  ;;  %v1254_v34 = vrot.slane %v1241_v2, 2  ;;  %v12883_v16 = vrot.slane %v7894_v40, 2  ;;  %v638_v43 = vpop.permute.xlu0 %637 }
 0x2b0   : > { %13531 = vst [vmem:[#allocation81_spill] sm:$0xff] %v7916_v36  ;;  %13532 = vst [vmem:[#allocation185_spill] sm:$0xff] %v7921_v37  ;;  %v7928_v48 = vadd.f32 %v7176_v8, %v623_v25  ;;  %v7933_v45 = vmul.f32 %v6535_v12, %v13479_v20  ;;  %v571_v59 = vadd.f32 %v560_v54, %v7494_v26  ;;  %v640_v51 = vpop.permute.xlu1 %639 }
 0x2b1   : > { %13533 = vst [vmem:[#allocation186_spill] sm:$0xff] %v7925_v44  ;;  %v7939_v63 = vsel %vm1130_vm11, %v12884_v62, %v1254_v34  ;;  %v1315_v8 = vmul.f32 %v6518_v5, %v13500_v49  ;;  %v7945_v21 = vmul.f32 %v13386_v9, %v13479_v20  ;;  %v649_v46 = vadd.f32 %v638_v43, %v545_v42  ;;  %v13538_v34 = vld [vmem:[#allocation86_spill] sm:$0xff]  ;;  %v13557_v62 = vld [vmem:[#allocation100_spill] sm:$0xff] }
 0x2b2   : > { %13534 = vst [vmem:[#allocation187_spill] sm:$0xff] %v7933_v45  ;;  %13535 = vst [vmem:[#allocation188_spill] sm:$0xff] %v7939_v63  ;;  %v650_v2 = vadd.f32 %v640_v51, %v546_v53  ;;  %v7950_v26 = vsel %vm1130_vm11, %v12883_v16, %v1291_v56  ;;  %v1352_v54 = vmul.f32 %v6535_v12, %v13500_v49  ;;  %v12880_v5 = vrot.slane %v7925_v44, 2  ;;  %v13613_v63 = vld [vmem:[#allocation106_spill] sm:$0xff] }
 0x2b3   : > { %13536 = vst [vmem:[#allocation189_spill] sm:$0xff] %v7945_v21  ;;  %13537 = vst [vmem:[#allocation190_spill] sm:$0xff] %v7950_v26  ;;  %v572_v25 = vadd.f32 %v7802_v11, %v7504_v19  ;;  %2127 = vrot.lane.b32.xlu0 %v13538_v34, %s6047_s27  ;;  %v1328_v42 = vrot.slane %v1315_v8, 2  ;;  %v1389_v53 = vmul.f32 %v13386_v9, %v13500_v49  ;;  %v12882_v11 = vrot.slane %v7933_v45, 2  ;;  %v664_v43 = vpop.permute.xlu0 %663  ;;  %v13603_v26 = vld [vmem:[#allocation52_spill] sm:$0xff] }
 0x2b4   : > { %v7964_v56 = vadd.f32 %v7229_v33, %v649_v46  ;;  %v7967_v12 = vadd.f32 %v7244_v22, %v650_v2  ;;  %v1365_v19 = vrot.slane %v1352_v54, 2  ;;  %v666_v51 = vpop.permute.xlu1 %665  ;;  %v12881_v8 = vrot.slane %v7945_v21, 2  ;;  %v13543_v2 = vld [vmem:[#allocation84_spill] sm:$0xff]  ;;  %2166 = vrot.lane.b32.xlu1 %v7676_v61, %s6047_s27  ;;  %v13600_v21 = vld [vmem:[#allocation119_spill] sm:$0xff] }
 0x2b5   : > { %v7973_v30 = vsel %vm1130_vm11, %v12880_v5, %v1328_v42  ;;  %v7978_v9 = vmul.f32 %v13390_v18, %v13479_v20  ;;  %v1402_v33 = vrot.slane %v1389_v53, 2  ;;  %v675_v46 = vadd.f32 %v664_v43, %v571_v59  ;;  %v13546_v42 = vld [vmem:[#allocation91_spill] sm:$0xff] }
 0x2b6   : > { %13539 = vst [vmem:[#allocation86_spill] sm:$0xff] %v7964_v56  ;;  %13540 = vst [vmem:[#allocation191_spill] sm:$0xff] %v7967_v12  ;;  %v676_v22 = vadd.f32 %v666_v51, %v572_v25  ;;  %v7982_v34 = vmul.f32 %v13543_v2, %v13418_v58  ;;  %v7987_v54 = vsel %vm1130_vm11, %v12882_v11, %v1365_v19 }
 0x2b7   : > { %13541 = vst [vmem:[#allocation192_spill] sm:$0xff] %v7973_v30  ;;  %13542 = vst [vmem:[#allocation193_spill] sm:$0xff] %v7978_v9  ;;  %2164 = vrot.lane.b32.xlu0 %v13546_v42, %s6047_s27  ;;  %v7997_v59 = vsel %vm1130_vm11, %v12881_v8, %v1402_v33  ;;  %v8001_v25 = vmul.f32 %v13414_v35, %v13479_v20  ;;  %v1426_v53 = vmul.f32 %v13390_v18, %v13500_v49  ;;  %v690_v33 = vpop.permute.xlu0 %689  ;;  %v13551_v8 = vld [vmem:[#allocation85_spill] sm:$0xff] }
 0x2b8   : > { %13544 = vst [vmem:[#allocation84_spill] sm:$0xff] %v7982_v34  ;;  %13545 = vst [vmem:[#allocation194_spill] sm:$0xff] %v7987_v54  ;;  %v597_v19 = vadd.f32 %v7840_v29, %v7612_v13  ;;  %v598_v61 = vadd.f32 %v7842_v32, %v7641_v10  ;;  %v8010_v43 = vadd.f32 %v7267_v23, %v675_v46  ;;  %v692_v42 = vpop.permute.xlu1 %691  ;;  %v12886_v18 = vrot.slane %v7978_v9, 2  ;;  %v13553_v32 = vld [vmem:[#allocation61_spill] sm:$0xff]  ;;  %v13555_v46 = vld [vmem:[#allocation94_spill] sm:$0xff] }
 0x2b9   : > { %13547 = vst [vmem:[#allocation91_spill] sm:$0xff] %v7997_v59  ;;  %13548 = vst [vmem:[#allocation195_spill] sm:$0xff] %v8001_v25  ;;  %v8013_v51 = vadd.f32 %v7272_v60, %v676_v22  ;;  %v8017_v11 = vmul.f32 %v13551_v8, %v13418_v58  ;;  %v1439_v16 = vrot.slane %v1426_v53, 2  ;;  %v1463_v13 = vmul.f32 %v13414_v35, %v13500_v49  ;;  %v13556_v22 = vld [vmem:[#allocation67_spill] sm:$0xff]  ;;  %v13572_v59 = vld [vmem:[#allocation97_spill] sm:$0xff] }
 0x2ba   : > { %13549 = vst [vmem:[#allocation196_spill] sm:$0xff] %v8010_v43  ;;  %v701_v29 = vadd.f32 %v690_v33, %v597_v19  ;;  %v702_v10 = vadd.f32 %v692_v42, %v598_v61  ;;  %v8025_v60 = vmul.f32 %v13553_v32, %v13479_v20  ;;  %2203 = vrot.lane.b32.xlu1 %v13556_v22, %s6047_s27  ;;  %v13560_v42 = vld [vmem:[#allocation147_spill] sm:$0xff]  ;;  %v13601_v30 = vrot.slane %v13600_v21, 2  ;;  %v13608_v21 = vld [vmem:[#allocation70_spill] sm:$0xff] }
 0x2bb   : > { %13550 = vst [vmem:[#allocation197_spill] sm:$0xff] %v8013_v51  ;;  %13552 = vst [vmem:[#allocation85_spill] sm:$0xff] %v8017_v11  ;;  %2201 = vrot.lane.b32.xlu0 %v13555_v46, %s6047_s27  ;;  %v8033_v53 = vmul.f32 %v13557_v62, %v13418_v58  ;;  %v8039_v19 = vsel %vm1130_vm11, %v12886_v18, %v1439_v16  ;;  %v1476_v61 = vrot.slane %v1463_v13, 2  ;;  %v13562_v46 = vld [vmem:[#allocation149_spill] sm:$0xff]  ;;  %v8050_v5 = vpop.permute.xlu0 %1755  ;;  %v13566_v18 = vrot.slane %v8001_v25, 2  ;;  %v13573_v13 = vld [vmem:[#allocation74_spill] sm:$0xff] }
 0x2bc   : > { %13554 = vst [vmem:[#allocation61_spill] sm:$0xff] %v8025_v60  ;;  %13559 = vst [vmem:[#allocation67_spill] sm:$0xff] %v8039_v19  ;;  %v8043_v38 = vadd.f32 %v13560_v42, %v701_v29  ;;  %v8046_v23 = vadd.f32 %v13562_v46, %v702_v10  ;;  %v1500_v22 = vmul.f32 %v13553_v32, %v13500_v49  ;;  %v8052_v35 = vpop.permute.xlu1 %1757  ;;  %v13568_v10 = vld [vmem:[#allocation72_spill] sm:$0xff]  ;;  %v13570_v46 = vld [vmem:[#allocation89_spill] sm:$0xff]  ;;  %v13574_v16 = vrot.slane %v13573_v13, 1 }
 0x2bd   : > { %13558 = vst [vmem:[#allocation94_spill] sm:$0xff] %v8033_v53  ;;  %13564 = vst [vmem:[#allocation149_spill] sm:$0xff] %v8050_v5  ;;  %v8060_v29 = vsel %vm1130_vm11, %v13566_v18, %v1476_v61  ;;  %v13569_v42 = vrot.slane %v13568_v10, 1  ;;  %v13571_v33 = vrot.slane %v13570_v46, 1  ;;  %v13575_v25 = vld [vmem:[#allocation96_spill] sm:$0xff]  ;;  %v13577_v61 = vrot.slane %v7705_v57, 1 }
 0x2be   : > { %13561 = vst [vmem:[#allocation100_spill] sm:$0xff] %v8043_v38  ;;  %13563 = vst [vmem:[#allocation147_spill] sm:$0xff] %v8046_v23  ;;  %v1513_v9 = vrot.slane %v1500_v22, 2  ;;  %v13576_v54 = vrot.slane %v13575_v25, 1  ;;  %v13578_v10 = vld [vmem:[#allocation98_spill] sm:$0xff]  ;;  %v13583_v13 = vrot.slane %v7846_v14, 2  ;;  %v8164_v40 = vmul.f32 %v13613_v63, %v13418_v58 }
 0x2bf   : > { %13565 = vst [vmem:[#allocation198_spill] sm:$0xff] %v8052_v35  ;;  %13567 = vst [vmem:[#allocation199_spill] sm:$0xff] %v8060_v29  ;;  %v2233_v32 = vsel %vm717_vm10, %v13571_v33, %v13569_v42  ;;  %2238 = vrot.lane.b32.xlu0 %v13572_v59, %s6048_s19  ;;  %v13579_v46 = vrot.slane %v13578_v10, 1  ;;  %v13580_v42 = vrot.slane %v7764_v17, 1  ;;  %v13581_v22 = vld [vmem:[#allocation102_spill] sm:$0xff]  ;;  %v13584_v29 = vld [vmem:[#allocation108_spill] sm:$0xff]  ;;  %v710_v55 = vmul.f32 %v13625_v27, %v13479_v20 }
 0x2c0   : > { %2240 = vrot.lane.b32.xlu1 %v2233_v32, %s6048_s19  ;;  %v2270_v18 = vsel %vm717_vm10, %v13576_v54, %v13574_v16  ;;  %v13582_v19 = vrot.slane %v13581_v22, 1  ;;  %v13585_v25 = vrot.slane %v13584_v29, 2  ;;  %v13586_v16 = vld [vmem:[#allocation32_spill] sm:$0xff]  ;;  %v13587_v57 = vld [vmem:[#allocation63_spill] sm:$0xff]  ;;  %v8107_v22 = vpop.permute.xlu0 %1781  ;;  %v8109_v32 = vpop.permute.xlu1 %1783  ;;  %v13596_v17 = vrot.slane %v7982_v34, 2  ;;  %13614 = vst [vmem:[#allocation102_spill] sm:$0xff] %v8164_v40 }
 0x2c1   : > { %v2307_v33 = vsel %vm717_vm10, %v13579_v46, %v13577_v61  ;;  %v8096_v10 = vmul.f32 %v13587_v57, %v13586_v16  ;;  %v13588_v61 = vrot.slane %v8025_v60, 2  ;;  %13591 = vst [vmem:[#allocation97_spill] sm:$0xff] %v8107_v22  ;;  %13592 = vst [vmem:[#allocation96_spill] sm:$0xff] %v8109_v32  ;;  %v13594_v29 = vld [vmem:[#allocation111_spill] sm:$0xff]  ;;  %v13597_v60 = vld [vmem:[#allocation113_spill] sm:$0xff]  ;;  %v8168_v0 = vmul.f32 %v13615_v31, %v13586_v16 }
 0x2c2   : > { %v2344_v59 = vsel %vm717_vm10, %v13582_v19, %v13580_v42  ;;  %v8092_v54 = vsel %vm1130_vm11, %v13585_v25, %v13583_v13  ;;  %v13590_v19 = vld [vmem:[#allocation64_spill] sm:$0xff]  ;;  %v13593_v13 = vrot.slane %v7890_v52, 2  ;;  %v13595_v25 = vrot.slane %v13594_v29, 2 }
 0x2c3   : > { %v8101_v46 = vsel %vm1130_vm11, %v13588_v61, %v1513_v9  ;;  %v8105_v42 = vmul.f32 %v13590_v19, %v13586_v16  ;;  %v13598_v9 = vrot.slane %v13597_v60, 2  ;;  %v13602_v52 = vld [vmem:[#allocation20_spill] sm:$0xff]  ;;  %v8186_v24 = vmul.f32 %v13512_v4, %v13586_v16 }
 0x2c4   : > { %13589 = vst [vmem:[#allocation89_spill] sm:$0xff] %v8101_v46  ;;  %v8116_v14 = vsel %vm1130_vm11, %v13595_v25, %v13593_v13  ;;  %v13599_v46 = vrot.slane %v8017_v11, 2  ;;  %v8134_v29 = vmul.f32 %v13603_v26, %v13602_v52  ;;  %v13604_v13 = vld [vmem:[#allocation103_spill] sm:$0xff]  ;;  %v13606_v60 = vld [vmem:[#allocation68_spill] sm:$0xff]  ;;  %2277 = vrot.lane.b32.xlu1 %v2270_v18, %s6048_s19  ;;  %v13610_v52 = vrot.slane %v8033_v53, 2  ;;  %v8182_v36 = vpop.permute.xlu1 %1809 }
 0x2c5   : > { %v8123_v61 = vsel %vm1130_vm11, %v13598_v9, %v13596_v17  ;;  %v8138_v25 = vmul.f32 %v13604_v13, %v13418_v58  ;;  %v8142_v34 = vmul.f32 %v13606_v60, %v13586_v16  ;;  %v13607_v17 = vld [vmem:[#allocation69_spill] sm:$0xff]  ;;  %v13611_v11 = vld [vmem:[#allocation123_spill] sm:$0xff]  ;;  %v13616_v18 = vld [vmem:[#allocation76_spill] sm:$0xff]  ;;  %13621 = vst [vmem:[#allocation64_spill] sm:$0xff] %v8182_v36  ;;  %v8190_v37 = vmul.f32 %v13525_v3, %v13586_v16 }
 0x2c6   : > { %v8130_v45 = vsel %vm1130_vm11, %v13601_v30, %v13599_v46  ;;  %v8146_v9 = vmul.f32 %v13607_v17, %v13586_v16  ;;  %v8150_v30 = vmul.f32 %v13608_v21, %v13586_v16  ;;  %v13609_v46 = vld [vmem:[#allocation104_spill] sm:$0xff]  ;;  %v13612_v26 = vrot.slane %v13611_v11, 2  ;;  %v13618_v11 = vld [vmem:[#allocation77_spill] sm:$0xff]  ;;  %13622 = vst [vmem:[#allocation111_spill] sm:$0xff] %v8186_v24 }
 0x2c7   : > { %13605 = vst [vmem:[#allocation98_spill] sm:$0xff] %v8138_v25  ;;  %2275 = vrot.lane.b32.xlu0 %v13609_v46, %s6048_s19  ;;  %v8174_v53 = vmul.f32 %v13616_v18, %v13586_v16  ;;  %13623 = vst [vmem:[#allocation113_spill] sm:$0xff] %v8190_v37  ;;  %v8194_v46 = vmul.f32 %v13543_v2, %v13586_v16  ;;  %v8203_v36 = vmul.f32 %v13551_v8, %v13586_v16  ;;  %v13630_v5 = vld [vmem:[#allocation88_spill] sm:$0xff] }
 0x2c8   : > { %v8160_v44 = vsel %vm1130_vm11, %v13612_v26, %v13610_v52  ;;  %v8178_v26 = vmul.f32 %v13618_v11, %v13586_v16  ;;  %v8180_v52 = vpop.permute.xlu0 %1807  ;;  %2314 = vrot.lane.b32.xlu1 %v2307_v33, %s6048_s19  ;;  %v8211_v22 = vmul.f32 %v13557_v62, %v13586_v16  ;;  %v723_v7 = vrot.slane %v710_v55, 1  ;;  %v8227_v47 = vpop.permute.xlu1 %1835  ;;  %v13637_v55 = vld [vmem:[#allocation110_spill] sm:$0xff]  ;;  %v13639_v51 = vld [vmem:[#allocation132_spill] sm:$0xff] }
 0x2c9   : > { %13617 = vst [vmem:[#allocation108_spill] sm:$0xff] %v8174_v53  ;;  %13620 = vst [vmem:[#allocation63_spill] sm:$0xff] %v8180_v52  ;;  %v13627_v52 = vld [vmem:[#allocation105_spill] sm:$0xff]  ;;  %v8215_v28 = vmul.f32 %v13604_v13, %v13586_v16  ;;  %v711_v33 = vmul.f32 %v13625_v27, %v13500_v49  ;;  %v13634_v38 = vrot.slane %v13633_v15, 1  ;;  %v13640_v41 = vrot.slane %v13639_v51, 1 }
 0x2ca   : > { %13619 = vst [vmem:[#allocation32_spill] sm:$0xff] %v8178_v26  ;;  %13624 = vst [vmem:[#allocation119_spill] sm:$0xff] %v8194_v46  ;;  %v13643_v15 = vld [vmem:[#allocation109_spill] sm:$0xff] }
 0x2cb   : > { %13626 = vst [vmem:[#allocation20_spill] sm:$0xff] %v8203_v36  ;;  %2312 = vrot.lane.b32.xlu0 %v13627_v52, %s6048_s19  ;;  %13628 = vst [vmem:[#allocation103_spill] sm:$0xff] %v8211_v22  ;;  %v8221_v52 = vmul.f32 %v13630_v5, %v13479_v20  ;;  %v8235_v35 = vsel %vm717_vm10, %v13634_v38, %v723_v7  ;;  %v725_v27 = vrot.slane %v711_v33, 1 }
 0x2cc   : > { %13629 = vst [vmem:[#allocation68_spill] sm:$0xff] %v8215_v28  ;;  %v8225_v32 = vpop.permute.xlu0 %1833  ;;  %13632 = vst [vmem:[#allocation70_spill] sm:$0xff] %v8227_v47  ;;  %2351 = vrot.lane.b32.xlu1 %v2344_v59, %s6048_s19  ;;  %v8250_v38 = vmul.f32 %v13613_v63, %v13586_v16  ;;  %v741_v33 = vmul.f32 %v13630_v5, %v13500_v49  ;;  %v8267_v23 = vmul.f32 %v13643_v15, %v13586_v16  ;;  %v8271_v12 = vpop.permute.xlu1 %1861  ;;  %v13647_v5 = vld [vmem:[#allocation114_spill] sm:$0xff] }
 0x2cd   : > { %13631 = vst [vmem:[#allocation69_spill] sm:$0xff] %v8225_v32  ;;  %13635 = vst [vmem:[#allocation104_spill] sm:$0xff] %v8235_v35  ;;  %v12911_v43 = vrot.slane %v8221_v52, 1  ;;  %v13636_v32 = vld [vmem:[#allocation90_spill] sm:$0xff]  ;;  %v8262_v59 = vsel %vm717_vm10, %v723_v7, %v725_v27  ;;  %v2075_v56 = vmul.f32 %v13587_v57, %v13647_v5  ;;  %v2149_v7 = vmul.f32 %v13606_v60, %v13647_v5 }
 0x2ce   : > { %v8241_v6 = vmul.f32 %v13636_v32, %v13479_v20  ;;  %13638 = vst [vmem:[#allocation123_spill] sm:$0xff] %v8250_v38  ;;  %13642 = vst [vmem:[#allocation75_spill] sm:$0xff] %v8262_v59  ;;  %v2186_v51 = vmul.f32 %v13607_v17, %v13647_v5  ;;  %v2223_v27 = vmul.f32 %v13608_v21, %v13647_v5 }
 0x2cf   : > { %2349 = vrot.lane.b32.xlu0 %v13637_v55, %s6048_s19  ;;  %v8259_v35 = vsel %vm717_vm10, %v13640_v41, %v12911_v43  ;;  %13644 = vst [vmem:[#allocation76_spill] sm:$0xff] %v8267_v23  ;;  %13646 = vst [vmem:[#allocation65_spill] sm:$0xff] %v8271_v12  ;;  %v2112_v41 = vmul.f32 %v13590_v19, %v13647_v5  ;;  %v2260_v43 = vmul.f32 %v13615_v31, %v13647_v5  ;;  %v13648_v19 = vld [vmem:[#allocation116_spill] sm:$0xff] }
 0x2d0   : > { %13641 = vst [vmem:[#allocation106_spill] sm:$0xff] %v8259_v35  ;;  %v8269_v47 = vpop.permute.xlu0 %1859  ;;  %v2297_v55 = vmul.f32 %v13616_v18, %v13647_v5  ;;  %v2334_v57 = vmul.f32 %v13618_v11, %v13647_v5  ;;  %2504 = vrot.lane.b32.xlu1 %v8092_v54, %s6047_s27  ;;  %v2088_v60 = vrot.slane %v2075_v56, 1  ;;  %v2162_v59 = vrot.slane %v2149_v7, 1  ;;  %v8295_v18 = vpop.permute.xlu1 %1887 }
 0x2d1   : > { %13645 = vst [vmem:[#allocation77_spill] sm:$0xff] %v8269_v47  ;;  %v2125_v17 = vrot.slane %v2112_v41, 1  ;;  %v2199_v35 = vrot.slane %v2186_v51, 1  ;;  %v2236_v21 = vrot.slane %v2223_v27, 1  ;;  %v2273_v12 = vrot.slane %v2260_v43, 1 }
 0x2d2   : > { %v2310_v47 = vrot.slane %v2297_v55, 1  ;;  %v2347_v31 = vrot.slane %v2334_v57, 1  ;;  %v13649_v11 = vrot.slane %v8096_v10, 1  ;;  %v13651_v54 = vrot.slane %v8142_v34, 1 }
 0x2d3   : > { %2502 = vrot.lane.b32.xlu0 %v13648_v19, %s6047_s27  ;;  %v13650_v19 = vrot.slane %v8105_v42, 1  ;;  %v13652_v55 = vrot.slane %v8146_v9, 1  ;;  %v13653_v7 = vrot.slane %v8150_v30, 1  ;;  %v13654_v27 = vrot.slane %v8168_v0, 1 }
 0x2d4   : > { %v8293_v50 = vpop.permute.xlu0 %1885  ;;  %v8300_v39 = vsel %vm717_vm10, %v13649_v11, %v2088_v60  ;;  %v8310_v43 = vsel %vm717_vm10, %v13651_v54, %v2162_v59  ;;  %v13656_v60 = vrot.slane %v8174_v53, 1  ;;  %v13660_v11 = vld [vmem:[#allocation117_spill] sm:$0xff]  ;;  %2541 = vrot.lane.b32.xlu1 %v8116_v14, %s6047_s27  ;;  %v2635_v54 = vmul.f32 %v13557_v62, %v13647_v5  ;;  %v13661_v14 = vld [vmem:[#allocation92_spill] sm:$0xff] }
 0x2d5   : > { %v8305_v56 = vsel %vm717_vm10, %v13650_v19, %v2125_v17  ;;  %v8315_v41 = vsel %vm717_vm10, %v13652_v55, %v2199_v35  ;;  %v8320_v51 = vsel %vm717_vm10, %v13653_v7, %v2236_v21  ;;  %v8325_v57 = vsel %vm717_vm10, %v13654_v27, %v2273_v12  ;;  %v8357_v27 = vpop.permute.xlu1 %1913 }
 0x2d6   : > { %13655 = vst [vmem:[#allocation105_spill] sm:$0xff] %v8325_v57  ;;  %v8330_v59 = vsel %vm717_vm10, %v13656_v60, %v2310_v47  ;;  %v13658_v17 = vrot.slane %v8178_v26, 1  ;;  %v2487_v12 = vmul.f32 %v13512_v4, %v13647_v5  ;;  %v2524_v21 = vmul.f32 %v13525_v3, %v13647_v5  ;;  %v13666_v57 = vld [vmem:[#allocation121_spill] sm:$0xff] }
 0x2d7   : > { %13657 = vst [vmem:[#allocation88_spill] sm:$0xff] %v8330_v59  ;;  %2539 = vrot.lane.b32.xlu0 %v13660_v11, %s6047_s27  ;;  %v2561_v47 = vmul.f32 %v13543_v2, %v13647_v5  ;;  %v754_v19 = vrot.slane %v741_v33, 1  ;;  %v2672_v55 = vmul.f32 %v13604_v13, %v13647_v5  ;;  %v798_v7 = vmul.f32 %v13661_v14, %v13479_v20 }
 0x2d8   : > { %v8335_v35 = vsel %vm717_vm10, %v13658_v17, %v2347_v31  ;;  %v2598_v31 = vmul.f32 %v13551_v8, %v13647_v5  ;;  %v8355_v4 = vpop.permute.xlu0 %1911  ;;  %v2500_v3 = vrot.slane %v2487_v12, 2  ;;  %v2537_v60 = vrot.slane %v2524_v21, 2  ;;  %v13663_v17 = vld [vmem:[#allocation136_spill] sm:$0xff]  ;;  %2578 = vrot.lane.b32.xlu1 %v8123_v61, %s6047_s27 }
 0x2d9   : > { %13659 = vst [vmem:[#allocation126_spill] sm:$0xff] %v8335_v35  ;;  %v2574_v2 = vrot.slane %v2561_v47, 2  ;;  %v13662_v33 = vrot.slane %v8241_v6, 1  ;;  %v13664_v8 = vrot.slane %v13663_v17, 1  ;;  %v2648_v35 = vrot.slane %v2635_v54, 2  ;;  %v8410_v17 = vpop.permute.xlu1 %1939 }
 0x2da   : > { %v2611_v62 = vrot.slane %v2598_v31, 2  ;;  %v2685_v13 = vrot.slane %v2672_v55, 2  ;;  %v13665_v59 = vrot.slane %v8221_v52, 1  ;;  %v13667_v12 = vrot.slane %v8186_v24, 2 }
 0x2db   : > { %v8364_v11 = vsel %vm717_vm10, %v13664_v8, %v13662_v33  ;;  %2576 = vrot.lane.b32.xlu0 %v13666_v57, %s6047_s27  ;;  %v13669_v47 = vrot.slane %v8190_v37, 2  ;;  %v13671_v52 = vrot.slane %v8194_v46, 2  ;;  %v13675_v54 = vrot.slane %v8211_v22, 2  ;;  %v13729_v46 = vld [vmem:[#allocation139_spill] sm:$0xff]  ;;  %v13731_v37 = vld [vmem:[#allocation29_spill] sm:$0xff] }
 0x2dc   : > { %v8369_v26 = vsel %vm717_vm10, %v13665_v59, %v754_v19  ;;  %v8378_v21 = vsel %vm1130_vm11, %v13667_v12, %v2500_v3  ;;  %v13673_v19 = vrot.slane %v8203_v36, 2  ;;  %v13677_v3 = vrot.slane %v8215_v28, 2  ;;  %v8408_v33 = vpop.permute.xlu0 %1937  ;;  %2615 = vrot.lane.b32.xlu1 %v8130_v45, %s6047_s27 }
 0x2dd   : > { %13668 = vst [vmem:[#allocation90_spill] sm:$0xff] %v8378_v21  ;;  %v8383_v31 = vsel %vm1130_vm11, %v13669_v47, %v2537_v60  ;;  %v8388_v59 = vsel %vm1130_vm11, %v13671_v52, %v2574_v2  ;;  %v8399_v55 = vsel %vm1130_vm11, %v13675_v54, %v2648_v35  ;;  %v2709_v2 = vmul.f32 %v13613_v63, %v13647_v5  ;;  %v13679_v52 = vld [vmem:[#allocation93_spill] sm:$0xff]  ;;  %v8439_v45 = vpop.permute.xlu1 %511 }
 0x2de   : > { %13670 = vst [vmem:[#allocation110_spill] sm:$0xff] %v8383_v31  ;;  %13672 = vst [vmem:[#allocation132_spill] sm:$0xff] %v8388_v59  ;;  %v8394_v61 = vsel %vm1130_vm11, %v13673_v19, %v2611_v62  ;;  %v8404_v60 = vsel %vm1130_vm11, %v13677_v3, %v2685_v13  ;;  %v810_v62 = vrot.slane %v798_v7, 1  ;;  %v770_v12 = vmul.f32 %v13636_v32, %v13500_v49  ;;  %v13680_v19 = vld [vmem:[#allocation95_spill] sm:$0xff]  ;;  %v13681_v3 = vld [vmem:[#allocation125_spill] sm:$0xff] }
 0x2df   : > { %13674 = vst [vmem:[#allocation109_spill] sm:$0xff] %v8394_v61  ;;  %13676 = vst [vmem:[#allocation114_spill] sm:$0xff] %v8399_v55  ;;  %v2746_v35 = vmul.f32 %v13643_v15, %v13647_v5  ;;  %v2722_v47 = vrot.slane %v2709_v2, 2  ;;  %v799_v13 = vmul.f32 %v13661_v14, %v13500_v49  ;;  %v1123_v63 = vmul.f32 %v13679_v52, %v13479_v20  ;;  %v13682_v32 = vld [vmem:[#allocation141_spill] sm:$0xff] }
 0x2e0   : > { %13678 = vst [vmem:[#allocation116_spill] sm:$0xff] %v8404_v60  ;;  %v1153_v54 = vmul.f32 %v13680_v19, %v13479_v20  ;;  %2613 = vrot.lane.b32.xlu0 %v13681_v3, %s6047_s27  ;;  %v13683_v7 = vrot.slane %v13682_v32, 1  ;;  %v783_v2 = vrot.slane %v770_v12, 1  ;;  %v1124_v14 = vmul.f32 %v13679_v52, %v13500_v49  ;;  %v510_v22 = vpop.permute.xlu0 %509  ;;  %2652 = vrot.lane.b32.xlu1 %v8160_v44, %s6048_s19 }
 0x2e1   : > { %v2759_v57 = vrot.slane %v2746_v35, 2  ;;  %v13684_v60 = vrot.slane %v8250_v38, 2  ;;  %v812_v61 = vrot.slane %v799_v13, 1  ;;  %v1136_v3 = vrot.slane %v1123_v63, 2 }
 0x2e2   : > { %v8430_v8 = vsel %vm717_vm10, %v13683_v7, %v810_v62  ;;  %v1165_v28 = vrot.slane %v1153_v54, 2  ;;  %v13686_v32 = vrot.slane %v8241_v6, 1  ;;  %v13687_v12 = vrot.slane %v8267_v23, 2  ;;  %v13690_v6 = vld [vmem:[#allocation151_spill] sm:$0xff] }
 0x2e3   : > { %v8437_v55 = vsel %vm1130_vm11, %v13684_v60, %v2722_v47  ;;  %v1138_v52 = vrot.slane %v1124_v14, 2  ;;  %v13689_v60 = vld [vmem:[#allocation99_spill] sm:$0xff]  ;;  %v520_v13 = vadd.f32 %v510_v22, %v8134_v29  ;;  %v8456_v54 = vsel %vm717_vm10, %v810_v62, %v812_v61 }
 0x2e4   : > { %13685 = vst [vmem:[#allocation117_spill] sm:$0xff] %v8437_v55  ;;  %v8444_v7 = vsel %vm717_vm10, %v13686_v32, %v783_v2  ;;  %v8449_v35 = vsel %vm1130_vm11, %v13687_v12, %v2759_v57  ;;  %v1182_v47 = vmul.f32 %v13689_v60, %v13479_v20  ;;  %v13691_v55 = vrot.slane %v13690_v6, 2  ;;  %v13693_v32 = vld [vmem:[#allocation128_spill] sm:$0xff]  ;;  %v13694_v57 = vld [vmem:[#allocation153_spill] sm:$0xff]  ;;  %v13702_v12 = vld [vmem:[#allocation131_spill] sm:$0xff] }
 0x2e5   : > { %13688 = vst [vmem:[#allocation92_spill] sm:$0xff] %v8449_v35  ;;  %2650 = vrot.lane.b32.xlu0 %v13693_v32, %s6048_s19  ;;  %v13695_v14 = vrot.slane %v13694_v57, 2  ;;  %v8473_v29 = vsel %vm1130_vm11, %v1136_v3, %v1138_v52  ;;  %v1154_v62 = vmul.f32 %v13680_v19, %v13500_v49  ;;  %v13698_v6 = vld [vmem:[#allocation101_spill] sm:$0xff]  ;;  %v1183_v44 = vmul.f32 %v13689_v60, %v13500_v49  ;;  %v844_v57 = vpop.permute.xlu0 %843  ;;  %v13699_v52 = vld [vmem:[#allocation156_spill] sm:$0xff]  ;;  %v13706_v23 = vld [vmem:[#allocation135_spill] sm:$0xff] }
 0x2e6   : > { %v8461_v2 = vsel %vm1130_vm11, %v13691_v55, %v1136_v3  ;;  %13697 = vst [vmem:[#allocation93_spill] sm:$0xff] %v8473_v29  ;;  %v1194_v61 = vrot.slane %v1182_v47, 2  ;;  %v624_v55 = vadd.f32 %v7896_v1, %v520_v13  ;;  %v1211_v32 = vmul.f32 %v13698_v6, %v13479_v20  ;;  %v13704_v60 = vld [vmem:[#allocation129_spill] sm:$0xff] }
 0x2e7   : > { %13692 = vst [vmem:[#allocation136_spill] sm:$0xff] %v8461_v2  ;;  %v8470_v22 = vsel %vm1130_vm11, %v13695_v14, %v1165_v28  ;;  %v846_v14 = vpop.permute.xlu1 %845  ;;  %v8485_v3 = vmul.f32 %v13643_v15, %v13418_v58  ;;  %v13700_v47 = vrot.slane %v13699_v52, 2  ;;  %v1167_v1 = vrot.slane %v1154_v62, 2 }
 0x2e8   : > { %13696 = vst [vmem:[#allocation121_spill] sm:$0xff] %v8470_v22  ;;  %v1212_v13 = vmul.f32 %v13698_v6, %v13500_v49  ;;  %v732_v63 = vadd.f32 %v13702_v12, %v624_v55  ;;  %v13703_v29 = vrot.slane %v8138_v25, 2  ;;  %v13705_v22 = vrot.slane %v13704_v60, 2  ;;  %v13708_v49 = vld [vmem:[#allocation157_spill] sm:$0xff]  ;;  %v13718_v60 = vld [vmem:[#allocation19_spill] sm:$0xff] }
 0x2e9   : > { %v8490_v19 = vsel %vm1130_vm11, %v13700_v47, %v1194_v61  ;;  %v1223_v35 = vrot.slane %v1211_v32, 2  ;;  %v1196_v15 = vrot.slane %v1183_v44, 2  ;;  %2687 = vrot.lane.b32.xlu0 %v13706_v23, %s6048_s19  ;;  %v8504_v62 = vsel %vm1130_vm11, %v1165_v28, %v1167_v1  ;;  %v13713_v32 = vld [vmem:[#allocation133_spill] sm:$0xff]  ;;  %v13716_v1 = vld [vmem:[#allocation118_spill] sm:$0xff] }
 0x2ea   : > { %13701 = vst [vmem:[#allocation95_spill] sm:$0xff] %v8490_v19  ;;  %v2682_v2 = vsel %vm1130_vm11, %v13705_v22, %v13703_v29  ;;  %13707 = vst [vmem:[#allocation125_spill] sm:$0xff] %v8504_v62  ;;  %v1225_v52 = vrot.slane %v1212_v13, 2  ;;  %v13709_v6 = vrot.slane %v13708_v49, 2  ;;  %v8514_v22 = vpop.permute.xlu0 %880  ;;  %v13712_v23 = vrot.slane %v8164_v40, 2  ;;  %v13719_v49 = vld [vmem:[#allocation17_spill] sm:$0xff] }
 0x2eb   : > { %2689 = vrot.lane.b32.xlu1 %v2682_v2, %s6048_s19  ;;  %v8512_v12 = vsel %vm1130_vm11, %v1194_v61, %v1196_v15  ;;  %v8516_v29 = vpop.permute.xlu1 %882  ;;  %v13714_v2 = vrot.slane %v13713_v32, 2  ;;  %v1958_v13 = vmul.f32 %v13716_v1, %v13586_v16  ;;  %v13717_v61 = vld [vmem:[#allocation25_spill] sm:$0xff]  ;;  %v13723_v44 = vld [vmem:[#allocation122_spill] sm:$0xff]  ;;  %v13728_v31 = vrot.slane %v8485_v3, 2 }
 0x2ec   : > { %v8509_v55 = vsel %vm1130_vm11, %v13709_v6, %v1223_v35  ;;  %13711 = vst [vmem:[#allocation99_spill] sm:$0xff] %v8512_v12  ;;  %v8525_v47 = vsel %vm1130_vm11, %v1223_v35, %v1225_v52  ;;  %v527_v15 = vmul.f32 %v13718_v60, %v13717_v61  ;;  %v502_v6 = vmul.f32 %v13719_v49, %v13479_v20  ;;  %v13720_v12 = vld [vmem:[#allocation22_spill] sm:$0xff] }
 0x2ed   : > { %13710 = vst [vmem:[#allocation141_spill] sm:$0xff] %v8509_v55  ;;  %v2719_v28 = vsel %vm1130_vm11, %v13714_v2, %v13712_v23  ;;  %13715 = vst [vmem:[#allocation151_spill] sm:$0xff] %v8525_v47  ;;  %v8535_v55 = vmul.f32 %v13720_v12, %v13717_v61  ;;  %v13721_v23 = vld [vmem:[#allocation120_spill] sm:$0xff]  ;;  %v13722_v2 = vld [vmem:[#allocation138_spill] sm:$0xff]  ;;  %v1970_v35 = vrot.slane %v1958_v13, 1  ;;  %v1959_v52 = vmul.f32 %v13716_v1, %v13647_v5 }
 0x2ee   : > { %v1987_v32 = vmul.f32 %v13721_v23, %v13586_v16  ;;  %2724 = vrot.lane.b32.xlu0 %v13722_v2, %s6048_s19  ;;  %v2016_v47 = vmul.f32 %v13723_v44, %v13586_v16  ;;  %v1988_v49 = vmul.f32 %v13721_v23, %v13647_v5  ;;  %v13724_v19 = vld [vmem:[#allocation142_spill] sm:$0xff]  ;;  %v2017_v38 = vmul.f32 %v13723_v44, %v13647_v5  ;;  %v8554_v13 = vpop.permute.xlu0 %917 }
 0x2ef   : > { %2726 = vrot.lane.b32.xlu1 %v2719_v28, %s6048_s19  ;;  %v2045_v40 = vmul.f32 %v13724_v19, %v13586_v16  ;;  %v2046_v28 = vmul.f32 %v13724_v19, %v13647_v5  ;;  %v8556_v2 = vpop.permute.xlu1 %919  ;;  %v13725_v1 = vld [vmem:[#allocation42_spill] sm:$0xff]  ;;  %v1972_v23 = vrot.slane %v1959_v52, 1  ;;  %v13730_v21 = vrot.slane %v13729_v46, 2  ;;  %v13736_v46 = vld [vmem:[#allocation163_spill] sm:$0xff] }
 0x2f0   : > { %v1999_v62 = vrot.slane %v1987_v32, 1  ;;  %v13726_v25 = vrot.slane %v13725_v1, 1  ;;  %v2028_v32 = vrot.slane %v2016_v47, 1  ;;  %v2001_v36 = vrot.slane %v1988_v49, 1 }
 0x2f1   : > { %v2756_v44 = vsel %vm1130_vm11, %v13730_v21, %v13728_v31  ;;  %v528_v19 = vmul.f32 %v13718_v60, %v13479_v20  ;;  %v13732_v24 = vrot.slane %v13731_v37, 1  ;;  %v2057_v1 = vrot.slane %v2045_v40, 1 }
 0x2f2   : > { %v8561_v59 = vsel %vm717_vm10, %v13726_v25, %v1970_v35  ;;  %v13734_v25 = vld [vmem:[#allocation143_spill] sm:$0xff]  ;;  %v8579_v47 = vsel %vm717_vm10, %v1970_v35, %v1972_v23  ;;  %v13737_v52 = vrot.slane %v13736_v46, 1  ;;  %v8587_v31 = vsel %vm717_vm10, %v1999_v62, %v2001_v36  ;;  %v13744_v35 = vld [vmem:[#allocation145_spill] sm:$0xff]  ;;  %v955_v46 = vpop.permute.xlu0 %954 }
 0x2f3   : > { %13727 = vst [vmem:[#allocation128_spill] sm:$0xff] %v8561_v59  ;;  %v8573_v53 = vsel %vm717_vm10, %v13732_v24, %v1999_v62  ;;  %2761 = vrot.lane.b32.xlu0 %v13734_v25, %s6048_s19  ;;  %2763 = vrot.lane.b32.xlu1 %v2756_v44, %s6048_s19  ;;  %13735 = vst [vmem:[#allocation101_spill] sm:$0xff] %v8579_v47  ;;  %v2030_v37 = vrot.slane %v2017_v38, 1  ;;  %v13740_v24 = vld [vmem:[#allocation164_spill] sm:$0xff]  ;;  %v2059_v49 = vrot.slane %v2046_v28, 1  ;;  %v957_v47 = vpop.permute.xlu1 %956  ;;  %v13746_v38 = vld [vmem:[#allocation146_spill] sm:$0xff] }
 0x2f4   : > { %13733 = vst [vmem:[#allocation153_spill] sm:$0xff] %v8573_v53  ;;  %v8584_v21 = vsel %vm717_vm10, %v13737_v52, %v2028_v32  ;;  %13739 = vst [vmem:[#allocation131_spill] sm:$0xff] %v8587_v31  ;;  %v13741_v60 = vrot.slane %v13740_v24, 1  ;;  %v13743_v44 = vld [vmem:[#allocation144_spill] sm:$0xff]  ;;  %v2399_v23 = vmul.f32 %v13744_v35, %v13586_v16  ;;  %v2428_v62 = vmul.f32 %v13746_v38, %v13586_v16 }
 0x2f5   : > { %13738 = vst [vmem:[#allocation156_spill] sm:$0xff] %v8584_v21  ;;  %v2370_v25 = vmul.f32 %v13743_v44, %v13586_v16  ;;  %v8599_v52 = vsel %vm717_vm10, %v2028_v32, %v2030_v37  ;;  %v2371_v36 = vmul.f32 %v13743_v44, %v13647_v5  ;;  %v2400_v28 = vmul.f32 %v13744_v35, %v13647_v5  ;;  %v13748_v21 = vld [vmem:[#allocation62_spill] sm:$0xff] }
 0x2f6   : > { %v8592_v40 = vsel %vm717_vm10, %v13741_v60, %v2057_v1  ;;  %13745 = vst [vmem:[#allocation135_spill] sm:$0xff] %v8599_v52  ;;  %v855_v24 = vadd.f32 %v844_v57, %v7928_v48  ;;  %v856_v60 = vadd.f32 %v846_v14, %v732_v63  ;;  %v2411_v32 = vrot.slane %v2399_v23, 2  ;;  %v13751_v48 = vld [vmem:[#allocation53_spill] sm:$0xff] }
 0x2f7   : > { %13742 = vst [vmem:[#allocation129_spill] sm:$0xff] %v8592_v40  ;;  %v8609_v40 = vsel %vm717_vm10, %v2057_v1, %v2059_v49  ;;  %v2382_v31 = vrot.slane %v2370_v25, 2  ;;  %537 = vrot.lane.b32.xlu0 %v527_v15, %s6047_s27  ;;  %513 = vrot.lane.b32.xlu1 %v502_v6, %s6047_s27  ;;  %v2384_v37 = vrot.slane %v2371_v36, 2  ;;  %v2440_v44 = vrot.slane %v2428_v62, 2  ;;  %v992_v15 = vpop.permute.xlu0 %991  ;;  %v994_v6 = vpop.permute.xlu1 %993  ;;  %v13752_v1 = vld [vmem:[#allocation57_spill] sm:$0xff] }
 0x2f8   : > { %13747 = vst [vmem:[#allocation157_spill] sm:$0xff] %v8609_v40  ;;  %v2413_v52 = vrot.slane %v2400_v28, 2  ;;  %v13749_v53 = vrot.slane %v13748_v21, 2  ;;  %v2457_v63 = vmul.f32 %v13751_v48, %v13586_v16  ;;  %v2429_v57 = vmul.f32 %v13746_v38, %v13647_v5 }
 0x2f9   : > { %v2458_v14 = vmul.f32 %v13751_v48, %v13647_v5  ;;  %v13753_v49 = vrot.slane %v13752_v1, 2  ;;  %v8630_v21 = vsel %vm1130_vm11, %v2382_v31, %v2384_v37  ;;  %v1003_v38 = vadd.f32 %v992_v15, %v855_v24  ;;  %v13760_v48 = vld [vmem:[#allocation86_spill] sm:$0xff] }
 0x2fa   : > { %v8616_v59 = vsel %vm1130_vm11, %v13749_v53, %v2382_v31  ;;  %13755 = vst [vmem:[#allocation25_spill] sm:$0xff] %v8630_v21  ;;  %v13756_v53 = vld [vmem:[#allocation66_spill] sm:$0xff]  ;;  %v8638_v36 = vsel %vm1130_vm11, %v2411_v32, %v2413_v52  ;;  %v1004_v5 = vadd.f32 %v994_v6, %v856_v60  ;;  %v2469_v62 = vrot.slane %v2457_v63, 2  ;;  %v13763_v52 = vld [vmem:[#allocation36_spill] sm:$0xff] }
 0x2fb   : > { %13750 = vst [vmem:[#allocation133_spill] sm:$0xff] %v8616_v59  ;;  %v8627_v25 = vsel %vm1130_vm11, %v13753_v49, %v2411_v32  ;;  %v13757_v35 = vrot.slane %v13756_v53, 2  ;;  %13759 = vst [vmem:[#allocation17_spill] sm:$0xff] %v8638_v36  ;;  %v2442_v28 = vrot.slane %v2429_v57, 2  ;;  %v892_v1 = vadd.f32 %v8514_v22, %v13760_v48  ;;  %v13761_v49 = vld [vmem:[#allocation191_spill] sm:$0xff]  ;;  %563 = vrot.lane.b32.xlu0 %v8535_v55, %s6047_s27  ;;  %v13762_v37 = vld [vmem:[#allocation154_spill] sm:$0xff]  ;;  %v1031_v57 = vpop.permute.xlu1 %1030 }
 0x2fc   : > { %13754 = vst [vmem:[#allocation118_spill] sm:$0xff] %v8627_v25  ;;  %v893_v25 = vadd.f32 %v8516_v29, %v13761_v49  ;;  %539 = vrot.lane.b32.xlu1 %v528_v19, %s6047_s27  ;;  %v2471_v31 = vrot.slane %v2458_v14, 2  ;;  %v8648_v53 = vadd.f32 %v13762_v37, %v1003_v38  ;;  %v8651_v24 = vadd.f32 %v13763_v52, %v1004_v5  ;;  %v13764_v60 = vld [vmem:[#allocation80_spill] sm:$0xff]  ;;  %v1029_v29 = vpop.permute.xlu0 %1028  ;;  %v13768_v55 = vld [vmem:[#allocation23_spill] sm:$0xff]  ;;  %v13771_v5 = vld [vmem:[#allocation197_spill] sm:$0xff] }
 0x2fd   : > { %v8635_v23 = vsel %vm1130_vm11, %v13757_v35, %v2440_v44  ;;  %v13765_v32 = vrot.slane %v13764_v60, 2  ;;  %v8659_v22 = vsel %vm1130_vm11, %v2440_v44, %v2442_v28  ;;  %v579_v19 = vmul.f32 %v13768_v55, %v13717_v61  ;;  %v13770_v38 = vld [vmem:[#allocation196_spill] sm:$0xff]  ;;  %v13772_v48 = vld [vmem:[#allocation155_spill] sm:$0xff]  ;;  %v13773_v37 = vld [vmem:[#allocation14_spill] sm:$0xff] }
 0x2fe   : > { %13758 = vst [vmem:[#allocation19_spill] sm:$0xff] %v8635_v23  ;;  %13767 = vst [vmem:[#allocation120_spill] sm:$0xff] %v8659_v22  ;;  %v554_v14 = vmul.f32 %v13720_v12, %v13479_v20  ;;  %v8666_v15 = vsel %vm1130_vm11, %v2469_v62, %v2471_v31  ;;  %v1040_v6 = vadd.f32 %v1029_v29, %v892_v1  ;;  %v13776_v29 = vld [vmem:[#allocation147_spill] sm:$0xff]  ;;  %v13788_v22 = vld [vmem:[#allocation21_spill] sm:$0xff]  ;;  %v8769_v59 = vstv %s8732_s22  ;;  %s5574_s22 = sld [smem:[#allocation6 + $0x61]] }
 0x2ff   : > { %v8656_v63 = vsel %vm1130_vm11, %v13765_v32, %v2469_v62  ;;  %13769 = vst [vmem:[#allocation138_spill] sm:$0xff] %v8666_v15  ;;  %v1041_v35 = vadd.f32 %v1031_v57, %v893_v25  ;;  %589 = vrot.lane.b32.xlu0 %v579_v19, %s6047_s27  ;;  %v929_v44 = vadd.f32 %v8554_v13, %v13770_v38  ;;  %v1068_v31 = vpop.permute.xlu1 %1067  ;;  %v13774_v25 = vld [vmem:[#allocation24_spill] sm:$0xff]  ;;  %v13777_v19 = vld [vmem:[#allocation158_spill] sm:$0xff] }
 0x300   : > { %13766 = vst [vmem:[#allocation22_spill] sm:$0xff] %v8656_v63  ;;  %565 = vrot.lane.b32.xlu1 %v554_v14, %s6047_s27  ;;  %v930_v28 = vadd.f32 %v8556_v2, %v13771_v5  ;;  %v8675_v49 = vadd.f32 %v13772_v48, %v1040_v6  ;;  %v1066_v62 = vpop.permute.xlu0 %1065  ;;  %v605_v1 = vmul.f32 %v13774_v25, %v13717_v61  ;;  %v13775_v13 = vld [vmem:[#allocation100_spill] sm:$0xff]  ;;  %v13778_v6 = vld [vmem:[#allocation54_spill] sm:$0xff] }
 0x301   : > { %v8678_v12 = vadd.f32 %v13773_v37, %v1041_v35  ;;  %v580_v52 = vmul.f32 %v13768_v55, %v13479_v20  ;;  %v1077_v60 = vadd.f32 %v1066_v62, %v929_v44  ;;  %v966_v2 = vadd.f32 %v955_v46, %v13775_v13  ;;  %v13779_v55 = vld [vmem:[#allocation26_spill] sm:$0xff]  ;;  %v13781_v62 = vld [vmem:[#allocation45_spill] sm:$0xff] }
 0x302   : > { %v1078_v32 = vadd.f32 %v1068_v31, %v930_v28  ;;  %v967_v57 = vadd.f32 %v957_v47, %v13776_v29  ;;  %v631_v44 = vmul.f32 %v13779_v55, %v13717_v61  ;;  %v606_v28 = vmul.f32 %v13774_v25, %v13479_v20  ;;  %v13780_v47 = vld [vmem:[#allocation39_spill] sm:$0xff]  ;;  %v13783_v29 = vld [vmem:[#allocation28_spill] sm:$0xff] }
 0x303   : > { %615 = vrot.lane.b32.xlu0 %v605_v1, %s6048_s19  ;;  %v8689_v14 = vadd.f32 %v13777_v19, %v1077_v60  ;;  %v1105_v5 = vpop.permute.xlu1 %1104  ;;  %v13782_v60 = vld [vmem:[#allocation27_spill] sm:$0xff]  ;;  %v632_v25 = vmul.f32 %v13779_v55, %v13479_v20 }
 0x304   : > { %591 = vrot.lane.b32.xlu1 %v580_v52, %s6047_s27  ;;  %v8692_v35 = vadd.f32 %v13778_v6, %v1078_v32  ;;  %v1103_v38 = vpop.permute.xlu0 %1102  ;;  %v1115_v37 = vadd.f32 %v1105_v5, %v967_v57  ;;  %v657_v32 = vmul.f32 %v13782_v60, %v13717_v61  ;;  %v683_v57 = vmul.f32 %v13783_v29, %v13717_v61  ;;  %v13784_v5 = vld [vmem:[#allocation34_spill] sm:$0xff] }
 0x305   : > { %v1114_v48 = vadd.f32 %v1103_v38, %v966_v2  ;;  %v658_v19 = vmul.f32 %v13782_v60, %v13479_v20  ;;  %v1749_v55 = vmul.f32 %v13784_v5, %v13418_v58  ;;  %v8730_v60 = vstv %s5497_s17  ;;  %s5567_s17 = sld [smem:[#allocation6 + $0x83]] }
 0x306   : > { %v8704_v31 = vadd.f32 %v13781_v62, %v1115_v37  ;;  %v13785_v37 = vld [vmem:[#allocation35_spill] sm:$0xff]  ;;  %v1750_v62 = vmul.f32 %v13784_v5, %v13586_v16  ;;  %v1708_v63 = vmul.f32 %v8730_v60, %v13788_v22 }
 0x307   : > { %641 = vrot.lane.b32.xlu0 %v631_v44, %s6048_s19  ;;  %v8701_v46 = vadd.f32 %v13780_v47, %v1114_v48  ;;  %v1259_v52 = vpop.permute.xlu1 %1258  ;;  %v684_v44 = vmul.f32 %v13783_v29, %v13479_v20  ;;  %v1775_v47 = vmul.f32 %v13785_v37, %v13418_v58  ;;  %v1776_v5 = vmul.f32 %v13785_v37, %v13586_v16 }
 0x308   : > { %617 = vrot.lane.b32.xlu1 %v606_v28, %s6048_s19  ;;  %v1257_v1 = vpop.permute.xlu0 %1256 }
 0x30b   : > { %667 = vrot.lane.b32.xlu0 %v657_v32, %s6048_s19  ;;  %v1296_v2 = vpop.permute.xlu1 %1295  ;;  %v1268_v32 = vadd.f32 %v1257_v1, %v8648_v53 }
 0x30c   : > { %643 = vrot.lane.b32.xlu1 %v632_v25, %s6048_s19  ;;  %v1294_v13 = vpop.permute.xlu0 %1293  ;;  %v1269_v25 = vadd.f32 %v1259_v52, %v8651_v24  ;;  %v8748_v24 = vstv %s5499_s20  ;;  %v1306_v52 = vadd.f32 %v1296_v2, %v8678_v12  ;;  %v13792_v12 = vld [vmem:[#allocation198_spill] sm:$0xff]  ;;  %s5573_s20 = sld [smem:[#allocation6 + $0x3d]] }
 0x30d   : > { %13789 = vst [vmem:[#allocation122_spill] sm:$0xff] %v8748_v24  ;;  %v1305_v1 = vadd.f32 %v1294_v13, %v8675_v49  ;;  %v13791_v49 = vld [vmem:[#allocation149_spill] sm:$0xff] }
 0x30f   : > { %693 = vrot.lane.b32.xlu0 %v683_v57, %s6048_s19  ;;  %v1333_v38 = vpop.permute.xlu1 %1332 }
 0x310   : > { %669 = vrot.lane.b32.xlu1 %v658_v19, %s6048_s19  ;;  %v1331_v6 = vpop.permute.xlu0 %1330  ;;  %v13786_v19 = vld [vmem:[#allocation37_spill] sm:$0xff] }
 0x311   : > { %v1802_v23 = vmul.f32 %v13786_v19, %v13586_v16 }
 0x313   : > { %1759 = vrot.lane.b32.xlu0 %v1749_v55, %s6047_s27  ;;  %v1370_v48 = vpop.permute.xlu1 %1369  ;;  %v1801_v55 = vmul.f32 %v13786_v19, %v13418_v58  ;;  %v8771_v19 = vpop.f32.mrb[14].mxu1 }
 0x314   : > { %695 = vrot.lane.b32.xlu1 %v684_v44, %s6048_s19  ;;  %v1368_v28 = vpop.permute.xlu0 %1367  ;;  %v8740_v44 = vstv %s5498_s10  ;;  %s5572_s10 = sld [smem:[#allocation6 + $0x19]] }
 0x317   : > { %1785 = vrot.lane.b32.xlu0 %v1775_v47, %s6047_s27  ;;  %v1407_v57 = vpop.permute.xlu1 %1406  ;;  %v13787_v47 = vld [vmem:[#allocation18_spill] sm:$0xff] }
 0x318   : > { %1761 = vrot.lane.b32.xlu1 %v1750_v62, %s6047_s27  ;;  %v1405_v29 = vpop.permute.xlu0 %1404  ;;  %v1707_v62 = vmul.f32 %v8730_v60, %v13787_v47  ;;  %v1417_v53 = vadd.f32 %v1407_v57, %v1269_v25  ;;  %v1718_v25 = vmul.f32 %v8740_v44, %v13788_v22  ;;  %v1727_v21 = vmul.f32 %v8748_v24, %v13787_v47 }
 0x319   : > { %v1416_v15 = vadd.f32 %v1405_v29, %v1268_v32  ;;  %v1717_v32 = vmul.f32 %v8740_v44, %v13787_v47 }
 0x31a   : > { %v1712_v36 = vadd.f32 %v1708_v63, %v1417_v53  ;;  %v1343_v53 = vadd.f32 %v1333_v38, %v8692_v35  ;;  %v1379_v35 = vadd.f32 %v1368_v28, %v8701_v46  ;;  %v13798_v46 = vld [vmem:[#allocation46_spill] sm:$0xff] }
 0x31b   : > { %1811 = vrot.lane.b32.xlu0 %v1801_v55, %s6047_s27  ;;  %v1711_v37 = vadd.f32 %v1707_v62, %v1416_v15  ;;  %v1444_v57 = vpop.permute.xlu1 %1443  ;;  %v13790_v55 = vld [vmem:[#allocation38_spill] sm:$0xff]  ;;  %v1342_v62 = vadd.f32 %v1331_v6, %v8689_v14  ;;  %v5758_v14 = vpop.f32.mrb[15].mxu1 }
 0x31c   : > { %1787 = vrot.lane.b32.xlu1 %v1776_v5, %s6047_s27  ;;  %v1442_v29 = vpop.permute.xlu0 %1441  ;;  %v1827_v5 = vmul.f32 %v13790_v55, %v13418_v58  ;;  %v1768_v15 = vadd.f32 %v13792_v12, %v1712_v36  ;;  %v1454_v2 = vadd.f32 %v1444_v57, %v1306_v52  ;;  %v13793_v36 = vld [vmem:[#allocation77_spill] sm:$0xff]  ;;  %v1828_v12 = vmul.f32 %v13790_v55, %v13586_v16  ;;  %v8789_v40 = vpop.f32.mrb[16].mxu1 }
 0x31d   : > { %v1767_v13 = vadd.f32 %v13791_v49, %v1711_v37  ;;  %v1453_v63 = vadd.f32 %v1442_v29, %v1305_v1  ;;  %v13794_v52 = vld [vmem:[#allocation65_spill] sm:$0xff] }
 0x31e   : > { %v1722_v49 = vadd.f32 %v1718_v25, %v1454_v2  ;;  %v1872_v29 = vadd.f32 %v13794_v52, %v1768_v15  ;;  %v13795_v57 = vld [vmem:[#allocation41_spill] sm:$0xff]  ;;  %v13799_v52 = vld [vmem:[#allocation159_spill] sm:$0xff] }
 0x31f   : > { %1837 = vrot.lane.b32.xlu0 %v1827_v5, %s6047_s27  ;;  %v1721_v37 = vadd.f32 %v1717_v32, %v1453_v63  ;;  %v1871_v1 = vadd.f32 %v13793_v36, %v1767_v13  ;;  %v1481_v38 = vpop.permute.xlu1 %1480  ;;  %v1853_v5 = vmul.f32 %v13795_v57, %v13418_v58  ;;  %v13796_v32 = vld [vmem:[#allocation97_spill] sm:$0xff]  ;;  %v13797_v63 = vld [vmem:[#allocation96_spill] sm:$0xff]  ;;  %v1380_v36 = vadd.f32 %v1370_v48, %v8704_v31 }
 0x320   : > { %1813 = vrot.lane.b32.xlu1 %v1802_v23, %s6047_s27  ;;  %v1479_v6 = vpop.permute.xlu0 %1478  ;;  %v1728_v23 = vmul.f32 %v8748_v24, %v13788_v22  ;;  %v1794_v13 = vadd.f32 %v13797_v63, %v1722_v49  ;;  %v1491_v15 = vadd.f32 %v1481_v38, %v1343_v53  ;;  %v1979_v14 = vadd.f32 %v13799_v52, %v1872_v29  ;;  %v13806_v52 = vld [vmem:[#allocation69_spill] sm:$0xff] }
 0x321   : > { %v1793_v25 = vadd.f32 %v13796_v32, %v1721_v37  ;;  %v1490_v2 = vadd.f32 %v1479_v6, %v1342_v62  ;;  %v1978_v28 = vadd.f32 %v13798_v46, %v1871_v1  ;;  %v5761_v62 = vpop.f32.mrb[17].mxu1  ;;  %v1737_v31 = vmul.f32 %v8769_v59, %v13787_v47  ;;  %v13800_v1 = vld [vmem:[#allocation43_spill] sm:$0xff]  ;;  %v13803_v47 = vld [vmem:[#allocation161_spill] sm:$0xff]  ;;  %v13805_v46 = vld [vmem:[#allocation44_spill] sm:$0xff] }
 0x322   : > { %v1732_v55 = vadd.f32 %v1728_v23, %v1491_v15  ;;  %v1898_v49 = vadd.f32 %v8295_v18, %v1794_v13  ;;  %v1738_v53 = vmul.f32 %v8769_v59, %v13788_v22  ;;  %v1879_v29 = vmul.f32 %v13800_v1, %v13418_v58  ;;  %v13801_v23 = vld [vmem:[#allocation63_spill] sm:$0xff]  ;;  %v13804_v22 = vld [vmem:[#allocation162_spill] sm:$0xff] }
 0x323   : > { %1863 = vrot.lane.b32.xlu0 %v1853_v5, %s6048_s19  ;;  %v1731_v24 = vadd.f32 %v1727_v21, %v1490_v2  ;;  %v1897_v37 = vadd.f32 %v8293_v50, %v1793_v25  ;;  %v1518_v6 = vpop.permute.xlu1 %1517  ;;  %v1854_v21 = vmul.f32 %v13795_v57, %v13586_v16  ;;  %v13802_v50 = vld [vmem:[#allocation64_spill] sm:$0xff]  ;;  %v13807_v62 = vld [vmem:[#allocation70_spill] sm:$0xff] }
 0x324   : > { %1839 = vrot.lane.b32.xlu1 %v1828_v12, %s6047_s27  ;;  %v1516_v48 = vpop.permute.xlu0 %1515  ;;  %v1820_v5 = vadd.f32 %v13802_v50, %v1732_v55  ;;  %v1528_v12 = vadd.f32 %v1518_v6, %v1380_v36  ;;  %v2008_v25 = vadd.f32 %v13804_v22, %v1898_v49  ;;  %v1880_v36 = vmul.f32 %v13800_v1, %v13586_v16  ;;  %v13808_v49 = vld [vmem:[#allocation51_spill] sm:$0xff]  ;;  %v13810_v1 = vld [vmem:[#allocation50_spill] sm:$0xff] }
 0x325   : > { %v1819_v38 = vadd.f32 %v13801_v23, %v1731_v24  ;;  %v1527_v18 = vadd.f32 %v1516_v48, %v1379_v35  ;;  %v2007_v32 = vadd.f32 %v13803_v47, %v1897_v37  ;;  %v1905_v35 = vmul.f32 %v13805_v46, %v13418_v58  ;;  %v13813_v47 = vld [vmem:[#allocation83_spill] sm:$0xff] }
 0x326   : > { %v1742_v13 = vadd.f32 %v1738_v53, %v1528_v12  ;;  %v1924_v57 = vadd.f32 %v8357_v27, %v1820_v5  ;;  %v1906_v23 = vmul.f32 %v13805_v46, %v13586_v16  ;;  %v13812_v5 = vld [vmem:[#allocation166_spill] sm:$0xff]  ;;  %v13814_v22 = vrot.slane %v13813_v47, 1  ;;  %v13825_v47 = vld [vmem:[#allocation115_spill] sm:$0xff] }
 0x327   : > { %1889 = vrot.lane.b32.xlu0 %v1879_v29, %s6048_s19  ;;  %v1741_v63 = vadd.f32 %v1737_v31, %v1527_v18  ;;  %v1923_v2 = vadd.f32 %v8355_v4, %v1819_v38  ;;  %v2093_v24 = vpop.permute.xlu1 %2092  ;;  %v13809_v31 = vld [vmem:[#allocation55_spill] sm:$0xff]  ;;  %v13811_v38 = vld [vmem:[#allocation165_spill] sm:$0xff] }
 0x328   : > { %1865 = vrot.lane.b32.xlu1 %v1854_v21, %s6048_s19  ;;  %v2091_v15 = vpop.permute.xlu0 %2090  ;;  %v1846_v37 = vadd.f32 %v13807_v62, %v1742_v13  ;;  %v2037_v27 = vadd.f32 %v13809_v31, %v1924_v57  ;;  %v1931_v21 = vmul.f32 %v13810_v1, %v13418_v58 }
 0x329   : > { %v1845_v55 = vadd.f32 %v13806_v52, %v1741_v63  ;;  %v2036_v4 = vadd.f32 %v13808_v49, %v1923_v2  ;;  %v13815_v63 = vld [vmem:[#allocation107_spill] sm:$0xff]  ;;  %v13819_v52 = vld [vmem:[#allocation112_spill] sm:$0xff]  ;;  %v13822_v49 = vld [vmem:[#allocation73_spill] sm:$0xff] }
 0x32a   : > { %v1950_v53 = vadd.f32 %v8410_v17, %v1846_v37  ;;  %v1932_v17 = vmul.f32 %v13810_v1, %v13586_v16  ;;  %v13816_v13 = vrot.slane %v13815_v63, 1  ;;  %v8843_v37 = vpop.f32.mrb[18].mxu1 }
 0x32b   : > { %1915 = vrot.lane.b32.xlu0 %v1905_v35, %s6048_s19  ;;  %v1949_v48 = vadd.f32 %v8408_v33, %v1845_v55  ;;  %v2130_v29 = vpop.permute.xlu1 %2129  ;;  %v13817_v35 = vld [vmem:[#allocation87_spill] sm:$0xff]  ;;  %v13820_v55 = vrot.slane %v13819_v52, 1  ;;  %13821 = vst [vmem:[#allocation142_spill] sm:$0xff] %v8843_v37  ;;  %v5764_v31 = vpop.f32.mrb[19].mxu1 }
 0x32c   : > { %1891 = vrot.lane.b32.xlu1 %v1880_v36, %s6048_s19  ;;  %v2128_v6 = vpop.permute.xlu0 %2127  ;;  %v2066_v18 = vadd.f32 %v13812_v5, %v1950_v53  ;;  %v840_v2 = vsel %vm717_vm10, %v13816_v13, %v13814_v22  ;;  %v13818_v36 = vrot.slane %v13817_v35, 1  ;;  %v2103_v53 = vadd.f32 %v2093_v24, %v1979_v14  ;;  %v13823_v5 = vld [vmem:[#allocation31_spill] sm:$0xff]  ;;  %v13829_v14 = vld [vmem:[#allocation168_spill] sm:$0xff] }
 0x32d   : > { %v2065_v50 = vadd.f32 %v13811_v38, %v1949_v48  ;;  %v2102_v48 = vadd.f32 %v2091_v15, %v1978_v28  ;;  %v13826_v22 = vrot.slane %v13825_v47, 1  ;;  %v13827_v13 = vld [vmem:[#allocation175_spill] sm:$0xff]  ;;  %v2140_v35 = vadd.f32 %v2130_v29, %v2008_v25 }
 0x32e   : > { %v877_v62 = vsel %vm717_vm10, %v13820_v55, %v13818_v36  ;;  %v13828_v36 = vld [vmem:[#allocation167_spill] sm:$0xff] }
 0x32f   : > { %1941 = vrot.lane.b32.xlu0 %v1931_v21, %s6048_s19  ;;  %v2167_v33 = vpop.permute.xlu1 %2166 }
 0x330   : > { %1917 = vrot.lane.b32.xlu1 %v1906_v23, %s6048_s19  ;;  %v2165_v12 = vpop.permute.xlu0 %2164  ;;  %v2177_v25 = vadd.f32 %v2167_v33, %v2037_v27 }
 0x333   : > { %847 = vrot.lane.b32.xlu0 %v840_v2, %s6047_s27  ;;  %v2204_v46 = vpop.permute.xlu1 %2203  ;;  %v2139_v2 = vadd.f32 %v2128_v6, %v2007_v32  ;;  %v2176_v32 = vadd.f32 %v2165_v12, %v2036_v4  ;;  %v13835_v6 = vld [vmem:[#allocation172_spill] sm:$0xff]  ;;  %v13842_v12 = vld [vmem:[#allocation71_spill] sm:$0xff] }
 0x334   : > { %1943 = vrot.lane.b32.xlu1 %v1932_v17, %s6048_s19  ;;  %v2202_v57 = vpop.permute.xlu0 %2201  ;;  %v13824_v17 = vrot.slane %v13823_v5, 1  ;;  %v2214_v27 = vadd.f32 %v2204_v46, %v2066_v18  ;;  %v13849_v18 = vld [vmem:[#allocation81_spill] sm:$0xff] }
 0x335   : > { %v2213_v4 = vadd.f32 %v2202_v57, %v2065_v50  ;;  %v13848_v50 = vld [vmem:[#allocation178_spill] sm:$0xff]  ;;  %v13850_v46 = vld [vmem:[#allocation185_spill] sm:$0xff] }
 0x336   : > { %v914_v63 = vsel %vm717_vm10, %v13826_v22, %v13824_v17 }
 0x337   : > { %884 = vrot.lane.b32.xlu0 %v877_v62, %s6047_s27  ;;  %v2241_v21 = vpop.permute.xlu1 %2240 }
 0x338   : > { %849 = vrot.lane.b32.xlu1 %v13822_v49, %s6047_s27  ;;  %v2239_v1 = vpop.permute.xlu0 %2238  ;;  %v2251_v38 = vadd.f32 %v2241_v21, %v2103_v53  ;;  %v13830_v49 = vld [vmem:[#allocation30_spill] sm:$0xff]  ;;  %v13834_v21 = vld [vmem:[#allocation176_spill] sm:$0xff] }
 0x339   : > { %v2250_v23 = vadd.f32 %v2239_v1, %v2102_v48  ;;  %v13831_v31 = vrot.slane %v13830_v49, 1  ;;  %v13832_v48 = vld [vmem:[#allocation124_spill] sm:$0xff] }
 0x33a   : > { %v2391_v15 = vadd.f32 %v13829_v14, %v2251_v38  ;;  %v13833_v53 = vrot.slane %v13832_v48, 1  ;;  %v13841_v14 = vld [vmem:[#allocation177_spill] sm:$0xff]  ;;  %v13844_v48 = vld [vmem:[#allocation170_spill] sm:$0xff] }
 0x33b   : > { %921 = vrot.lane.b32.xlu0 %v914_v63, %s6047_s27  ;;  %v2390_v28 = vadd.f32 %v13828_v36, %v2250_v23  ;;  %v2278_v52 = vpop.permute.xlu1 %2277  ;;  %v13836_v23 = vld [vmem:[#allocation173_spill] sm:$0xff] }
 0x33c   : > { %886 = vrot.lane.b32.xlu1 %v13827_v13, %s6047_s27  ;;  %v2276_v24 = vpop.permute.xlu0 %2275  ;;  %v2288_v62 = vadd.f32 %v2278_v52, %v2140_v35  ;;  %v951_v1 = vsel %vm717_vm10, %v13833_v53, %v13831_v31  ;;  %v13837_v63 = vld [vmem:[#allocation169_spill] sm:$0xff]  ;;  %v13845_v53 = vrot.slane %v13844_v48, 1  ;;  %v13863_v48 = vld [vmem:[#allocation140_spill] sm:$0xff] }
 0x33d   : > { %v2287_v55 = vadd.f32 %v2276_v24, %v2139_v2  ;;  %v13838_v13 = vrot.slane %v13837_v63, 1  ;;  %v13839_v2 = vld [vmem:[#allocation127_spill] sm:$0xff] }
 0x33e   : > { %v2420_v38 = vadd.f32 %v13836_v23, %v2288_v62  ;;  %v13840_v35 = vrot.slane %v13839_v2, 1  ;;  %v13843_v24 = vld [vmem:[#allocation179_spill] sm:$0xff] }
 0x33f   : > { %958 = vrot.lane.b32.xlu0 %v951_v1, %s6047_s27  ;;  %v2419_v29 = vadd.f32 %v13835_v6, %v2287_v55  ;;  %v2315_v17 = vpop.permute.xlu1 %2314  ;;  %v13846_v1 = vld [vmem:[#allocation130_spill] sm:$0xff] }
 0x340   : > { %923 = vrot.lane.b32.xlu1 %v13834_v21, %s6047_s27  ;;  %v2313_v5 = vpop.permute.xlu0 %2312  ;;  %v2325_v22 = vadd.f32 %v2315_v17, %v2177_v25  ;;  %v988_v36 = vsel %vm717_vm10, %v13840_v35, %v13838_v13  ;;  %v13847_v21 = vrot.slane %v13846_v1, 1  ;;  %v13855_v13 = vld [vmem:[#allocation180_spill] sm:$0xff] }
 0x341   : > { %v2324_v47 = vadd.f32 %v2313_v5, %v2176_v32  ;;  %v13851_v5 = vld [vmem:[#allocation174_spill] sm:$0xff] }
 0x342   : > { %v8880_v52 = vadd.f32 %v13843_v24, %v2325_v22  ;;  %v1025_v32 = vsel %vm717_vm10, %v13847_v21, %v13845_v53  ;;  %v13852_v17 = vrot.slane %v13851_v5, 1  ;;  %v13860_v24 = vld [vmem:[#allocation181_spill] sm:$0xff]  ;;  %v13864_v53 = vrot.slane %v13863_v48, 2  ;;  %v13865_v21 = vld [vmem:[#allocation184_spill] sm:$0xff] }
 0x343   : > { %995 = vrot.lane.b32.xlu0 %v988_v36, %s6048_s19  ;;  %v8877_v33 = vadd.f32 %v13842_v12, %v2324_v47  ;;  %v2352_v62 = vpop.permute.xlu1 %2351  ;;  %v13853_v47 = vld [vmem:[#allocation134_spill] sm:$0xff]  ;;  %v13856_v36 = vld [vmem:[#allocation33_spill] sm:$0xff] }
 0x344   : > { %960 = vrot.lane.b32.xlu1 %v13841_v14, %s6047_s27  ;;  %v2350_v55 = vpop.permute.xlu0 %2349  ;;  %v2362_v31 = vadd.f32 %v2352_v62, %v2214_v27  ;;  %v13854_v22 = vrot.slane %v13853_v47, 1  ;;  %v13857_v14 = vrot.slane %v13856_v36, 1 }
 0x345   : > { %v2361_v49 = vadd.f32 %v2350_v55, %v2213_v4  ;;  %v13858_v4 = vld [vmem:[#allocation137_spill] sm:$0xff] }
 0x346   : > { %v8894_v25 = vadd.f32 %v13850_v46, %v2362_v31  ;;  %v1062_v63 = vsel %vm717_vm10, %v13854_v22, %v13852_v17  ;;  %v13859_v27 = vrot.slane %v13858_v4, 1  ;;  %v13867_v46 = vld [vmem:[#allocation183_spill] sm:$0xff]  ;;  %v13869_v17 = vld [vmem:[#allocation148_spill] sm:$0xff] }
 0x347   : > { %1032 = vrot.lane.b32.xlu0 %v1025_v32, %s6048_s19  ;;  %v8891_v57 = vadd.f32 %v13849_v18, %v2361_v49  ;;  %v2505_v23 = vpop.permute.xlu1 %2504  ;;  %v13861_v49 = vld [vmem:[#allocation182_spill] sm:$0xff]  ;;  %v8920_v18 = vstv %s5544_s29  ;;  %v13868_v5 = vrot.slane %v13867_v46, 2  ;;  %v13870_v47 = vrot.slane %v13869_v17, 2  ;;  %s9305_s29 = sld [smem:[#allocation6 + $0x13]] }
 0x348   : > { %997 = vrot.lane.b32.xlu1 %v13848_v50, %s6048_s19  ;;  %v2503_v6 = vpop.permute.xlu0 %2502  ;;  %v1099_v12 = vsel %vm717_vm10, %v13859_v27, %v13857_v14  ;;  %v13862_v31 = vrot.slane %v13861_v49, 2  ;;  %13866 = vst [vmem:[#allocation42_spill] sm:$0xff] %v8920_v18  ;;  %v2515_v36 = vadd.f32 %v2505_v23, %v2391_v15  ;;  %v8930_v14 = vpop.f32.mrb[14].mxu0  ;;  %v2953_v4 = vmul.f32 %v8920_v18, %v8771_v19 }
 0x349   : > { %v1290_v22 = vsel %vm1130_vm11, %v13870_v47, %v13868_v5  ;;  %13872 = vst [vmem:[#allocation139_spill] sm:$0xff] %v8930_v14  ;;  %v2954_v27 = vmul.f32 %v8920_v18, %v8789_v40  ;;  %v8936_v49 = vstv %s5545_s6  ;;  %v5784_v23 = vpop.f32.mrb[15].mxu0  ;;  %v13878_v5 = vld [vmem:[#allocation190_spill] sm:$0xff]  ;;  %s9314_s6 = sld [smem:[#allocation6 + $0x37]] }
 0x34a   : > { %v1253_v1 = vsel %vm1130_vm11, %v13864_v53, %v13862_v31  ;;  %13873 = vst [vmem:[#allocation29_spill] sm:$0xff] %v8936_v49  ;;  %v13874_v53 = vld [vmem:[#allocation186_spill] sm:$0xff] }
 0x34b   : > { %1069 = vrot.lane.b32.xlu0 %v1062_v63, %s6048_s19  ;;  %v2542_v35 = vpop.permute.xlu1 %2541  ;;  %v13871_v63 = vld [vmem:[#allocation188_spill] sm:$0xff]  ;;  %v8948_v17 = vpop.f32.mrb[16].mxu0 }
 0x34c   : > { %1034 = vrot.lane.b32.xlu1 %v13855_v13, %s6048_s19  ;;  %v2540_v2 = vpop.permute.xlu0 %2539  ;;  %v2514_v13 = vadd.f32 %v2503_v6, %v2390_v28  ;;  %v13876_v28 = vld [vmem:[#allocation150_spill] sm:$0xff]  ;;  %v2552_v46 = vadd.f32 %v2542_v35, %v2420_v38  ;;  %13879 = vst [vmem:[#allocation143_spill] sm:$0xff] %v8948_v17  ;;  %v8958_v38 = vstv %s5546_s8  ;;  %s9332_s8 = sld [smem:[#allocation6 + $0x5b]] }
 0x34d   : > { %v13877_v15 = vrot.slane %v13876_v28, 2  ;;  %13882 = vst [vmem:[#allocation144_spill] sm:$0xff] %v8958_v38  ;;  %v13887_v28 = vld [vmem:[#allocation192_spill] sm:$0xff]  ;;  %v2973_v23 = vmul.f32 %v8958_v38, %v8771_v19 }
 0x34f   : > { %1106 = vrot.lane.b32.xlu0 %v1099_v12, %s6048_s19  ;;  %v2579_v62 = vpop.permute.xlu1 %2578 }
 0x350   : > { %1071 = vrot.lane.b32.xlu1 %v13860_v24, %s6048_s19  ;;  %v2577_v55 = vpop.permute.xlu0 %2576 }
 0x353   : > { %1260 = vrot.lane.b32.xlu0 %v1253_v1, %s6047_s27  ;;  %v2616_v50 = vpop.permute.xlu1 %2615  ;;  %v13875_v1 = vrot.slane %v13874_v53, 2  ;;  %v13885_v53 = vld [vmem:[#allocation152_spill] sm:$0xff] }
 0x354   : > { %1108 = vrot.lane.b32.xlu1 %v13865_v21, %s6048_s19  ;;  %v2614_v32 = vpop.permute.xlu0 %2613  ;;  %v2551_v21 = vadd.f32 %v2540_v2, %v2419_v29 }
 0x355   : > { %v1327_v6 = vsel %vm1130_vm11, %v13877_v15, %v13875_v1  ;;  %v5787_v1 = vpop.f32.mrb[17].mxu0 }
 0x356   : > { %v8970_v15 = vpop.f32.mrb[18].mxu0 }
 0x357   : > { %1297 = vrot.lane.b32.xlu0 %v1290_v22, %s6047_s27  ;;  %v2653_v24 = vpop.permute.xlu1 %2652  ;;  %v2963_v22 = vmul.f32 %v8936_v49, %v8771_v19  ;;  %13888 = vst [vmem:[#allocation145_spill] sm:$0xff] %v8970_v15 }
 0x358   : > { %1262 = vrot.lane.b32.xlu1 %v13871_v63, %s6047_s27  ;;  %v2651_v12 = vpop.permute.xlu0 %2650  ;;  %v2663_v48 = vadd.f32 %v2653_v24, %v2515_v36 }
 0x359   : > { %v2662_v31 = vadd.f32 %v2651_v12, %v2514_v13  ;;  %v2964_v13 = vmul.f32 %v8936_v49, %v8789_v40  ;;  %v13883_v12 = vld [vmem:[#allocation187_spill] sm:$0xff]  ;;  %v9280_v49 = vstv %s5572_s10  ;;  %s9488_s10 = sld [smem:[#allocation6 + $0x15]] }
 0x35a   : > { %v8954_v63 = vadd.f32 %v2954_v27, %v2663_v48  ;;  %v13884_v24 = vrot.slane %v13883_v12, 2  ;;  %v2588_v27 = vadd.f32 %v2577_v55, %v8877_v33  ;;  %v2589_v48 = vadd.f32 %v2579_v62, %v8880_v52  ;;  %v13894_v12 = vld [vmem:[#allocation48_spill] sm:$0xff]  ;;  %13989 = vst [vmem:[#allocation65_spill] sm:$0xff] %v9280_v49 }
 0x35b   : > { %1334 = vrot.lane.b32.xlu0 %v1327_v6, %s6047_s27  ;;  %v8950_v47 = vadd.f32 %v2953_v4, %v2662_v31  ;;  %v13886_v4 = vrot.slane %v13885_v53, 2  ;;  %v8981_v52 = vstv %s8938_s9  ;;  %v2625_v53 = vadd.f32 %v2614_v32, %v8891_v57  ;;  %s9334_s9 = sld [smem:[#allocation6 + $0x85]] }
 0x35c   : > { %1299 = vrot.lane.b32.xlu1 %v13878_v5, %s6047_s27  ;;  %13881 = vst [vmem:[#allocation164_spill] sm:$0xff] %v8954_v63  ;;  %v2688_v36 = vpop.permute.xlu0 %2687  ;;  %13891 = vst [vmem:[#allocation53_spill] sm:$0xff] %v8981_v52  ;;  %v9254_v63 = vstv %s5567_s17  ;;  %s9460_s17 = sld [smem:[#allocation6 + $0x5c]] }
 0x35d   : > { %13880 = vst [vmem:[#allocation163_spill] sm:$0xff] %v8950_v47  ;;  %v2690_v29 = vpop.permute.xlu1 %2689  ;;  %v2699_v2 = vadd.f32 %v2688_v36, %v2551_v21  ;;  %v1364_v31 = vsel %vm1130_vm11, %v13886_v4, %v13884_v24  ;;  %v13892_v36 = vld [vmem:[#allocation189_spill] sm:$0xff]  ;;  %v13895_v24 = vrot.slane %v13894_v12, 2  ;;  %v13906_v12 = vld [vmem:[#allocation195_spill] sm:$0xff]  ;;  %13980 = vst [vmem:[#allocation38_spill] sm:$0xff] %v9254_v63 }
 0x35e   : > { %v2700_v35 = vadd.f32 %v2690_v29, %v2552_v46  ;;  %v2974_v46 = vmul.f32 %v8958_v38, %v8789_v40  ;;  %v13893_v29 = vrot.slane %v13892_v36, 2  ;;  %v13988_v38 = vld [vmem:[#allocation90_spill] sm:$0xff] }
 0x35f   : > { %1371 = vrot.lane.b32.xlu0 %v1364_v31, %s6047_s27  ;;  %v8972_v6 = vadd.f32 %v2963_v22, %v2699_v2  ;;  %v5790_v2 = vpop.f32.mrb[19].mxu0  ;;  %v2983_v31 = vmul.f32 %v8981_v52, %v8771_v19 }
 0x360   : > { %1336 = vrot.lane.b32.xlu1 %v13887_v28, %s6047_s27  ;;  %v8976_v21 = vadd.f32 %v2964_v13, %v2700_v35  ;;  %v2725_v33 = vpop.permute.xlu0 %2724  ;;  %v1401_v22 = vsel %vm1130_vm11, %v13895_v24, %v13893_v29  ;;  %v2626_v13 = vadd.f32 %v2616_v50, %v8894_v25  ;;  %v13896_v35 = vld [vmem:[#allocation194_spill] sm:$0xff]  ;;  %v13899_v25 = vld [vmem:[#allocation193_spill] sm:$0xff]  ;;  %v13907_v24 = vrot.slane %v13906_v12, 2 }
 0x361   : > { %13889 = vst [vmem:[#allocation146_spill] sm:$0xff] %v8972_v6  ;;  %v2727_v55 = vpop.permute.xlu1 %2726  ;;  %v2736_v62 = vadd.f32 %v2725_v33, %v2588_v27  ;;  %v2984_v27 = vmul.f32 %v8981_v52, %v8789_v40  ;;  %v13900_v50 = vrot.slane %v13899_v25, 2  ;;  %v13901_v33 = vld [vmem:[#allocation40_spill] sm:$0xff]  ;;  %v13915_v25 = vld [vmem:[#allocation199_spill] sm:$0xff]  ;;  %v13918_v12 = vld [vmem:[#allocation49_spill] sm:$0xff] }
 0x362   : > { %13890 = vst [vmem:[#allocation62_spill] sm:$0xff] %v8976_v21  ;;  %v2737_v5 = vadd.f32 %v2727_v55, %v2589_v48  ;;  %v13902_v55 = vrot.slane %v13901_v33, 2 }
 0x363   : > { %1408 = vrot.lane.b32.xlu0 %v1401_v22, %s6048_s19  ;;  %v8993_v4 = vadd.f32 %v2973_v23, %v2736_v62  ;;  %v13903_v23 = vld [vmem:[#allocation91_spill] sm:$0xff] }
 0x364   : > { %1373 = vrot.lane.b32.xlu1 %v13896_v35, %s6047_s27  ;;  %v8997_v1 = vadd.f32 %v2974_v46, %v2737_v5  ;;  %v1438_v36 = vsel %vm1130_vm11, %v13902_v55, %v13900_v50  ;;  %v13908_v22 = vld [vmem:[#allocation47_spill] sm:$0xff]  ;;  %v13916_v55 = vld [vmem:[#allocation52_spill] sm:$0xff] }
 0x365   : > { %13897 = vst [vmem:[#allocation57_spill] sm:$0xff] %v8993_v4  ;;  %v2762_v48 = vpop.permute.xlu0 %2761  ;;  %v2764_v28 = vpop.permute.xlu1 %2763  ;;  %v13909_v2 = vrot.slane %v13908_v22, 2  ;;  %v13979_v4 = vld [vmem:[#allocation126_spill] sm:$0xff] }
 0x366   : > { %13898 = vst [vmem:[#allocation66_spill] sm:$0xff] %v8997_v1  ;;  %v2773_v57 = vadd.f32 %v2762_v48, %v2625_v53  ;;  %v2774_v32 = vadd.f32 %v2764_v28, %v2626_v13  ;;  %v13910_v13 = vld [vmem:[#allocation67_spill] sm:$0xff]  ;;  %v13911_v28 = vld [vmem:[#allocation61_spill] sm:$0xff] }
 0x367   : > { %1445 = vrot.lane.b32.xlu0 %v1438_v36, %s6048_s19  ;;  %v1475_v53 = vsel %vm1130_vm11, %v13909_v2, %v13907_v24  ;;  %v461_v36 = vmul.f32 %v13916_v55, %v13717_v61  ;;  %v13919_v24 = vrot.slane %v13918_v12, 1  ;;  %v9036_v2 = vpop.f32.mrb[20].mxu1  ;;  %v13924_v12 = vld [vmem:[#allocation59_spill] sm:$0xff] }
 0x368   : > { %1410 = vrot.lane.b32.xlu1 %v13903_v23, %s6048_s19  ;;  %v9009_v46 = vadd.f32 %v2983_v31, %v2773_v57  ;;  %v9011_v62 = vadd.f32 %v2984_v27, %v2774_v32  ;;  %v13912_v31 = vrot.slane %v13911_v28, 2  ;;  %v13913_v57 = vld [vmem:[#allocation15_spill] sm:$0xff]  ;;  %v13917_v23 = vrot.slane %v8096_v10, 1  ;;  %13920 = vst [vmem:[#allocation154_spill] sm:$0xff] %v9036_v2  ;;  %v13922_v10 = vld [vmem:[#allocation56_spill] sm:$0xff] }
 0x369   : > { %v538_v5 = vpop.permute.xlu0 %537  ;;  %v514_v29 = vpop.permute.xlu1 %513  ;;  %v13914_v27 = vrot.slane %v13913_v57, 2  ;;  %v521_v28 = vadd.f32 %v8439_v45, %v461_v36 }
 0x36a   : > { %13904 = vst [vmem:[#allocation86_spill] sm:$0xff] %v9009_v46  ;;  %13905 = vst [vmem:[#allocation191_spill] sm:$0xff] %v9011_v62  ;;  %v2087_v22 = vsel %vm717_vm10, %v13919_v24, %v13917_v23  ;;  %v13923_v23 = vrot.slane %v8105_v42, 1  ;;  %v13925_v24 = vrot.slane %v13924_v12, 1  ;;  %v9059_v62 = vstv %s5560_s23  ;;  %s9350_s23 = sld [smem:[#allocation6 + $0x7f]] }
 0x36b   : > { %1482 = vrot.lane.b32.xlu0 %v1475_v53, %s6048_s19  ;;  %v1512_v32 = vsel %vm1130_vm11, %v13914_v27, %v13912_v31  ;;  %v13921_v53 = vld [vmem:[#allocation89_spill] sm:$0xff]  ;;  %v471_v27 = vmul.f32 %v13922_v10, %v13717_v61  ;;  %13927 = vst [vmem:[#allocation36_spill] sm:$0xff] %v9059_v62  ;;  %v9067_v12 = vmul.f32 %v9059_v62, %v8789_v40 }
 0x36c   : > { %1447 = vrot.lane.b32.xlu1 %v13910_v13, %s6048_s19  ;;  %v5767_v13 = vpop.f32.mrb[21].mxu1 }
 0x36d   : > { %v564_v35 = vpop.permute.xlu0 %563  ;;  %v547_v45 = vadd.f32 %v538_v5, %v471_v27  ;;  %13929 = vst [vmem:[#allocation80_spill] sm:$0xff] %v9067_v12  ;;  %v13930_v27 = vrot.slane %v8142_v34, 1  ;;  %v12929_v1 = vrot.slane %v9067_v12, 1 }
 0x36e   : > { %v540_v48 = vpop.permute.xlu1 %539 }
 0x36f   : > { %1519 = vrot.lane.b32.xlu0 %v1512_v32, %s6048_s19  ;;  %v462_v32 = vmul.f32 %v13916_v55, %v13479_v20  ;;  %v13928_v55 = vld [vmem:[#allocation58_spill] sm:$0xff] }
 0x370   : > { %1484 = vrot.lane.b32.xlu1 %v13915_v25, %s6048_s19  ;;  %v481_v42 = vmul.f32 %v13928_v55, %v13717_v61 }
 0x371   : > { %v590_v50 = vpop.permute.xlu0 %589  ;;  %v522_v36 = vadd.f32 %v514_v29, %v462_v32  ;;  %v13931_v32 = vld [vmem:[#allocation16_spill] sm:$0xff] }
 0x372   : > { %v566_v33 = vpop.permute.xlu1 %565 }
 0x373   : > { %2094 = vrot.lane.b32.xlu0 %v2087_v22, %s6047_s27  ;;  %v2124_v22 = vsel %vm717_vm10, %v13925_v24, %v13923_v23  ;;  %v3317_v23 = vmul.f32 %v9059_v62, %v8771_v19 }
 0x374   : > { %1521 = vrot.lane.b32.xlu1 %v13921_v53, %s6048_s19  ;;  %v13926_v53 = vld [vmem:[#allocation104_spill] sm:$0xff] }
 0x375   : > { %v616_v31 = vpop.permute.xlu0 %615 }
 0x376   : > { %v9042_v57 = vpop.permute.xlu1 %591  ;;  %v625_v25 = vadd.f32 %v616_v31, %v521_v28 }
 0x377   : > { %2131 = vrot.lane.b32.xlu0 %v2124_v22, %s6047_s27  ;;  %v573_v22 = vadd.f32 %v564_v35, %v481_v42 }
 0x378   : > { %2096 = vrot.lane.b32.xlu1 %v8300_v39, %s6047_s27  ;;  %v9057_v13 = vadd.f32 %v13926_v53, %v625_v25  ;;  %v472_v39 = vmul.f32 %v13922_v10, %v13479_v20  ;;  %v13932_v25 = vrot.slane %v13931_v32, 1  ;;  %v3327_v53 = vrot.slane %v3317_v23, 1  ;;  %v13933_v10 = vld [vmem:[#allocation106_spill] sm:$0xff]  ;;  %v13940_v32 = vld [vmem:[#allocation160_spill] sm:$0xff] }
 0x379   : > { %v642_v28 = vpop.permute.xlu0 %641 }
 0x37a   : > { %v618_v31 = vpop.permute.xlu1 %617  ;;  %v651_v5 = vadd.f32 %v642_v28, %v547_v45  ;;  %v2161_v24 = vsel %vm717_vm10, %v13932_v25, %v13930_v27  ;;  %v548_v46 = vadd.f32 %v540_v48, %v472_v39  ;;  %v9086_v28 = vstv %s5561_s26  ;;  %s9374_s26 = sld [smem:[#allocation6 + $0x1a]] }
 0x37b   : > { %v626_v29 = vadd.f32 %v618_v31, %v522_v36  ;;  %2168 = vrot.lane.b32.xlu0 %v2161_v24, %s6047_s27  ;;  %v13934_v36 = vld [vmem:[#allocation75_spill] sm:$0xff]  ;;  %13935 = vst [vmem:[#allocation23_spill] sm:$0xff] %v9086_v28  ;;  %v13936_v31 = vld [vmem:[#allocation60_spill] sm:$0xff]  ;;  %v3354_v48 = vmul.f32 %v9086_v28, %v8771_v19  ;;  %v9099_v23 = vmul.f32 %v9086_v28, %v8789_v40  ;;  %v13941_v25 = vrot.slane %v13940_v32, 1 }
 0x37c   : > { %2133 = vrot.lane.b32.xlu1 %v8305_v56, %s6047_s27  ;;  %v9081_v45 = vadd.f32 %v13933_v10, %v651_v5  ;;  %v491_v35 = vmul.f32 %v13936_v31, %v13717_v61  ;;  %v9093_v56 = vsel %vm717_vm10, %v3327_v53, %v12929_v1  ;;  %v482_v39 = vmul.f32 %v13928_v55, %v13479_v20 }
 0x37d   : > { %v9084_v34 = vadd.f32 %v13934_v36, %v626_v29  ;;  %v668_v42 = vpop.permute.xlu0 %667  ;;  %13937 = vst [vmem:[#allocation196_spill] sm:$0xff] %v9093_v56  ;;  %13938 = vst [vmem:[#allocation197_spill] sm:$0xff] %v9099_v23  ;;  %v13939_v61 = vrot.slane %v8146_v9, 1  ;;  %v3364_v10 = vrot.slane %v3354_v48, 1  ;;  %v12933_v36 = vrot.slane %v9099_v23, 1  ;;  %v13946_v48 = vld [vmem:[#allocation72_spill] sm:$0xff] }
 0x37e   : > { %v644_v27 = vpop.permute.xlu1 %643  ;;  %v677_v5 = vadd.f32 %v668_v42, %v573_v22  ;;  %v599_v53 = vadd.f32 %v590_v50, %v491_v35  ;;  %v574_v1 = vadd.f32 %v566_v33, %v482_v39  ;;  %v13947_v39 = vrot.slane %v13946_v48, 1  ;;  %v14011_v56 = vld [vmem:[#allocation68_spill] sm:$0xff] }
 0x37f   : > { %v652_v29 = vadd.f32 %v644_v27, %v548_v46  ;;  %v2198_v24 = vsel %vm717_vm10, %v13941_v25, %v13939_v61  ;;  %v9118_v46 = vstv %s5562_s7  ;;  %v9123_v50 = vsel %vm717_vm10, %v3364_v10, %v12933_v36  ;;  %s9376_s7 = sld [smem:[#allocation6 + $0x3e]] }
 0x380   : > { %2205 = vrot.lane.b32.xlu0 %v2198_v24, %s6047_s27  ;;  %2170 = vrot.lane.b32.xlu1 %v8310_v43, %s6047_s27  ;;  %v9113_v55 = vadd.f32 %v8364_v11, %v677_v5  ;;  %13942 = vst [vmem:[#allocation155_spill] sm:$0xff] %v9118_v46  ;;  %13943 = vst [vmem:[#allocation14_spill] sm:$0xff] %v9123_v50  ;;  %v3391_v43 = vmul.f32 %v9118_v46, %v8771_v19  ;;  %v13945_v27 = vrot.slane %v8150_v30, 1  ;;  %v14007_v50 = vld [vmem:[#allocation103_spill] sm:$0xff] }
 0x381   : > { %v9116_v9 = vadd.f32 %v8369_v26, %v652_v29  ;;  %v694_v22 = vpop.permute.xlu0 %693  ;;  %v9129_v33 = vmul.f32 %v9118_v46, %v8789_v40  ;;  %v492_v26 = vmul.f32 %v13936_v31, %v13479_v20  ;;  %v14008_v15 = vrot.slane %v14007_v50, 2  ;;  %v14018_v50 = vld [vmem:[#allocation123_spill] sm:$0xff] }
 0x382   : > { %v670_v42 = vpop.permute.xlu1 %669  ;;  %v703_v11 = vadd.f32 %v694_v22, %v599_v53  ;;  %v2235_v5 = vsel %vm717_vm10, %v13947_v39, %v13945_v27  ;;  %v3401_v29 = vrot.slane %v3391_v43, 1  ;;  %v13952_v53 = vld [vmem:[#allocation74_spill] sm:$0xff] }
 0x383   : > { %13944 = vst [vmem:[#allocation24_spill] sm:$0xff] %v9129_v33  ;;  %v678_v35 = vadd.f32 %v670_v42, %v574_v1  ;;  %v12932_v61 = vrot.slane %v9129_v33, 1  ;;  %v600_v32 = vadd.f32 %v9042_v57, %v492_v26  ;;  %v9149_v1 = vstv %s5563_s28  ;;  %s9397_s28 = sld [smem:[#allocation6 + $0x62]] }
 0x384   : > { %2242 = vrot.lane.b32.xlu0 %v2235_v5, %s6048_s19  ;;  %2207 = vrot.lane.b32.xlu1 %v8315_v41, %s6047_s27  ;;  %v9144_v20 = vadd.f32 %v8430_v8, %v703_v11  ;;  %13948 = vst [vmem:[#allocation100_spill] sm:$0xff] %v9149_v1  ;;  %v3428_v24 = vmul.f32 %v9149_v1, %v8771_v19  ;;  %v13953_v10 = vrot.slane %v13952_v53, 1  ;;  %v9176_v11 = vstv %s5564_s4  ;;  %v13959_v5 = vld [vmem:[#allocation78_spill] sm:$0xff]  ;;  %s9405_s4 = sld [smem:[#allocation6 + $0x14]] }
 0x385   : > { %v9147_v30 = vadd.f32 %v8444_v7, %v678_v35  ;;  %v9151_v31 = vpop.permute.xlu0 %1759  ;;  %v9156_v41 = vsel %vm717_vm10, %v3401_v29, %v12932_v61  ;;  %v9162_v8 = vmul.f32 %v9149_v1, %v8789_v40  ;;  %v13951_v7 = vrot.slane %v8168_v0, 1  ;;  %13954 = vst [vmem:[#allocation54_spill] sm:$0xff] %v9176_v11 }
 0x386   : > { %v696_v25 = vpop.permute.xlu1 %695  ;;  %13949 = vst [vmem:[#allocation147_spill] sm:$0xff] %v9156_v41  ;;  %v3438_v42 = vrot.slane %v3428_v24, 1  ;;  %v9191_v48 = vmul.f32 %v9176_v11, %v8789_v40  ;;  %v13960_v29 = vrot.slane %v13959_v5, 1  ;;  %v13967_v5 = vld [vmem:[#allocation171_spill] sm:$0xff] }
 0x387   : > { %13950 = vst [vmem:[#allocation158_spill] sm:$0xff] %v9162_v8  ;;  %v704_v57 = vadd.f32 %v696_v25, %v600_v32  ;;  %v2272_v22 = vsel %vm717_vm10, %v13953_v10, %v13951_v7  ;;  %v12931_v43 = vrot.slane %v9162_v8, 1  ;;  %v13961_v25 = vld [vmem:[#allocation105_spill] sm:$0xff]  ;;  %v9202_v7 = vstv %s5565_s30  ;;  %s9434_s30 = sld [smem:[#allocation6 + $0x38]] }
 0x388   : > { %2279 = vrot.lane.b32.xlu0 %v2272_v22, %s6048_s19  ;;  %2244 = vrot.lane.b32.xlu1 %v8320_v51, %s6048_s19  ;;  %v3465_v51 = vmul.f32 %v9176_v11, %v8771_v19  ;;  %13956 = vst [vmem:[#allocation39_spill] sm:$0xff] %v9191_v48  ;;  %13962 = vst [vmem:[#allocation45_spill] sm:$0xff] %v9202_v7 }
 0x389   : > { %v9174_v26 = vadd.f32 %v8456_v54, %v704_v57  ;;  %v9178_v35 = vpop.permute.xlu0 %1785  ;;  %v9185_v27 = vsel %vm717_vm10, %v3438_v42, %v12931_v43  ;;  %v13957_v54 = vld [vmem:[#allocation108_spill] sm:$0xff]  ;;  %v12930_v57 = vrot.slane %v9191_v48, 1  ;;  %v3502_v42 = vmul.f32 %v9202_v7, %v8771_v19 }
 0x38a   : > { %v9180_v0 = vpop.permute.xlu1 %1761  ;;  %13955 = vst [vmem:[#allocation26_spill] sm:$0xff] %v9185_v27  ;;  %v13958_v39 = vrot.slane %v13957_v54, 1  ;;  %v3475_v24 = vrot.slane %v3465_v51, 1  ;;  %v9217_v54 = vmul.f32 %v9202_v7, %v8789_v40  ;;  %v13965_v51 = vld [vmem:[#allocation32_spill] sm:$0xff]  ;;  %v9228_v43 = vstv %s5566_s11  ;;  %s9447_s11 = sld [smem:[#allocation6 + $0x86]] }
 0x38b   : > { %13970 = vst [vmem:[#allocation34_spill] sm:$0xff] %v9228_v43  ;;  %v9425_v48 = vstv %s9334_s9  ;;  %s9667_s9 = sld [smem:[#allocation6 + $0x43]] }
 0x38c   : > { %v2309_v32 = vsel %vm717_vm10, %v13960_v29, %v13958_v39  ;;  %2281 = vrot.lane.b32.xlu1 %v13961_v25, %s6048_s19  ;;  %v9211_v22 = vsel %vm717_vm10, %v3475_v24, %v12930_v57  ;;  %13964 = vst [vmem:[#allocation28_spill] sm:$0xff] %v9217_v54  ;;  %v13966_v39 = vrot.slane %v13965_v51, 1  ;;  %v13968_v29 = vrot.slane %v13967_v5, 1  ;;  %v13969_v25 = vld [vmem:[#allocation88_spill] sm:$0xff]  ;;  %14033 = vst [vmem:[#allocation50_spill] sm:$0xff] %v9425_v48 }
 0x38d   : > { %2316 = vrot.lane.b32.xlu0 %v2309_v32, %s6048_s19  ;;  %v9204_v53 = vpop.permute.xlu0 %1811  ;;  %13963 = vst [vmem:[#allocation27_spill] sm:$0xff] %v9211_v22  ;;  %v3512_v24 = vrot.slane %v3502_v42, 1  ;;  %v12934_v57 = vrot.slane %v9217_v54, 1  ;;  %v9243_v5 = vmul.f32 %v9228_v43, %v8789_v40  ;;  %v13975_v42 = vld [vmem:[#allocation111_spill] sm:$0xff]  ;;  %v9445_v33 = vmul.f32 %v9425_v48, %v8789_v40 }
 0x38e   : > { %v9206_v10 = vpop.permute.xlu1 %1787  ;;  %v2346_v32 = vsel %vm717_vm10, %v13968_v29, %v13966_v39  ;;  %v3539_v39 = vmul.f32 %v9228_v43, %v8771_v19  ;;  %v13976_v29 = vrot.slane %v13975_v42, 2 }
 0x38f   : > { %v9237_v51 = vsel %vm717_vm10, %v3512_v24, %v12934_v57  ;;  %13974 = vst [vmem:[#allocation21_spill] sm:$0xff] %v9243_v5  ;;  %v12939_v57 = vrot.slane %v9243_v5, 1  ;;  %14038 = vst [vmem:[#allocation107_spill] sm:$0xff] %v9445_v33 }
 0x390   : > { %2318 = vrot.lane.b32.xlu1 %v13969_v25, %s6048_s19  ;;  %13973 = vst [vmem:[#allocation18_spill] sm:$0xff] %v9237_v51  ;;  %v3549_v24 = vrot.slane %v3539_v39, 1  ;;  %v13984_v39 = vld [vmem:[#allocation113_spill] sm:$0xff]  ;;  %v13996_v51 = vld [vmem:[#allocation110_spill] sm:$0xff] }
 0x391   : > { %2353 = vrot.lane.b32.xlu0 %v2346_v32, %s6048_s19  ;;  %v9230_v61 = vpop.permute.xlu0 %1837  ;;  %v13977_v32 = vld [vmem:[#allocation79_spill] sm:$0xff] }
 0x392   : > { %13971 = vst [vmem:[#allocation35_spill] sm:$0xff] %v9230_v61  ;;  %v9232_v36 = vpop.permute.xlu1 %1813  ;;  %v13978_v25 = vrot.slane %v13977_v32, 2  ;;  %v9263_v42 = vsel %vm717_vm10, %v3549_v24, %v12939_v57  ;;  %v13986_v32 = vld [vmem:[#allocation82_spill] sm:$0xff]  ;;  %v9626_v61 = vpop.f32.mrb[20].mxu0 }
 0x393   : > { %13972 = vst [vmem:[#allocation37_spill] sm:$0xff] %v9232_v36  ;;  %13982 = vst [vmem:[#allocation198_spill] sm:$0xff] %v9263_v42  ;;  %v5793_v28 = vpop.f32.mrb[21].mxu0 }
 0x394   : > { %v2499_v21 = vsel %vm1130_vm11, %v13978_v25, %v13976_v29  ;;  %2355 = vrot.lane.b32.xlu1 %v13979_v4, %s6048_s19  ;;  %v9269_v4 = vmul.f32 %v9254_v63, %v8789_v40  ;;  %v13985_v29 = vrot.slane %v13984_v39, 2  ;;  %v13987_v25 = vrot.slane %v13986_v32, 2  ;;  %v13994_v32 = vld [vmem:[#allocation84_spill] sm:$0xff]  ;;  %14065 = vst [vmem:[#allocation81_spill] sm:$0xff] %v9626_v61 }
 0x395   : > { %2506 = vrot.lane.b32.xlu0 %v2499_v21, %s6047_s27  ;;  %v9256_v6 = vpop.permute.xlu0 %1863  ;;  %v3576_v21 = vmul.f32 %v9254_v63, %v8771_v19 }
 0x396   : > { %v9258_v47 = vpop.permute.xlu1 %1839  ;;  %13983 = vst [vmem:[#allocation77_spill] sm:$0xff] %v9269_v4  ;;  %v2536_v52 = vsel %vm1130_vm11, %v13987_v25, %v13985_v29  ;;  %v12945_v57 = vrot.slane %v9269_v4, 1  ;;  %v13995_v25 = vrot.slane %v13994_v32, 2 }
 0x397   : > { %13981 = vst [vmem:[#allocation149_spill] sm:$0xff] %v9258_v47  ;;  %v3586_v24 = vrot.slane %v3576_v21, 1  ;;  %v13992_v21 = vld [vmem:[#allocation119_spill] sm:$0xff]  ;;  %v9507_v47 = vstv %s9397_s28  ;;  %s9761_s28 = sld [smem:[#allocation6 + $0x8b]] }
 0x398   : > { %2508 = vrot.lane.b32.xlu1 %v13988_v38, %s6047_s27  ;;  %v9295_v38 = vmul.f32 %v9280_v49, %v8789_v40  ;;  %v13993_v29 = vrot.slane %v13992_v21, 2  ;;  %14049 = vst [vmem:[#allocation30_spill] sm:$0xff] %v9507_v47 }
 0x399   : > { %2543 = vrot.lane.b32.xlu0 %v2536_v52, %s6047_s27  ;;  %v9282_v18 = vpop.permute.xlu0 %1889  ;;  %v9289_v39 = vsel %vm717_vm10, %v3586_v24, %v12945_v57  ;;  %v3729_v52 = vmul.f32 %v9280_v49, %v8771_v19 }
 0x39a   : > { %v9284_v42 = vpop.permute.xlu1 %1865  ;;  %13990 = vst [vmem:[#allocation41_spill] sm:$0xff] %v9289_v39  ;;  %13991 = vst [vmem:[#allocation97_spill] sm:$0xff] %v9295_v38  ;;  %v2573_v2 = vsel %vm1130_vm11, %v13995_v25, %v13993_v29  ;;  %v12946_v57 = vrot.slane %v9295_v38, 2  ;;  %v9308_v39 = vstv %s5573_s20  ;;  %v14002_v29 = vld [vmem:[#allocation20_spill] sm:$0xff]  ;;  %v14004_v25 = vld [vmem:[#allocation85_spill] sm:$0xff]  ;;  %s9490_s20 = sld [smem:[#allocation6 + $0x39]] }
 0x39b   : > { %v3739_v24 = vrot.slane %v3729_v52, 2  ;;  %13997 = vst [vmem:[#allocation96_spill] sm:$0xff] %v9308_v39  ;;  %v9325_v52 = vmul.f32 %v9308_v39, %v8789_v40  ;;  %v14003_v32 = vrot.slane %v14002_v29, 2  ;;  %v14005_v27 = vrot.slane %v14004_v25, 2  ;;  %v14009_v38 = vld [vmem:[#allocation94_spill] sm:$0xff] }
 0x39c   : > { %2545 = vrot.lane.b32.xlu1 %v13996_v51, %s6047_s27  ;;  %v3766_v51 = vmul.f32 %v9308_v39, %v8771_v19  ;;  %v14010_v29 = vrot.slane %v14009_v38, 2  ;;  %v14020_v38 = vld [vmem:[#allocation102_spill] sm:$0xff]  ;;  %v14046_v39 = vrot.slane %v9445_v33, 2 }
 0x39d   : > { %2580 = vrot.lane.b32.xlu0 %v2573_v2, %s6047_s27  ;;  %v9310_v22 = vpop.permute.xlu0 %1915  ;;  %v9319_v2 = vsel %vm1130_vm11, %v3739_v24, %v12946_v57  ;;  %14001 = vst [vmem:[#allocation63_spill] sm:$0xff] %v9325_v52  ;;  %v2610_v41 = vsel %vm1130_vm11, %v14005_v27, %v14003_v32  ;;  %v14006_v24 = vld [vmem:[#allocation132_spill] sm:$0xff]  ;;  %v14012_v27 = vrot.slane %v14011_v56, 2  ;;  %v14013_v32 = vld [vmem:[#allocation98_spill] sm:$0xff]  ;;  %v14021_v54 = vrot.slane %v14020_v38, 2 }
 0x39e   : > { %13998 = vst [vmem:[#allocation46_spill] sm:$0xff] %v9310_v22  ;;  %v9312_v21 = vpop.permute.xlu1 %1891  ;;  %14000 = vst [vmem:[#allocation43_spill] sm:$0xff] %v9319_v2  ;;  %v3776_v57 = vrot.slane %v3766_v51, 2  ;;  %v2647_v25 = vsel %vm1130_vm11, %v14010_v29, %v14008_v15  ;;  %v14014_v4 = vrot.slane %v14013_v32, 2  ;;  %v14019_v2 = vrot.slane %v14018_v50, 2  ;;  %v14025_v32 = vld [vmem:[#allocation76_spill] sm:$0xff] }
 0x39f   : > { %13999 = vst [vmem:[#allocation159_spill] sm:$0xff] %v9312_v21  ;;  %v14022_v56 = vrot.slane %v9325_v52, 2  ;;  %v14026_v50 = vrot.slane %v14025_v32, 2  ;;  %v9391_v38 = vmul.f32 %v8740_v44, %v13418_v58  ;;  %v9403_v32 = vstv %s9305_s29  ;;  %s9531_s29 = sld [smem:[#allocation6 + $0x5d]] }
 0x3a0   : > { %2582 = vrot.lane.b32.xlu1 %v14006_v24, %s6047_s27  ;;  %v2684_v5 = vsel %vm1130_vm11, %v14014_v4, %v14012_v27  ;;  %v2721_v15 = vsel %vm1130_vm11, %v14021_v54, %v14019_v2  ;;  %v14027_v54 = vrot.slane %v8485_v3, 2  ;;  %v14028_v3 = vld [vmem:[#allocation109_spill] sm:$0xff]  ;;  %14029 = vst [vmem:[#allocation70_spill] sm:$0xff] %v9403_v32  ;;  %v9414_v52 = vmul.f32 %v8740_v44, %v13586_v16 }
 0x3a1   : > { %2617 = vrot.lane.b32.xlu0 %v2610_v41, %s6047_s27  ;;  %v9352_v41 = vstv %s5574_s22  ;;  %v9354_v51 = vpop.permute.xlu0 %1941  ;;  %v9366_v29 = vsel %vm1130_vm11, %v3776_v57, %v14022_v56  ;;  %v9387_v57 = vmul.f32 %v8730_v60, %v13418_v58  ;;  %v9395_v56 = vmul.f32 %v8730_v60, %v13586_v16  ;;  %s9517_s22 = sld [smem:[#allocation6 + $0x80]] }
 0x3a2   : > { %14015 = vst [vmem:[#allocation64_spill] sm:$0xff] %v9352_v41  ;;  %14016 = vst [vmem:[#allocation161_spill] sm:$0xff] %v9354_v51  ;;  %v9356_v24 = vpop.permute.xlu1 %1917  ;;  %v3803_v4 = vmul.f32 %v9352_v41, %v8771_v19  ;;  %v9372_v27 = vmul.f32 %v9352_v41, %v8789_v40  ;;  %v9383_v2 = vsel %vm1130_vm11, %v14027_v54, %v14026_v50  ;;  %v14030_v50 = vld [vmem:[#allocation122_spill] sm:$0xff]  ;;  %v9432_v60 = vstv %s9314_s6  ;;  %s9628_s6 = sld [smem:[#allocation6 + $0x1f]] }
 0x3a3   : > { %14017 = vst [vmem:[#allocation162_spill] sm:$0xff] %v9356_v24  ;;  %14023 = vst [vmem:[#allocation44_spill] sm:$0xff] %v9366_v29  ;;  %v9409_v54 = vmul.f32 %v14030_v50, %v13418_v58  ;;  %v9451_v23 = vmul.f32 %v9403_v32, %v8771_v19  ;;  %v9455_v12 = vmul.f32 %v9403_v32, %v8789_v40  ;;  %v9471_v32 = vstv %s9374_s26  ;;  %s9711_s26 = sld [smem:[#allocation6 + $0x67]] }
 0x3a4   : > { %14024 = vst [vmem:[#allocation69_spill] sm:$0xff] %v9372_v27  ;;  %2619 = vrot.lane.b32.xlu1 %v14028_v3, %s6047_s27  ;;  %v3813_v29 = vrot.slane %v3803_v4, 2  ;;  %v9422_v3 = vmul.f32 %v14030_v50, %v13586_v16  ;;  %14035 = vst [vmem:[#allocation166_spill] sm:$0xff] %v9432_v60  ;;  %v14036_v44 = vrot.slane %v9372_v27, 2  ;;  %v3840_v50 = vmul.f32 %v9425_v48, %v8771_v19 }
 0x3a5   : > { %2654 = vrot.lane.b32.xlu0 %v2647_v25, %s6048_s19  ;;  %v9418_v25 = vmul.f32 %v8769_v59, %v13418_v58  ;;  %v9427_v8 = vpop.permute.xlu0 %847  ;;  %v9458_v27 = vstv %s9332_s8  ;;  %14042 = vst [vmem:[#allocation73_spill] sm:$0xff] %v9471_v32  ;;  %v9474_v41 = vstv %s9376_s7  ;;  %v9495_v48 = vstv %s9350_s23  ;;  %s9632_s8 = sld [smem:[#allocation6 + $0x81]]  ;;  %s9709_s23 = sld [smem:[#allocation6 + $0x1c]] }
 0x3a6   : > { %14032 = vst [vmem:[#allocation55_spill] sm:$0xff] %v9422_v3  ;;  %v9429_v4 = vpop.permute.xlu1 %1943  ;;  %v9439_v58 = vsel %vm1130_vm11, %v3813_v29, %v14036_v44  ;;  %14039 = vst [vmem:[#allocation87_spill] sm:$0xff] %v9458_v27  ;;  %v9464_v29 = vmul.f32 %v8769_v59, %v13586_v16  ;;  %v14041_v44 = vld [vmem:[#allocation114_spill] sm:$0xff]  ;;  %v3877_v16 = vmul.f32 %v9471_v32, %v8771_v19  ;;  %v9572_v24 = vstv %s9460_s17  ;;  %s9759_s7 = sld [smem:[#allocation6 + $0x40]] }
 0x3a7   : > { %14031 = vst [vmem:[#allocation51_spill] sm:$0xff] %v9418_v25  ;;  %14034 = vst [vmem:[#allocation165_spill] sm:$0xff] %v9429_v4  ;;  %v9478_v4 = vmul.f32 %v9432_v60, %v8771_v19  ;;  %v9484_v59 = vmul.f32 %v9471_v32, %v8789_v40  ;;  %v9504_v32 = vmul.f32 %v9474_v41, %v8789_v40  ;;  %v9648_v61 = vstv %s9531_s29  ;;  %s9809_s17 = sld [smem:[#allocation6 + $0x88]]  ;;  %s9864_s29 = sld [smem:[#allocation6 + $0x41]] }
 0x3a8   : > { %14037 = vst [vmem:[#allocation83_spill] sm:$0xff] %v9439_v58  ;;  %14040 = vst [vmem:[#allocation112_spill] sm:$0xff] %v9464_v29  ;;  %2656 = vrot.lane.b32.xlu1 %v14041_v44, %s6048_s19  ;;  %v3850_v58 = vrot.slane %v3840_v50, 2  ;;  %v9511_v63 = vmul.f32 %v9458_v27, %v8771_v19  ;;  %v9515_v43 = vmul.f32 %v9432_v60, %v8789_v40  ;;  %v3887_v33 = vrot.slane %v3877_v16, 2  ;;  %v14059_v29 = vld [vmem:[#allocation117_spill] sm:$0xff] }
 0x3a9   : > { %2691 = vrot.lane.b32.xlu0 %v2684_v5, %s6048_s19  ;;  %14043 = vst [vmem:[#allocation31_spill] sm:$0xff] %v9474_v41  ;;  %14044 = vst [vmem:[#allocation115_spill] sm:$0xff] %v9484_v59  ;;  %v3914_v5 = vmul.f32 %v9474_v41, %v8771_v19  ;;  %v885_v50 = vpop.permute.xlu0 %884  ;;  %v9528_v41 = vstv %s9405_s4  ;;  %v9535_v16 = vmul.f32 %v9495_v48, %v8771_v19  ;;  %s9782_s4 = sld [smem:[#allocation6 + $0x64]] }
 0x3aa   : > { %v9492_v44 = vpop.permute.xlu1 %849  ;;  %14045 = vst [vmem:[#allocation175_spill] sm:$0xff] %v9495_v48  ;;  %v9500_v49 = vsel %vm1130_vm11, %v3850_v58, %v14046_v39  ;;  %14048 = vst [vmem:[#allocation168_spill] sm:$0xff] %v9504_v32  ;;  %v12987_v39 = vrot.slane %v9484_v59, 2  ;;  %v14050_v58 = vld [vmem:[#allocation116_spill] sm:$0xff]  ;;  %v9554_v11 = vmul.f32 %v9495_v48, %v8789_v40  ;;  %v9557_v59 = vstv %s9434_s30  ;;  %s9802_s30 = sld [smem:[#allocation6 + $0x20]] }
 0x3ab   : > { %14047 = vst [vmem:[#allocation167_spill] sm:$0xff] %v9500_v49  ;;  %v9525_v49 = vmul.f32 %v9458_v27, %v8789_v40  ;;  %14051 = vst [vmem:[#allocation124_spill] sm:$0xff] %v9528_v41  ;;  %v3924_v60 = vrot.slane %v3914_v5, 2  ;;  %v9546_v27 = vmul.f32 %v9507_v47, %v8789_v40  ;;  %v9614_v46 = vmul.f32 %v9557_v59, %v8789_v40 }
 0x3ac   : > { %2693 = vrot.lane.b32.xlu1 %v14050_v58, %s6048_s19  ;;  %v3951_v58 = vmul.f32 %v9507_v47, %v8771_v19  ;;  %14054 = vst [vmem:[#allocation173_spill] sm:$0xff] %v9557_v59  ;;  %v9569_v47 = vmul.f32 %v9528_v41, %v8771_v19  ;;  %14058 = vst [vmem:[#allocation177_spill] sm:$0xff] %v9572_v24  ;;  %v9624_v36 = vmul.f32 %v9572_v24, %v8789_v40 }
 0x3ad   : > { %2728 = vrot.lane.b32.xlu0 %v2721_v15, %s6048_s19  ;;  %v9540_v15 = vsel %vm1130_vm11, %v3887_v33, %v12987_v39  ;;  %14053 = vst [vmem:[#allocation172_spill] sm:$0xff] %v9546_v27  ;;  %v9548_v5 = vpop.permute.xlu0 %921  ;;  %v14055_v33 = vrot.slane %v9504_v32, 2  ;;  %v13002_v48 = vrot.slane %v9546_v27, 2  ;;  %14068 = vst [vmem:[#allocation174_spill] sm:$0xff] %v9648_v61  ;;  %v894_v21 = vadd.f32 %v885_v50, %v9081_v45 }
 0x3ae   : > { %14052 = vst [vmem:[#allocation176_spill] sm:$0xff] %v9540_v15  ;;  %v9550_v7 = vpop.permute.xlu1 %886  ;;  %v9565_v15 = vstv %s9447_s11  ;;  %v3961_v51 = vrot.slane %v3951_v58, 2  ;;  %v9591_v58 = vmul.f32 %v9557_v59, %v8771_v19  ;;  %v3259_v3 = vmul.f32 %v9648_v61, %v8771_v19  ;;  %s9804_s11 = sld [smem:[#allocation6 + $0x44]] }
 0x3af   : > { %v9562_v39 = vsel %vm1130_vm11, %v3924_v60, %v14055_v33  ;;  %14057 = vst [vmem:[#allocation127_spill] sm:$0xff] %v9565_v15  ;;  %v9581_v60 = vmul.f32 %v9528_v41, %v8789_v40  ;;  %v3988_v33 = vmul.f32 %v9565_v15, %v8771_v19  ;;  %v9602_v41 = vstv %s9490_s20  ;;  %s9831_s20 = sld [smem:[#allocation6 + $0x68]] }
 0x3b0   : > { %14056 = vst [vmem:[#allocation169_spill] sm:$0xff] %v9562_v39  ;;  %2730 = vrot.lane.b32.xlu1 %v14059_v29, %s6048_s19  ;;  %v9587_v39 = vmul.f32 %v9565_v15, %v8789_v40  ;;  %v9599_v29 = vstv %s9488_s10  ;;  %14063 = vst [vmem:[#allocation130_spill] sm:$0xff] %v9602_v41  ;;  %v9610_v15 = vmul.f32 %v9572_v24, %v8771_v19  ;;  %s9818_s10 = sld [smem:[#allocation6 + $0x1d]] }
 0x3b1   : > { %2765 = vrot.lane.b32.xlu0 %v9383_v2, %s6048_s19  ;;  %v9596_v2 = vsel %vm1130_vm11, %v3961_v51, %v13002_v48  ;;  %14062 = vst [vmem:[#allocation170_spill] sm:$0xff] %v9599_v29  ;;  %v9604_v32 = vpop.permute.xlu0 %958  ;;  %v3998_v27 = vrot.slane %v3988_v33, 2  ;;  %v857_v48 = vadd.f32 %v9427_v8, %v9057_v13  ;;  %v3201_v59 = vmul.f32 %v9599_v29, %v8771_v19  ;;  %v14066_v33 = vld [vmem:[#allocation92_spill] sm:$0xff] }
 0x3b2   : > { %14060 = vst [vmem:[#allocation71_spill] sm:$0xff] %v9587_v39  ;;  %14061 = vst [vmem:[#allocation179_spill] sm:$0xff] %v9596_v2  ;;  %v9606_v1 = vpop.permute.xlu1 %923  ;;  %v13011_v51 = vrot.slane %v9587_v39, 2  ;;  %v9620_v2 = vstv %s9517_s22  ;;  %v3202_v8 = vmul.f32 %v9599_v29, %v8789_v40  ;;  %v3230_v24 = vmul.f32 %v9602_v41, %v8771_v19  ;;  %s9833_s22 = sld [smem:[#allocation6 + $0x8c]] }
 0x3b3   : > { %14064 = vst [vmem:[#allocation178_spill] sm:$0xff] %v9620_v2  ;;  %v9655_v39 = vmul.f32 %v9599_v29, %v8843_v37  ;;  %v9663_v45 = vmul.f32 %v9648_v61, %v8789_v40  ;;  %v858_v28 = vadd.f32 %v9492_v44, %v9084_v34  ;;  %v9680_v34 = vmul.f32 %v9602_v41, %v8843_v37 }
 0x3b4   : > { %2767 = vrot.lane.b32.xlu1 %v14066_v33, %s6048_s19  ;;  %v9641_v13 = vsel %vm1130_vm11, %v3998_v27, %v13011_v51  ;;  %v3211_v33 = vrot.slane %v3201_v59, 1  ;;  %v3240_v22 = vrot.slane %v3230_v24, 1 }
 0x3b5   : > { %3001 = vrot.lane.b32.xlu0 %v9451_v23, %s6047_s27  ;;  %14067 = vst [vmem:[#allocation185_spill] sm:$0xff] %v9641_v13  ;;  %v3231_v23 = vmul.f32 %v9602_v41, %v8789_v40  ;;  %14069 = vst [vmem:[#allocation134_spill] sm:$0xff] %v9655_v39  ;;  %v996_v27 = vpop.permute.xlu0 %995  ;;  %v3212_v13 = vrot.slane %v3202_v8, 1  ;;  %v13014_v29 = vrot.slane %v9655_v39, 1  ;;  %v3269_v8 = vrot.slane %v3259_v3, 1 }
 0x3b6   : > { %v9657_v51 = vpop.permute.xlu1 %960  ;;  %v1005_v59 = vadd.f32 %v996_v27, %v857_v48  ;;  %14071 = vst [vmem:[#allocation33_spill] sm:$0xff] %v9680_v34  ;;  %v14072_v48 = vld [vmem:[#allocation136_spill] sm:$0xff]  ;;  %v931_v3 = vadd.f32 %v9548_v5, %v9113_v55  ;;  %v9715_v5 = vstv %s9632_s8  ;;  %s9892_s8 = sld [smem:[#allocation6 + $0x89]] }
 0x3b7   : > { %v3241_v50 = vrot.slane %v3231_v23, 1  ;;  %v9675_v24 = vsel %vm717_vm10, %v3211_v33, %v3212_v13  ;;  %v9686_v23 = vstv %s9628_s6  ;;  %14079 = vst [vmem:[#allocation183_spill] sm:$0xff] %v9715_v5  ;;  %s9877_s6 = sld [smem:[#allocation6 + $0x65]] }
 0x3b8   : > { %3003 = vrot.lane.b32.xlu1 %v9455_v12, %s6047_s27  ;;  %14070 = vst [vmem:[#allocation180_spill] sm:$0xff] %v9675_v24  ;;  %v9683_v44 = vadd.f32 %v14072_v48, %v1005_v59  ;;  %14073 = vst [vmem:[#allocation137_spill] sm:$0xff] %v9686_v23  ;;  %v9694_v12 = vsel %vm717_vm10, %v3212_v13, %v13014_v29  ;;  %v4563_v25 = vmul.f32 %v9686_v23, %v8930_v14 }
 0x3b9   : > { %3027 = vrot.lane.b32.xlu0 %v9478_v4, %s6047_s27  ;;  %v9689_v4 = vsel %vm717_vm10, %v3240_v22, %v3241_v50  ;;  %14075 = vst [vmem:[#allocation182_spill] sm:$0xff] %v9694_v12  ;;  %v1033_v33 = vpop.permute.xlu0 %1032  ;;  %v9702_v59 = vmul.f32 %v9686_v23, %v8948_v17  ;;  %v14077_v22 = vrot.slane %v9663_v45, 1  ;;  %v895_v12 = vadd.f32 %v9550_v7, %v9116_v9 }
 0x3ba   : > { %14074 = vst [vmem:[#allocation181_spill] sm:$0xff] %v9689_v4  ;;  %v998_v27 = vpop.permute.xlu1 %997  ;;  %v1042_v13 = vadd.f32 %v1033_v33, %v894_v21  ;;  %v14080_v33 = vld [vmem:[#allocation121_spill] sm:$0xff]  ;;  %v14083_v9 = vrot.slane %v9680_v34, 1  ;;  %v9926_v34 = vstv %s9809_s17  ;;  %v9956_v39 = vstv %s9833_s22  ;;  %s10567_s17 = sld [smem:[#allocation6 + $0x22]]  ;;  %s10793_s22 = sld [smem:[#allocation6 + $0x21]] }
 0x3bb   : > { %14076 = vst [vmem:[#allocation140_spill] sm:$0xff] %v9702_v59  ;;  %v9707_v48 = vsel %vm717_vm10, %v3269_v8, %v14077_v22  ;;  %v1006_v29 = vadd.f32 %v998_v27, %v858_v28  ;;  %v4573_v8 = vrot.slane %v4563_v25, 1  ;;  %v13015_v21 = vrot.slane %v9702_v59, 1  ;;  %v14081_v22 = vld [vmem:[#allocation93_spill] sm:$0xff]  ;;  %14112 = vst [vmem:[#allocation49_spill] sm:$0xff] %v9926_v34 }
 0x3bc   : > { %14078 = vst [vmem:[#allocation184_spill] sm:$0xff] %v9707_v48  ;;  %3029 = vrot.lane.b32.xlu1 %v9515_v43, %s6047_s27  ;;  %v3288_v28 = vmul.f32 %v9715_v5, %v8771_v19  ;;  %v9727_v27 = vadd.f32 %v14080_v33, %v1042_v13  ;;  %v9733_v48 = vstv %s9667_s9  ;;  %v9742_v25 = vmul.f32 %v9620_v2, %v8771_v19  ;;  %s9919_s9 = sld [smem:[#allocation6 + $0x18]] }
 0x3bd   : > { %3053 = vrot.lane.b32.xlu0 %v9511_v63, %s6047_s27  ;;  %v9730_v55 = vadd.f32 %v14081_v22, %v1006_v29  ;;  %14082 = vst [vmem:[#allocation148_spill] sm:$0xff] %v9733_v48  ;;  %v9738_v63 = vsel %vm717_vm10, %v3241_v50, %v14083_v9  ;;  %v1070_v43 = vpop.permute.xlu0 %1069  ;;  %v9747_v13 = vsel %vm717_vm10, %v4573_v8, %v13015_v21  ;;  %14116 = vst [vmem:[#allocation104_spill] sm:$0xff] %v9956_v39 }
 0x3be   : > { %14084 = vst [vmem:[#allocation188_spill] sm:$0xff] %v9738_v63  ;;  %v1035_v7 = vpop.permute.xlu1 %1034  ;;  %14085 = vst [vmem:[#allocation186_spill] sm:$0xff] %v9747_v13  ;;  %v4600_v29 = vmul.f32 %v9733_v48, %v8930_v14  ;;  %v9753_v33 = vmul.f32 %v9733_v48, %v8948_v17  ;;  %v968_v50 = vadd.f32 %v9604_v32, %v9144_v20 }
 0x3bf   : > { %v932_v22 = vadd.f32 %v9606_v1, %v9147_v30  ;;  %v1079_v9 = vadd.f32 %v1070_v43, %v931_v3  ;;  %v1043_v63 = vadd.f32 %v1035_v7, %v895_v12  ;;  %v9770_v20 = vmul.f32 %v9715_v5, %v8789_v40  ;;  %v14088_v1 = vld [vmem:[#allocation95_spill] sm:$0xff]  ;;  %v14089_v12 = vld [vmem:[#allocation125_spill] sm:$0xff] }
 0x3c0   : > { %14086 = vst [vmem:[#allocation150_spill] sm:$0xff] %v9753_v33  ;;  %3055 = vrot.lane.b32.xlu1 %v9525_v49, %s6047_s27  ;;  %v4610_v8 = vrot.slane %v4600_v29, 1  ;;  %v13016_v21 = vrot.slane %v9753_v33, 1  ;;  %v9774_v30 = vmul.f32 %v9648_v61, %v8843_v37  ;;  %v9785_v49 = vstv %s9711_s26  ;;  %s10013_s26 = sld [smem:[#allocation6 + $0x60]] }
 0x3c1   : > { %3079 = vrot.lane.b32.xlu0 %v9535_v16, %s6047_s27  ;;  %v9777_v32 = vadd.f32 %v14088_v1, %v1079_v9  ;;  %v9780_v16 = vadd.f32 %v14089_v12, %v1043_v63  ;;  %14090 = vst [vmem:[#allocation187_spill] sm:$0xff] %v9785_v49  ;;  %v3298_v3 = vrot.slane %v3288_v28, 1  ;;  %v1107_v43 = vpop.permute.xlu0 %1106  ;;  %v9789_v29 = vmul.f32 %v9620_v2, %v8789_v40 }
 0x3c2   : > { %14087 = vst [vmem:[#allocation190_spill] sm:$0xff] %v9774_v30  ;;  %v1072_v7 = vpop.permute.xlu1 %1071  ;;  %v9794_v4 = vsel %vm717_vm10, %v4610_v8, %v13016_v21  ;;  %v4637_v63 = vmul.f32 %v9785_v49, %v8930_v14  ;;  %v9800_v9 = vmul.f32 %v9785_v49, %v8948_v17  ;;  %v1116_v28 = vadd.f32 %v1107_v43, %v968_v50  ;;  %v14094_v43 = vld [vmem:[#allocation141_spill] sm:$0xff]  ;;  %v14095_v8 = vld [vmem:[#allocation99_spill] sm:$0xff] }
 0x3c3   : > { %14091 = vst [vmem:[#allocation152_spill] sm:$0xff] %v9794_v4  ;;  %v1080_v1 = vadd.f32 %v1072_v7, %v932_v22  ;;  %v9807_v12 = vstv %s9709_s23  ;;  %v969_v21 = vadd.f32 %v9657_v51, %v9174_v26  ;;  %v9829_v26 = vstv %s9761_s28  ;;  %s9941_s23 = sld [smem:[#allocation6 + $0x3c]]  ;;  %s10296_s28 = sld [smem:[#allocation6 + $0x1e]] }
 0x3c4   : > { %14092 = vst [vmem:[#allocation192_spill] sm:$0xff] %v9800_v9  ;;  %14093 = vst [vmem:[#allocation189_spill] sm:$0xff] %v9807_v12  ;;  %3081 = vrot.lane.b32.xlu1 %v9554_v11, %s6047_s27  ;;  %v4647_v2 = vrot.slane %v4637_v63, 1  ;;  %v13019_v50 = vrot.slane %v9800_v9, 1  ;;  %v9823_v7 = vadd.f32 %v14094_v43, %v1116_v28  ;;  %v9844_v28 = vmul.f32 %v9807_v12, %v8930_v14 }
 0x3c5   : > { %3105 = vrot.lane.b32.xlu0 %v9569_v47, %s6048_s19  ;;  %v9826_v24 = vadd.f32 %v14095_v8, %v1080_v1  ;;  %14096 = vst [vmem:[#allocation48_spill] sm:$0xff] %v9829_v26  ;;  %v14097_v47 = vrot.slane %v9770_v20, 1  ;;  %v9840_v51 = vpop.permute.xlu0 %1260  ;;  %v4674_v8 = vmul.f32 %v9829_v26, %v8930_v14  ;;  %v9862_v22 = vmul.f32 %v9807_v12, %v8948_v17 }
 0x3c6   : > { %v1109_v63 = vpop.permute.xlu1 %1108  ;;  %v9849_v1 = vsel %vm717_vm10, %v4647_v2, %v13019_v50  ;;  %v14102_v2 = vrot.slane %v9774_v30, 1  ;;  %v14103_v50 = vrot.slane %v9663_v45, 1  ;;  %v9881_v12 = vstv %s9802_s30  ;;  %v14107_v45 = vld [vmem:[#allocation151_spill] sm:$0xff]  ;;  %s10439_s30 = sld [smem:[#allocation6 + $0x66]] }
 0x3c7   : > { %v9838_v11 = vsel %vm717_vm10, %v3298_v3, %v14097_v47  ;;  %14099 = vst [vmem:[#allocation193_spill] sm:$0xff] %v9849_v1  ;;  %v9855_v3 = vmul.f32 %v9829_v26, %v8948_v17  ;;  %v1117_v43 = vadd.f32 %v1109_v63, %v969_v21  ;;  %v9858_v47 = vstv %s9759_s7  ;;  %14105 = vst [vmem:[#allocation47_spill] sm:$0xff] %v9881_v12  ;;  %s10065_s7 = sld [smem:[#allocation6 + $0x84]] }
 0x3c8   : > { %14098 = vst [vmem:[#allocation194_spill] sm:$0xff] %v9838_v11  ;;  %14101 = vst [vmem:[#allocation91_spill] sm:$0xff] %v9858_v47  ;;  %v9871_v11 = vsel %vm717_vm10, %v14103_v50, %v14102_v2  ;;  %3107 = vrot.lane.b32.xlu1 %v9581_v60, %s6048_s19  ;;  %v4684_v21 = vrot.slane %v4674_v8, 1  ;;  %v9884_v1 = vstv %s9804_s11  ;;  %v9890_v50 = vstv %s9782_s4  ;;  %s10358_s4 = sld [smem:[#allocation6 + $0x42]] }
 0x3c9   : > { %14100 = vst [vmem:[#allocation40_spill] sm:$0xff] %v9855_v3  ;;  %14104 = vst [vmem:[#allocation195_spill] sm:$0xff] %v9871_v11  ;;  %3131 = vrot.lane.b32.xlu0 %v9591_v58, %s6048_s19  ;;  %v13026_v63 = vrot.slane %v9855_v3, 1  ;;  %v9887_v4 = vadd.f32 %v14107_v45, %v1117_v43  ;;  %v4711_v60 = vmul.f32 %v9881_v12, %v8930_v14  ;;  %v9900_v8 = vpop.permute.xlu0 %1297  ;;  %v9986_v33 = vstv %s9864_s29  ;;  %s10497_s11 = sld [smem:[#allocation6 + $0x8a]]  ;;  %s10795_s29 = sld [smem:[#allocation6 + $0x8e]] }
 0x3ca   : > { %14106 = vst [vmem:[#allocation67_spill] sm:$0xff] %v9884_v1  ;;  %14108 = vst [vmem:[#allocation61_spill] sm:$0xff] %v9890_v50  ;;  %v9898_v58 = vmul.f32 %v9881_v12, %v8948_v17  ;;  %v9902_v2 = vpop.permute.xlu1 %1262  ;;  %v9906_v43 = vmul.f32 %v9858_v47, %v8930_v14  ;;  %v4748_v11 = vmul.f32 %v9884_v1, %v8930_v14 }
 0x3cb   : > { %v9911_v45 = vsel %vm717_vm10, %v4684_v21, %v13026_v63  ;;  %v9917_v13 = vmul.f32 %v9884_v1, %v8948_v17  ;;  %v9923_v30 = vmul.f32 %v9858_v47, %v8948_v17  ;;  %v4721_v61 = vrot.slane %v4711_v60, 1  ;;  %14120 = vst [vmem:[#allocation106_spill] sm:$0xff] %v9986_v33 }
 0x3cc   : > { %14109 = vst [vmem:[#allocation15_spill] sm:$0xff] %v9898_v58  ;;  %14110 = vst [vmem:[#allocation199_spill] sm:$0xff] %v9911_v45  ;;  %v13036_v21 = vrot.slane %v9898_v58, 1  ;;  %3133 = vrot.lane.b32.xlu1 %v9614_v46, %s6048_s19  ;;  %v9935_v63 = vmul.f32 %v9890_v50, %v8930_v14  ;;  %v9938_v45 = vstv %s9818_s10  ;;  %v4758_v47 = vrot.slane %v4748_v11, 1  ;;  %s10664_s10 = sld [smem:[#allocation6 + $0x46]] }
 0x3cd   : > { %14111 = vst [vmem:[#allocation52_spill] sm:$0xff] %v9917_v13  ;;  %3157 = vrot.lane.b32.xlu0 %v9610_v15, %s6048_s19  ;;  %14113 = vst [vmem:[#allocation89_spill] sm:$0xff] %v9938_v45  ;;  %v9945_v60 = vmul.f32 %v9890_v50, %v8948_v17  ;;  %v9953_v15 = vstv %s9831_s20  ;;  %v9958_v3 = vpop.permute.xlu0 %1334  ;;  %v9964_v41 = vmul.f32 %v9926_v34, %v8930_v14  ;;  %v14117_v50 = vrot.slane %v9917_v13, 1  ;;  %s10686_s20 = sld [smem:[#allocation6 + $0x6a]] }
 0x3ce   : > { %v9950_v46 = vsel %vm717_vm10, %v4721_v61, %v13036_v21  ;;  %14115 = vst [vmem:[#allocation59_spill] sm:$0xff] %v9953_v15  ;;  %v9960_v11 = vpop.permute.xlu1 %1299  ;;  %v4785_v61 = vmul.f32 %v9953_v15, %v8930_v14  ;;  %v9975_v21 = vmul.f32 %v9953_v15, %v8948_v17  ;;  %v9983_v9 = vmul.f32 %v9926_v34, %v8948_v17 }
 0x3cf   : > { %14114 = vst [vmem:[#allocation56_spill] sm:$0xff] %v9950_v46  ;;  %v9969_v58 = vsel %vm717_vm10, %v4758_v47, %v14117_v50  ;;  %v9979_v46 = vmul.f32 %v9938_v45, %v8930_v14  ;;  %v4822_v47 = vmul.f32 %v9956_v39, %v8930_v14  ;;  %v9995_v50 = vstv %s9877_s6  ;;  %s10870_s6 = sld [smem:[#allocation6 + $0x23]] }
 0x3d0   : > { %14118 = vst [vmem:[#allocation58_spill] sm:$0xff] %v9969_v58  ;;  %14119 = vst [vmem:[#allocation16_spill] sm:$0xff] %v9975_v21  ;;  %3159 = vrot.lane.b32.xlu1 %v9624_v36, %s6048_s19  ;;  %v4795_v58 = vrot.slane %v4785_v61, 1  ;;  %v10000_v34 = vmul.f32 %v9956_v39, %v8948_v17  ;;  %v10004_v59 = vmul.f32 %v9938_v45, %v8948_v17  ;;  %v10007_v15 = vstv %s9892_s8  ;;  %s11025_s8 = sld [smem:[#allocation6 + $0x47]] }
 0x3d1   : > { %3183 = vrot.lane.b32.xlu0 %v9742_v25, %s6048_s19  ;;  %14121 = vst [vmem:[#allocation75_spill] sm:$0xff] %v9995_v50  ;;  %14123 = vst [vmem:[#allocation160_spill] sm:$0xff] %v10007_v15  ;;  %v4832_v25 = vrot.slane %v4822_v47, 1  ;;  %v10011_v1 = vmul.f32 %v9715_v5, %v8843_v37  ;;  %v10015_v36 = vpop.permute.xlu0 %1371  ;;  %v10021_v13 = vmul.f32 %v9986_v33, %v8930_v14  ;;  %v14125_v45 = vrot.slane %v9975_v21, 1 }
 0x3d2   : > { %14122 = vst [vmem:[#allocation60_spill] sm:$0xff] %v10000_v34  ;;  %v10017_v61 = vpop.permute.xlu1 %1336  ;;  %v13066_v47 = vrot.slane %v10000_v34, 1  ;;  %v10030_v5 = vstv %s9919_s9  ;;  %v10034_v12 = vmul.f32 %v9995_v50, %v8930_v14  ;;  %v10038_v26 = vmul.f32 %v9986_v33, %v8948_v17  ;;  %s11057_s9 = sld [smem:[#allocation6 + $0x6b]] }
 0x3d3   : > { %14124 = vst [vmem:[#allocation72_spill] sm:$0xff] %v10011_v1  ;;  %v10026_v39 = vsel %vm717_vm10, %v4795_v58, %v14125_v45  ;;  %14127 = vst [vmem:[#allocation108_spill] sm:$0xff] %v10030_v5  ;;  %v10042_v49 = vmul.f32 %v9995_v50, %v8948_v17  ;;  %v10051_v58 = vmul.f32 %v10007_v15, %v8930_v14  ;;  %v10063_v21 = vstv %s9941_s23  ;;  %s11237_s23 = sld [smem:[#allocation6 + $0x8f]] }
 0x3d4   : > { %14126 = vst [vmem:[#allocation74_spill] sm:$0xff] %v10026_v39  ;;  %3185 = vrot.lane.b32.xlu1 %v9789_v29, %s6048_s19  ;;  %v10055_v45 = vmul.f32 %v10007_v15, %v8948_v17  ;;  %v10060_v50 = vsel %vm717_vm10, %v4832_v25, %v13066_v47  ;;  %14129 = vst [vmem:[#allocation105_spill] sm:$0xff] %v10063_v21  ;;  %v1270_v29 = vadd.f32 %v9840_v51, %v9683_v44 }
 0x3d5   : > { %4247 = vrot.lane.b32.xlu0 %v9844_v28, %s6047_s27  ;;  %14128 = vst [vmem:[#allocation78_spill] sm:$0xff] %v10060_v50  ;;  %v14130_v28 = vrot.slane %v10011_v1, 1  ;;  %v14131_v33 = vrot.slane %v9770_v20, 1  ;;  %v3613_v15 = vmul.f32 %v10030_v5, %v8771_v19  ;;  %v3614_v25 = vmul.f32 %v10030_v5, %v8789_v40  ;;  %v1409_v47 = vpop.permute.xlu0 %1408 }
 0x3d6   : > { %v10080_v50 = vpop.permute.xlu1 %1373  ;;  %v10084_v34 = vmul.f32 %v9059_v62, %v8843_v37  ;;  %v3642_v44 = vmul.f32 %v10063_v21, %v8771_v19  ;;  %v10092_v20 = vmul.f32 %v10030_v5, %v8843_v37  ;;  %v1307_v51 = vadd.f32 %v9900_v8, %v9727_v27 }
 0x3d7   : > { %v10074_v39 = vsel %vm717_vm10, %v14131_v33, %v14130_v28  ;;  %v3643_v33 = vmul.f32 %v10063_v21, %v8789_v40  ;;  %v1418_v28 = vadd.f32 %v1409_v47, %v1270_v29  ;;  %v3623_v1 = vrot.slane %v3613_v15, 2 }
 0x3d8   : > { %14132 = vst [vmem:[#allocation32_spill] sm:$0xff] %v10074_v39  ;;  %14133 = vst [vmem:[#allocation171_spill] sm:$0xff] %v10084_v34  ;;  %v10096_v39 = vpop.f32.mrb[22].mxu1  ;;  %v3624_v62 = vrot.slane %v3614_v25, 2  ;;  %v1271_v17 = vadd.f32 %v9902_v2, %v9730_v55  ;;  %4249 = vrot.lane.b32.xlu1 %v9862_v22, %s6047_s27  ;;  %v3652_v14 = vrot.slane %v3642_v44, 2  ;;  %v13084_v48 = vrot.slane %v10092_v20, 2 }
 0x3d9   : > { %14134 = vst [vmem:[#allocation88_spill] sm:$0xff] %v10092_v20  ;;  %4273 = vrot.lane.b32.xlu0 %v9906_v43, %s6047_s27  ;;  %v3653_v5 = vrot.slane %v3643_v33, 2  ;;  %v5770_v23 = vpop.f32.mrb[23].mxu1  ;;  %v1713_v27 = vadd.f32 %v9387_v57, %v1418_v28  ;;  %v10110_v15 = vstv %s10013_s26  ;;  %v10114_v55 = vmul.f32 %v10063_v21, %v8843_v37  ;;  %v1446_v2 = vpop.permute.xlu0 %1445  ;;  %s11355_s26 = sld [smem:[#allocation6 + $0x45]] }
 0x3da   : > { %v10107_v8 = vsel %vm1130_vm11, %v3623_v1, %v3624_v62  ;;  %14136 = vst [vmem:[#allocation79_spill] sm:$0xff] %v10110_v15  ;;  %v1344_v22 = vadd.f32 %v9958_v3, %v9777_v32  ;;  %v1411_v43 = vpop.permute.xlu1 %1410  ;;  %v10124_v57 = vsel %vm1130_vm11, %v3624_v62, %v13084_v48  ;;  %v3671_v23 = vmul.f32 %v10110_v15, %v8771_v19  ;;  %v14195_v48 = vld [vmem:[#allocation127_spill] sm:$0xff] }
 0x3db   : > { %14135 = vst [vmem:[#allocation111_spill] sm:$0xff] %v10107_v8  ;;  %14137 = vst [vmem:[#allocation126_spill] sm:$0xff] %v10114_v55  ;;  %v10119_v47 = vsel %vm1130_vm11, %v3652_v14, %v3653_v5  ;;  %v1769_v1 = vadd.f32 %v9151_v31, %v1713_v27  ;;  %v1455_v29 = vadd.f32 %v1446_v2, %v1307_v51  ;;  %v13083_v62 = vrot.slane %v10114_v55, 2  ;;  %v14245_v55 = vld [vmem:[#allocation143_spill] sm:$0xff] }
 0x3dc   : > { %14138 = vst [vmem:[#allocation113_spill] sm:$0xff] %v10119_v47  ;;  %14139 = vst [vmem:[#allocation82_spill] sm:$0xff] %v10124_v57  ;;  %v1419_v25 = vadd.f32 %v1411_v43, %v1271_v17  ;;  %v3672_v32 = vmul.f32 %v10110_v15, %v8789_v40  ;;  %v1308_v3 = vadd.f32 %v9960_v11, %v9780_v16  ;;  %4275 = vrot.lane.b32.xlu1 %v9923_v30, %s6047_s27  ;;  %v14201_v57 = vld [vmem:[#allocation197_spill] sm:$0xff] }
 0x3dd   : > { %4299 = vrot.lane.b32.xlu0 %v9935_v63, %s6047_s27  ;;  %v3681_v14 = vrot.slane %v3671_v23, 2  ;;  %v10139_v44 = vstv %s10065_s7  ;;  %v1723_v31 = vadd.f32 %v9391_v38, %v1455_v29  ;;  %v1873_v33 = vadd.f32 %v9256_v6, %v1769_v1  ;;  %v1483_v11 = vpop.permute.xlu0 %1482  ;;  %s11492_s7 = sld [smem:[#allocation6 + $0x69]] }
 0x3de   : > { %14140 = vst [vmem:[#allocation90_spill] sm:$0xff] %v10139_v44  ;;  %v1714_v17 = vadd.f32 %v9395_v56, %v1419_v25  ;;  %v3682_v51 = vrot.slane %v3672_v32, 2  ;;  %v1381_v16 = vadd.f32 %v10015_v36, %v9823_v7  ;;  %v1448_v63 = vpop.permute.xlu1 %1447  ;;  %v10149_v30 = vsel %vm1130_vm11, %v3653_v5, %v13083_v62  ;;  %v14142_v5 = vld [vmem:[#allocation128_spill] sm:$0xff]  ;;  %v14146_v32 = vld [vmem:[#allocation101_spill] sm:$0xff] }
 0x3df   : > { %14141 = vst [vmem:[#allocation119_spill] sm:$0xff] %v10149_v30  ;;  %v3700_v28 = vmul.f32 %v10139_v44, %v8771_v19  ;;  %v3701_v38 = vmul.f32 %v10139_v44, %v8789_v40  ;;  %v1795_v56 = vadd.f32 %v9178_v35, %v1723_v31  ;;  %v1492_v27 = vadd.f32 %v1483_v11, %v1344_v22  ;;  %v14148_v31 = vld [vmem:[#allocation55_spill] sm:$0xff] }
 0x3e0   : > { %v1770_v6 = vadd.f32 %v9180_v0, %v1714_v17  ;;  %v1456_v2 = vadd.f32 %v1448_v63, %v1308_v3  ;;  %v1345_v7 = vadd.f32 %v10017_v61, %v9826_v24  ;;  %4301 = vrot.lane.b32.xlu1 %v9945_v60, %s6047_s27  ;;  %v10164_v19 = vadd.f32 %v14142_v5, %v1873_v33  ;;  %v14149_v33 = vld [vmem:[#allocation46_spill] sm:$0xff] }
 0x3e1   : > { %4325 = vrot.lane.b32.xlu0 %v9964_v41, %s6047_s27  ;;  %v10167_v40 = vsel %vm1130_vm11, %v3681_v14, %v3682_v51  ;;  %v1733_v35 = vadd.f32 %v9409_v54, %v1492_v27  ;;  %v1899_v36 = vadd.f32 %v9282_v18, %v1795_v56  ;;  %v1520_v61 = vpop.permute.xlu0 %1519  ;;  %v3710_v43 = vrot.slane %v3700_v28, 2  ;;  %v14191_v41 = vld [vmem:[#allocation31_spill] sm:$0xff] }
 0x3e2   : > { %14143 = vst [vmem:[#allocation84_spill] sm:$0xff] %v10167_v40  ;;  %v1724_v0 = vadd.f32 %v9414_v52, %v1456_v2  ;;  %v1874_v24 = vadd.f32 %v9284_v42, %v1770_v6  ;;  %v1485_v22 = vpop.permute.xlu1 %1484  ;;  %v3711_v60 = vrot.slane %v3701_v38, 2  ;;  %v10176_v23 = vmul.f32 %v10110_v15, %v8843_v37  ;;  %v14145_v42 = vld [vmem:[#allocation153_spill] sm:$0xff]  ;;  %v14156_v6 = vld [vmem:[#allocation35_spill] sm:$0xff] }
 0x3e3   : > { %v1821_v1 = vadd.f32 %v9204_v53, %v1733_v35  ;;  %v1529_v29 = vadd.f32 %v1520_v61, %v1381_v16  ;;  %v1493_v52 = vadd.f32 %v1485_v22, %v1345_v7  ;;  %v1382_v18 = vadd.f32 %v10080_v50, %v9887_v4  ;;  %v14150_v50 = vld [vmem:[#allocation159_spill] sm:$0xff]  ;;  %v14157_v2 = vld [vmem:[#allocation37_spill] sm:$0xff]  ;;  %v14162_v22 = vld [vmem:[#allocation100_spill] sm:$0xff] }
 0x3e4   : > { %14144 = vst [vmem:[#allocation110_spill] sm:$0xff] %v10176_v23  ;;  %v1796_v54 = vadd.f32 %v9206_v10, %v1724_v0  ;;  %4327 = vrot.lane.b32.xlu1 %v9983_v9, %s6047_s27  ;;  %v10187_v25 = vadd.f32 %v14145_v42, %v1899_v36  ;;  %v10190_v3 = vadd.f32 %v14146_v32, %v1874_v24  ;;  %v13082_v53 = vrot.slane %v10176_v23, 2  ;;  %v14147_v10 = vld [vmem:[#allocation51_spill] sm:$0xff] }
 0x3e5   : > { %4351 = vrot.lane.b32.xlu0 %v9979_v46, %s6048_s19  ;;  %v1743_v14 = vadd.f32 %v14147_v10, %v1529_v29  ;;  %v1734_v17 = vadd.f32 %v14148_v31, %v1493_v52  ;;  %v1925_v4 = vadd.f32 %v14149_v33, %v1821_v1  ;;  %v10197_v46 = vpop.permute.xlu0 %2094  ;;  %v14151_v9 = vld [vmem:[#allocation23_spill] sm:$0xff]  ;;  %v10204_v28 = vsel %vm1130_vm11, %v3710_v43, %v3711_v60  ;;  %v14165_v52 = vld [vmem:[#allocation161_spill] sm:$0xff]  ;;  %v14171_v33 = vld [vmem:[#allocation34_spill] sm:$0xff] }
 0x3e6   : > { %v1900_v16 = vadd.f32 %v14150_v50, %v1796_v54  ;;  %v1522_v11 = vpop.permute.xlu1 %1521  ;;  %v10201_v63 = vmul.f32 %v14151_v9, %v8843_v37  ;;  %14153 = vst [vmem:[#allocation85_spill] sm:$0xff] %v10204_v28  ;;  %v10209_v38 = vsel %vm1130_vm11, %v3682_v51, %v13082_v53  ;;  %v10213_v56 = vmul.f32 %v10139_v44, %v8843_v37  ;;  %v14158_v35 = vld [vmem:[#allocation155_spill] sm:$0xff]  ;;  %v14160_v51 = vld [vmem:[#allocation156_spill] sm:$0xff]  ;;  %v14169_v31 = vld [vmem:[#allocation45_spill] sm:$0xff] }
 0x3e7   : > { %14154 = vst [vmem:[#allocation132_spill] sm:$0xff] %v10209_v38  ;;  %v1847_v27 = vadd.f32 %v14156_v6, %v1743_v14  ;;  %v1822_v7 = vadd.f32 %v14157_v2, %v1734_v17  ;;  %v1530_v5 = vadd.f32 %v1522_v11, %v1382_v18  ;;  %v10219_v0 = vmul.f32 %v14158_v35, %v8843_v37  ;;  %v14161_v24 = vld [vmem:[#allocation131_spill] sm:$0xff]  ;;  %v14164_v54 = vld [vmem:[#allocation112_spill] sm:$0xff]  ;;  %v14173_v50 = vld [vmem:[#allocation38_spill] sm:$0xff] }
 0x3e8   : > { %14152 = vst [vmem:[#allocation20_spill] sm:$0xff] %v10201_v63  ;;  %14155 = vst [vmem:[#allocation103_spill] sm:$0xff] %v10213_v56  ;;  %4353 = vrot.lane.b32.xlu1 %v10004_v59, %s6048_s19  ;;  %v10226_v36 = vadd.f32 %v14160_v51, %v1925_v4  ;;  %v10229_v61 = vadd.f32 %v14161_v24, %v1900_v16  ;;  %v10233_v43 = vmul.f32 %v14162_v22, %v8843_v37  ;;  %v14167_v59 = vld [vmem:[#allocation54_spill] sm:$0xff]  ;;  %v14176_v6 = vld [vmem:[#allocation149_spill] sm:$0xff] }
 0x3e9   : > { %14159 = vst [vmem:[#allocation94_spill] sm:$0xff] %v10219_v0  ;;  %4377 = vrot.lane.b32.xlu0 %v10021_v13, %s6048_s19  ;;  %v13081_v1 = vrot.slane %v10213_v56, 2  ;;  %v1744_v29 = vadd.f32 %v14164_v54, %v1530_v5  ;;  %v1951_v18 = vadd.f32 %v14165_v52, %v1847_v27  ;;  %v14166_v13 = vld [vmem:[#allocation162_spill] sm:$0xff]  ;;  %v10241_v32 = vmul.f32 %v14167_v59, %v8843_v37  ;;  %v10243_v10 = vpop.permute.xlu0 %2131  ;;  %v14177_v2 = vld [vmem:[#allocation129_spill] sm:$0xff]  ;;  %v14178_v24 = vld [vmem:[#allocation135_spill] sm:$0xff] }
 0x3ea   : > { %14163 = vst [vmem:[#allocation68_spill] sm:$0xff] %v10233_v43  ;;  %v1926_v42 = vadd.f32 %v14166_v13, %v1822_v7  ;;  %v10245_v14 = vpop.permute.xlu1 %2096  ;;  %v10249_v17 = vmul.f32 %v14169_v31, %v8843_v37  ;;  %v10253_v4 = vmul.f32 %v14171_v33, %v8843_v37  ;;  %v10257_v16 = vmul.f32 %v14173_v50, %v8843_v37  ;;  %v14190_v51 = vld [vmem:[#allocation157_spill] sm:$0xff]  ;;  %v14193_v38 = vld [vmem:[#allocation30_spill] sm:$0xff] }
 0x3eb   : > { %14168 = vst [vmem:[#allocation98_spill] sm:$0xff] %v10241_v32  ;;  %v10262_v11 = vsel %vm1130_vm11, %v3711_v60, %v13081_v1  ;;  %v1848_v27 = vadd.f32 %v14176_v6, %v1744_v29  ;;  %v10266_v7 = vadd.f32 %v14177_v2, %v1951_v18  ;;  %v14179_v29 = vld [vmem:[#allocation65_spill] sm:$0xff]  ;;  %v14181_v18 = vld [vmem:[#allocation96_spill] sm:$0xff]  ;;  %v10318_v28 = vmul.f32 %v14193_v38, %v8843_v37 }
 0x3ec   : > { %14170 = vst [vmem:[#allocation123_spill] sm:$0xff] %v10249_v17  ;;  %14172 = vst [vmem:[#allocation102_spill] sm:$0xff] %v10253_v4  ;;  %4379 = vrot.lane.b32.xlu1 %v10038_v26, %s6048_s19  ;;  %v10275_v54 = vadd.f32 %v14178_v24, %v1926_v42  ;;  %v10280_v52 = vmul.f32 %v14179_v29, %v8843_v37  ;;  %v10284_v13 = vmul.f32 %v14181_v18, %v8843_v37  ;;  %v14183_v6 = vld [vmem:[#allocation165_spill] sm:$0xff]  ;;  %v14184_v1 = vld [vmem:[#allocation64_spill] sm:$0xff] }
 0x3ed   : > { %14174 = vst [vmem:[#allocation76_spill] sm:$0xff] %v10257_v16  ;;  %14175 = vst [vmem:[#allocation109_spill] sm:$0xff] %v10262_v11  ;;  %4403 = vrot.lane.b32.xlu0 %v10034_v12, %s6048_s19  ;;  %v1952_v2 = vadd.f32 %v14183_v6, %v1848_v27  ;;  %v10290_v26 = vmul.f32 %v14184_v1, %v8843_v37  ;;  %v14186_v42 = vld [vmem:[#allocation50_spill] sm:$0xff]  ;;  %v10298_v53 = vpop.permute.xlu0 %2168  ;;  %v14188_v12 = vld [vmem:[#allocation73_spill] sm:$0xff]  ;;  %v10314_v11 = vmul.f32 %v14191_v41, %v8843_v37 }
 0x3ee   : > { %14180 = vst [vmem:[#allocation122_spill] sm:$0xff] %v10280_v52  ;;  %14182 = vst [vmem:[#allocation114_spill] sm:$0xff] %v10284_v13  ;;  %v10294_v24 = vmul.f32 %v14186_v42, %v8843_v37  ;;  %v10300_v62 = vpop.permute.xlu1 %2133  ;;  %v10307_v60 = vmul.f32 %v14188_v12, %v8843_v37  ;;  %v10322_v27 = vmul.f32 %v14195_v48, %v8843_v37  ;;  %v14200_v40 = vrot.slane %v10201_v63, 1  ;;  %v14253_v12 = vld [vmem:[#allocation71_spill] sm:$0xff] }
 0x3ef   : > { %14185 = vst [vmem:[#allocation116_spill] sm:$0xff] %v10290_v26  ;;  %v10310_v5 = vadd.f32 %v14190_v51, %v1952_v2  ;;  %14192 = vst [vmem:[#allocation136_spill] sm:$0xff] %v10314_v11  ;;  %v14197_v51 = vrot.slane %v10084_v34, 1  ;;  %v14198_v2 = vld [vmem:[#allocation80_spill] sm:$0xff]  ;;  %v14202_v47 = vrot.slane %v14201_v57, 1  ;;  %v14203_v23 = vrot.slane %v10219_v0, 1 }
 0x3f0   : > { %14187 = vst [vmem:[#allocation117_spill] sm:$0xff] %v10294_v24  ;;  %14189 = vst [vmem:[#allocation92_spill] sm:$0xff] %v10307_v60  ;;  %4405 = vrot.lane.b32.xlu1 %v10042_v49, %s6048_s19  ;;  %v14199_v6 = vrot.slane %v14198_v2, 1  ;;  %v14204_v49 = vld [vmem:[#allocation24_spill] sm:$0xff]  ;;  %v14216_v0 = vld [vmem:[#allocation21_spill] sm:$0xff]  ;;  %v14246_v20 = vrot.slane %v10314_v11, 2 }
 0x3f1   : > { %14194 = vst [vmem:[#allocation121_spill] sm:$0xff] %v10318_v28  ;;  %14196 = vst [vmem:[#allocation93_spill] sm:$0xff] %v10322_v27  ;;  %4429 = vrot.lane.b32.xlu0 %v10051_v58, %s6048_s19  ;;  %v10338_v8 = vsel %vm717_vm10, %v14202_v47, %v14200_v40  ;;  %v14205_v44 = vrot.slane %v14204_v49, 1  ;;  %v14215_v40 = vrot.slane %v10253_v4, 1  ;;  %v14217_v63 = vrot.slane %v14216_v0, 1  ;;  %v14221_v0 = vld [vmem:[#allocation196_spill] sm:$0xff] }
 0x3f2   : > { %v3331_v30 = vsel %vm717_vm10, %v14199_v6, %v14197_v51  ;;  %v14206_v6 = vrot.slane %v10233_v43, 1  ;;  %v14207_v51 = vld [vmem:[#allocation158_spill] sm:$0xff]  ;;  %v10360_v58 = vpop.permute.xlu0 %2205  ;;  %v10362_v56 = vpop.permute.xlu1 %2170  ;;  %v14252_v41 = vrot.slane %v10322_v27, 2  ;;  %v14254_v42 = vrot.slane %v14253_v12, 2  ;;  %v14262_v27 = vld [vmem:[#allocation147_spill] sm:$0xff] }
 0x3f3   : > { %v10347_v34 = vsel %vm717_vm10, %v14205_v44, %v14203_v23  ;;  %v14208_v2 = vrot.slane %v14207_v51, 1  ;;  %v14209_v44 = vrot.slane %v10241_v32, 1  ;;  %v14210_v23 = vld [vmem:[#allocation39_spill] sm:$0xff]  ;;  %v14213_v51 = vld [vmem:[#allocation28_spill] sm:$0xff]  ;;  %v10383_v15 = vsel %vm717_vm10, %v14217_v63, %v14215_v40  ;;  %v14223_v40 = vld [vmem:[#allocation97_spill] sm:$0xff]  ;;  %v10418_v4 = vpop.f32.mrb[22].mxu0 }
 0x3f4   : > { %v14211_v49 = vrot.slane %v14210_v23, 1  ;;  %4431 = vrot.lane.b32.xlu1 %v10055_v45, %s6048_s19  ;;  %v14222_v63 = vrot.slane %v10280_v52, 2  ;;  %v14224_v23 = vrot.slane %v14223_v40, 2  ;;  %14231 = vst [vmem:[#allocation125_spill] sm:$0xff] %v10418_v4  ;;  %v2104_v45 = vadd.f32 %v10197_v46, %v10164_v19  ;;  %v5796_v4 = vpop.f32.mrb[23].mxu0 }
 0x3f5   : > { %v10354_v57 = vsel %vm717_vm10, %v14208_v2, %v14206_v6  ;;  %v14212_v6 = vrot.slane %v10249_v17, 1  ;;  %v14214_v2 = vrot.slane %v14213_v51, 1  ;;  %3336 = vrot.lane.b32.xlu0 %v14221_v0, %s6047_s27  ;;  %v14232_v40 = vrot.slane %v10290_v26, 2  ;;  %v14240_v26 = vld [vmem:[#allocation115_spill] sm:$0xff] }
 0x3f6   : > { %v10369_v43 = vsel %vm717_vm10, %v14211_v49, %v14209_v44  ;;  %v14218_v44 = vrot.slane %v10257_v16, 1  ;;  %v14219_v49 = vld [vmem:[#allocation77_spill] sm:$0xff]  ;;  %v2243_v19 = vpop.permute.xlu0 %2242  ;;  %v10441_v46 = vpop.permute.xlu1 %2207 }
 0x3f7   : > { %v10376_v47 = vsel %vm717_vm10, %v14214_v2, %v14212_v6  ;;  %v14220_v32 = vrot.slane %v14219_v49, 1  ;;  %v10405_v49 = vsel %vm1130_vm11, %v14224_v23, %v14222_v63  ;;  %v14228_v2 = vld [vmem:[#allocation145_spill] sm:$0xff]  ;;  %v2252_v21 = vadd.f32 %v2243_v19, %v2104_v45 }
 0x3f8   : > { %v14229_v16 = vld [vmem:[#allocation137_spill] sm:$0xff]  ;;  %v10477_v45 = vsel %vm1130_vm11, %v14254_v42, %v14252_v41  ;;  %3338 = vrot.lane.b32.xlu1 %v3331_v30, %s6047_s27  ;;  %v10491_v41 = vstv %s10358_s4  ;;  %v2178_v42 = vadd.f32 %v10298_v53, %v10226_v36  ;;  %s5591_s4 = sld [smem:[#allocation6 + $0x1b]] }
 0x3f9   : > { %v10391_v17 = vsel %vm717_vm10, %v14220_v32, %v14218_v44  ;;  %v14225_v32 = vrot.slane %v10284_v13, 2  ;;  %v14226_v44 = vld [vmem:[#allocation63_spill] sm:$0xff]  ;;  %v10416_v0 = vmul.f32 %v14229_v16, %v14228_v2  ;;  %v14233_v23 = vld [vmem:[#allocation69_spill] sm:$0xff]  ;;  %v10437_v16 = vstv %s10296_s28  ;;  %14257 = vst [vmem:[#allocation151_spill] sm:$0xff] %v10491_v41  ;;  %s11586_s28 = sld [smem:[#allocation6 + $0x8d]] }
 0x3fa   : > { %v14227_v6 = vrot.slane %v14226_v44, 2  ;;  %v14234_v63 = vrot.slane %v14233_v23, 2  ;;  %v14235_v44 = vrot.slane %v10294_v24, 2  ;;  %14238 = vst [vmem:[#allocation141_spill] sm:$0xff] %v10437_v16  ;;  %v14239_v23 = vrot.slane %v10307_v60, 2  ;;  %v14247_v60 = vld [vmem:[#allocation168_spill] sm:$0xff]  ;;  %v2245_v30 = vpop.permute.xlu1 %2244 }
 0x3fb   : > { %14230 = vst [vmem:[#allocation95_spill] sm:$0xff] %v10416_v0  ;;  %v4448_v4 = vmul.f32 %v10437_v16, %v14245_v55  ;;  %v14248_v48 = vrot.slane %v14247_v60, 2  ;;  %v2141_v60 = vadd.f32 %v10243_v10, %v10187_v25  ;;  %v10495_v25 = vmul.f32 %v10437_v16, %v14228_v2  ;;  %v2280_v10 = vpop.permute.xlu0 %2279 }
 0x3fc   : > { %v10412_v51 = vsel %vm1130_vm11, %v14227_v6, %v14225_v32  ;;  %v10427_v13 = vsel %vm1130_vm11, %v14234_v63, %v14232_v40  ;;  %v14236_v6 = vld [vmem:[#allocation107_spill] sm:$0xff]  ;;  %v14241_v40 = vrot.slane %v14240_v26, 2  ;;  %3375 = vrot.lane.b32.xlu1 %v10338_v8, %s6047_s27 }
 0x3fd   : > { %v14237_v32 = vrot.slane %v14236_v6, 2  ;;  %v14242_v6 = vld [vmem:[#allocation148_spill] sm:$0xff]  ;;  %v10463_v26 = vsel %vm1130_vm11, %v14248_v48, %v14246_v20  ;;  %v14255_v48 = vld [vmem:[#allocation14_spill] sm:$0xff]  ;;  %14258 = vst [vmem:[#allocation128_spill] sm:$0xff] %v10495_v25  ;;  %v13112_v20 = vrot.slane %v10495_v25, 1 }
 0x3fe   : > { %v10448_v63 = vsel %vm1130_vm11, %v14241_v40, %v14239_v23  ;;  %v14249_v23 = vrot.slane %v10318_v28, 2  ;;  %v14250_v40 = vld [vmem:[#allocation172_spill] sm:$0xff]  ;;  %3373 = vrot.lane.b32.xlu0 %v14255_v48, %s6047_s27  ;;  %v14260_v48 = vld [vmem:[#allocation187_spill] sm:$0xff]  ;;  %v14264_v28 = vld [vmem:[#allocation25_spill] sm:$0xff] }
 0x3ff   : > { %v10434_v52 = vsel %vm1130_vm11, %v14237_v32, %v14235_v44  ;;  %v10452_v44 = vmul.f32 %v14242_v6, %v14228_v2  ;;  %v14244_v32 = vld [vmem:[#allocation139_spill] sm:$0xff]  ;;  %v14251_v38 = vrot.slane %v14250_v40, 2  ;;  %v14256_v40 = vld [vmem:[#allocation133_spill] sm:$0xff]  ;;  %v2317_v36 = vpop.permute.xlu0 %2316  ;;  %v14299_v25 = vld [vmem:[#allocation138_spill] sm:$0xff] }
 0x400   : > { %v4447_v24 = vmul.f32 %v10437_v16, %v14244_v32  ;;  %v10488_v12 = vadd.f32 %v14256_v40, %v2252_v21  ;;  %v4476_v21 = vmul.f32 %v10491_v41, %v14244_v32  ;;  %v10509_v40 = vmul.f32 %v14260_v48, %v14228_v2  ;;  %3412 = vrot.lane.b32.xlu1 %v10347_v34, %s6047_s27 }
 0x401   : > { %14243 = vst [vmem:[#allocation99_spill] sm:$0xff] %v10452_v44  ;;  %v10470_v6 = vsel %vm1130_vm11, %v14251_v38, %v14249_v23  ;;  %v4458_v38 = vrot.slane %v4448_v4, 1  ;;  %v2105_v23 = vadd.f32 %v10245_v14, %v10190_v3  ;;  %v4477_v3 = vmul.f32 %v10491_v41, %v14245_v55 }
 0x402   : > { %v4457_v19 = vrot.slane %v4447_v24, 1  ;;  %v2289_v14 = vadd.f32 %v2280_v10, %v2141_v60  ;;  %14261 = vst [vmem:[#allocation101_spill] sm:$0xff] %v10509_v40  ;;  %3410 = vrot.lane.b32.xlu0 %v14262_v27, %s6047_s27  ;;  %v4486_v60 = vrot.slane %v4476_v21, 1  ;;  %v14263_v10 = vld [vmem:[#allocation118_spill] sm:$0xff]  ;;  %v14267_v27 = vld [vmem:[#allocation48_spill] sm:$0xff]  ;;  %v10804_v16 = vstv %s10686_s20 }
 0x403   : > { %v2253_v4 = vadd.f32 %v2245_v30, %v2105_v23  ;;  %v4487_v23 = vrot.slane %v4477_v3, 1  ;;  %v10529_v53 = vsel %vm717_vm10, %v4458_v38, %v13112_v20  ;;  %v10536_v8 = vmul.f32 %v14267_v27, %v14228_v2  ;;  %14357 = vst [vmem:[#allocation107_spill] sm:$0xff] %v10804_v16 }
 0x404   : > { %v10501_v24 = vsel %vm717_vm10, %v4457_v19, %v4458_v38  ;;  %v2142_v19 = vadd.f32 %v10300_v62, %v10229_v61  ;;  %v10521_v30 = vadd.f32 %v14263_v10, %v2289_v14  ;;  %14265 = vst [vmem:[#allocation51_spill] sm:$0xff] %v10529_v53  ;;  %v10532_v62 = vstv %s10439_s30  ;;  %v2282_v61 = vpop.permute.xlu1 %2281  ;;  %3449 = vrot.lane.b32.xlu1 %v10354_v57, %s6047_s27  ;;  %s5592_s30 = sld [smem:[#allocation6 + $0x3f]] }
 0x405   : > { %14259 = vst [vmem:[#allocation153_spill] sm:$0xff] %v10501_v24  ;;  %v10524_v11 = vadd.f32 %v14264_v28, %v2253_v4  ;;  %14266 = vst [vmem:[#allocation55_spill] sm:$0xff] %v10532_v62  ;;  %v10539_v21 = vsel %vm717_vm10, %v4486_v60, %v4487_v23  ;;  %v4505_v28 = vmul.f32 %v10532_v62, %v14244_v32  ;;  %v14270_v4 = vld [vmem:[#allocation47_spill] sm:$0xff]  ;;  %v14275_v24 = vld [vmem:[#allocation17_spill] sm:$0xff] }
 0x406   : > { %14268 = vst [vmem:[#allocation46_spill] sm:$0xff] %v10536_v8  ;;  %14269 = vst [vmem:[#allocation159_spill] sm:$0xff] %v10539_v21  ;;  %v4506_v3 = vmul.f32 %v10532_v62, %v14245_v55  ;;  %v2326_v38 = vadd.f32 %v2317_v36, %v2178_v42  ;;  %v2290_v14 = vadd.f32 %v2282_v61, %v2142_v19  ;;  %v14273_v21 = vld [vmem:[#allocation26_spill] sm:$0xff]  ;;  %v14274_v36 = vld [vmem:[#allocation19_spill] sm:$0xff] }
 0x407   : > { %v10547_v10 = vmul.f32 %v14270_v4, %v14228_v2  ;;  %v10551_v20 = vmul.f32 %v10491_v41, %v14228_v2  ;;  %v2215_v60 = vadd.f32 %v10360_v58, %v10266_v7  ;;  %v2179_v53 = vadd.f32 %v10362_v56, %v10275_v54  ;;  %3447 = vrot.lane.b32.xlu0 %v14273_v21, %s6047_s27  ;;  %v2354_v56 = vpop.permute.xlu0 %2353  ;;  %v14277_v21 = vld [vmem:[#allocation67_spill] sm:$0xff] }
 0x408   : > { %v4515_v42 = vrot.slane %v4505_v28, 1  ;;  %v4516_v19 = vrot.slane %v4506_v3, 1  ;;  %v10562_v61 = vadd.f32 %v14274_v36, %v2326_v38  ;;  %v10565_v4 = vadd.f32 %v14275_v24, %v2290_v14  ;;  %v2319_v54 = vpop.permute.xlu1 %2318  ;;  %v14280_v14 = vld [vmem:[#allocation59_spill] sm:$0xff]  ;;  %3486 = vrot.lane.b32.xlu1 %v10369_v43, %s6048_s19 }
 0x409   : > { %14271 = vst [vmem:[#allocation23_spill] sm:$0xff] %v10547_v10  ;;  %14272 = vst [vmem:[#allocation35_spill] sm:$0xff] %v10551_v20  ;;  %v13114_v7 = vrot.slane %v10551_v20, 1  ;;  %v10571_v58 = vstv %s10497_s11  ;;  %v10575_v27 = vmul.f32 %v14277_v21, %v14228_v2  ;;  %v2363_v3 = vadd.f32 %v2354_v56, %v2215_v60  ;;  %v14284_v60 = vld [vmem:[#allocation104_spill] sm:$0xff]  ;;  %v14286_v20 = vld [vmem:[#allocation22_spill] sm:$0xff]  ;;  %s5593_s11 = sld [smem:[#allocation6 + $0x63]] }
 0x40a   : > { %14276 = vst [vmem:[#allocation37_spill] sm:$0xff] %v10571_v58  ;;  %v10578_v34 = vsel %vm717_vm10, %v4515_v42, %v4516_v19  ;;  %v4534_v28 = vmul.f32 %v10571_v58, %v14244_v32  ;;  %v4535_v24 = vmul.f32 %v10571_v58, %v14245_v55  ;;  %v2327_v38 = vadd.f32 %v2319_v54, %v2179_v53  ;;  %v14283_v42 = vld [vmem:[#allocation27_spill] sm:$0xff] }
 0x40b   : > { %14278 = vst [vmem:[#allocation155_spill] sm:$0xff] %v10575_v27  ;;  %14279 = vst [vmem:[#allocation156_spill] sm:$0xff] %v10578_v34  ;;  %v10586_v36 = vmul.f32 %v14280_v14, %v14228_v2  ;;  %v10591_v21 = vsel %vm717_vm10, %v4487_v23, %v13114_v7  ;;  %3484 = vrot.lane.b32.xlu0 %v14283_v42, %s6048_s19  ;;  %v10600_v53 = vmul.f32 %v14284_v60, %v14228_v2  ;;  %v14287_v7 = vld [vmem:[#allocation120_spill] sm:$0xff]  ;;  %v2507_v42 = vpop.permute.xlu0 %2506 }
 0x40c   : > { %14282 = vst [vmem:[#allocation100_spill] sm:$0xff] %v10591_v21  ;;  %v4544_v56 = vrot.slane %v4534_v28, 1  ;;  %v4545_v54 = vrot.slane %v4535_v24, 1  ;;  %v2216_v14 = vadd.f32 %v10441_v46, %v10310_v5  ;;  %v10605_v23 = vadd.f32 %v14286_v20, %v2363_v3  ;;  %v2356_v34 = vpop.permute.xlu1 %2355  ;;  %v14293_v28 = vld [vmem:[#allocation140_spill] sm:$0xff]  ;;  %3523 = vrot.lane.b32.xlu1 %v10376_v47, %s6048_s19  ;;  %v14340_v47 = vld [vmem:[#allocation87_spill] sm:$0xff] }
 0x40d   : > { %14281 = vst [vmem:[#allocation131_spill] sm:$0xff] %v10586_v36  ;;  %14285 = vst [vmem:[#allocation112_spill] sm:$0xff] %v10600_v53  ;;  %v10608_v21 = vadd.f32 %v14287_v7, %v2327_v38  ;;  %v10612_v57 = vmul.f32 %v10532_v62, %v14228_v2  ;;  %v10621_v5 = vmul.f32 %v10571_v58, %v14228_v2  ;;  %v14291_v38 = vld [vmem:[#allocation18_spill] sm:$0xff]  ;;  %v14294_v60 = vrot.slane %v14293_v28, 1  ;;  %v14301_v28 = vld [vmem:[#allocation192_spill] sm:$0xff] }
 0x40e   : > { %v10617_v24 = vsel %vm717_vm10, %v4544_v56, %v4545_v54  ;;  %v2364_v46 = vadd.f32 %v2356_v34, %v2216_v14  ;;  %v14292_v56 = vrot.slane %v10416_v0, 1  ;;  %v14295_v34 = vrot.slane %v10452_v44, 1  ;;  %v14296_v14 = vld [vmem:[#allocation150_spill] sm:$0xff] }
 0x40f   : > { %14288 = vst [vmem:[#allocation161_spill] sm:$0xff] %v10612_v57  ;;  %14289 = vst [vmem:[#allocation162_spill] sm:$0xff] %v10617_v24  ;;  %3521 = vrot.lane.b32.xlu0 %v14291_v38, %s6048_s19  ;;  %v14297_v20 = vrot.slane %v14296_v14, 1  ;;  %v14300_v0 = vrot.slane %v10509_v40, 1  ;;  %v14302_v58 = vrot.slane %v14301_v28, 1  ;;  %v14305_v14 = vrot.slane %v10612_v57, 1 }
 0x410   : > { %14290 = vst [vmem:[#allocation54_spill] sm:$0xff] %v10621_v5  ;;  %v10635_v24 = vsel %vm717_vm10, %v14294_v60, %v14292_v56  ;;  %v10647_v43 = vadd.f32 %v14299_v25, %v2364_v46  ;;  %v10657_v56 = vstv %s10567_s17  ;;  %v2509_v3 = vpop.permute.xlu1 %2508  ;;  %v14307_v25 = vrot.slane %v10536_v8, 1  ;;  %v14308_v46 = vld [vmem:[#allocation40_spill] sm:$0xff]  ;;  %v14318_v8 = vld [vmem:[#allocation15_spill] sm:$0xff]  ;;  %3560 = vrot.lane.b32.xlu1 %v10383_v15, %s6048_s19  ;;  %s12063_s17 = sld [smem:[#allocation6 + $0x87]] }
 0x411   : > { %v10642_v7 = vsel %vm717_vm10, %v14297_v20, %v14295_v34  ;;  %v10654_v60 = vsel %vm717_vm10, %v14302_v58, %v14300_v0  ;;  %14304 = vst [vmem:[#allocation38_spill] sm:$0xff] %v10657_v56  ;;  %v10662_v20 = vsel %vm717_vm10, %v4516_v19, %v14305_v14  ;;  %v2544_v34 = vpop.permute.xlu0 %2543  ;;  %v14309_v38 = vrot.slane %v14308_v46, 1  ;;  %v14311_v0 = vld [vmem:[#allocation154_spill] sm:$0xff]  ;;  %v14312_v58 = vld [vmem:[#allocation36_spill] sm:$0xff] }
 0x412   : > { %14298 = vst [vmem:[#allocation45_spill] sm:$0xff] %v10642_v7  ;;  %14303 = vst [vmem:[#allocation34_spill] sm:$0xff] %v10654_v60  ;;  %v10675_v40 = vmul.f32 %v14312_v58, %v14311_v0  ;;  %v10679_v44 = vmul.f32 %v14151_v9, %v14311_v0  ;;  %v14315_v19 = vrot.slane %v10621_v5, 1  ;;  %v14317_v46 = vrot.slane %v10547_v10, 1  ;;  %v14322_v57 = vld [vmem:[#allocation52_spill] sm:$0xff]  ;;  %v14329_v10 = vld [vmem:[#allocation70_spill] sm:$0xff] }
 0x413   : > { %14306 = vst [vmem:[#allocation149_spill] sm:$0xff] %v10662_v20  ;;  %v10671_v28 = vsel %vm717_vm10, %v14309_v38, %v14307_v25  ;;  %v14319_v38 = vrot.slane %v14318_v8, 1  ;;  %v14321_v20 = vrot.slane %v10575_v27, 1  ;;  %v14323_v62 = vrot.slane %v14322_v57, 1  ;;  %v14333_v57 = vld [vmem:[#allocation60_spill] sm:$0xff] }
 0x414   : > { %14310 = vst [vmem:[#allocation129_spill] sm:$0xff] %v10671_v28  ;;  %14313 = vst [vmem:[#allocation135_spill] sm:$0xff] %v10675_v40  ;;  %v10684_v14 = vsel %vm717_vm10, %v4545_v54, %v14315_v19  ;;  %v14325_v5 = vrot.slane %v10586_v36, 1  ;;  %v14326_v54 = vld [vmem:[#allocation16_spill] sm:$0xff]  ;;  %v10711_v8 = vmul.f32 %v14329_v10, %v8843_v37  ;;  %v2546_v27 = vpop.permute.xlu1 %2545  ;;  %3597 = vrot.lane.b32.xlu1 %v10391_v17, %s6048_s19 }
 0x415   : > { %14314 = vst [vmem:[#allocation65_spill] sm:$0xff] %v10679_v44  ;;  %14316 = vst [vmem:[#allocation96_spill] sm:$0xff] %v10684_v14  ;;  %v10693_v25 = vsel %vm717_vm10, %v14319_v38, %v14317_v46  ;;  %v10700_v41 = vsel %vm717_vm10, %v14323_v62, %v14321_v20  ;;  %v14327_v19 = vrot.slane %v14326_v54, 1  ;;  %v14331_v46 = vld [vmem:[#allocation198_spill] sm:$0xff]  ;;  %v14332_v62 = vrot.slane %v10600_v53, 1  ;;  %v2581_v36 = vpop.permute.xlu0 %2580 }
 0x416   : > { %14320 = vst [vmem:[#allocation165_spill] sm:$0xff] %v10693_v25  ;;  %14324 = vst [vmem:[#allocation64_spill] sm:$0xff] %v10700_v41  ;;  %3558 = vrot.lane.b32.xlu0 %v14331_v46, %s6048_s19  ;;  %v14334_v20 = vrot.slane %v14333_v57, 1  ;;  %v10734_v46 = vmul.f32 %v14329_v10, %v14311_v0  ;;  %v10738_v53 = vmul.f32 %v14340_v47, %v8843_v37  ;;  %v14343_v57 = vld [vmem:[#allocation175_spill] sm:$0xff]  ;;  %v14346_v10 = vld [vmem:[#allocation124_spill] sm:$0xff] }
 0x417   : > { %v10707_v14 = vsel %vm717_vm10, %v14327_v19, %v14325_v5  ;;  %14330 = vst [vmem:[#allocation80_spill] sm:$0xff] %v10711_v8  ;;  %v14336_v5 = vld [vmem:[#allocation166_spill] sm:$0xff]  ;;  %v10730_v19 = vmul.f32 %v10657_v56, %v14245_v55  ;;  %v2553_v8 = vadd.f32 %v2544_v34, %v10521_v30  ;;  %v14351_v30 = vld [vmem:[#allocation29_spill] sm:$0xff] }
 0x418   : > { %14328 = vst [vmem:[#allocation157_spill] sm:$0xff] %v10707_v14  ;;  %v10722_v38 = vsel %vm717_vm10, %v14334_v20, %v14332_v62  ;;  %v10726_v54 = vmul.f32 %v14336_v5, %v8843_v37  ;;  %14339 = vst [vmem:[#allocation39_spill] sm:$0xff] %v10734_v46  ;;  %v10742_v62 = vmul.f32 %v14336_v5, %v14311_v0  ;;  %v14350_v5 = vld [vmem:[#allocation42_spill] sm:$0xff]  ;;  %v2583_v41 = vpop.permute.xlu1 %2582  ;;  %3750 = vrot.lane.b32.xlu1 %v10405_v49, %s6047_s27 }
 0x419   : > { %14335 = vst [vmem:[#allocation197_spill] sm:$0xff] %v10722_v38  ;;  %14338 = vst [vmem:[#allocation158_spill] sm:$0xff] %v10730_v19  ;;  %v10746_v20 = vmul.f32 %v14343_v57, %v8843_v37  ;;  %v10754_v46 = vmul.f32 %v14346_v10, %v8843_v37  ;;  %v10763_v38 = vmul.f32 %v14158_v35, %v14311_v0  ;;  %v10787_v10 = vstv %s10664_s10  ;;  %v2618_v14 = vpop.permute.xlu0 %2617  ;;  %v14372_v49 = vld [vmem:[#allocation174_spill] sm:$0xff]  ;;  %s5627_s10 = sld [smem:[#allocation7 + $0x1]] }
 0x41a   : > { %14337 = vst [vmem:[#allocation24_spill] sm:$0xff] %v10726_v54  ;;  %14341 = vst [vmem:[#allocation28_spill] sm:$0xff] %v10738_v53  ;;  %v10750_v54 = vmul.f32 %v14340_v47, %v14311_v0  ;;  %v14349_v47 = vld [vmem:[#allocation41_spill] sm:$0xff]  ;;  %v14355_v53 = vld [vmem:[#allocation170_spill] sm:$0xff]  ;;  %v10807_v48 = vadd.f32 %v2618_v14, %v10605_v23  ;;  %v5012_v25 = vmul.f32 %v10787_v10, %v14244_v32 }
 0x41b   : > { %14342 = vst [vmem:[#allocation21_spill] sm:$0xff] %v10742_v62  ;;  %14344 = vst [vmem:[#allocation77_spill] sm:$0xff] %v10746_v20  ;;  %v2516_v62 = vadd.f32 %v2507_v42, %v10488_v12  ;;  %v2517_v20 = vadd.f32 %v2509_v3, %v10524_v11  ;;  %3595 = vrot.lane.b32.xlu0 %v14349_v47, %s6048_s19  ;;  %v2955_v12 = vmul.f32 %v14350_v5, %v8843_v37  ;;  %v14352_v3 = vld [vmem:[#allocation144_spill] sm:$0xff]  ;;  %v14353_v47 = vld [vmem:[#allocation53_spill] sm:$0xff] }
 0x41c   : > { %14345 = vst [vmem:[#allocation196_spill] sm:$0xff] %v10750_v54  ;;  %14347 = vst [vmem:[#allocation97_spill] sm:$0xff] %v10754_v46  ;;  %v10774_v42 = vmul.f32 %v14351_v30, %v8843_v37  ;;  %v4975_v11 = vmul.f32 %v10657_v56, %v14244_v32  ;;  %v10780_v34 = vmul.f32 %v14352_v3, %v8843_v37  ;;  %v2620_v28 = vpop.permute.xlu1 %2619  ;;  %3787 = vrot.lane.b32.xlu1 %v10412_v51, %s6047_s27 }
 0x41d   : > { %14348 = vst [vmem:[#allocation63_spill] sm:$0xff] %v10763_v38  ;;  %v10784_v15 = vmul.f32 %v14353_v47, %v8843_v37  ;;  %14354 = vst [vmem:[#allocation145_spill] sm:$0xff] %v10787_v10  ;;  %v10791_v46 = vmul.f32 %v14355_v53, %v14311_v0  ;;  %v10798_v56 = vadd.f32 %v2581_v36, %v10562_v61  ;;  %v14359_v36 = vrot.slane %v10730_v19, 2  ;;  %v2655_v17 = vpop.permute.xlu0 %2654 }
 0x41e   : > { %v10801_v54 = vadd.f32 %v2546_v27, %v10565_v4  ;;  %v4985_v37 = vrot.slane %v4975_v11, 2  ;;  %v2956_v53 = vmul.f32 %v14350_v5, %v14311_v0  ;;  %v5013_v61 = vmul.f32 %v10787_v10, %v14245_v55  ;;  %v14358_v4 = vld [vmem:[#allocation43_spill] sm:$0xff] }
 0x41f   : > { %14356 = vst [vmem:[#allocation69_spill] sm:$0xff] %v10791_v46  ;;  %v10816_v27 = vadd.f32 %v2583_v41, %v10608_v21  ;;  %3748 = vrot.lane.b32.xlu0 %v14358_v4, %s6047_s27  ;;  %v10829_v14 = vmul.f32 %v10787_v10, %v14228_v2  ;;  %v13140_v5 = vrot.slane %v10791_v46, 1  ;;  %v5022_v11 = vrot.slane %v5012_v25, 2  ;;  %v14365_v46 = vld [vmem:[#allocation44_spill] sm:$0xff] }
 0x420   : > { %v10825_v23 = vsel %vm1130_vm11, %v4985_v37, %v14359_v36  ;;  %v5023_v41 = vrot.slane %v5013_v61, 2  ;;  %v5049_v21 = vmul.f32 %v10804_v16, %v14244_v32  ;;  %v5050_v4 = vmul.f32 %v10804_v16, %v14245_v55  ;;  %3824 = vrot.lane.b32.xlu1 %v10427_v13, %s6047_s27 }
 0x421   : > { %14360 = vst [vmem:[#allocation115_spill] sm:$0xff] %v10825_v23  ;;  %v2966_v37 = vmul.f32 %v14351_v30, %v14311_v0  ;;  %v14361_v23 = vld [vmem:[#allocation134_spill] sm:$0xff]  ;;  %v10848_v61 = vmul.f32 %v10804_v16, %v14228_v2  ;;  %v2664_v60 = vadd.f32 %v2655_v17, %v2516_v62  ;;  %v10851_v7 = vadd.f32 %v2620_v28, %v10647_v43 }
 0x422   : > { %v14362_v19 = vrot.slane %v14361_v23, 1  ;;  %v10854_v30 = vsel %vm1130_vm11, %v5022_v11, %v5023_v41  ;;  %v5059_v36 = vrot.slane %v5049_v21, 2  ;;  %v14368_v43 = vld [vmem:[#allocation130_spill] sm:$0xff]  ;;  %v10878_v21 = vstv %s10795_s29  ;;  %s5637_s29 = sld [smem:[#allocation7 + $0x3]] }
 0x423   : > { %14364 = vst [vmem:[#allocation172_spill] sm:$0xff] %v10854_v30  ;;  %3785 = vrot.lane.b32.xlu0 %v14365_v46, %s6047_s27  ;;  %v10868_v28 = vmul.f32 %v14368_v43, %v14311_v0  ;;  %v10872_v11 = vadd.f32 %v2955_v12, %v2664_v60  ;;  %v10875_v46 = vstv %s10793_s22  ;;  %v10882_v17 = vmul.f32 %v14372_v49, %v14311_v0  ;;  %s5632_s22 = sld [smem:[#allocation7 + $0x2]] }
 0x424   : > { %v10844_v25 = vsel %vm717_vm10, %v14362_v19, %v13140_v5  ;;  %v14366_v19 = vrot.slane %v10829_v14, 2  ;;  %v5060_v5 = vrot.slane %v5050_v4, 2  ;;  %14371 = vst [vmem:[#allocation147_spill] sm:$0xff] %v10875_v46  ;;  %v2657_v4 = vpop.permute.xlu1 %2656  ;;  %v10901_v49 = vmul.f32 %v10875_v46, %v14228_v2  ;;  %3861 = vrot.lane.b32.xlu1 %v10434_v52, %s6047_s27 }
 0x425   : > { %14363 = vst [vmem:[#allocation168_spill] sm:$0xff] %v10844_v25  ;;  %14369 = vst [vmem:[#allocation14_spill] sm:$0xff] %v10868_v28  ;;  %v13141_v12 = vrot.slane %v10868_v28, 1  ;;  %v2665_v25 = vadd.f32 %v2657_v4, %v2517_v20  ;;  %v5086_v20 = vmul.f32 %v10878_v21, %v14244_v32 }
 0x426   : > { %v10863_v23 = vsel %vm1130_vm11, %v5023_v41, %v14366_v19  ;;  %14370 = vst [vmem:[#allocation133_spill] sm:$0xff] %v10872_v11  ;;  %14373 = vst [vmem:[#allocation118_spill] sm:$0xff] %v10882_v17  ;;  %v2692_v41 = vpop.permute.xlu0 %2691  ;;  %v2976_v19 = vmul.f32 %v14352_v3, %v14311_v0  ;;  %v10887_v62 = vsel %vm1130_vm11, %v5059_v36, %v5060_v5  ;;  %v14379_v3 = vld [vmem:[#allocation83_spill] sm:$0xff] }
 0x427   : > { %14367 = vst [vmem:[#allocation71_spill] sm:$0xff] %v10863_v23  ;;  %14374 = vst [vmem:[#allocation25_spill] sm:$0xff] %v10887_v62  ;;  %v14375_v23 = vrot.slane %v10848_v61, 2  ;;  %v2701_v30 = vadd.f32 %v2692_v41, %v2553_v8  ;;  %v10897_v11 = vmul.f32 %v10875_v46, %v14245_v55  ;;  %3822 = vrot.lane.b32.xlu0 %v14379_v3, %s6047_s27  ;;  %v13147_v41 = vrot.slane %v10882_v17, 1  ;;  %v14385_v46 = vld [vmem:[#allocation190_spill] sm:$0xff] }
 0x428   : > { %14378 = vst [vmem:[#allocation17_spill] sm:$0xff] %v10901_v49  ;;  %v10922_v3 = vadd.f32 %v2956_v53, %v2665_v25  ;;  %v5096_v62 = vrot.slane %v5086_v20, 2  ;;  %v14386_v28 = vrot.slane %v14385_v46, 1  ;;  %v14389_v20 = vld [vmem:[#allocation167_spill] sm:$0xff]  ;;  %v10962_v46 = vstv %s10870_s6  ;;  %3898 = vrot.lane.b32.xlu1 %v10448_v63, %s6048_s19  ;;  %v14449_v17 = vld [vmem:[#allocation86_spill] sm:$0xff]  ;;  %s5648_s6 = sshll.u32 %s6093_s16, 11 }
 0x429   : > { %v10892_v60 = vsel %vm1130_vm11, %v5060_v5, %v14375_v23  ;;  %14377 = vst [vmem:[#allocation19_spill] sm:$0xff] %v10897_v11  ;;  %v14380_v5 = vld [vmem:[#allocation33_spill] sm:$0xff]  ;;  %v5087_v23 = vmul.f32 %v10878_v21, %v14245_v55  ;;  %v10920_v4 = vadd.f32 %v10774_v42, %v2701_v30  ;;  %v13146_v51 = vrot.slane %v10897_v11, 2  ;;  %s5314_s16 = scalar_lea.sflag [#allocation4], %s6210_s5 }
 0x42a   : > { %14376 = vst [vmem:[#allocation26_spill] sm:$0xff] %v10892_v60  ;;  %v14381_v36 = vrot.slane %v14380_v5, 1  ;;  %14384 = vst [vmem:[#allocation120_spill] sm:$0xff] %v10922_v3  ;;  %v13145_v5 = vrot.slane %v10901_v49, 2  ;;  %v2986_v60 = vmul.f32 %v14353_v47, %v14311_v0  ;;  %v10933_v42 = vsel %vm717_vm10, %v14386_v28, %v13147_v41 }
 0x42b   : > { %14383 = vst [vmem:[#allocation22_spill] sm:$0xff] %v10920_v4  ;;  %14387 = vst [vmem:[#allocation18_spill] sm:$0xff] %v10933_v42  ;;  %v3321_v30 = vmul.f32 %v14312_v58, %v10096_v39  ;;  %3859 = vrot.lane.b32.xlu0 %v14389_v20, %s6047_s27  ;;  %v14391_v58 = vld [vmem:[#allocation183_spill] sm:$0xff]  ;;  %v5123_v13 = vmul.f32 %v10962_v46, %v14244_v32  ;;  %v5124_v41 = vmul.f32 %v10962_v46, %v14245_v55 }
 0x42c   : > { %v10912_v8 = vsel %vm717_vm10, %v14381_v36, %v13141_v12  ;;  %v2729_v36 = vpop.permute.xlu0 %2728  ;;  %v2694_v12 = vpop.permute.xlu1 %2693  ;;  %v10944_v47 = vsel %vm1130_vm11, %v13146_v51, %v13145_v5  ;;  %v10959_v28 = vmul.f32 %v14391_v58, %v14311_v0  ;;  %v3358_v5 = vmul.f32 %v14151_v9, %v10096_v39  ;;  %v14397_v51 = vld [vmem:[#allocation176_spill] sm:$0xff]  ;;  %3935 = vrot.lane.b32.xlu1 %v10463_v26, %s6048_s19 }
 0x42d   : > { %14382 = vst [vmem:[#allocation27_spill] sm:$0xff] %v10912_v8  ;;  %v5097_v8 = vrot.slane %v5087_v23, 2  ;;  %v2738_v53 = vadd.f32 %v2729_v36, %v10798_v56  ;;  %v2702_v25 = vadd.f32 %v2694_v12, %v10801_v54  ;;  %14388 = vst [vmem:[#allocation140_spill] sm:$0xff] %v10944_v47  ;;  %v10955_v54 = vmul.f32 %v10878_v21, %v14228_v2 }
 0x42e   : > { %14392 = vst [vmem:[#allocation138_spill] sm:$0xff] %v10959_v28  ;;  %v3334_v12 = vrot.slane %v3321_v30, 1  ;;  %v10977_v30 = vmul.f32 %v10962_v46, %v14228_v2  ;;  %v5134_v9 = vrot.slane %v5124_v41, 2  ;;  %v3371_v42 = vrot.slane %v3358_v5, 1 }
 0x42f   : > { %v10951_v56 = vsel %vm1130_vm11, %v5096_v62, %v5097_v8  ;;  %v10965_v23 = vadd.f32 %v10780_v34, %v2738_v53  ;;  %v10967_v36 = vadd.f32 %v2966_v37, %v2702_v25  ;;  %v14395_v53 = vrot.slane %v10675_v40, 1  ;;  %3896 = vrot.lane.b32.xlu0 %v14397_v51, %s6048_s19 }
 0x430   : > { %14390 = vst [vmem:[#allocation150_spill] sm:$0xff] %v10951_v56  ;;  %v2766_v62 = vpop.permute.xlu0 %2765  ;;  %v2731_v20 = vpop.permute.xlu1 %2730  ;;  %v14398_v56 = vrot.slane %v10955_v54, 2  ;;  %v13148_v52 = vrot.slane %v10977_v30, 2  ;;  %v11020_v41 = vmul.f32 %v14169_v31, %v14311_v0  ;;  %v11030_v5 = vmul.f32 %v14343_v57, %v14311_v0  ;;  %3972 = vrot.lane.b32.xlu1 %v10470_v6, %s6048_s19 }
 0x431   : > { %14393 = vst [vmem:[#allocation192_spill] sm:$0xff] %v10965_v23  ;;  %14394 = vst [vmem:[#allocation40_spill] sm:$0xff] %v10967_v36  ;;  %v2775_v34 = vadd.f32 %v2766_v62, %v10807_v48  ;;  %v2739_v37 = vadd.f32 %v2731_v20, %v10816_v27  ;;  %v10984_v25 = vsel %vm717_vm10, %v14395_v53, %v3334_v12  ;;  %v14400_v27 = vrot.slane %v10959_v28, 1  ;;  %v14401_v62 = vld [vmem:[#allocation72_spill] sm:$0xff] }
 0x432   : > { %14396 = vst [vmem:[#allocation154_spill] sm:$0xff] %v10984_v25  ;;  %v10995_v48 = vsel %vm1130_vm11, %v5097_v8, %v14398_v56  ;;  %v14402_v20 = vrot.slane %v14401_v62, 1  ;;  %v5133_v53 = vrot.slane %v5123_v13, 2  ;;  %v11012_v56 = vmul.f32 %v14162_v22, %v14311_v0  ;;  %14408 = vst [vmem:[#allocation60_spill] sm:$0xff] %v11020_v41  ;;  %v14413_v62 = vld [vmem:[#allocation169_spill] sm:$0xff] }
 0x433   : > { %14399 = vst [vmem:[#allocation36_spill] sm:$0xff] %v10995_v48  ;;  %v11005_v51 = vadd.f32 %v10784_v15, %v2775_v34  ;;  %v11007_v36 = vadd.f32 %v2976_v19, %v2739_v37  ;;  %14410 = vst [vmem:[#allocation87_spill] sm:$0xff] %v11030_v5  ;;  %v14411_v13 = vrot.slane %v10679_v44, 1  ;;  %v3395_v37 = vmul.f32 %v14158_v35, %v10096_v39 }
 0x434   : > { %v11002_v12 = vsel %vm717_vm10, %v14402_v20, %v14400_v27  ;;  %v2768_v23 = vpop.permute.xlu1 %2767  ;;  %v3002_v8 = vpop.permute.xlu0 %3001  ;;  %14406 = vst [vmem:[#allocation70_spill] sm:$0xff] %v11012_v56  ;;  %v11016_v27 = vmul.f32 %v14167_v59, %v14311_v0  ;;  %v11023_v15 = vsel %vm1130_vm11, %v5133_v53, %v5134_v9  ;;  %3933 = vrot.lane.b32.xlu0 %v14413_v62, %s6048_s19  ;;  %v11141_v25 = vstv %s11057_s9 }
 0x435   : > { %14403 = vst [vmem:[#allocation15_spill] sm:$0xff] %v11002_v12  ;;  %14404 = vst [vmem:[#allocation52_spill] sm:$0xff] %v11005_v51  ;;  %v2776_v19 = vadd.f32 %v2768_v23, %v10851_v7  ;;  %v11035_v34 = vsel %vm717_vm10, %v14411_v13, %v3371_v42  ;;  %v11046_v57 = vmul.f32 %v14171_v33, %v14311_v0  ;;  %v3408_v42 = vrot.slane %v3395_v37, 1  ;;  %v14427_v7 = vld [vmem:[#allocation179_spill] sm:$0xff] }
 0x436   : > { %14405 = vst [vmem:[#allocation16_spill] sm:$0xff] %v11007_v36  ;;  %14407 = vst [vmem:[#allocation198_spill] sm:$0xff] %v11016_v27  ;;  %v11050_v23 = vmul.f32 %v14173_v50, %v14311_v0  ;;  %v11055_v35 = vsel %vm1130_vm11, %v5134_v9, %v13148_v52  ;;  %v11061_v63 = vmul.f32 %v14179_v29, %v14311_v0  ;;  %v14425_v9 = vld [vmem:[#allocation73_spill] sm:$0xff]  ;;  %v14428_v12 = vld [vmem:[#allocation31_spill] sm:$0xff]  ;;  %v14438_v44 = vrot.slane %v11016_v27, 1 }
 0x437   : > { %14409 = vst [vmem:[#allocation166_spill] sm:$0xff] %v11023_v15  ;;  %14412 = vst [vmem:[#allocation175_spill] sm:$0xff] %v11035_v34  ;;  %v11065_v20 = vmul.f32 %v14181_v18, %v14311_v0  ;;  %v11067_v53 = vadd.f32 %v2986_v60, %v2776_v19  ;;  %v11074_v37 = vmul.f32 %v14184_v1, %v14311_v0  ;;  %v14423_v19 = vld [vmem:[#allocation50_spill] sm:$0xff]  ;;  %v14440_v51 = vld [vmem:[#allocation163_spill] sm:$0xff]  ;;  %4009 = vrot.lane.b32.xlu1 %v10477_v45, %s6048_s19 }
 0x438   : > { %14414 = vst [vmem:[#allocation41_spill] sm:$0xff] %v11046_v57  ;;  %14415 = vst [vmem:[#allocation42_spill] sm:$0xff] %v11050_v23  ;;  %v3028_v13 = vpop.permute.xlu0 %3027  ;;  %v3004_v62 = vpop.permute.xlu1 %3003  ;;  %v3432_v60 = vmul.f32 %v14162_v22, %v10096_v39  ;;  %v11085_v48 = vmul.f32 %v14423_v19, %v14311_v0  ;;  %v11089_v52 = vmul.f32 %v14425_v9, %v14311_v0  ;;  %3970 = vrot.lane.b32.xlu0 %v14427_v7, %s6048_s19  ;;  %v14430_v7 = vld [vmem:[#allocation30_spill] sm:$0xff]  ;;  %v14443_v27 = vld [vmem:[#allocation164_spill] sm:$0xff] }
 0x439   : > { %14416 = vst [vmem:[#allocation29_spill] sm:$0xff] %v11055_v35  ;;  %14417 = vst [vmem:[#allocation144_spill] sm:$0xff] %v11061_v63  ;;  %v14421_v35 = vrot.slane %v10763_v38, 1  ;;  %v3469_v22 = vmul.f32 %v14167_v59, %v10096_v39  ;;  %v11107_v4 = vmul.f32 %v14430_v7, %v14311_v0  ;;  %v14435_v38 = vld [vmem:[#allocation127_spill] sm:$0xff]  ;;  %v14437_v59 = vld [vmem:[#allocation185_spill] sm:$0xff]  ;;  %v5197_v11 = vmul.f32 %v11141_v25, %v14244_v32 }
 0x43a   : > { %14418 = vst [vmem:[#allocation53_spill] sm:$0xff] %v11065_v20  ;;  %14419 = vst [vmem:[#allocation43_spill] sm:$0xff] %v11067_v53  ;;  %v11101_v53 = vmul.f32 %v14428_v12, %v14311_v0  ;;  %v3445_v36 = vrot.slane %v3432_v60, 1  ;;  %v14433_v60 = vrot.slane %v11012_v56, 1 }
 0x43b   : > { %14420 = vst [vmem:[#allocation134_spill] sm:$0xff] %v11074_v37  ;;  %v11079_v15 = vsel %vm717_vm10, %v14421_v35, %v3408_v42  ;;  %14424 = vst [vmem:[#allocation130_spill] sm:$0xff] %v11085_v48  ;;  %v3482_v47 = vrot.slane %v3469_v22, 1  ;;  %v11111_v42 = vstv %s11025_s8  ;;  %v11126_v22 = vmul.f32 %v14435_v38, %v14311_v0  ;;  %4584 = vrot.lane.b32.xlu1 %v10635_v24, %s6047_s27 }
 0x43c   : > { %14422 = vst [vmem:[#allocation44_spill] sm:$0xff] %v11079_v15  ;;  %14426 = vst [vmem:[#allocation83_spill] sm:$0xff] %v11089_v52  ;;  %v3054_v26 = vpop.permute.xlu0 %3053  ;;  %v3030_v35 = vpop.permute.xlu1 %3029  ;;  %v14432_v15 = vld [vmem:[#allocation108_spill] sm:$0xff]  ;;  %v11120_v3 = vsel %vm717_vm10, %v14433_v60, %v3445_v36  ;;  %4007 = vrot.lane.b32.xlu0 %v14437_v59, %s6048_s19  ;;  %v3506_v36 = vmul.f32 %v14169_v31, %v10096_v39  ;;  %v14441_v59 = vld [vmem:[#allocation81_spill] sm:$0xff]  ;;  %v5160_v6 = vmul.f32 %v11111_v42, %v14244_v32 }
 0x43d   : > { %14429 = vst [vmem:[#allocation33_spill] sm:$0xff] %v11101_v53  ;;  %14431 = vst [vmem:[#allocation190_spill] sm:$0xff] %v11107_v4  ;;  %v11115_v34 = vmul.f32 %v14432_v15, %v14311_v0  ;;  %v11135_v56 = vsel %vm717_vm10, %v14438_v44, %v3482_v47  ;;  %v11147_v5 = vmul.f32 %v10787_v10, %v14441_v59 }
 0x43e   : > { %14434 = vst [vmem:[#allocation167_spill] sm:$0xff] %v11120_v3  ;;  %14436 = vst [vmem:[#allocation183_spill] sm:$0xff] %v11126_v22  ;;  %v3013_v3 = vadd.f32 %v3002_v8, %v14440_v51  ;;  %v11153_v31 = vmul.f32 %v10804_v16, %v14441_v59  ;;  %v5161_v60 = vmul.f32 %v11111_v42, %v14245_v55  ;;  %v14442_v8 = vld [vmem:[#allocation146_spill] sm:$0xff]  ;;  %v14446_v51 = vrot.slane %v11020_v41, 1 }
 0x43f   : > { %14439 = vst [vmem:[#allocation176_spill] sm:$0xff] %v11135_v56  ;;  %v3519_v56 = vrot.slane %v3506_v36, 1  ;;  %v3039_v40 = vadd.f32 %v3028_v13, %v14442_v8  ;;  %v3014_v10 = vadd.f32 %v3004_v62, %v14443_v27  ;;  %v5162_v49 = vmul.f32 %v11111_v42, %v14228_v2  ;;  %v14444_v36 = vld [vmem:[#allocation57_spill] sm:$0xff]  ;;  %v14445_v16 = vld [vmem:[#allocation186_spill] sm:$0xff] }
 0x440   : > { %v3080_v44 = vpop.permute.xlu0 %3079  ;;  %v3056_v47 = vpop.permute.xlu1 %3055  ;;  %v3065_v15 = vadd.f32 %v3054_v26, %v14444_v36  ;;  %4582 = vrot.lane.b32.xlu0 %v14445_v16, %s6047_s27  ;;  %v3543_v27 = vmul.f32 %v14171_v33, %v10096_v39  ;;  %v13161_v62 = vrot.slane %v11147_v5, 2  ;;  %v14448_v8 = vld [vmem:[#allocation62_spill] sm:$0xff]  ;;  %v11184_v45 = vmul.f32 %v10878_v21, %v14441_v59 }
 0x441   : > { %v11172_v13 = vsel %vm717_vm10, %v14446_v51, %v3519_v56  ;;  %v3040_v28 = vadd.f32 %v3030_v35, %v14448_v8  ;;  %v11179_v26 = vadd.f32 %v3080_v44, %v14449_v17  ;;  %v14450_v36 = vld [vmem:[#allocation66_spill] sm:$0xff]  ;;  %v14451_v33 = vrot.slane %v10829_v14, 2  ;;  %v14453_v8 = vld [vmem:[#allocation191_spill] sm:$0xff] }
 0x442   : > { %14447 = vst [vmem:[#allocation72_spill] sm:$0xff] %v11172_v13  ;;  %v11187_v41 = vadd.f32 %v3056_v47, %v14450_v36  ;;  %v3556_v13 = vrot.slane %v3543_v27, 1  ;;  %v11198_v17 = vmul.f32 %v10962_v46, %v14441_v59  ;;  %v14454_v47 = vrot.slane %v11153_v31, 2 }
 0x443   : > { %v11194_v35 = vsel %vm1130_vm11, %v14451_v33, %v13161_v62  ;;  %v14455_v36 = vrot.slane %v10848_v61, 2  ;;  %v13162_v14 = vrot.slane %v11184_v45, 2  ;;  %v14457_v33 = vld [vmem:[#allocation152_spill] sm:$0xff]  ;;  %v5171_v62 = vrot.slane %v5161_v60, 2 }
 0x444   : > { %v3106_v56 = vpop.permute.xlu0 %3105  ;;  %v3082_v51 = vpop.permute.xlu1 %3081  ;;  %14452 = vst [vmem:[#allocation169_spill] sm:$0xff] %v11194_v35  ;;  %4619 = vrot.lane.b32.xlu0 %v14457_v33, %s6047_s27  ;;  %v13163_v61 = vrot.slane %v11198_v17, 2  ;;  %v14461_v33 = vrot.slane %v10955_v54, 2  ;;  %v5173_v54 = vrot.slane %v5162_v49, 2  ;;  %v5198_v60 = vmul.f32 %v11141_v25, %v14245_v55  ;;  %v14467_v35 = vld [vmem:[#allocation45_spill] sm:$0xff] }
 0x445   : > { %v3117_v44 = vadd.f32 %v3106_v56, %v3013_v3  ;;  %v11201_v16 = vadd.f32 %v3082_v51, %v14453_v8  ;;  %v11208_v27 = vsel %vm1130_vm11, %v14455_v36, %v14454_v47  ;;  %v14458_v3 = vrot.slane %v11046_v57, 1  ;;  %v14460_v47 = vld [vmem:[#allocation180_spill] sm:$0xff]  ;;  %4621 = vrot.lane.b32.xlu1 %v14467_v35, %s6047_s27  ;;  %v14531_v57 = vld [vmem:[#allocation151_spill] sm:$0xff] }
 0x446   : > { %14456 = vst [vmem:[#allocation50_spill] sm:$0xff] %v11208_v27  ;;  %v3580_v51 = vmul.f32 %v14173_v50, %v10096_v39  ;;  %v5170_v8 = vrot.slane %v5160_v6, 2  ;;  %v11231_v24 = vsel %vm1130_vm11, %v14461_v33, %v13162_v14 }
 0x447   : > { %v11218_v56 = vsel %vm717_vm10, %v14458_v3, %v3556_v13  ;;  %v11224_v36 = vadd.f32 %v14460_v47, %v3117_v44  ;;  %14462 = vst [vmem:[#allocation179_spill] sm:$0xff] %v11231_v24  ;;  %v11235_v13 = vmul.f32 %v11111_v42, %v14441_v59  ;;  %v14463_v44 = vrot.slane %v10977_v30, 2 }
 0x448   : > { %14459 = vst [vmem:[#allocation73_spill] sm:$0xff] %v11218_v56  ;;  %v3132_v50 = vpop.permute.xlu0 %3131  ;;  %v3108_v3 = vpop.permute.xlu1 %3107  ;;  %v3593_v6 = vrot.slane %v3580_v51, 1  ;;  %v11249_v24 = vsel %vm1130_vm11, %v5170_v8, %v5171_v62  ;;  %v14466_v51 = vld [vmem:[#allocation193_spill] sm:$0xff]  ;;  %v14468_v30 = vrot.slane %v11050_v23, 1  ;;  %v5207_v8 = vrot.slane %v5197_v11, 2 }
 0x449   : > { %v11244_v47 = vsel %vm1130_vm11, %v14463_v44, %v13163_v61  ;;  %v3143_v33 = vadd.f32 %v3132_v50, %v3039_v40  ;;  %v3118_v14 = vadd.f32 %v3108_v3, %v3014_v10  ;;  %14465 = vst [vmem:[#allocation30_spill] sm:$0xff] %v11249_v24  ;;  %v13164_v27 = vrot.slane %v11235_v13, 2  ;;  %4656 = vrot.lane.b32.xlu0 %v14466_v51, %s6047_s27  ;;  %v14471_v50 = vld [vmem:[#allocation181_spill] sm:$0xff]  ;;  %v14472_v44 = vld [vmem:[#allocation182_spill] sm:$0xff] }
 0x44a   : > { %14464 = vst [vmem:[#allocation31_spill] sm:$0xff] %v11244_v47  ;;  %v11259_v49 = vsel %vm717_vm10, %v14468_v30, %v3593_v6  ;;  %v3733_v40 = vmul.f32 %v14179_v29, %v10096_v39  ;;  %v11264_v10 = vsel %vm1130_vm11, %v5171_v62, %v5173_v54  ;;  %v5208_v6 = vrot.slane %v5198_v60, 2  ;;  %v14475_v62 = vld [vmem:[#allocation88_spill] sm:$0xff] }
 0x44b   : > { %14469 = vst [vmem:[#allocation127_spill] sm:$0xff] %v11259_v49  ;;  %14470 = vst [vmem:[#allocation185_spill] sm:$0xff] %v11264_v10  ;;  %v11267_v3 = vadd.f32 %v14471_v50, %v3143_v33  ;;  %v11270_v51 = vadd.f32 %v14472_v44, %v3118_v14  ;;  %v11275_v35 = vsel %vm1130_vm11, %v5173_v54, %v13164_v27  ;;  %v14474_v29 = vrot.slane %v11115_v34, 2 }
 0x44c   : > { %14473 = vst [vmem:[#allocation163_spill] sm:$0xff] %v11275_v35  ;;  %v3158_v30 = vpop.permute.xlu0 %3157  ;;  %v3134_v61 = vpop.permute.xlu1 %3133  ;;  %v3746_v24 = vrot.slane %v3733_v40, 2  ;;  %v14476_v10 = vrot.slane %v14475_v62, 2  ;;  %v5199_v14 = vmul.f32 %v11141_v25, %v14228_v2  ;;  %v11288_v33 = vmul.f32 %v11141_v25, %v14441_v59  ;;  %v14479_v40 = vld [vmem:[#allocation105_spill] sm:$0xff] }
 0x44d   : > { %v3169_v54 = vadd.f32 %v3158_v30, %v3065_v15  ;;  %v3144_v60 = vadd.f32 %v3134_v61, %v3040_v28  ;;  %v11291_v50 = vsel %vm1130_vm11, %v5207_v8, %v5208_v6  ;;  %v11295_v44 = vmul.f32 %v14479_v40, %v14311_v0  ;;  %v14484_v8 = vld [vmem:[#allocation184_spill] sm:$0xff] }
 0x44e   : > { %v11282_v11 = vsel %vm1130_vm11, %v14476_v10, %v14474_v29  ;;  %14478 = vst [vmem:[#allocation146_spill] sm:$0xff] %v11291_v50  ;;  %v14480_v10 = vld [vmem:[#allocation199_spill] sm:$0xff]  ;;  %v14481_v29 = vld [vmem:[#allocation34_spill] sm:$0xff]  ;;  %v14482_v62 = vrot.slane %v11061_v63, 2  ;;  %v3770_v28 = vmul.f32 %v14181_v18, %v10096_v39  ;;  %v5210_v15 = vrot.slane %v5199_v14, 2  ;;  %v14486_v50 = vld [vmem:[#allocation188_spill] sm:$0xff] }
 0x44f   : > { %14477 = vst [vmem:[#allocation81_spill] sm:$0xff] %v11282_v11  ;;  %4693 = vrot.lane.b32.xlu0 %v14480_v10, %s6047_s27  ;;  %4658 = vrot.lane.b32.xlu1 %v14481_v29, %s6047_s27  ;;  %v13165_v61 = vrot.slane %v11288_v33, 2  ;;  %v11310_v30 = vadd.f32 %v14484_v8, %v3169_v54  ;;  %v11313_v35 = vadd.f32 %v14486_v50, %v3144_v60  ;;  %v13166_v10 = vrot.slane %v11295_v44, 2 }
 0x450   : > { %v11304_v27 = vsel %vm1130_vm11, %v14482_v62, %v3746_v24  ;;  %v11317_v29 = vstv %s11237_s23  ;;  %v3184_v11 = vpop.permute.xlu0 %3183  ;;  %v3160_v47 = vpop.permute.xlu1 %3159  ;;  %v3783_v24 = vrot.slane %v3770_v28, 2  ;;  %v11325_v14 = vsel %vm1130_vm11, %v5208_v6, %v5210_v15  ;;  %v14490_v62 = vld [vmem:[#allocation126_spill] sm:$0xff]  ;;  %v14493_v6 = vld [vmem:[#allocation56_spill] sm:$0xff] }
 0x451   : > { %14483 = vst [vmem:[#allocation164_spill] sm:$0xff] %v11304_v27  ;;  %14485 = vst [vmem:[#allocation57_spill] sm:$0xff] %v11310_v30  ;;  %v11322_v18 = vsel %vm1130_vm11, %v5210_v15, %v13165_v61  ;;  %v5234_v54 = vmul.f32 %v11317_v29, %v14244_v32  ;;  %v3195_v60 = vadd.f32 %v3184_v11, %v11179_v26  ;;  %v14491_v8 = vrot.slane %v14490_v62, 2  ;;  %v14494_v15 = vld [vmem:[#allocation129_spill] sm:$0xff]  ;;  %v14497_v62 = vld [vmem:[#allocation79_spill] sm:$0xff] }
 0x452   : > { %14487 = vst [vmem:[#allocation186_spill] sm:$0xff] %v11313_v35  ;;  %14488 = vst [vmem:[#allocation62_spill] sm:$0xff] %v11322_v18  ;;  %v3170_v50 = vadd.f32 %v3160_v47, %v11187_v41  ;;  %v5235_v61 = vmul.f32 %v11317_v29, %v14245_v55  ;;  %v14495_v26 = vrot.slane %v11065_v20, 2  ;;  %v3807_v47 = vmul.f32 %v14184_v1, %v10096_v39  ;;  %v14541_v35 = vld [vmem:[#allocation174_spill] sm:$0xff] }
 0x453   : > { %14489 = vst [vmem:[#allocation86_spill] sm:$0xff] %v11325_v14  ;;  %v11336_v28 = vsel %vm1130_vm11, %v14491_v8, %v13166_v10  ;;  %4730 = vrot.lane.b32.xlu0 %v14493_v6, %s6048_s19  ;;  %4695 = vrot.lane.b32.xlu1 %v14494_v15, %s6047_s27  ;;  %v5244_v11 = vrot.slane %v5234_v54, 2  ;;  %v11353_v8 = vmul.f32 %v14497_v62, %v14311_v0  ;;  %v14498_v10 = vld [vmem:[#allocation194_spill] sm:$0xff]  ;;  %v14500_v14 = vld [vmem:[#allocation195_spill] sm:$0xff]  ;;  %v14508_v49 = vrot.slane %v11074_v37, 2 }
 0x454   : > { %14492 = vst [vmem:[#allocation66_spill] sm:$0xff] %v11336_v28  ;;  %v11347_v41 = vsel %vm1130_vm11, %v14495_v26, %v3783_v24  ;;  %v11358_v6 = vadd.f32 %v14498_v10, %v3195_v60  ;;  %v11361_v15 = vadd.f32 %v14500_v14, %v3170_v50  ;;  %v5245_v18 = vrot.slane %v5235_v61, 2  ;;  %v11365_v26 = vpop.permute.xlu0 %4247  ;;  %v3186_v1 = vpop.permute.xlu1 %3185  ;;  %v14504_v10 = vld [vmem:[#allocation90_spill] sm:$0xff]  ;;  %v14507_v28 = vld [vmem:[#allocation165_spill] sm:$0xff] }
 0x455   : > { %14496 = vst [vmem:[#allocation191_spill] sm:$0xff] %v11347_v41  ;;  %v5236_v24 = vmul.f32 %v11317_v29, %v14228_v2  ;;  %14502 = vst [vmem:[#allocation193_spill] sm:$0xff] %v11365_v26  ;;  %v3820_v54 = vrot.slane %v3807_v47, 2  ;;  %v11370_v41 = vmul.f32 %v11317_v29, %v14441_v59  ;;  %v11374_v60 = vmul.f32 %v14504_v10, %v14311_v0  ;;  %v14506_v47 = vld [vmem:[#allocation58_spill] sm:$0xff] }
 0x456   : > { %14499 = vst [vmem:[#allocation152_spill] sm:$0xff] %v11358_v6  ;;  %14501 = vst [vmem:[#allocation180_spill] sm:$0xff] %v11361_v15  ;;  %v3196_v14 = vadd.f32 %v3186_v1, %v11201_v16  ;;  %v11379_v50 = vsel %vm1130_vm11, %v5244_v11, %v5245_v18  ;;  %v3844_v16 = vmul.f32 %v14423_v19, %v10096_v39  ;;  %v14510_v1 = vrot.slane %v11353_v8, 2  ;;  %v14511_v61 = vld [vmem:[#allocation110_spill] sm:$0xff] }
 0x457   : > { %14503 = vst [vmem:[#allocation45_spill] sm:$0xff] %v11370_v41  ;;  %14505 = vst [vmem:[#allocation181_spill] sm:$0xff] %v11379_v50  ;;  %v5247_v27 = vrot.slane %v5236_v24, 2  ;;  %4767 = vrot.lane.b32.xlu0 %v14506_v47, %s6048_s19  ;;  %4732 = vrot.lane.b32.xlu1 %v14507_v28, %s6048_s19  ;;  %v11388_v20 = vsel %vm1130_vm11, %v14508_v49, %v3820_v54  ;;  %v14512_v11 = vrot.slane %v14511_v61, 2  ;;  %v14514_v50 = vld [vmem:[#allocation32_spill] sm:$0xff]  ;;  %v14516_v28 = vld [vmem:[#allocation137_spill] sm:$0xff] }
 0x458   : > { %14509 = vst [vmem:[#allocation182_spill] sm:$0xff] %v11388_v20  ;;  %v11401_v56 = vadd.f32 %v14514_v50, %v3196_v14  ;;  %v11405_v37 = vmul.f32 %v14516_v28, %v14441_v59  ;;  %v13172_v19 = vrot.slane %v11374_v60, 2  ;;  %v11411_v54 = vpop.permute.xlu0 %4273  ;;  %v11413_v61 = vpop.permute.xlu1 %4249  ;;  %v14523_v14 = vld [vmem:[#allocation187_spill] sm:$0xff]  ;;  %v3234_v6 = vmul.f32 %v14368_v43, %v10096_v39 }
 0x459   : > { %v11397_v24 = vsel %vm1130_vm11, %v14512_v11, %v14510_v1  ;;  %v11408_v49 = vsel %vm1130_vm11, %v5245_v18, %v5247_v27  ;;  %14519 = vst [vmem:[#allocation184_spill] sm:$0xff] %v11411_v54  ;;  %14520 = vst [vmem:[#allocation188_spill] sm:$0xff] %v11413_v61  ;;  %v3857_v1 = vrot.slane %v3844_v16, 2  ;;  %v14521_v11 = vld [vmem:[#allocation148_spill] sm:$0xff]  ;;  %v11421_v50 = vmul.f32 %v14523_v14, %v14441_v59  ;;  %v14530_v16 = vld [vmem:[#allocation141_spill] sm:$0xff] }
 0x45a   : > { %14513 = vst [vmem:[#allocation88_spill] sm:$0xff] %v11397_v24  ;;  %14515 = vst [vmem:[#allocation105_spill] sm:$0xff] %v11401_v56  ;;  %v11417_v47 = vmul.f32 %v14521_v11, %v14441_v59  ;;  %v14525_v24 = vrot.slane %v11370_v41, 2  ;;  %v11437_v23 = vmul.f32 %v14530_v16, %v14441_v59  ;;  %v11441_v61 = vmul.f32 %v14531_v57, %v14441_v59  ;;  %v14532_v54 = vld [vmem:[#allocation55_spill] sm:$0xff] }
 0x45b   : > { %14517 = vst [vmem:[#allocation199_spill] sm:$0xff] %v11405_v37  ;;  %14518 = vst [vmem:[#allocation34_spill] sm:$0xff] %v11408_v49  ;;  %v14527_v49 = vld [vmem:[#allocation103_spill] sm:$0xff]  ;;  %v11445_v26 = vmul.f32 %v14532_v54, %v14441_v59  ;;  %v11463_v56 = vstv %s11355_s26  ;;  %s12603_s26 = scalar_lea.hbm %s12654_s3, %s5648_s6 }
 0x45c   : > { %14522 = vst [vmem:[#allocation126_spill] sm:$0xff] %v11417_v47  ;;  %14524 = vst [vmem:[#allocation56_spill] sm:$0xff] %v11421_v50  ;;  %v11426_v18 = vsel %vm1130_vm11, %v5247_v27, %v14525_v24  ;;  %v14528_v20 = vrot.slane %v14527_v49, 2  ;;  %v14533_v27 = vld [vmem:[#allocation74_spill] sm:$0xff]  ;;  %v14534_v24 = vld [vmem:[#allocation64_spill] sm:$0xff] }
 0x45d   : > { %14526 = vst [vmem:[#allocation129_spill] sm:$0xff] %v11426_v18  ;;  %4804 = vrot.lane.b32.xlu0 %v14533_v27, %s6048_s19  ;;  %4769 = vrot.lane.b32.xlu1 %v14534_v24, %s6048_s19  ;;  %v14537_v18 = vld [vmem:[#allocation37_spill] sm:$0xff]  ;;  %v3918_v27 = vmul.f32 %v14428_v12, %v10096_v39  ;;  %v3955_v24 = vmul.f32 %v14430_v7, %v10096_v39 }
 0x45e   : > { %v11433_v63 = vsel %vm1130_vm11, %v14528_v20, %v13172_v19  ;;  %v14535_v20 = vrot.slane %v11085_v48, 2  ;;  %v3881_v19 = vmul.f32 %v14425_v9, %v10096_v39  ;;  %v3992_v48 = vmul.f32 %v14435_v38, %v10096_v39  ;;  %v11475_v9 = vpop.permute.xlu1 %4275 }
 0x45f   : > { %14529 = vst [vmem:[#allocation79_spill] sm:$0xff] %v11433_v63  ;;  %v11460_v63 = vmul.f32 %v14537_v18, %v14441_v59  ;;  %14540 = vst [vmem:[#allocation90_spill] sm:$0xff] %v11475_v9  ;;  %v3263_v12 = vmul.f32 %v14541_v35, %v10096_v39  ;;  %v3292_v7 = vmul.f32 %v14391_v58, %v10096_v39  ;;  %v3931_v30 = vrot.slane %v3918_v27, 2 }
 0x460   : > { %v11454_v49 = vsel %vm1130_vm11, %v14535_v20, %v3857_v1  ;;  %v14538_v1 = vld [vmem:[#allocation170_spill] sm:$0xff]  ;;  %v3894_v15 = vrot.slane %v3881_v19, 2  ;;  %v3968_v18 = vrot.slane %v3955_v24, 2  ;;  %v4005_v38 = vrot.slane %v3992_v48, 2 }
 0x461   : > { %14536 = vst [vmem:[#allocation194_spill] sm:$0xff] %v11454_v49  ;;  %v3205_v20 = vmul.f32 %v14538_v1, %v10096_v39  ;;  %v11473_v49 = vpop.permute.xlu0 %4299  ;;  %v14542_v1 = vld [vmem:[#allocation78_spill] sm:$0xff]  ;;  %v14544_v19 = vrot.slane %v11089_v52, 2  ;;  %v3247_v9 = vrot.slane %v3234_v6, 1  ;;  %v3276_v35 = vrot.slane %v3263_v12, 1  ;;  %v14552_v6 = vld [vmem:[#allocation69_spill] sm:$0xff] }
 0x462   : > { %14539 = vst [vmem:[#allocation195_spill] sm:$0xff] %v11473_v49  ;;  %4841 = vrot.lane.b32.xlu0 %v14542_v1, %s6048_s19  ;;  %v14543_v49 = vld [vmem:[#allocation157_spill] sm:$0xff]  ;;  %v3305_v41 = vrot.slane %v3292_v7, 1  ;;  %v14546_v58 = vrot.slane %v11101_v53, 2  ;;  %v14548_v27 = vrot.slane %v11107_v4, 2  ;;  %v11516_v1 = vpop.permute.xlu1 %4301 }
 0x463   : > { %v3218_v54 = vrot.slane %v3205_v20, 1  ;;  %4806 = vrot.lane.b32.xlu1 %v14543_v49, %s6048_s19  ;;  %v11490_v43 = vsel %vm1130_vm11, %v14544_v19, %v3894_v15  ;;  %v14550_v49 = vrot.slane %v11126_v22, 2  ;;  %v14553_v20 = vrot.slane %v14552_v6, 1  ;;  %14556 = vst [vmem:[#allocation187_spill] sm:$0xff] %v11516_v1 }
 0x464   : > { %14545 = vst [vmem:[#allocation58_spill] sm:$0xff] %v11490_v43  ;;  %v11497_v48 = vsel %vm1130_vm11, %v14546_v58, %v3931_v30  ;;  %v11502_v24 = vsel %vm1130_vm11, %v14548_v27, %v3968_v18  ;;  %v14557_v30 = vld [vmem:[#allocation14_spill] sm:$0xff]  ;;  %v14614_v43 = vld [vmem:[#allocation77_spill] sm:$0xff] }
 0x465   : > { %14547 = vst [vmem:[#allocation165_spill] sm:$0xff] %v11497_v48  ;;  %14549 = vst [vmem:[#allocation110_spill] sm:$0xff] %v11502_v24  ;;  %v11507_v15 = vsel %vm1130_vm11, %v14550_v49, %v4005_v38  ;;  %v11512_v12 = vsel %vm717_vm10, %v14553_v20, %v3218_v54  ;;  %v11514_v7 = vpop.permute.xlu0 %4325  ;;  %v14558_v19 = vrot.slane %v14557_v30, 1  ;;  %v14560_v18 = vld [vmem:[#allocation118_spill] sm:$0xff]  ;;  %v14566_v54 = vld [vmem:[#allocation108_spill] sm:$0xff]  ;;  %v3704_v30 = vmul.f32 %v14504_v10, %v10096_v39 }
 0x466   : > { %14551 = vst [vmem:[#allocation32_spill] sm:$0xff] %v11507_v15  ;;  %14554 = vst [vmem:[#allocation137_spill] sm:$0xff] %v11512_v12  ;;  %v14561_v27 = vrot.slane %v14560_v18, 1  ;;  %v14563_v38 = vld [vmem:[#allocation138_spill] sm:$0xff]  ;;  %v3617_v20 = vmul.f32 %v14566_v54, %v10096_v39  ;;  %v3646_v12 = vmul.f32 %v14479_v40, %v10096_v39  ;;  %v14601_v15 = vld [vmem:[#allocation28_spill] sm:$0xff] }
 0x467   : > { %14555 = vst [vmem:[#allocation148_spill] sm:$0xff] %v11514_v7  ;;  %v11521_v58 = vsel %vm717_vm10, %v14558_v19, %v3247_v9  ;;  %v14564_v49 = vrot.slane %v14563_v38, 1  ;;  %v3675_v9 = vmul.f32 %v14497_v62, %v10096_v39  ;;  %v14567_v19 = vld [vmem:[#allocation197_spill] sm:$0xff]  ;;  %v3717_v54 = vrot.slane %v3704_v30, 2  ;;  %v14569_v39 = vld [vmem:[#allocation128_spill] sm:$0xff] }
 0x468   : > { %14559 = vst [vmem:[#allocation103_spill] sm:$0xff] %v11521_v58  ;;  %v11526_v24 = vsel %vm717_vm10, %v14561_v27, %v3276_v35  ;;  %v13175_v35 = vrot.slane %v11437_v23, 1  ;;  %4843 = vrot.lane.b32.xlu1 %v14567_v19, %s6048_s19  ;;  %v3630_v18 = vrot.slane %v3617_v20, 2  ;;  %v13176_v27 = vrot.slane %v11441_v61, 1  ;;  %v11558_v20 = vpop.permute.xlu1 %4327  ;;  %v14644_v7 = vld [vmem:[#allocation104_spill] sm:$0xff] }
 0x469   : > { %14562 = vst [vmem:[#allocation141_spill] sm:$0xff] %v11526_v24  ;;  %v11531_v6 = vsel %vm717_vm10, %v14564_v49, %v3305_v41  ;;  %v14568_v41 = vld [vmem:[#allocation80_spill] sm:$0xff]  ;;  %v3659_v49 = vrot.slane %v3646_v12, 2  ;;  %v3688_v62 = vrot.slane %v3675_v9, 2  ;;  %v14570_v10 = vrot.slane %v14569_v39, 1  ;;  %v11556_v19 = vpop.permute.xlu0 %4351  ;;  %14573 = vst [vmem:[#allocation170_spill] sm:$0xff] %v11558_v20 }
 0x46a   : > { %14565 = vst [vmem:[#allocation151_spill] sm:$0xff] %v11531_v6  ;;  %3005 = vrot.lane.b32.xlu0 %v14568_v41, %s6047_s27  ;;  %14572 = vst [vmem:[#allocation64_spill] sm:$0xff] %v11556_v19  ;;  %v14574_v41 = vrot.slane %v11115_v34, 2  ;;  %v14576_v12 = vld [vmem:[#allocation35_spill] sm:$0xff]  ;;  %v14579_v39 = vrot.slane %v11445_v26, 1  ;;  %v14584_v34 = vld [vmem:[#allocation54_spill] sm:$0xff] }
 0x46b   : > { %v11554_v6 = vsel %vm717_vm10, %v14570_v10, %v13175_v35  ;;  %v14577_v9 = vrot.slane %v14576_v12, 1  ;;  %v14580_v10 = vld [vmem:[#allocation161_spill] sm:$0xff]  ;;  %v14585_v24 = vrot.slane %v14584_v34, 1  ;;  %v14594_v34 = vld [vmem:[#allocation24_spill] sm:$0xff] }
 0x46c   : > { %14571 = vst [vmem:[#allocation74_spill] sm:$0xff] %v11554_v6  ;;  %v11563_v38 = vsel %vm1130_vm11, %v14574_v41, %v3630_v18  ;;  %v14581_v35 = vrot.slane %v14580_v10, 1  ;;  %v14583_v6 = vrot.slane %v11460_v63, 1  ;;  %v14587_v41 = vrot.slane %v11295_v44, 2  ;;  %v14595_v44 = vld [vmem:[#allocation39_spill] sm:$0xff] }
 0x46d   : > { %14575 = vst [vmem:[#allocation174_spill] sm:$0xff] %v11563_v38  ;;  %v11570_v30 = vsel %vm717_vm10, %v14577_v9, %v13176_v27  ;;  %v14589_v9 = vrot.slane %v11353_v8, 2  ;;  %3007 = vrot.lane.b32.xlu1 %v14595_v44, %s6047_s27  ;;  %v11630_v44 = vpop.permute.xlu1 %4353  ;;  %v14602_v27 = vld [vmem:[#allocation21_spill] sm:$0xff] }
 0x46e   : > { %14578 = vst [vmem:[#allocation78_spill] sm:$0xff] %v11570_v30  ;;  %v11577_v40 = vsel %vm717_vm10, %v14581_v35, %v14579_v39  ;;  %v11584_v18 = vsel %vm717_vm10, %v14585_v24, %v14583_v6  ;;  %v11591_v12 = vsel %vm1130_vm11, %v14587_v41, %v3659_v49  ;;  %v14591_v35 = vrot.slane %v11374_v60, 2  ;;  %v14593_v24 = vld [vmem:[#allocation147_spill] sm:$0xff]  ;;  %3031 = vrot.lane.b32.xlu0 %v14594_v34, %s6047_s27  ;;  %v11628_v34 = vpop.permute.xlu0 %4377 }
 0x46f   : > { %14582 = vst [vmem:[#allocation157_spill] sm:$0xff] %v11577_v40  ;;  %14586 = vst [vmem:[#allocation69_spill] sm:$0xff] %v11584_v18  ;;  %v11596_v10 = vsel %vm1130_vm11, %v14589_v9, %v3688_v62  ;;  %v4859_v6 = vmul.f32 %v14593_v24, %v14244_v32  ;;  %v11611_v8 = vmul.f32 %v14593_v24, %v14441_v59  ;;  %v11618_v62 = vstv %s11492_s7  ;;  %v14598_v30 = vld [vmem:[#allocation19_spill] sm:$0xff] }
 0x470   : > { %14588 = vst [vmem:[#allocation14_spill] sm:$0xff] %v11591_v12  ;;  %14590 = vst [vmem:[#allocation118_spill] sm:$0xff] %v11596_v10  ;;  %v11601_v39 = vsel %vm1130_vm11, %v14591_v35, %v3717_v54  ;;  %v4888_v49 = vmul.f32 %v11463_v56, %v14244_v32  ;;  %v4889_v60 = vmul.f32 %v11463_v56, %v14245_v55 }
 0x471   : > { %14592 = vst [vmem:[#allocation138_spill] sm:$0xff] %v11601_v39  ;;  %v4869_v54 = vrot.slane %v4859_v6, 2  ;;  %v4890_v41 = vmul.f32 %v11463_v56, %v14228_v2  ;;  %v11624_v9 = vmul.f32 %v11463_v56, %v14441_v59  ;;  %v4917_v35 = vmul.f32 %v11618_v62, %v14244_v32  ;;  %14596 = vst [vmem:[#allocation108_spill] sm:$0xff] %v11628_v34 }
 0x472   : > { %14597 = vst [vmem:[#allocation197_spill] sm:$0xff] %v11630_v44  ;;  %v4898_v18 = vrot.slane %v4888_v49, 2  ;;  %v4899_v40 = vrot.slane %v4889_v60, 2  ;;  %v4918_v6 = vmul.f32 %v11618_v62, %v14245_v55  ;;  %v14599_v39 = vrot.slane %v14598_v30, 2  ;;  %3057 = vrot.lane.b32.xlu0 %v14601_v15, %s6047_s27  ;;  %3033 = vrot.lane.b32.xlu1 %v14602_v27, %s6047_s27  ;;  %v14603_v49 = vld [vmem:[#allocation125_spill] sm:$0xff] }
 0x473   : > { %v4901_v12 = vrot.slane %v4890_v41, 2  ;;  %v13178_v38 = vrot.slane %v11624_v9, 2  ;;  %v4927_v58 = vrot.slane %v4917_v35, 2  ;;  %v4567_v60 = vmul.f32 %v14516_v28, %v14603_v49  ;;  %v14605_v30 = vld [vmem:[#allocation17_spill] sm:$0xff] }
 0x474   : > { %v11638_v10 = vsel %vm1130_vm11, %v4869_v54, %v14599_v39  ;;  %v14604_v48 = vrot.slane %v11611_v8, 2  ;;  %v14606_v22 = vrot.slane %v14605_v30, 2  ;;  %v11655_v54 = vsel %vm1130_vm11, %v4898_v18, %v4899_v40  ;;  %v14615_v18 = vld [vmem:[#allocation196_spill] sm:$0xff] }
 0x475   : > { %14600 = vst [vmem:[#allocation80_spill] sm:$0xff] %v11638_v10  ;;  %14608 = vst [vmem:[#allocation35_spill] sm:$0xff] %v11655_v54  ;;  %v4928_v41 = vrot.slane %v4918_v6, 2  ;;  %v11660_v15 = vsel %vm1130_vm11, %v4901_v12, %v13178_v38  ;;  %v11663_v27 = vsel %vm1130_vm11, %v4899_v40, %v4901_v12  ;;  %v4919_v28 = vmul.f32 %v11618_v62, %v14228_v2  ;;  %v14641_v10 = vld [vmem:[#allocation177_spill] sm:$0xff] }
 0x476   : > { %v11652_v39 = vsel %vm1130_vm11, %v14606_v22, %v14604_v48  ;;  %14609 = vst [vmem:[#allocation161_spill] sm:$0xff] %v11660_v15  ;;  %14610 = vst [vmem:[#allocation54_spill] sm:$0xff] %v11663_v27  ;;  %v11669_v35 = vmul.f32 %v11618_v62, %v14441_v59  ;;  %v11671_v22 = vpop.permute.xlu0 %4403  ;;  %v11673_v48 = vpop.permute.xlu1 %4379  ;;  %v4580_v6 = vrot.slane %v4567_v60, 1  ;;  %v11680_v38 = vstv %s11586_s28  ;;  %3083 = vrot.lane.b32.xlu0 %v14614_v43, %s6047_s27  ;;  %s6049_s28 = smov [#allocation9]  }
 0x477   : > { %14607 = vst [vmem:[#allocation128_spill] sm:$0xff] %v11652_v39  ;;  %14611 = vst [vmem:[#allocation147_spill] sm:$0xff] %v11671_v22  ;;  %v11677_v30 = vsel %vm1130_vm11, %v4927_v58, %v4928_v41  ;;  %v4930_v40 = vrot.slane %v4919_v28, 2  ;;  %v4946_v15 = vmul.f32 %v11680_v38, %v14244_v32  ;;  %v4947_v39 = vmul.f32 %v11680_v38, %v14245_v55 }
 0x478   : > { %14612 = vst [vmem:[#allocation24_spill] sm:$0xff] %v11673_v48  ;;  %14613 = vst [vmem:[#allocation39_spill] sm:$0xff] %v11677_v30  ;;  %3059 = vrot.lane.b32.xlu1 %v14615_v18, %s6047_s27  ;;  %v14616_v58 = vrot.slane %v11405_v37, 1  ;;  %v4604_v28 = vmul.f32 %v14521_v11, %v14603_v49  ;;  %v4948_v12 = vmul.f32 %v11680_v38, %v14228_v2  ;;  %v14618_v4 = vrot.slane %v11669_v35, 2  ;;  %v14645_v48 = vld [vmem:[#allocation38_spill] sm:$0xff] }
 0x479   : > { %v11706_v43 = vsel %vm1130_vm11, %v4928_v41, %v4930_v40  ;;  %v4956_v18 = vrot.slane %v4946_v15, 2  ;;  %v4957_v27 = vrot.slane %v4947_v39, 2  ;;  %v14624_v41 = vld [vmem:[#allocation97_spill] sm:$0xff]  ;;  %v14625_v39 = vld [vmem:[#allocation87_spill] sm:$0xff]  ;;  %v11796_v22 = vmul.f32 %v14645_v48, %v14441_v59 }
 0x47a   : > { %v11694_v60 = vsel %vm717_vm10, %v14616_v58, %v4580_v6  ;;  %v11703_v30 = vsel %vm1130_vm11, %v4930_v40, %v14618_v4  ;;  %14620 = vst [vmem:[#allocation21_spill] sm:$0xff] %v11706_v43  ;;  %v11708_v37 = vpop.permute.xlu0 %4429  ;;  %v11710_v6 = vpop.permute.xlu1 %4405  ;;  %v13183_v58 = vrot.slane %v11417_v47, 1  ;;  %v4617_v11 = vrot.slane %v4604_v28, 1  ;;  %3109 = vrot.lane.b32.xlu0 %v14624_v41, %s6048_s19  ;;  %v14630_v41 = vld [vmem:[#allocation124_spill] sm:$0xff] }
 0x47b   : > { %14617 = vst [vmem:[#allocation19_spill] sm:$0xff] %v11694_v60  ;;  %14619 = vst [vmem:[#allocation28_spill] sm:$0xff] %v11703_v30  ;;  %v11715_v60 = vmul.f32 %v11680_v38, %v14441_v59  ;;  %v4959_v53 = vrot.slane %v4948_v12, 2  ;;  %v11718_v4 = vsel %vm1130_vm11, %v4956_v18, %v4957_v27  ;;  %v4641_v40 = vmul.f32 %v14523_v14, %v14603_v49  ;;  %v14628_v18 = vld [vmem:[#allocation142_spill] sm:$0xff]  ;;  %v14629_v30 = vld [vmem:[#allocation173_spill] sm:$0xff] }
 0x47c   : > { %14621 = vst [vmem:[#allocation125_spill] sm:$0xff] %v11708_v37  ;;  %14622 = vst [vmem:[#allocation17_spill] sm:$0xff] %v11710_v6  ;;  %3085 = vrot.lane.b32.xlu1 %v14625_v39, %s6047_s27  ;;  %v11727_v15 = vsel %vm717_vm10, %v13183_v58, %v4617_v11  ;;  %v3100_v43 = vmul.f32 %v14630_v41, %v14311_v0  ;;  %v13186_v11 = vrot.slane %v11421_v50, 1  ;;  %v14632_v58 = vld [vmem:[#allocation48_spill] sm:$0xff]  ;;  %v14638_v41 = vld [vmem:[#allocation67_spill] sm:$0xff] }
 0x47d   : > { %14623 = vst [vmem:[#allocation77_spill] sm:$0xff] %v11718_v4  ;;  %14626 = vst [vmem:[#allocation196_spill] sm:$0xff] %v11727_v15  ;;  %v11733_v12 = vsel %vm1130_vm11, %v4957_v27, %v4959_v53  ;;  %v3125_v4 = vmul.f32 %v14629_v30, %v14628_v18  ;;  %v11746_v14 = vmul.f32 %v14632_v58, %v14441_v59  ;;  %v4654_v28 = vrot.slane %v4641_v40, 1 }
 0x47e   : > { %14627 = vst [vmem:[#allocation97_spill] sm:$0xff] %v11733_v12  ;;  %v11739_v39 = vpop.permute.xlu0 %3336  ;;  %v11741_v47 = vpop.permute.xlu1 %4431  ;;  %v14634_v27 = vrot.slane %v11715_v60, 2  ;;  %v14636_v12 = vld [vmem:[#allocation47_spill] sm:$0xff]  ;;  %v11759_v52 = vmul.f32 %v14638_v41, %v14441_v59 }
 0x47f   : > { %14631 = vst [vmem:[#allocation87_spill] sm:$0xff] %v11741_v47  ;;  %14633 = vst [vmem:[#allocation142_spill] sm:$0xff] %v11746_v14  ;;  %v11755_v54 = vmul.f32 %v14636_v12, %v14441_v59  ;;  %3135 = vrot.lane.b32.xlu0 %v3125_v4, %s6048_s19  ;;  %v11766_v40 = vsel %vm717_vm10, %v13186_v11, %v4654_v28  ;;  %v3151_v47 = vmul.f32 %v14641_v10, %v14628_v18 }
 0x480   : > { %v11751_v15 = vsel %vm1130_vm11, %v4959_v53, %v14634_v27  ;;  %3111 = vrot.lane.b32.xlu1 %v3100_v43, %s6048_s19  ;;  %14639 = vst [vmem:[#allocation48_spill] sm:$0xff] %v11766_v40  ;;  %v4678_v53 = vmul.f32 %v14632_v58, %v14603_v49  ;;  %v14640_v27 = vld [vmem:[#allocation59_spill] sm:$0xff]  ;;  %v3126_v4 = vmul.f32 %v14629_v30, %v14311_v0  ;;  %v14642_v43 = vld [vmem:[#allocation178_spill] sm:$0xff]  ;;  %v14643_v58 = vld [vmem:[#allocation189_spill] sm:$0xff]  ;;  %v13188_v40 = vrot.slane %v11746_v14, 1 }
 0x481   : > { %14635 = vst [vmem:[#allocation173_spill] sm:$0xff] %v11751_v15  ;;  %14637 = vst [vmem:[#allocation124_spill] sm:$0xff] %v11755_v54  ;;  %v11772_v15 = vmul.f32 %v14640_v27, %v14441_v59  ;;  %v3177_v20 = vmul.f32 %v14642_v43, %v14628_v18  ;;  %v3152_v28 = vmul.f32 %v14641_v10, %v14311_v0 }
 0x482   : > { %v3374_v50 = vpop.permute.xlu0 %3373  ;;  %v11780_v6 = vpop.permute.xlu1 %3338  ;;  %v4241_v11 = vmul.f32 %v14643_v58, %v14228_v2  ;;  %v4691_v37 = vrot.slane %v4678_v53, 1  ;;  %v3178_v1 = vmul.f32 %v14642_v43, %v14311_v0  ;;  %v11792_v18 = vmul.f32 %v14644_v7, %v14441_v59  ;;  %v14647_v53 = vld [vmem:[#allocation145_spill] sm:$0xff] }
 0x483   : > { %3161 = vrot.lane.b32.xlu0 %v3151_v47, %s6048_s19  ;;  %v4715_v43 = vmul.f32 %v14636_v12, %v14603_v49  ;;  %v4752_v30 = vmul.f32 %v14638_v41, %v14603_v49  ;;  %v4789_v47 = vmul.f32 %v14640_v27, %v14603_v49  ;;  %v4979_v10 = vmul.f32 %v14645_v48, %v14603_v49 }
 0x484   : > { %3137 = vrot.lane.b32.xlu1 %v3126_v4, %s6048_s19  ;;  %v11804_v0 = vsel %vm717_vm10, %v13188_v40, %v4691_v37  ;;  %v4826_v4 = vmul.f32 %v14644_v7, %v14603_v49  ;;  %v5016_v12 = vmul.f32 %v14647_v53, %v14603_v49  ;;  %v5090_v27 = vmul.f32 %v10878_v21, %v14603_v49 }
 0x485   : > { %14646 = vst [vmem:[#allocation47_spill] sm:$0xff] %v11804_v0  ;;  %v4728_v40 = vrot.slane %v4715_v43, 1  ;;  %v14648_v0 = vld [vmem:[#allocation107_spill] sm:$0xff]  ;;  %v4765_v7 = vrot.slane %v4752_v30, 1  ;;  %v4802_v34 = vrot.slane %v4789_v47, 1  ;;  %v14649_v43 = vrot.slane %v11755_v54, 1 }
 0x486   : > { %v11817_v14 = vpop.permute.xlu0 %3410  ;;  %v11819_v37 = vpop.permute.xlu1 %3375  ;;  %v5053_v41 = vmul.f32 %v14648_v0, %v14603_v49  ;;  %v4839_v55 = vrot.slane %v4826_v4, 1  ;;  %v4992_v0 = vrot.slane %v4979_v10, 2  ;;  %v5029_v32 = vrot.slane %v5016_v12, 2 }
 0x487   : > { %3187 = vrot.lane.b32.xlu0 %v3177_v20, %s6048_s19  ;;  %v11834_v53 = vsel %vm717_vm10, %v14649_v43, %v4728_v40  ;;  %v14650_v21 = vrot.slane %v11759_v52, 1  ;;  %v14651_v30 = vrot.slane %v11772_v15, 1  ;;  %v14652_v40 = vrot.slane %v11792_v18, 1 }
 0x488   : > { %3163 = vrot.lane.b32.xlu1 %v3152_v28, %s6048_s19  ;;  %v5066_v20 = vrot.slane %v5053_v41, 2  ;;  %v5103_v28 = vrot.slane %v5090_v27, 2  ;;  %v14653_v4 = vrot.slane %v11796_v22, 2  ;;  %v5127_v41 = vmul.f32 %v10962_v46, %v14603_v49 }
 0x489   : > { %v11839_v44 = vsel %vm717_vm10, %v14650_v21, %v4765_v7  ;;  %v11844_v47 = vsel %vm717_vm10, %v14651_v30, %v4802_v34  ;;  %v11853_v10 = vsel %vm717_vm10, %v14652_v40, %v4839_v55  ;;  %v14654_v7 = vrot.slane %v11147_v5, 2  ;;  %v14657_v30 = vld [vmem:[#allocation91_spill] sm:$0xff] }
 0x48a   : > { %v11846_v19 = vpop.permute.xlu0 %3447  ;;  %v11848_v54 = vpop.permute.xlu1 %3412  ;;  %v11858_v12 = vsel %vm1130_vm11, %v14653_v4, %v4992_v0  ;;  %v4242_v27 = vmul.f32 %v14643_v58, %v14441_v59  ;;  %v14655_v43 = vrot.slane %v11153_v31, 2  ;;  %v14656_v21 = vrot.slane %v11184_v45, 2 }
 0x48b   : > { %v11863_v34 = vsel %vm1130_vm11, %v14654_v7, %v5029_v32  ;;  %4251 = vrot.lane.b32.xlu0 %v4241_v11, %s6047_s27  ;;  %v5140_v32 = vrot.slane %v5127_v41, 2  ;;  %v5164_v46 = vmul.f32 %v11111_v42, %v14603_v49  ;;  %v5201_v5 = vmul.f32 %v11141_v25, %v14603_v49 }
 0x48c   : > { %v11872_v55 = vsel %vm1130_vm11, %v14655_v43, %v5066_v20  ;;  %v11877_v0 = vsel %vm1130_vm11, %v14656_v21, %v5103_v28  ;;  %3189 = vrot.lane.b32.xlu1 %v3178_v1, %s6048_s19  ;;  %v5238_v31 = vmul.f32 %v11317_v29, %v14603_v49  ;;  %v3348_v45 = vadd.f32 %v11739_v39, %v11224_v36 }
 0x48d   : > { %v3385_v58 = vadd.f32 %v3374_v50, %v11267_v3  ;;  %v4267_v11 = vmul.f32 %v14657_v30, %v14228_v2  ;;  %v14658_v28 = vrot.slane %v11198_v17, 2  ;;  %v5177_v25 = vrot.slane %v5164_v46, 2 }
 0x48e   : > { %v3485_v20 = vpop.permute.xlu0 %3484  ;;  %v11892_v1 = vpop.permute.xlu1 %3449  ;;  %v5214_v40 = vrot.slane %v5201_v5, 2  ;;  %v5251_v4 = vrot.slane %v5238_v31, 2  ;;  %v3349_v29 = vadd.f32 %v11780_v6, %v11270_v51  ;;  %v4451_v3 = vmul.f32 %v14530_v16, %v14603_v49  ;;  %v14661_v6 = vld [vmem:[#allocation45_spill] sm:$0xff] }
 0x48f   : > { %v11897_v42 = vsel %vm1130_vm11, %v14658_v28, %v5140_v32  ;;  %v3496_v36 = vadd.f32 %v3485_v20, %v3348_v45  ;;  %v4480_v50 = vmul.f32 %v14531_v57, %v14603_v49  ;;  %4277 = vrot.lane.b32.xlu0 %v4267_v11, %s6047_s27  ;;  %v14659_v17 = vrot.slane %v11235_v13, 2  ;;  %v14663_v57 = vld [vmem:[#allocation111_spill] sm:$0xff]  ;;  %v14666_v11 = vld [vmem:[#allocation49_spill] sm:$0xff] }
 0x490   : > { %4253 = vrot.lane.b32.xlu1 %v4242_v27, %s6047_s27  ;;  %v14660_v7 = vrot.slane %v11288_v33, 2  ;;  %v14662_v41 = vrot.slane %v14661_v6, 2  ;;  %v4464_v21 = vrot.slane %v4451_v3, 1  ;;  %v14664_v13 = vld [vmem:[#allocation55_spill] sm:$0xff]  ;;  %v14665_v33 = vld [vmem:[#allocation61_spill] sm:$0xff]  ;;  %v4268_v45 = vmul.f32 %v14657_v30, %v14441_v59 }
 0x491   : > { %v11910_v39 = vsel %vm1130_vm11, %v14659_v17, %v5177_v25  ;;  %v11923_v43 = vadd.f32 %v14663_v57, %v3496_v36  ;;  %v4493_v27 = vrot.slane %v4480_v50, 1  ;;  %v4509_v32 = vmul.f32 %v14664_v13, %v14603_v49  ;;  %v14667_v28 = vld [vmem:[#allocation37_spill] sm:$0xff] }
 0x492   : > { %v11915_v51 = vsel %vm1130_vm11, %v14660_v7, %v5214_v40  ;;  %v11920_v16 = vsel %vm1130_vm11, %v14662_v41, %v5251_v4  ;;  %v3522_v46 = vpop.permute.xlu0 %3521  ;;  %v3487_v5 = vpop.permute.xlu1 %3486  ;;  %v4293_v31 = vmul.f32 %v14665_v33, %v14228_v2  ;;  %v4319_v20 = vmul.f32 %v14666_v11, %v14228_v2  ;;  %v14671_v41 = vld [vmem:[#allocation186_spill] sm:$0xff]  ;;  %v14672_v57 = vld [vmem:[#allocation113_spill] sm:$0xff] }
 0x493   : > { %v4538_v25 = vmul.f32 %v14667_v28, %v14603_v49  ;;  %v3533_v40 = vadd.f32 %v3522_v46, %v3385_v58  ;;  %v3497_v4 = vadd.f32 %v3487_v5, %v3349_v29  ;;  %v14668_v36 = vrot.slane %v11437_v23, 1  ;;  %v14670_v29 = vld [vmem:[#allocation57_spill] sm:$0xff] }
 0x494   : > { %v14669_v50 = vrot.slane %v11441_v61, 1  ;;  %4303 = vrot.lane.b32.xlu0 %v4293_v31, %s6047_s27  ;;  %4279 = vrot.lane.b32.xlu1 %v4268_v45, %s6047_s27  ;;  %v4294_v30 = vmul.f32 %v14665_v33, %v14441_v59  ;;  %v4522_v7 = vrot.slane %v4509_v32, 1  ;;  %v4863_v23 = vmul.f32 %v14593_v24, %v14603_v49 }
 0x495   : > { %v11938_v3 = vsel %vm717_vm10, %v14668_v36, %v4464_v21  ;;  %v4551_v58 = vrot.slane %v4538_v25, 1  ;;  %v3422_v6 = vadd.f32 %v11817_v14, %v14670_v29  ;;  %v3386_v61 = vadd.f32 %v11819_v37, %v14671_v41  ;;  %v14678_v36 = vld [vmem:[#allocation180_spill] sm:$0xff] }
 0x496   : > { %v11943_v17 = vsel %vm717_vm10, %v14669_v50, %v4493_v27  ;;  %v11956_v21 = vadd.f32 %v14672_v57, %v3533_v40  ;;  %v14673_v27 = vld [vmem:[#allocation82_spill] sm:$0xff]  ;;  %v3559_v46 = vpop.permute.xlu0 %3558  ;;  %v3524_v5 = vpop.permute.xlu1 %3523  ;;  %v14674_v32 = vrot.slane %v11445_v26, 1  ;;  %v14675_v24 = vrot.slane %v11460_v63, 1  ;;  %v14677_v63 = vld [vmem:[#allocation152_spill] sm:$0xff] }
 0x497   : > { %v11959_v13 = vadd.f32 %v14673_v27, %v3497_v4  ;;  %v4876_v31 = vrot.slane %v4863_v23, 2  ;;  %v4892_v37 = vmul.f32 %v11463_v56, %v14603_v49  ;;  %v3570_v45 = vadd.f32 %v3559_v46, %v3422_v6  ;;  %v14683_v46 = vld [vmem:[#allocation105_spill] sm:$0xff] }
 0x498   : > { %v11964_v33 = vsel %vm717_vm10, %v14674_v32, %v4522_v7  ;;  %v11969_v14 = vsel %vm717_vm10, %v14675_v24, %v4551_v58  ;;  %v3534_v28 = vadd.f32 %v3524_v5, %v3386_v61  ;;  %4329 = vrot.lane.b32.xlu0 %v4319_v20, %s6047_s27  ;;  %4305 = vrot.lane.b32.xlu1 %v4294_v30, %s6047_s27  ;;  %v14676_v26 = vrot.slane %v11611_v8, 2  ;;  %v14679_v7 = vld [vmem:[#allocation84_spill] sm:$0xff]  ;;  %v14680_v58 = vld [vmem:[#allocation119_spill] sm:$0xff]  ;;  %v14681_v8 = vld [vmem:[#allocation89_spill] sm:$0xff] }
 0x499   : > { %v4905_v40 = vrot.slane %v4892_v37, 2  ;;  %v3459_v4 = vadd.f32 %v11846_v19, %v14677_v63  ;;  %v3423_v50 = vadd.f32 %v11848_v54, %v14678_v36  ;;  %v11985_v56 = vadd.f32 %v14679_v7, %v3570_v45  ;;  %v14685_v32 = vld [vmem:[#allocation132_spill] sm:$0xff]  ;;  %v14689_v36 = vld [vmem:[#allocation109_spill] sm:$0xff] }
 0x49a   : > { %v11978_v25 = vsel %vm1130_vm11, %v14676_v26, %v4876_v31  ;;  %v11988_v23 = vadd.f32 %v14680_v58, %v3534_v28  ;;  %v3596_v20 = vpop.permute.xlu0 %3595  ;;  %v3561_v30 = vpop.permute.xlu1 %3560  ;;  %v4345_v29 = vmul.f32 %v14681_v8, %v14228_v2  ;;  %v4320_v6 = vmul.f32 %v14666_v11, %v14441_v59  ;;  %v14684_v11 = vld [vmem:[#allocation85_spill] sm:$0xff]  ;;  %v14686_v28 = vld [vmem:[#allocation106_spill] sm:$0xff] }
 0x49b   : > { %v14682_v41 = vrot.slane %v11624_v9, 2  ;;  %v3607_v54 = vadd.f32 %v3596_v20, %v3459_v4  ;;  %v3571_v61 = vadd.f32 %v3561_v30, %v3423_v50  ;;  %v4921_v57 = vmul.f32 %v11618_v62, %v14603_v49  ;;  %v14690_v20 = vld [vmem:[#allocation75_spill] sm:$0xff] }
 0x49c   : > { %v4950_v27 = vmul.f32 %v11680_v38, %v14603_v49  ;;  %v3460_v5 = vadd.f32 %v11892_v1, %v14683_v46  ;;  %4355 = vrot.lane.b32.xlu0 %v4345_v29, %s6048_s19  ;;  %4331 = vrot.lane.b32.xlu1 %v4320_v6, %s6047_s27  ;;  %v4371_v38 = vmul.f32 %v14686_v28, %v14228_v2  ;;  %v14687_v26 = vrot.slane %v11669_v35, 2  ;;  %v14691_v29 = vld [vmem:[#allocation160_spill] sm:$0xff]  ;;  %v14692_v46 = vld [vmem:[#allocation135_spill] sm:$0xff] }
 0x49d   : > { %v11997_v19 = vsel %vm1130_vm11, %v14682_v41, %v4905_v40  ;;  %v12008_v9 = vadd.f32 %v14684_v11, %v3607_v54  ;;  %v12011_v24 = vadd.f32 %v14685_v32, %v3571_v61  ;;  %v4934_v31 = vrot.slane %v4921_v57, 2  ;;  %v14694_v11 = vld [vmem:[#allocation171_spill] sm:$0xff] }
 0x49e   : > { %v4963_v37 = vrot.slane %v4950_v27, 2  ;;  %v3749_v45 = vpop.permute.xlu0 %3748  ;;  %v3598_v62 = vpop.permute.xlu1 %3597  ;;  %v4346_v49 = vmul.f32 %v14681_v8, %v14441_v59  ;;  %v14688_v63 = vrot.slane %v11715_v60, 2  ;;  %v4397_v35 = vmul.f32 %v14690_v20, %v14228_v2 }
 0x49f   : > { %v3608_v1 = vadd.f32 %v3598_v62, %v3460_v5  ;;  %v12020_v40 = vsel %vm1130_vm11, %v14687_v26, %v4934_v31  ;;  %v4372_v30 = vmul.f32 %v14686_v28, %v14441_v59  ;;  %v4423_v6 = vmul.f32 %v14691_v29, %v14228_v2  ;;  %v14696_v28 = vld [vmem:[#allocation139_spill] sm:$0xff] }
 0x4a0   : > { %v12025_v4 = vsel %vm1130_vm11, %v14688_v63, %v4963_v37  ;;  %4381 = vrot.lane.b32.xlu0 %v4371_v38, %s6048_s19  ;;  %4357 = vrot.lane.b32.xlu1 %v4346_v49, %s6048_s19  ;;  %v4398_v41 = vmul.f32 %v14690_v20, %v14441_v59  ;;  %v12044_v54 = vmul.f32 %v14645_v48, %v14228_v2  ;;  %v14693_v5 = vrot.slane %v14692_v46, 1  ;;  %v14697_v63 = vld [vmem:[#allocation65_spill] sm:$0xff]  ;;  %v14699_v20 = vld [vmem:[#allocation20_spill] sm:$0xff] }
 0x4a1   : > { %v12030_v50 = vadd.f32 %v14689_v36, %v3608_v1  ;;  %v4424_v27 = vmul.f32 %v14691_v29, %v14441_v59  ;;  %v14695_v32 = vrot.slane %v14694_v11, 1  ;;  %v12055_v37 = vstv %s5591_s4  ;;  %v14701_v29 = vld [vmem:[#allocation158_spill] sm:$0xff]  ;;  %s5966_s4 = sshll.u32 %s6049_s28, 4  ;;  %s5967_s4 = int_to_ptr.vmem [resolvable:$false] %s5966_s4 }
 0x4a2   : > { %v3786_v7 = vpop.permute.xlu0 %3785  ;;  %v3751_v58 = vpop.permute.xlu1 %3750  ;;  %v13192_v48 = vrot.slane %v12044_v54, 2  ;;  %v3760_v62 = vadd.f32 %v3749_v45, %v11923_v43  ;;  %v4199_v38 = vmul.f32 %v12055_v37, %v14696_v28  ;;  %v14698_v36 = vrot.slane %v14697_v63, 1  ;;  %v14704_v63 = vld [vmem:[#allocation193_spill] sm:$0xff] }
 0x4a3   : > { %v3333_v31 = vsel %vm717_vm10, %v14695_v32, %v14693_v5  ;;  %v12075_v45 = vstv %s5592_s30  ;;  %v14703_v32 = vld [vmem:[#allocation143_spill] sm:$0xff]  ;;  %s5968_s30 = scalar_lea.vmem %s5967_s4, 4096 }
 0x4a4   : > { %4407 = vrot.lane.b32.xlu0 %v4397_v35, %s6048_s19  ;;  %4383 = vrot.lane.b32.xlu1 %v4372_v30, %s6048_s19  ;;  %v14700_v35 = vrot.slane %v14699_v20, 1  ;;  %v4209_v5 = vmul.f32 %v12075_v45, %v14696_v28 }
 0x4a6   : > { %v3823_v60 = vpop.permute.xlu0 %3822  ;;  %v3788_v8 = vpop.permute.xlu1 %3787  ;;  %v3370_v30 = vsel %vm717_vm10, %v14700_v35, %v14698_v36 }
 0x4a8   : > { %4433 = vrot.lane.b32.xlu0 %v4423_v6, %s6048_s19  ;;  %4409 = vrot.lane.b32.xlu1 %v4398_v41, %s6048_s19  ;;  %v14702_v6 = vrot.slane %v14701_v29, 2  ;;  %v3797_v41 = vadd.f32 %v3786_v7, %v11956_v21  ;;  %v14707_v7 = vld [vmem:[#allocation94_spill] sm:$0xff]  ;;  %v3798_v29 = vadd.f32 %v3788_v8, %v11988_v23  ;;  %v14715_v23 = vld [vmem:[#allocation184_spill] sm:$0xff] }
 0x4aa   : > { %v3860_v61 = vpop.permute.xlu0 %3859  ;;  %v3825_v57 = vpop.permute.xlu1 %3824  ;;  %v4989_v43 = vsel %vm1130_vm11, %v14702_v6, %v13192_v48 }
 0x4ac   : > { %3340 = vrot.lane.b32.xlu0 %v3333_v31, %s6047_s27  ;;  %4435 = vrot.lane.b32.xlu1 %v4424_v27, %s6048_s19  ;;  %v3761_v27 = vadd.f32 %v3751_v58, %v11959_v13  ;;  %v4200_v31 = vmul.f32 %v12055_v37, %v14703_v32  ;;  %v14708_v13 = vrot.slane %v14707_v7, 1 }
 0x4ae   : > { %v3897_v49 = vpop.permute.xlu0 %3896  ;;  %v3862_v1 = vpop.permute.xlu1 %3861 }
 0x4af   : > { %v3908_v26 = vadd.f32 %v3897_v49, %v3760_v62  ;;  %v12085_v49 = vstv %s5593_s11 }
 0x4b0   : > { %3377 = vrot.lane.b32.xlu0 %v3370_v30, %s6047_s27  ;;  %4996 = vrot.lane.b32.xlu1 %v4989_v43, %s6047_s27  ;;  %v14705_v30 = vld [vmem:[#allocation63_spill] sm:$0xff] }
 0x4b1   : > { %v4203_v46 = vadd.f32 %v4199_v38, %v3908_v26  ;;  %v14706_v21 = vrot.slane %v14705_v30, 1  ;;  %v3834_v38 = vadd.f32 %v3823_v60, %v11985_v56  ;;  %v14709_v26 = vld [vmem:[#allocation154_spill] sm:$0xff]  ;;  %v14713_v30 = vld [vmem:[#allocation68_spill] sm:$0xff] }
 0x4b2   : > { %v3934_v11 = vpop.permute.xlu0 %3933  ;;  %v3899_v62 = vpop.permute.xlu1 %3898  ;;  %v14711_v56 = vld [vmem:[#allocation70_spill] sm:$0xff] }
 0x4b3   : > { %v4259_v36 = vadd.f32 %v14704_v63, %v4203_v46  ;;  %v3945_v20 = vadd.f32 %v3934_v11, %v3797_v41  ;;  %v3909_v35 = vadd.f32 %v3899_v62, %v3761_v27  ;;  %v3407_v58 = vsel %vm717_vm10, %v14708_v13, %v14706_v21  ;;  %v14710_v46 = vld [vmem:[#allocation64_spill] sm:$0xff] }
 0x4b4   : > { %3414 = vrot.lane.b32.xlu0 %v3407_v58, %s6047_s27  ;;  %3342 = vrot.lane.b32.xlu1 %v14709_v26, %s6047_s27  ;;  %v4219_v27 = vmul.f32 %v12085_v49, %v14696_v28  ;;  %v4210_v62 = vmul.f32 %v12075_v45, %v14703_v32  ;;  %v14712_v60 = vrot.slane %v14711_v56, 1  ;;  %v14714_v21 = vrot.slane %v14713_v30, 1  ;;  %v14717_v26 = vld [vmem:[#allocation175_spill] sm:$0xff] }
 0x4b5   : > { %v4213_v6 = vadd.f32 %v4209_v5, %v3945_v20  ;;  %v4204_v43 = vadd.f32 %v4200_v31, %v3909_v35  ;;  %v4363_v41 = vadd.f32 %v14710_v46, %v4259_v36  ;;  %v12109_v13 = vstv %s12063_s17  ;;  %v14716_v5 = vld [vmem:[#allocation188_spill] sm:$0xff]  ;;  %v14718_v46 = vld [vmem:[#allocation153_spill] sm:$0xff] }
 0x4b6   : > { %v3971_v11 = vpop.permute.xlu0 %3970  ;;  %v3936_v63 = vpop.permute.xlu1 %3935  ;;  %v3444_v7 = vsel %vm717_vm10, %v14714_v21, %v14712_v60  ;;  %v3871_v35 = vadd.f32 %v3860_v61, %v12008_v9  ;;  %v3835_v58 = vadd.f32 %v3825_v57, %v12011_v24  ;;  %v14719_v21 = vld [vmem:[#allocation108_spill] sm:$0xff]  ;;  %v4220_v9 = vmul.f32 %v12085_v49, %v14703_v32  ;;  %v14721_v61 = vld [vmem:[#allocation198_spill] sm:$0xff] }
 0x4b7   : > { %v4285_v8 = vadd.f32 %v14715_v23, %v4213_v6  ;;  %v4260_v31 = vadd.f32 %v14716_v5, %v4204_v43  ;;  %v3982_v36 = vadd.f32 %v3971_v11, %v3834_v38  ;;  %v3946_v20 = vadd.f32 %v3936_v63, %v3798_v29  ;;  %v14720_v6 = vld [vmem:[#allocation197_spill] sm:$0xff]  ;;  %v14723_v43 = vld [vmem:[#allocation98_spill] sm:$0xff] }
 0x4b8   : > { %3451 = vrot.lane.b32.xlu0 %v3444_v7, %s6047_s27  ;;  %3379 = vrot.lane.b32.xlu1 %v14717_v26, %s6047_s27  ;;  %v4470_v56 = vadd.f32 %v14718_v46, %v4363_v41  ;;  %v4229_v38 = vmul.f32 %v12109_v13, %v14696_v28  ;;  %v14722_v57 = vrot.slane %v14721_v61, 1  ;;  %v14724_v11 = vrot.slane %v14723_v43, 1  ;;  %v14726_v63 = vld [vmem:[#allocation90_spill] sm:$0xff]  ;;  %v14727_v28 = vld [vmem:[#allocation44_spill] sm:$0xff]  ;;  %v14729_v26 = vld [vmem:[#allocation51_spill] sm:$0xff] }
 0x4b9   : > { %v4223_v60 = vadd.f32 %v4219_v27, %v3982_v36  ;;  %v4214_v30 = vadd.f32 %v4210_v62, %v3946_v20  ;;  %v4389_v48 = vadd.f32 %v14719_v21, %v4285_v8  ;;  %v4364_v23 = vadd.f32 %v14720_v6, %v4260_v31  ;;  %v14725_v27 = vld [vmem:[#allocation195_spill] sm:$0xff] }
 0x4ba   : > { %v4008_v29 = vpop.permute.xlu0 %4007  ;;  %v3973_v24 = vpop.permute.xlu1 %3972  ;;  %v3481_v41 = vsel %vm717_vm10, %v14724_v11, %v14722_v57  ;;  %v3872_v31 = vadd.f32 %v3862_v1, %v12030_v50  ;;  %v14728_v36 = vld [vmem:[#allocation159_spill] sm:$0xff]  ;;  %v14732_v1 = vld [vmem:[#allocation148_spill] sm:$0xff] }
 0x4bb   : > { %v4311_v62 = vadd.f32 %v14725_v27, %v4223_v60  ;;  %v4286_v7 = vadd.f32 %v14726_v63, %v4214_v30  ;;  %v4019_v8 = vadd.f32 %v4008_v29, %v3871_v35  ;;  %v3983_v5 = vadd.f32 %v3973_v24, %v3835_v58  ;;  %v14730_v61 = vld [vmem:[#allocation147_spill] sm:$0xff]  ;;  %v14731_v60 = vld [vmem:[#allocation24_spill] sm:$0xff] }
 0x4bc   : > { %3488 = vrot.lane.b32.xlu0 %v3481_v41, %s6048_s19  ;;  %3416 = vrot.lane.b32.xlu1 %v14727_v28, %s6047_s27  ;;  %v4499_v20 = vadd.f32 %v14728_v36, %v4389_v48  ;;  %v4471_v46 = vadd.f32 %v14729_v26, %v4364_v23  ;;  %v4230_v35 = vmul.f32 %v12109_v13, %v14703_v32  ;;  %v14733_v29 = vld [vmem:[#allocation187_spill] sm:$0xff]  ;;  %v14734_v41 = vld [vmem:[#allocation60_spill] sm:$0xff]  ;;  %v14742_v36 = vld [vmem:[#allocation17_spill] sm:$0xff] }
 0x4bd   : > { %v4233_v21 = vadd.f32 %v4229_v38, %v4019_v8  ;;  %v4224_v6 = vadd.f32 %v4220_v9, %v3983_v5  ;;  %v4415_v57 = vadd.f32 %v14730_v61, %v4311_v62  ;;  %v4390_v43 = vadd.f32 %v14731_v60, %v4286_v7  ;;  %v14736_v27 = vld [vmem:[#allocation123_spill] sm:$0xff]  ;;  %v14739_v62 = vld [vmem:[#allocation156_spill] sm:$0xff]  ;;  %v14741_v5 = vld [vmem:[#allocation125_spill] sm:$0xff] }
 0x4be   : > { %v4583_v30 = vpop.permute.xlu0 %4582  ;;  %v4010_v50 = vpop.permute.xlu1 %4009  ;;  %v14735_v48 = vrot.slane %v14734_v41, 1  ;;  %v14737_v23 = vrot.slane %v14736_v27, 1  ;;  %v14738_v9 = vld [vmem:[#allocation167_spill] sm:$0xff]  ;;  %v14740_v32 = vld [vmem:[#allocation100_spill] sm:$0xff]  ;;  %v14744_v60 = vld [vmem:[#allocation41_spill] sm:$0xff] }
 0x4bf   : > { %v4337_v58 = vadd.f32 %v14732_v1, %v4233_v21  ;;  %v4312_v24 = vadd.f32 %v14733_v29, %v4224_v6  ;;  %v4020_v11 = vadd.f32 %v4010_v50, %v3872_v31  ;;  %v4528_v63 = vadd.f32 %v14739_v62, %v4415_v57  ;;  %v14743_v6 = vld [vmem:[#allocation170_spill] sm:$0xff]  ;;  %v14749_v57 = vld [vmem:[#allocation176_spill] sm:$0xff] }
 0x4c0   : > { %v3518_v38 = vsel %vm717_vm10, %v14737_v23, %v14735_v48  ;;  %3453 = vrot.lane.b32.xlu1 %v14738_v9, %s6047_s27  ;;  %v4500_v7 = vadd.f32 %v14740_v32, %v4390_v43  ;;  %v14745_v50 = vrot.slane %v14744_v60, 1  ;;  %v14746_v1 = vld [vmem:[#allocation102_spill] sm:$0xff]  ;;  %v14750_v43 = vld [vmem:[#allocation149_spill] sm:$0xff]  ;;  %v14754_v62 = vld [vmem:[#allocation76_spill] sm:$0xff] }
 0x4c1   : > { %3525 = vrot.lane.b32.xlu0 %v3518_v38, %s6048_s19  ;;  %v4234_v8 = vadd.f32 %v4230_v35, %v4020_v11  ;;  %v4441_v28 = vadd.f32 %v14741_v5, %v4337_v58  ;;  %v4416_v31 = vadd.f32 %v14742_v36, %v4312_v24  ;;  %v14747_v29 = vrot.slane %v14746_v1, 1  ;;  %v14748_v48 = vld [vmem:[#allocation162_spill] sm:$0xff]  ;;  %v14751_v58 = vld [vmem:[#allocation87_spill] sm:$0xff]  ;;  %v14756_v5 = vld [vmem:[#allocation96_spill] sm:$0xff] }
 0x4c2   : > { %v4620_v26 = vpop.permute.xlu0 %4619  ;;  %v4585_v21 = vpop.permute.xlu1 %4584  ;;  %v14752_v38 = vld [vmem:[#allocation42_spill] sm:$0xff]  ;;  %v14755_v32 = vrot.slane %v14754_v62, 1  ;;  %v4594_v62 = vadd.f32 %v4583_v30, %v4470_v56  ;;  %v14772_v56 = vld [vmem:[#allocation164_spill] sm:$0xff] }
 0x4c3   : > { %v4338_v61 = vadd.f32 %v14743_v6, %v4234_v8  ;;  %v3555_v41 = vsel %vm717_vm10, %v14747_v29, %v14745_v50  ;;  %v4557_v27 = vadd.f32 %v14748_v48, %v4441_v28  ;;  %v4529_v35 = vadd.f32 %v14750_v43, %v4416_v31  ;;  %v14757_v28 = vld [vmem:[#allocation72_spill] sm:$0xff]  ;;  %v14763_v43 = vld [vmem:[#allocation53_spill] sm:$0xff] }
 0x4c4   : > { %3490 = vrot.lane.b32.xlu1 %v14749_v57, %s6048_s19  ;;  %v14753_v9 = vrot.slane %v14752_v38, 1  ;;  %v14758_v31 = vld [vmem:[#allocation144_spill] sm:$0xff]  ;;  %v4631_v30 = vadd.f32 %v4620_v26, %v4499_v20 }
 0x4c5   : > { %3562 = vrot.lane.b32.xlu0 %v3555_v41, %s6048_s19  ;;  %v4442_v24 = vadd.f32 %v14751_v58, %v4338_v61  ;;  %v14759_v50 = vrot.slane %v14758_v31, 2  ;;  %v14760_v61 = vld [vmem:[#allocation122_spill] sm:$0xff]  ;;  %v14762_v41 = vld [vmem:[#allocation73_spill] sm:$0xff]  ;;  %v14764_v58 = vrot.slane %v14763_v43, 2 }
 0x4c6   : > { %v4657_v11 = vpop.permute.xlu0 %4656  ;;  %v4622_v23 = vpop.permute.xlu1 %4621  ;;  %v3592_v8 = vsel %vm717_vm10, %v14755_v32, %v14753_v9  ;;  %v14761_v1 = vrot.slane %v14760_v61, 2  ;;  %v14767_v32 = vld [vmem:[#allocation127_spill] sm:$0xff]  ;;  %v14768_v61 = vld [vmem:[#allocation134_spill] sm:$0xff] }
 0x4c7   : > { %v4558_v36 = vadd.f32 %v14756_v5, %v4442_v24  ;;  %v14765_v24 = vld [vmem:[#allocation114_spill] sm:$0xff]  ;;  %v4632_v20 = vadd.f32 %v4622_v23, %v4500_v7 }
 0x4c8   : > { %3527 = vrot.lane.b32.xlu1 %v14757_v28, %s6048_s19  ;;  %v3745_v29 = vsel %vm1130_vm11, %v14761_v1, %v14759_v50  ;;  %v14766_v38 = vrot.slane %v14765_v24, 2  ;;  %v14769_v1 = vrot.slane %v14768_v61, 2 }
 0x4c9   : > { %3599 = vrot.lane.b32.xlu0 %v3592_v8, %s6048_s19  ;;  %v4595_v8 = vadd.f32 %v4585_v21, %v4471_v46 }
 0x4ca   : > { %v4694_v6 = vpop.permute.xlu0 %4693  ;;  %v4659_v60 = vpop.permute.xlu1 %4658  ;;  %v3782_v9 = vsel %vm1130_vm11, %v14766_v38, %v14764_v58  ;;  %v14773_v58 = vld [vmem:[#allocation140_spill] sm:$0xff] }
 0x4cc   : > { %3564 = vrot.lane.b32.xlu1 %v14762_v41, %s6048_s19 }
 0x4cd   : > { %3752 = vrot.lane.b32.xlu0 %v3745_v29, %s6047_s27  ;;  %v14770_v29 = vld [vmem:[#allocation116_spill] sm:$0xff] }
 0x4ce   : > { %v4731_v48 = vpop.permute.xlu0 %4730  ;;  %v4696_v57 = vpop.permute.xlu1 %4695  ;;  %v14771_v41 = vrot.slane %v14770_v29, 2  ;;  %v4668_v29 = vadd.f32 %v4657_v11, %v4528_v63  ;;  %v14786_v63 = vld [vmem:[#allocation33_spill] sm:$0xff] }
 0x4cf   : > { %v4742_v5 = vadd.f32 %v4731_v48, %v4594_v62  ;;  %v14774_v48 = vld [vmem:[#allocation80_spill] sm:$0xff]  ;;  %v14775_v62 = vld [vmem:[#allocation130_spill] sm:$0xff]  ;;  %v14787_v11 = vrot.slane %v14786_v63, 2  ;;  %v14798_v63 = vld [vmem:[#allocation21_spill] sm:$0xff] }
 0x4d0   : > { %3601 = vrot.lane.b32.xlu1 %v14767_v32, %s6048_s19  ;;  %v3819_v43 = vsel %vm1130_vm11, %v14771_v41, %v14769_v1  ;;  %v14776_v32 = vrot.slane %v14775_v62, 2  ;;  %v14779_v1 = vld [vmem:[#allocation191_spill] sm:$0xff]  ;;  %v14785_v62 = vld [vmem:[#allocation182_spill] sm:$0xff] }
 0x4d1   : > { %3789 = vrot.lane.b32.xlu0 %v3782_v9, %s6047_s27  ;;  %v12205_v38 = vadd.f32 %v14774_v48, %v4742_v5 }
 0x4d2   : > { %v4768_v28 = vpop.permute.xlu0 %4767  ;;  %v4733_v31 = vpop.permute.xlu1 %4732 }
 0x4d3   : > { %v4743_v50 = vadd.f32 %v4733_v31, %v4595_v8  ;;  %v4779_v9 = vadd.f32 %v4768_v28, %v4631_v30  ;;  %v14777_v8 = vld [vmem:[#allocation117_spill] sm:$0xff] }
 0x4d4   : > { %3754 = vrot.lane.b32.xlu1 %v14772_v56, %s6047_s27  ;;  %v14778_v31 = vrot.slane %v14777_v8, 2  ;;  %v14782_v56 = vld [vmem:[#allocation92_spill] sm:$0xff]  ;;  %v4669_v8 = vadd.f32 %v4659_v60, %v4529_v35  ;;  %v14793_v60 = vld [vmem:[#allocation190_spill] sm:$0xff] }
 0x4d5   : > { %3826 = vrot.lane.b32.xlu0 %v3819_v43, %s6047_s27  ;;  %v12202_v24 = vadd.f32 %v14773_v58, %v4743_v50  ;;  %v14780_v43 = vld [vmem:[#allocation83_spill] sm:$0xff]  ;;  %v14783_v28 = vrot.slane %v14782_v56, 2  ;;  %v14794_v56 = vrot.slane %v14793_v60, 2 }
 0x4d6   : > { %v4805_v46 = vpop.permute.xlu0 %4804  ;;  %v4770_v21 = vpop.permute.xlu1 %4769  ;;  %v3856_v61 = vsel %vm1130_vm11, %v14778_v31, %v14776_v32  ;;  %v14781_v5 = vrot.slane %v14780_v43, 2  ;;  %v14784_v58 = vld [vmem:[#allocation35_spill] sm:$0xff] }
 0x4d7   : > { %v4780_v41 = vadd.f32 %v4770_v21, %v4632_v20  ;;  %v12221_v48 = vadd.f32 %v14784_v58, %v4779_v9  ;;  %v4816_v32 = vadd.f32 %v4805_v46, %v4668_v29  ;;  %v14788_v21 = vld [vmem:[#allocation136_spill] sm:$0xff]  ;;  %v14791_v9 = vld [vmem:[#allocation194_spill] sm:$0xff] }
 0x4d8   : > { %3791 = vrot.lane.b32.xlu1 %v14779_v1, %s6047_s27  ;;  %v3893_v30 = vsel %vm1130_vm11, %v14783_v28, %v14781_v5  ;;  %v14789_v31 = vrot.slane %v14788_v21, 2  ;;  %v14790_v1 = vld [vmem:[#allocation54_spill] sm:$0xff]  ;;  %v14792_v5 = vld [vmem:[#allocation39_spill] sm:$0xff]  ;;  %v14795_v28 = vld [vmem:[#allocation121_spill] sm:$0xff] }
 0x4d9   : > { %3863 = vrot.lane.b32.xlu0 %v3856_v61, %s6047_s27  ;;  %v12232_v20 = vadd.f32 %v14790_v1, %v4780_v41  ;;  %v12238_v46 = vadd.f32 %v14792_v5, %v4816_v32  ;;  %v14797_v41 = vld [vmem:[#allocation58_spill] sm:$0xff]  ;;  %v14799_v21 = vld [vmem:[#allocation183_spill] sm:$0xff]  ;;  %v4706_v5 = vadd.f32 %v4696_v57, %v4558_v36  ;;  %v14810_v57 = vld [vmem:[#allocation133_spill] sm:$0xff] }
 0x4da   : > { %v4842_v26 = vpop.permute.xlu0 %4841  ;;  %v4807_v50 = vpop.permute.xlu1 %4806  ;;  %v3930_v61 = vsel %vm1130_vm11, %v14789_v31, %v14787_v11  ;;  %v14800_v31 = vrot.slane %v14799_v21, 2  ;;  %v14809_v36 = vld [vmem:[#allocation110_spill] sm:$0xff] }
 0x4db   : > { %v4817_v43 = vadd.f32 %v4807_v50, %v4669_v8 }
 0x4dc   : > { %3828 = vrot.lane.b32.xlu1 %v14785_v62, %s6047_s27  ;;  %v4705_v62 = vadd.f32 %v4694_v6, %v4557_v27  ;;  %v14803_v27 = vld [vmem:[#allocation165_spill] sm:$0xff] }
 0x4dd   : > { %3900 = vrot.lane.b32.xlu0 %v3893_v30, %s6048_s19  ;;  %v14796_v30 = vrot.slane %v14795_v28, 2  ;;  %v12249_v11 = vadd.f32 %v14798_v63, %v4817_v43  ;;  %v14804_v43 = vld [vmem:[#allocation77_spill] sm:$0xff] }
 0x4de   : > { %v4844_v7 = vpop.permute.xlu1 %4843  ;;  %v3006_v23 = vpop.permute.xlu0 %3005  ;;  %v4853_v50 = vadd.f32 %v4842_v26, %v4705_v62  ;;  %v14805_v26 = vld [vmem:[#allocation199_spill] sm:$0xff] }
 0x4df   : > { %v3967_v58 = vsel %vm1130_vm11, %v14796_v30, %v14794_v56  ;;  %v4854_v6 = vadd.f32 %v4844_v7, %v4706_v5  ;;  %v14806_v30 = vrot.slane %v14805_v26, 1  ;;  %v3015_v63 = vadd.f32 %v3006_v23, %v14810_v57  ;;  %v14815_v5 = vld [vmem:[#allocation99_spill] sm:$0xff]  ;;  %v14817_v26 = vld [vmem:[#allocation32_spill] sm:$0xff] }
 0x4e0   : > { %3865 = vrot.lane.b32.xlu1 %v14791_v9, %s6047_s27  ;;  %v12260_v28 = vadd.f32 %v14804_v43, %v4853_v50  ;;  %v14819_v23 = vld [vmem:[#allocation120_spill] sm:$0xff] }
 0x4e1   : > { %3937 = vrot.lane.b32.xlu0 %v3930_v61, %s6048_s19  ;;  %v14801_v61 = vld [vmem:[#allocation93_spill] sm:$0xff] }
 0x4e2   : > { %v3032_v29 = vpop.permute.xlu0 %3031  ;;  %v3008_v35 = vpop.permute.xlu1 %3007  ;;  %v14802_v1 = vrot.slane %v14801_v61, 2 }
 0x4e4   : > { %3902 = vrot.lane.b32.xlu1 %v14797_v41, %s6048_s19  ;;  %v4004_v9 = vsel %vm1130_vm11, %v14802_v1, %v14800_v31  ;;  %v14811_v31 = vld [vmem:[#allocation97_spill] sm:$0xff]  ;;  %v14813_v1 = vld [vmem:[#allocation126_spill] sm:$0xff] }
 0x4e5   : > { %3974 = vrot.lane.b32.xlu0 %v3967_v58, %s6048_s19  ;;  %v14807_v58 = vld [vmem:[#allocation95_spill] sm:$0xff]  ;;  %v12272_v61 = vadd.f32 %v14811_v31, %v4854_v6  ;;  %v14821_v31 = vld [vmem:[#allocation56_spill] sm:$0xff] }
 0x4e6   : > { %v3058_v32 = vpop.permute.xlu0 %3057  ;;  %v3034_v8 = vpop.permute.xlu1 %3033  ;;  %v14808_v62 = vrot.slane %v14807_v58, 1 }
 0x4e7   : > { %14812 = vst [vmem:[#allocation67_spill] sm:$0xff] %v12272_v61 }
 0x4e8   : > { %3939 = vrot.lane.b32.xlu1 %v14803_v27, %s6048_s19  ;;  %v4579_v41 = vsel %vm717_vm10, %v14808_v62, %v14806_v30  ;;  %v14816_v27 = vrot.slane %v14815_v5, 1  ;;  %v14818_v30 = vld [vmem:[#allocation22_spill] sm:$0xff]  ;;  %v3016_v62 = vadd.f32 %v3008_v35, %v14819_v23  ;;  %v14823_v5 = vld [vmem:[#allocation101_spill] sm:$0xff] }
 0x4e9   : > { %4011 = vrot.lane.b32.xlu0 %v4004_v9, %s6048_s19  ;;  %v14814_v9 = vrot.slane %v14813_v1, 1  ;;  %v3041_v58 = vadd.f32 %v3032_v29, %v14818_v30  ;;  %v14822_v1 = vrot.slane %v14821_v31, 1  ;;  %v14826_v29 = vld [vmem:[#allocation192_spill] sm:$0xff]  ;;  %v14828_v30 = vld [vmem:[#allocation27_spill] sm:$0xff] }
 0x4ea   : > { %v3084_v60 = vpop.permute.xlu0 %3083  ;;  %v3060_v56 = vpop.permute.xlu1 %3059  ;;  %v3067_v35 = vadd.f32 %v3058_v32, %v14826_v29  ;;  %v14834_v32 = vld [vmem:[#allocation196_spill] sm:$0xff] }
 0x4eb   : > { %v4616_v43 = vsel %vm717_vm10, %v14816_v27, %v14814_v9  ;;  %v14824_v9 = vrot.slane %v14823_v5, 1  ;;  %v14836_v29 = vld [vmem:[#allocation16_spill] sm:$0xff] }
 0x4ec   : > { %3976 = vrot.lane.b32.xlu1 %v14809_v36, %s6048_s19 }
 0x4ed   : > { %4586 = vrot.lane.b32.xlu0 %v4579_v41, %s6047_s27  ;;  %v14820_v41 = vld [vmem:[#allocation168_spill] sm:$0xff]  ;;  %v4653_v27 = vsel %vm717_vm10, %v14824_v9, %v14822_v1  ;;  %v14830_v1 = vld [vmem:[#allocation142_spill] sm:$0xff] }
 0x4ee   : > { %v3110_v21 = vpop.permute.xlu0 %3109  ;;  %v3086_v7 = vpop.permute.xlu1 %3085  ;;  %v14831_v5 = vrot.slane %v14830_v1, 1  ;;  %v14832_v9 = vld [vmem:[#allocation46_spill] sm:$0xff] }
 0x4ef   : > { %v3119_v50 = vadd.f32 %v3110_v21, %v3015_v63 }
 0x4f0   : > { %4013 = vrot.lane.b32.xlu1 %v14817_v26, %s6048_s19  ;;  %v14827_v26 = vld [vmem:[#allocation40_spill] sm:$0xff] }
 0x4f1   : > { %4623 = vrot.lane.b32.xlu0 %v4616_v43, %s6047_s27  ;;  %v12285_v36 = vadd.f32 %v14820_v41, %v3119_v50  ;;  %v14825_v43 = vld [vmem:[#allocation19_spill] sm:$0xff]  ;;  %v3042_v50 = vadd.f32 %v3034_v8, %v14827_v26  ;;  %v14835_v8 = vld [vmem:[#allocation52_spill] sm:$0xff]  ;;  %v14837_v26 = vld [vmem:[#allocation18_spill] sm:$0xff] }
 0x4f2   : > { %v3136_v6 = vpop.permute.xlu0 %3135  ;;  %v3112_v57 = vpop.permute.xlu1 %3111 }
 0x4f3   : > { %v3145_v63 = vadd.f32 %v3136_v6, %v3041_v58  ;;  %v3120_v21 = vadd.f32 %v3112_v57, %v3016_v62  ;;  %v14829_v58 = vld [vmem:[#allocation137_spill] sm:$0xff] }
 0x4f4   : > { %4588 = vrot.lane.b32.xlu1 %v14825_v43, %s6047_s27 }
 0x4f5   : > { %4660 = vrot.lane.b32.xlu0 %v4653_v27, %s6047_s27  ;;  %v12298_v23 = vadd.f32 %v14828_v30, %v3145_v63  ;;  %v12301_v62 = vadd.f32 %v14829_v58, %v3120_v21  ;;  %v14833_v27 = vrot.slane %v14832_v9, 1  ;;  %v3093_v63 = vadd.f32 %v3084_v60, %v14835_v8  ;;  %v14843_v60 = vld [vmem:[#allocation48_spill] sm:$0xff]  ;;  %v14845_v8 = vld [vmem:[#allocation15_spill] sm:$0xff] }
 0x4f6   : > { %v3162_v41 = vpop.permute.xlu0 %3161  ;;  %v3138_v6 = vpop.permute.xlu1 %3137  ;;  %v3068_v21 = vadd.f32 %v3060_v56, %v14836_v29  ;;  %v14844_v56 = vld [vmem:[#allocation43_spill] sm:$0xff]  ;;  %v14846_v29 = vld [vmem:[#allocation141_spill] sm:$0xff] }
 0x4f7   : > { %v3171_v57 = vadd.f32 %v3162_v41, %v3067_v35  ;;  %v3146_v31 = vadd.f32 %v3138_v6, %v3042_v50  ;;  %v4690_v43 = vsel %vm717_vm10, %v14833_v27, %v14831_v5  ;;  %v14838_v35 = vld [vmem:[#allocation103_spill] sm:$0xff]  ;;  %v14839_v5 = vld [vmem:[#allocation124_spill] sm:$0xff] }
 0x4f8   : > { %4625 = vrot.lane.b32.xlu1 %v14834_v32, %s6047_s27  ;;  %v14840_v9 = vrot.slane %v14839_v5, 1  ;;  %v14841_v27 = vld [vmem:[#allocation23_spill] sm:$0xff] }
 0x4f9   : > { %4697 = vrot.lane.b32.xlu0 %v4690_v43, %s6047_s27  ;;  %v12314_v30 = vadd.f32 %v14837_v26, %v3171_v57  ;;  %v12317_v50 = vadd.f32 %v14838_v35, %v3146_v31  ;;  %v14842_v43 = vrot.slane %v14841_v27, 1  ;;  %v3094_v57 = vadd.f32 %v3086_v7, %v14844_v56  ;;  %v14850_v27 = vld [vmem:[#allocation47_spill] sm:$0xff] }
 0x4fa   : > { %v3188_v58 = vpop.permute.xlu0 %3187  ;;  %v3164_v41 = vpop.permute.xlu1 %3163  ;;  %v14851_v7 = vld [vmem:[#allocation151_spill] sm:$0xff] }
 0x4fb   : > { %v3197_v6 = vadd.f32 %v3188_v58, %v3093_v63  ;;  %v3172_v1 = vadd.f32 %v3164_v41, %v3068_v21  ;;  %v4727_v32 = vsel %vm717_vm10, %v14842_v43, %v14840_v9  ;;  %v14847_v58 = vrot.slane %v11759_v52, 1  ;;  %v14848_v41 = vld [vmem:[#allocation155_spill] sm:$0xff] }
 0x4fc   : > { %4662 = vrot.lane.b32.xlu1 %v14843_v60, %s6047_s27  ;;  %v14849_v5 = vrot.slane %v14848_v41, 1  ;;  %v14853_v60 = vld [vmem:[#allocation131_spill] sm:$0xff] }
 0x4fd   : > { %4734 = vrot.lane.b32.xlu0 %v4727_v32, %s6048_s19  ;;  %v3313_v31 = vadd.f32 %v14845_v8, %v3197_v6  ;;  %v12330_v26 = vadd.f32 %v14846_v29, %v3172_v1  ;;  %v14852_v32 = vrot.slane %v11772_v15, 1  ;;  %v14854_v52 = vrot.slane %v14853_v60, 1  ;;  %v14862_v60 = vld [vmem:[#allocation169_spill] sm:$0xff] }
 0x4fe   : > { %v12332_v63 = vpop.permute.xlu0 %4251  ;;  %v3190_v21 = vpop.permute.xlu1 %3189  ;;  %v4764_v9 = vsel %vm717_vm10, %v14849_v5, %v14847_v58  ;;  %v14855_v29 = vrot.slane %v11792_v18, 1 }
 0x4ff   : > { %v3198_v35 = vadd.f32 %v3190_v21, %v3094_v57  ;;  %v4801_v56 = vsel %vm717_vm10, %v14854_v52, %v14852_v32  ;;  %v14856_v21 = vld [vmem:[#allocation112_spill] sm:$0xff]  ;;  %v14863_v52 = vld [vmem:[#allocation71_spill] sm:$0xff] }
 0x500   : > { %4699 = vrot.lane.b32.xlu1 %v14850_v27, %s6047_s27  ;;  %v14860_v27 = vrot.slane %v12044_v54, 2 }
 0x501   : > { %4771 = vrot.lane.b32.xlu0 %v4764_v9, %s6048_s19  ;;  %v12343_v6 = vadd.f32 %v14851_v7, %v3198_v35  ;;  %v14857_v35 = vrot.slane %v14856_v21, 1  ;;  %v14859_v9 = vrot.slane %v11796_v22, 2 }
 0x502   : > { %v12345_v1 = vpop.permute.xlu0 %4277  ;;  %v12347_v43 = vpop.permute.xlu1 %4253 }
 0x503   : > { %v4838_v58 = vsel %vm717_vm10, %v14857_v35, %v14855_v29  ;;  %v14864_v29 = vld [vmem:[#allocation25_spill] sm:$0xff] }
 0x504   : > { %4736 = vrot.lane.b32.xlu1 %v11834_v53, %s6048_s19  ;;  %v14858_v53 = vld [vmem:[#allocation115_spill] sm:$0xff] }
 0x505   : > { %4808 = vrot.lane.b32.xlu0 %v4801_v56, %s6048_s19 }
 0x506   : > { %v12357_v57 = vpop.permute.xlu0 %4303  ;;  %v12359_v8 = vpop.permute.xlu1 %4279 }
 0x508   : > { %4773 = vrot.lane.b32.xlu1 %v11839_v44, %s6048_s19  ;;  %v4991_v44 = vsel %vm1130_vm11, %v14860_v27, %v14859_v9 }
 0x509   : > { %4845 = vrot.lane.b32.xlu0 %v4838_v58, %s6048_s19  ;;  %v14865_v58 = vld [vmem:[#allocation50_spill] sm:$0xff] }
 0x50a   : > { %v12369_v15 = vpop.permute.xlu0 %4329  ;;  %v12371_v41 = vpop.permute.xlu1 %4305 }
 0x50c   : > { %4810 = vrot.lane.b32.xlu1 %v11844_v47, %s6048_s19  ;;  %v14861_v47 = vld [vmem:[#allocation172_spill] sm:$0xff] }
 0x50d   : > { %4994 = vrot.lane.b32.xlu0 %v14858_v53, %s6047_s27  ;;  %v14866_v53 = vld [vmem:[#allocation26_spill] sm:$0xff] }
 0x50e   : > { %v12377_v18 = vpop.permute.xlu0 %4355  ;;  %v12379_v5 = vpop.permute.xlu1 %4331 }
 0x510   : > { %4847 = vrot.lane.b32.xlu1 %v11853_v10, %s6048_s19 }
 0x511   : > { %4998 = vrot.lane.b32.xlu0 %v4991_v44, %s6047_s27 }
 0x512   : > { %v12389_v7 = vpop.permute.xlu0 %4381  ;;  %v12391_v32 = vpop.permute.xlu1 %4357 }
 0x514   : > { %5000 = vrot.lane.b32.xlu1 %v11858_v12, %s6047_s27 }
 0x515   : > { %5031 = vrot.lane.b32.xlu0 %v14861_v47, %s6047_s27 }
 0x516   : > { %v12397_v22 = vpop.permute.xlu0 %4407  ;;  %v12399_v54 = vpop.permute.xlu1 %4383 }
 0x518   : > { %5033 = vrot.lane.b32.xlu1 %v14863_v52, %s6047_s27 }
 0x519   : > { %5035 = vrot.lane.b32.xlu0 %v14862_v60, %s6047_s27 }
 0x51a   : > { %v12405_v10 = vpop.permute.xlu0 %4433  ;;  %v12407_v56 = vpop.permute.xlu1 %4409 }
 0x51c   : > { %5037 = vrot.lane.b32.xlu1 %v11863_v34, %s6047_s27  ;;  %v14867_v34 = vld [vmem:[#allocation150_spill] sm:$0xff] }
 0x51d   : > { %5068 = vrot.lane.b32.xlu0 %v14864_v29, %s6047_s27 }
 0x51e   : > { %v3341_v12 = vpop.permute.xlu0 %3340  ;;  %v12413_v21 = vpop.permute.xlu1 %4435 }
 0x51f   : > { %v3350_v35 = vadd.f32 %v3341_v12, %v12285_v36  ;;  %v14868_v12 = vld [vmem:[#allocation179_spill] sm:$0xff] }
 0x520   : > { %5070 = vrot.lane.b32.xlu1 %v14866_v53, %s6047_s27 }
 0x521   : > { %5072 = vrot.lane.b32.xlu0 %v14865_v58, %s6047_s27 }
 0x522   : > { %v3378_v9 = vpop.permute.xlu0 %3377  ;;  %v4997_v27 = vpop.permute.xlu1 %4996 }
 0x523   : > { %v3387_v44 = vadd.f32 %v3378_v9, %v12298_v23  ;;  %v12422_v47 = vadd.f32 %v4997_v27, %v12202_v24  ;;  %v14869_v23 = vld [vmem:[#allocation36_spill] sm:$0xff]  ;;  %v14870_v27 = vld [vmem:[#allocation166_spill] sm:$0xff] }
 0x524   : > { %5074 = vrot.lane.b32.xlu1 %v11872_v55, %s6047_s27 }
 0x525   : > { %5105 = vrot.lane.b32.xlu0 %v14867_v34, %s6047_s27 }
 0x526   : > { %v3415_v36 = vpop.permute.xlu0 %3414  ;;  %v3343_v60 = vpop.permute.xlu1 %3342 }
 0x527   : > { %v3424_v52 = vadd.f32 %v3415_v36, %v12314_v30  ;;  %v3351_v29 = vadd.f32 %v3343_v60, %v12301_v62  ;;  %v14871_v36 = vld [vmem:[#allocation31_spill] sm:$0xff]  ;;  %v14872_v60 = vld [vmem:[#allocation29_spill] sm:$0xff] }
 0x528   : > { %5107 = vrot.lane.b32.xlu1 %v14869_v23, %s6047_s27 }
 0x529   : > { %5109 = vrot.lane.b32.xlu0 %v14868_v12, %s6047_s27 }
 0x52a   : > { %v3452_v24 = vpop.permute.xlu0 %3451  ;;  %v3380_v58 = vpop.permute.xlu1 %3379 }
 0x52b   : > { %v3461_v53 = vadd.f32 %v3452_v24, %v3313_v31  ;;  %v3388_v9 = vadd.f32 %v3380_v58, %v12317_v50  ;;  %v14873_v31 = vld [vmem:[#allocation81_spill] sm:$0xff] }
 0x52c   : > { %5111 = vrot.lane.b32.xlu1 %v11877_v0, %s6047_s27  ;;  %v14874_v0 = vld [vmem:[#allocation30_spill] sm:$0xff]  ;;  %s5269_s27 = sld [smem:[#allocation7]] }
 0x52d   : > { %5142 = vrot.lane.b32.xlu0 %v14870_v27, %s6048_s19 }
 0x52e   : > { %v3489_v55 = vpop.permute.xlu0 %3488  ;;  %v3417_v30 = vpop.permute.xlu1 %3416 }
 0x52f   : > { %v3498_v62 = vadd.f32 %v3489_v55, %v3350_v35  ;;  %v3425_v34 = vadd.f32 %v3417_v30, %v12330_v26  ;;  %v14875_v26 = vld [vmem:[#allocation66_spill] sm:$0xff] }
 0x530   : > { %5144 = vrot.lane.b32.xlu1 %v14872_v60, %s6048_s19  ;;  %v14876_v60 = vld [vmem:[#allocation163_spill] sm:$0xff] }
 0x531   : > { %5146 = vrot.lane.b32.xlu0 %v14871_v36, %s6048_s19  ;;  %v3638_v12 = vadd.f32 %v14873_v31, %v3498_v62  ;;  %v14877_v62 = vld [vmem:[#allocation185_spill] sm:$0xff]  ;;  %v14879_v31 = vld [vmem:[#allocation174_spill] sm:$0xff] }
 0x532   : > { %v3454_v23 = vpop.permute.xlu1 %3453 }
 0x533   : > { %v3526_v50 = vpop.permute.xlu0 %3525  ;;  %v3462_v58 = vadd.f32 %v3454_v23, %v12343_v6 }
 0x534   : > { %v3535_v24 = vadd.f32 %v3526_v50, %v3387_v44  ;;  %5148 = vrot.lane.b32.xlu1 %v11897_v42, %s6048_s19  ;;  %v14878_v44 = vld [vmem:[#allocation88_spill] sm:$0xff] }
 0x535   : > { %5179 = vrot.lane.b32.xlu0 %v14874_v0, %s6048_s19 }
 0x536   : > { %v3667_v35 = vadd.f32 %v14875_v26, %v3535_v24  ;;  %v3491_v55 = vpop.permute.xlu1 %3490  ;;  %v14880_v24 = vld [vmem:[#allocation146_spill] sm:$0xff] }
 0x537   : > { %v3563_v27 = vpop.permute.xlu0 %3562  ;;  %v3499_v36 = vadd.f32 %v3491_v55, %v3351_v29  ;;  %v14882_v26 = vld [vmem:[#allocation14_spill] sm:$0xff] }
 0x538   : > { %v3572_v30 = vadd.f32 %v3563_v27, %v3424_v52  ;;  %5181 = vrot.lane.b32.xlu1 %v14877_v62, %s6048_s19  ;;  %v14881_v52 = vld [vmem:[#allocation79_spill] sm:$0xff] }
 0x539   : > { %5183 = vrot.lane.b32.xlu0 %v14876_v60, %s6048_s19  ;;  %v3639_v50 = vadd.f32 %v14879_v31, %v3499_v36  ;;  %v14883_v36 = vld [vmem:[#allocation62_spill] sm:$0xff] }
 0x53a   : > { %v3696_v6 = vadd.f32 %v14878_v44, %v3572_v30  ;;  %v3528_v0 = vpop.permute.xlu1 %3527 }
 0x53b   : > { %v3600_v23 = vpop.permute.xlu0 %3599  ;;  %v3536_v42 = vadd.f32 %v3528_v0, %v3388_v9  ;;  %v14885_v9 = vld [vmem:[#allocation118_spill] sm:$0xff] }
 0x53c   : > { %v3609_v61 = vadd.f32 %v3600_v23, %v3461_v53  ;;  %5185 = vrot.lane.b32.xlu1 %v11910_v39, %s6048_s19  ;;  %v14884_v53 = vld [vmem:[#allocation86_spill] sm:$0xff] }
 0x53d   : > { %5216 = vrot.lane.b32.xlu0 %v14880_v24, %s6048_s19  ;;  %v3668_v27 = vadd.f32 %v14882_v26, %v3536_v42 }
 0x53e   : > { %v3725_v29 = vadd.f32 %v14881_v52, %v3609_v61  ;;  %v3565_v60 = vpop.permute.xlu1 %3564  ;;  %v14886_v61 = vld [vmem:[#allocation181_spill] sm:$0xff] }
 0x53f   : > { %v3753_v55 = vpop.permute.xlu0 %3752  ;;  %v3573_v30 = vadd.f32 %v3565_v60, %v3425_v34  ;;  %v14889_v60 = vld [vmem:[#allocation34_spill] sm:$0xff] }
 0x540   : > { %v3762_v62 = vadd.f32 %v3753_v55, %v3638_v12  ;;  %5218 = vrot.lane.b32.xlu1 %v14884_v53, %s6048_s19  ;;  %v14887_v12 = vld [vmem:[#allocation138_spill] sm:$0xff]  ;;  %v14888_v55 = vld [vmem:[#allocation129_spill] sm:$0xff] }
 0x541   : > { %5220 = vrot.lane.b32.xlu0 %v14883_v36, %s6048_s19  ;;  %v3697_v44 = vadd.f32 %v14885_v9, %v3573_v30  ;;  %v4201_v9 = vmul.f32 %v12055_v37, %v14228_v2 }
 0x542   : > { %v3602_v23 = vpop.permute.xlu1 %3601 }
 0x543   : > { %v3790_v31 = vpop.permute.xlu0 %3789  ;;  %v3610_v39 = vadd.f32 %v3602_v23, %v3462_v58 }
 0x544   : > { %v3799_v0 = vadd.f32 %v3790_v31, %v3667_v35  ;;  %5222 = vrot.lane.b32.xlu1 %v11915_v51, %s6048_s19 }
 0x545   : > { %5253 = vrot.lane.b32.xlu0 %v14886_v61, %s6048_s19  ;;  %v3726_v34 = vadd.f32 %v14887_v12, %v3610_v39  ;;  %v4211_v12 = vmul.f32 %v12075_v45, %v14228_v2 }
 0x546   : > { %v3755_v24 = vpop.permute.xlu1 %3754 }
 0x547   : > { %v3827_v42 = vpop.permute.xlu0 %3826  ;;  %v3763_v26 = vadd.f32 %v3755_v24, %v3639_v50  ;;  %v4221_v24 = vmul.f32 %v12085_v49, %v14228_v2 }
 0x548   : > { %v3836_v52 = vadd.f32 %v3827_v42, %v3696_v6  ;;  %5255 = vrot.lane.b32.xlu1 %v14889_v60, %s6048_s19 }
 0x549   : > { %5257 = vrot.lane.b32.xlu0 %v14888_v55, %s6048_s19 }
 0x54a   : > { %v3792_v58 = vpop.permute.xlu1 %3791 }
 0x54b   : > { %v3864_v35 = vpop.permute.xlu0 %3863  ;;  %v3800_v36 = vadd.f32 %v3792_v58, %v3668_v27  ;;  %v14890_v58 = vld [vmem:[#allocation74_spill] sm:$0xff] }
 0x54c   : > { %v3873_v30 = vadd.f32 %v3864_v35, %v3725_v29  ;;  %5259 = vrot.lane.b32.xlu1 %v11920_v16, %s6048_s19  ;;  %s5434_s19 = sshll.u32 %s6210_s5, 7 }
 0x54d   : > { %s12549_s20 = scalar_lea.vmem [#allocation9], %s5434_s19 }
 0x54e   : > { %v3829_v53 = vpop.permute.xlu1 %3828  ;;  %s5327_s8 = sshll.u32 %s12549_s20, 4  ;;  %s12605_s8 = int_to_ptr.vmem [resolvable:$true] %s5327_s8 }
 0x54f   : > { %v3901_v51 = vpop.permute.xlu0 %3900  ;;  %v3837_v50 = vadd.f32 %v3829_v53, %v3697_v44  ;;  %s5962_s7 = scalar_lea.vmem %s12605_s8, 2048  ;;  %p5969_p4 = scmp.lt.s32.totalorder %s12605_s8, %s5967_s4 }
 0x550   : > { %v3910_v6 = vadd.f32 %v3901_v51, %v3762_v62  ;;  %v4202_v62 = vmul.f32 %v12055_v37, %v14441_v59  ;;  %p5963_p5 = scmp.ne.s32.totalorder %s12605_s8, %s5962_s7  ;;  %p5970_p12 = scmp.lt.s32.totalorder %s5968_s30, %s5962_s7 }
 0x552   : > { %v4205_v31 = vadd.f32 %v4201_v9, %v3910_v6  ;;  %v3866_v39 = vpop.permute.xlu1 %3865  ;;  %v4212_v6 = vmul.f32 %v12075_v45, %v14441_v59  ;;  %p5964_p8 = pnand %p5963_p5, %p14899_p2  ;;  %p5971_p0 = por %p5970_p12, %p5969_p4 }
 0x553   : > { %v3938_v23 = vpop.permute.xlu0 %3937  ;;  %v3874_v27 = vadd.f32 %v3866_v39, %v3726_v34 }
 0x554   : > { %v4261_v61 = vadd.f32 %v12332_v63, %v4205_v31  ;;  %v3947_v29 = vadd.f32 %v3938_v23, %v3799_v0  ;;  %v14891_v23 = vld [vmem:[#allocation78_spill] sm:$0xff]  ;;  %p5965_p10 = pneg %p5964_p8 }
 0x556   : > { %v4215_v42 = vadd.f32 %v4211_v12, %v3947_v29  ;;  %v4365_v16 = vadd.f32 %v12377_v18, %v4261_v61  ;;  %v3903_v44 = vpop.permute.xlu1 %3902  ;;  %v4231_v18 = vmul.f32 %v12109_v13, %v14228_v2  ;;  %p5972_p7 = pnand %p5971_p0, %p5965_p10 }
 0x557   : > { %v3975_v55 = vpop.permute.xlu0 %3974  ;;  %v3911_v63 = vadd.f32 %v3903_v44, %v3763_v26  ;;  %v4232_v44 = vmul.f32 %v12109_v13, %v14441_v59 }
 0x558   : > { %v4287_v60 = vadd.f32 %v12345_v1, %v4215_v42  ;;  %v3984_v35 = vadd.f32 %v3975_v55, %v3836_v52  ;;  %v4472_v51 = vadd.f32 %v14890_v58, %v4365_v16 }
 0x559   : > { %v4206_v0 = vadd.f32 %v4202_v62, %v3911_v63 }
 0x55a   : > { %v4225_v53 = vadd.f32 %v4221_v24, %v3984_v35  ;;  %v4391_v34 = vadd.f32 %v12389_v7, %v4287_v60  ;;  %v3940_v31 = vpop.permute.xlu1 %3939 }
 0x55b   : > { %v4012_v9 = vpop.permute.xlu0 %4011  ;;  %v4262_v1 = vadd.f32 %v12347_v43, %v4206_v0  ;;  %v3948_v26 = vadd.f32 %v3940_v31, %v3800_v36 }
 0x55c   : > { %v4313_v37 = vadd.f32 %v12357_v57, %v4225_v53  ;;  %v4021_v52 = vadd.f32 %v4012_v9, %v3873_v30  ;;  %v4501_v39 = vadd.f32 %v14891_v23, %v4391_v34  ;;  %v4222_v57 = vmul.f32 %v12085_v49, %v14441_v59  ;;  %v14892_v30 = vld [vmem:[#allocation157_spill] sm:$0xff] }
 0x55d   : > { %v4216_v12 = vadd.f32 %v4212_v6, %v3948_v26  ;;  %v4366_v29 = vadd.f32 %v12391_v32, %v4262_v1  ;;  %v14893_v49 = vld [vmem:[#allocation69_spill] sm:$0xff] }
 0x55e   : > { %v4235_v61 = vadd.f32 %v4231_v18, %v4021_v52  ;;  %v4417_v7 = vadd.f32 %v12397_v22, %v4313_v37  ;;  %v3977_v42 = vpop.permute.xlu1 %3976 }
 0x55f   : > { %v4587_v2 = vpop.permute.xlu0 %4586  ;;  %v4288_v45 = vadd.f32 %v12359_v8, %v4216_v12  ;;  %v3985_v43 = vadd.f32 %v3977_v42, %v3837_v50  ;;  %v4473_v24 = vadd.f32 %v11938_v3, %v4366_v29 }
 0x560   : > { %v4339_v16 = vadd.f32 %v12369_v15, %v4235_v61  ;;  %v4530_v36 = vadd.f32 %v14892_v30, %v4417_v7  ;;  %v4596_v9 = vadd.f32 %v4587_v2, %v4472_v51  ;;  %v14896_v2 = vld [vmem:[#allocation28_spill] sm:$0xff] }
 0x561   : > { %v4226_v55 = vadd.f32 %v4222_v57, %v3985_v43  ;;  %v4392_v22 = vadd.f32 %v12399_v54, %v4288_v45 }
 0x562   : > { %v4443_v62 = vadd.f32 %v12405_v10, %v4339_v16  ;;  %v4014_v15 = vpop.permute.xlu1 %4013 }
 0x563   : > { %v4624_v32 = vpop.permute.xlu0 %4623  ;;  %v4314_v8 = vadd.f32 %v12371_v41, %v4226_v55  ;;  %v4022_v35 = vadd.f32 %v4014_v15, %v3874_v27  ;;  %v4502_v63 = vadd.f32 %v11943_v17, %v4392_v22 }
 0x564   : > { %v4633_v60 = vadd.f32 %v4624_v32, %v4501_v39  ;;  %v4559_v50 = vadd.f32 %v14893_v49, %v4443_v62 }
 0x565   : > { %v4236_v58 = vadd.f32 %v4232_v44, %v4022_v35  ;;  %v4418_v3 = vadd.f32 %v12407_v56, %v4314_v8  ;;  %v14894_v56 = vld [vmem:[#allocation128_spill] sm:$0xff] }
 0x566   : > { %v4589_v10 = vpop.permute.xlu1 %4588 }
 0x567   : > { %v4661_v53 = vpop.permute.xlu0 %4660  ;;  %v4340_v54 = vadd.f32 %v12379_v5, %v4236_v58  ;;  %v4531_v34 = vadd.f32 %v11964_v33, %v4418_v3  ;;  %v4597_v39 = vadd.f32 %v4589_v10, %v4473_v24  ;;  %v14895_v33 = vld [vmem:[#allocation161_spill] sm:$0xff] }
 0x568   : > { %v4670_v0 = vadd.f32 %v4661_v53, %v4530_v36  ;;  %v14897_v36 = vld [vmem:[#allocation173_spill] sm:$0xff] }
 0x569   : > { %v4444_v59 = vadd.f32 %v12413_v21, %v4340_v54 }
 0x56a   : > { %v4626_v41 = vpop.permute.xlu1 %4625 }
 0x56b   : > { %v4698_v13 = vpop.permute.xlu0 %4697  ;;  %v4560_v27 = vadd.f32 %v11969_v14, %v4444_v59  ;;  %v4634_v14 = vadd.f32 %v4626_v41, %v4502_v63 }
 0x56c   : > { %v4707_v18 = vadd.f32 %v4698_v13, %v4559_v50 }
 0x56e   : > { %v4663_v17 = vpop.permute.xlu1 %4662 }
 0x56f   : > { %v4735_v6 = vpop.permute.xlu0 %4734  ;;  %v4671_v37 = vadd.f32 %v4663_v17, %v4531_v34 }
 0x570   : > { %v4744_v31 = vadd.f32 %v4735_v6, %v4596_v9 }
 0x572   : > { %v4884_v1 = vadd.f32 %v14894_v56, %v4744_v31  ;;  %v4700_v26 = vpop.permute.xlu1 %4699 }
 0x573   : > { %v4772_v52 = vpop.permute.xlu0 %4771  ;;  %v4708_v23 = vadd.f32 %v4700_v26, %v4560_v27 }
 0x574   : > { %v4781_v5 = vadd.f32 %v4772_v52, %v4633_v60 }
 0x576   : > { %v12521_v61 = vadd.f32 %v14895_v33, %v4781_v5  ;;  %v4737_v12 = vpop.permute.xlu1 %4736 }
 0x577   : > { %v4809_v21 = vpop.permute.xlu0 %4808  ;;  %v4745_v29 = vadd.f32 %v4737_v12, %v4597_v39 }
 0x578   : > { %v4818_v7 = vadd.f32 %v4809_v21, %v4670_v0  ;;  %v5270_v0 = vstv %s5269_s27 }
 0x579   : > { %v4885_v51 = vadd.f32 %v11978_v25, %v4745_v29 }
 0x57a   : > { %v12525_v42 = vadd.f32 %v14896_v2, %v4818_v7  ;;  %v4774_v45 = vpop.permute.xlu1 %4773 }
 0x57b   : > { %v4846_v16 = vpop.permute.xlu0 %4845  ;;  %v4782_v43 = vadd.f32 %v4774_v45, %v4634_v14 }
 0x57c   : > { %v4855_v57 = vadd.f32 %v4846_v16, %v4707_v18 }
 0x57d   : > { %v4914_v30 = vadd.f32 %v11997_v19, %v4782_v43 }
 0x57e   : > { %v12529_v24 = vadd.f32 %v14897_v36, %v4855_v57  ;;  %v4811_v62 = vpop.permute.xlu1 %4810 }
 0x57f   : > { %v4995_v55 = vpop.permute.xlu0 %4994  ;;  %v4819_v22 = vadd.f32 %v4811_v62, %v4671_v37 }
 0x581   : > { %v12532_v32 = vadd.f32 %v12020_v40, %v4819_v22 }
 0x582   : > { %v4848_v25 = vpop.permute.xlu1 %4847 }
 0x583   : > { %v4999_v44 = vpop.permute.xlu0 %4998  ;;  %v4856_v15 = vadd.f32 %v4848_v25, %v4708_v23 }
 0x584   : > { %v5008_v41 = vadd.f32 %v4999_v44, %v4884_v1  ;;  %v5281_v1 = vstv %s5627_s10 }
 0x585   : > { %v12535_v8 = vadd.f32 %v12025_v4, %v4856_v15  ;;  %v5006_v4 = vadd.f32 %v4995_v55, %v12205_v38 }
 0x586   : > { %v5001_v35 = vpop.permute.xlu1 %5000 }
 0x587   : > { %v5032_v60 = vpop.permute.xlu0 %5031  ;;  %v5009_v31 = vadd.f32 %v5001_v35, %v4885_v51  ;;  %v5303_v35 = vstv %s5637_s29 }
 0x588   : > { %v5043_v17 = vadd.f32 %v5032_v60, %v12221_v48 }
 0x58a   : > { %v5034_v19 = vpop.permute.xlu1 %5033 }
 0x58b   : > { %v5036_v49 = vpop.permute.xlu0 %5035 }
 0x58c   : > { %v5045_v39 = vadd.f32 %v5036_v49, %v12521_v61 }
 0x58e   : > { %v5038_v63 = vpop.permute.xlu1 %5037 }
 0x58f   : > { %v5069_v50 = vpop.permute.xlu0 %5068  ;;  %v5046_v51 = vadd.f32 %v5038_v63, %v4914_v30 }
 0x590   : > { %v5080_v14 = vadd.f32 %v5069_v50, %v12238_v46 }
 0x592   : > { %v5071_v3 = vpop.permute.xlu1 %5070 }
 0x593   : > { %v5073_v58 = vpop.permute.xlu0 %5072  ;;  %v5081_v55 = vadd.f32 %v5071_v3, %v12249_v11 }
 0x594   : > { %v5082_v36 = vadd.f32 %v5073_v58, %v12525_v42  ;;  %v14898_v58 = vld [vmem:[#allocation67_spill] sm:$0xff] }
 0x596   : > { %v12539_v10 = vpop.permute.xlu1 %5074 }
 0x597   : > { %v12537_v53 = vpop.permute.xlu0 %5105  ;;  %v5083_v42 = vadd.f32 %v12539_v10, %v12532_v32 }
 0x598   : > { %v5117_v15 = vadd.f32 %v12537_v53, %v12260_v28 }
 0x59a   : > { %v12543_v54 = vpop.permute.xlu1 %5107 }
 0x59b   : > { %v12541_v40 = vpop.permute.xlu0 %5109  ;;  %v5118_v32 = vadd.f32 %v12543_v54, %v14898_v58 }
 0x59c   : > { %v5119_v28 = vadd.f32 %v12541_v40, %v12529_v24 }
 0x59e   : > { %v12547_v59 = vpop.permute.xlu1 %5111 }
 0x59f   : > { %v5143_v34 = vpop.permute.xlu0 %5142  ;;  %v5120_v24 = vadd.f32 %v12547_v59, %v12535_v8 }
 0x5a0   : > { %v5154_v13 = vadd.f32 %v5143_v34, %v5006_v4 }
 0x5a2   : > { %v5271_v18 = vadd.f32 %v5270_v0, %v5154_v13  ;;  %v5145_v9 = vpop.permute.xlu1 %5144 }
 0x5a3   : > { %v5147_v27 = vpop.permute.xlu0 %5146  ;;  %v5155_v6 = vadd.f32 %v5145_v9, %v12422_v47  ;;  %v5044_v47 = vadd.f32 %v5034_v19, %v12232_v20  ;;  %v5292_v20 = vstv %s5632_s22 }
 0x5a4   : > { %5276 = vst.msk [vmem:[%s12549_s20] sm:$0xff] %vm5275_vm0, %v5271_v18  ;;  %v5156_v38 = vadd.f32 %v5147_v27, %v5008_v41 }
 0x5a5   : > { %v5272_v56 = vadd.f32 %v5270_v0, %v5155_v6 }
 0x5a6   : > { %v5273_v37 = vadd.f32 %v5270_v0, %v5156_v38  ;;  %v5149_v26 = vpop.permute.xlu1 %5148 }
 0x5a7   : > { %v5180_v52 = vpop.permute.xlu0 %5179  ;;  %5277 = vst.msk [vmem:[%s12549_s20 + $0x8] sm:$0xff] %vm5275_vm0, %v5272_v56  ;;  %v5157_v23 = vadd.f32 %v5149_v26, %v5009_v31 }
 0x5a8   : > { %5278 = vst.msk [vmem:[%s12549_s20 + $0x10] sm:$0xff] %vm5275_vm0, %v5273_v37  ;;  %v5191_v5 = vadd.f32 %v5180_v52, %v5043_v17 }
 0x5a9   : > { %v5274_v33 = vadd.f32 %v5270_v0, %v5157_v23 }
 0x5aa   : > { %v5282_v48 = vadd.f32 %v5281_v1, %v5191_v5  ;;  %v5182_v12 = vpop.permute.xlu1 %5181 }
 0x5ab   : > { %v5184_v21 = vpop.permute.xlu0 %5183  ;;  %5279 = vst.msk [vmem:[%s12549_s20 + $0x18] sm:$0xff] %vm5275_vm0, %v5274_v33  ;;  %v5192_v29 = vadd.f32 %v5182_v12, %v5044_v47 }
 0x5ac   : > { %5628 = vst.msk [vmem:[%s12549_s20 + $0x20] sm:$0xff] %vm5275_vm0, %v5282_v48  ;;  %v5193_v7 = vadd.f32 %v5184_v21, %v5045_v39 }
 0x5ad   : > { %v5283_v61 = vadd.f32 %v5281_v1, %v5192_v29 }
 0x5ae   : > { %v5284_v2 = vadd.f32 %v5281_v1, %v5193_v7  ;;  %v5186_v45 = vpop.permute.xlu1 %5185 }
 0x5af   : > { %v5217_v16 = vpop.permute.xlu0 %5216  ;;  %5629 = vst.msk [vmem:[%s12549_s20 + $0x28] sm:$0xff] %vm5275_vm0, %v5283_v61  ;;  %v5194_v43 = vadd.f32 %v5186_v45, %v5046_v51 }
 0x5b0   : > { %5630 = vst.msk [vmem:[%s12549_s20 + $0x30] sm:$0xff] %vm5275_vm0, %v5284_v2  ;;  %v5228_v57 = vadd.f32 %v5217_v16, %v5080_v14 }
 0x5b1   : > { %v5285_v30 = vadd.f32 %v5281_v1, %v5194_v43 }
 0x5b2   : > { %v5293_v46 = vadd.f32 %v5292_v20, %v5228_v57  ;;  %v5219_v22 = vpop.permute.xlu1 %5218 }
 0x5b3   : > { %v5221_v62 = vpop.permute.xlu0 %5220  ;;  %5631 = vst.msk [vmem:[%s12549_s20 + $0x38] sm:$0xff] %vm5275_vm0, %v5285_v30  ;;  %v5229_v25 = vadd.f32 %v5219_v22, %v5081_v55 }
 0x5b4   : > { %5633 = vst.msk [vmem:[%s12549_s20 + $0x40] sm:$0xff] %vm5275_vm0, %v5293_v46  ;;  %v5230_v44 = vadd.f32 %v5221_v62, %v5082_v36 }
 0x5b5   : > { %v5294_v60 = vadd.f32 %v5292_v20, %v5229_v25 }
 0x5b6   : > { %v5295_v11 = vadd.f32 %v5292_v20, %v5230_v44  ;;  %v5223_v19 = vpop.permute.xlu1 %5222 }
 0x5b7   : > { %v5254_v49 = vpop.permute.xlu0 %5253  ;;  %5634 = vst.msk [vmem:[%s12549_s20 + $0x48] sm:$0xff] %vm5275_vm0, %v5294_v60  ;;  %v5231_v63 = vadd.f32 %v5223_v19, %v5083_v42 }
 0x5b8   : > { %5635 = vst.msk [vmem:[%s12549_s20 + $0x50] sm:$0xff] %vm5275_vm0, %v5295_v11  ;;  %v5265_v50 = vadd.f32 %v5254_v49, %v5117_v15 }
 0x5b9   : > { %v5296_v53 = vadd.f32 %v5292_v20, %v5231_v63 }
 0x5ba   : > { %v5304_v3 = vadd.f32 %v5303_v35, %v5265_v50  ;;  %v5256_v4 = vpop.permute.xlu1 %5255 }
 0x5bb   : > { %v5258_v10 = vpop.permute.xlu0 %5257  ;;  %5636 = vst.msk [vmem:[%s12549_s20 + $0x58] sm:$0xff] %vm5275_vm0, %v5296_v53  ;;  %v5266_v34 = vadd.f32 %v5256_v4, %v5118_v32 }
 0x5bc   : > { %5638 = vst.msk [vmem:[%s12549_s20 + $0x60] sm:$0xff] %vm5275_vm0, %v5304_v3  ;;  %v5267_v0 = vadd.f32 %v5258_v10, %v5119_v28 }
 0x5bd   : > { %v5305_v13 = vadd.f32 %v5303_v35, %v5266_v34 }
 0x5be   : > { %v5306_v40 = vadd.f32 %v5303_v35, %v5267_v0  ;;  %v5260_v54 = vpop.permute.xlu1 %5259 }
 0x5bf   : > { %5639 = vst.msk [vmem:[%s12549_s20 + $0x68] sm:$0xff] %vm5275_vm0, %v5305_v13  ;;  %v5268_v41 = vadd.f32 %v5260_v54, %v5120_v24 }
 0x5c0   : > { %5640 = vst.msk [vmem:[%s12549_s20 + $0x70] sm:$0xff] %vm5275_vm0, %v5306_v40 }
 0x5c1   : > { %v5307_v8 = vadd.f32 %v5303_v35, %v5268_v41 }
 0x5c3   : > { %5641 = vst.msk [vmem:[%s12549_s20 + $0x78] sm:$0xff] %vm5275_vm0, %v5307_v8 }
 0x5c4   : > { %5975 = shalt.err (!%p5972_p7)
}
 0x5c5   : > { %s5976_s11 = scalar_lea.hbm %s12603_s26, 2048  ;;  %s5980_s19 = scalar_lea.hbm %s12654_s3, 4096 }
 0x5c6   : > { %p5977_p11 = scmp.ne.s32.totalorder %s12603_s26, %s5976_s11  ;;  %p5981_p3 = scmp.lt.u32.totalorder %s12603_s26, %s12654_s3 }
 0x5c7   : > { %p5982_p9 = scmp.lt.u32.totalorder %s5980_s19, %s5976_s11  ;;  %p5984_p5 = scmp.lt.u32.totalorder %s5976_s11, %s12603_s26 }
 0x5c8   : > { %p5978_p13 = pnand %p5977_p11, %p14899_p2 }
 0x5c9   : > { %p5983_p1 = por %p5982_p9, %p5981_p3 }
 0x5ca   : > { %p5979_p6 = pneg %p5978_p13 }
 0x5cb   : > { %p5985_p8 = por %p5984_p5, %p5983_p1 }
 0x5cd   : > { %p5986_p10 = pnand %p5985_p8, %p5979_p6 }
 0x5cf   : > { %5989 = shalt.err (!%p5986_p10)
}
 0x5d0   : > { %s6050_s22 = smov 128   ;;  %s6051_s29 = smov 8  }
 0x5d1   : > { %5835 = dma.vmem_to_hbm [thread:$0]  (%p14899_p2), %s12605_s8, 2048, %s12603_s26, %s5314_s16, %s6050_s22, %s6050_s22, %s6051_s29  }
 0x5d2 PF: > { %s5342_s6 = sand.u32 1, %s6024_s12   ;;  %p14900_p4 = scmp.ne.s32.totalorder %s13196_s25, 0 }
 0x5d3   : > { %p14901_p12 = scmp.ge.s32.totalorder %s6036_s15, 2  ;;  %s5343_s9 = scalar_lea.sflag [#allocation4], %s5342_s6 }
 0x5d5   : > { %p5849_p0 = pnand %p14901_p12, %p14900_p4 }
 0x5d7   : > { %6019 = dma.done.wait (!%p5849_p0), %s5343_s9, 2048  }
 0x5d8   : > { %6021 = vsyncadd (!%p5849_p0), %s5343_s9, 4294965248  ;;  %p18_p7 = scmp.ge.s32.totalorder %s6097_s18, 4   ;;  %s14902_s12 = smov %s6028_s13 }
 0x5d9   : > { %s14903_s13 = smov %s6032_s14  ;;  %s14904_s14 = smov %s6109_s21 }
 0x5da   : > { %s14905_s15 = smov %s6097_s18  ;;  %20 = sbr.rel (!%p18_p7) target bundleno = 7 (0x7), region = 92 }
 0x5e1   :  { %5348 = vsyncpa [#allocation3], 1 }
 0x5e2   :  { %5350 = vsyncpa [#allocation3 + $0x1], 1 }
 0x5e3   :  { %5351 = vsyncpa [#allocation4], 1 }
 0x5e4   :  { %5353 = vsyncpa [#allocation4 + $0x1], 1 }
 0x5e5   :  { %5354 = vsyncpa [#allocation5], 1 }
 0x5e6   :  { %5356 = vsyncpa [#allocation5 + $0x1], 1 }
 0x5e7   :  { %5357 = vsyncpa [#allocation8], 1 }

</bundles_post_ra>
